<compile_context>
chip_gen: v6e
topology: v6e:2x2x1
jax: 0.10.0
libtpu: 0.0.40
codegen_flags: <defaults>
</compile_context>

<pallas_src>
import functools
import math

import jax
import jax.numpy as jnp
from jax.experimental import pallas as pl
from jax.experimental.pallas import tpu as pltpu

EPS = 1e-12          # the PyTorch module passes eps=EPS (1e-12) to both norms
NUM_HEADS = 8


# ------------------------------ fused kernel -------------------------------

def _fused_galr_kernel(x_ref, enc_ref, lnw_ref, lnb_ref,
                       wq_ref, wk_ref, wv_ref, bq_ref, bk_ref, bv_ref,
                       wo_ref, bo_ref, g_ref, beta_ref, o_ref,
                       *, K, S, H, Dh):
    """Whole GloballyAttentiveBlock forward for one batch sample.

    x_ref / o_ref : (1, D, K*S)   channel-first, lane-dense (token axis on lanes)
    enc_ref       : (K*S, D)      positional encoding, rows ordered (k, s)
    weights       : (D, D) transposed projection weights; biases / affine: (1, D)
    """
    D = H * Dh
    KS = K * S

    x = x_ref[0].T                                    # (KS, D) raw input rows

    # (1) LayerNorm over channels + positional encoding (residual for attention).
    mu = jnp.mean(x, axis=-1, keepdims=True)
    var = jnp.mean((x - mu) ** 2, axis=-1, keepdims=True)
    xe = ((x - mu) * jax.lax.rsqrt(var + EPS) * lnw_ref[...] + lnb_ref[...]
          + enc_ref[...])                             # (KS, D)

    # (2) Q/K/V projections (weights VMEM-resident, fetched once).
    q = jnp.dot(xe, wq_ref[...], preferred_element_type=jnp.float32) + bq_ref[...]
    k = jnp.dot(xe, wk_ref[...], preferred_element_type=jnp.float32) + bk_ref[...]
    v = jnp.dot(xe, wv_ref[...], preferred_element_type=jnp.float32) + bv_ref[...]

    # (3) Multi-head attention + fused output projection + residual.
    scale = 1.0 / math.sqrt(Dh)
    wo = wo_ref[...]                                  # (D, D) = out_proj_w.T
    y = xe + bo_ref[...]                              # residual + out-proj bias
    for h in range(H):
        sl = slice(h * Dh, (h + 1) * Dh)
        qh = (q[:, sl] * scale).reshape(K, S, Dh)     # batch K chunks, seq S
        kh = k[:, sl].reshape(K, S, Dh)
        vh = v[:, sl].reshape(K, S, Dh)
        s_ = jax.lax.dot_general(qh, kh, (((2,), (2,)), ((0,), (0,))),
                                 preferred_element_type=jnp.float32)   # (K, S, S)
        m = jnp.max(s_, axis=-1, keepdims=True)
        p = jnp.exp(s_ - m)
        # exact softmax normalization (approx reciprocal was the source of the
        # 6e-3 mismatch vs the reference)
        p = p / jnp.sum(p, axis=-1, keepdims=True)
        oh = jax.lax.dot_general(p, vh, (((2,), (1,)), ((0,), (0,))),
                                 preferred_element_type=jnp.float32)   # (K, S, Dh)
        # att @ Wo^T accumulated per head: att_h @ Wo^T[h*Dh:(h+1)*Dh, :]
        y = y + jnp.dot(oh.reshape(KS, Dh), wo[sl, :],
                        preferred_element_type=jnp.float32)

    # (4) Global layer norm (gLN: per-sample stats over all C,S,K) + final residual.
    mu_g = jnp.mean(y)
    var_g = jnp.mean((y - mu_g) ** 2)
    yn = (y - mu_g) * jax.lax.rsqrt(var_g + EPS)
    o_ref[0] = (yn * g_ref[...] + beta_ref[...] + x).T      # back to (D, KS)


# ------------------------------- JAX glue ----------------------------------

def positional_encoding(length, dimension, base=10000.0):
    pos = jnp.arange(length, dtype=jnp.float32)[:, None]
    idx = (jnp.arange(dimension // 2, dtype=jnp.float32) / dimension)[None, :]
    ang = pos / jnp.power(base, idx)
    return jnp.concatenate([jnp.sin(ang), jnp.cos(ang)], axis=1)   # (L, D)


def init_params(key, num_features):
    D = num_features
    ks = jax.random.split(key, 8)
    n = lambda k, shape, s: s * jax.random.normal(k, shape, jnp.float32)
    return {
        'ln_in_w': 1.0 + n(ks[0], (D,), 0.05),
        'ln_in_b': n(ks[1], (D,), 0.05),
        'in_proj_w': n(ks[2], (3 * D, D), 0.2),     # nn.MultiheadAttention.in_proj_weight
        'in_proj_b': n(ks[3], (3 * D,), 0.05),
        'out_proj_w': n(ks[4], (D, D), 0.2),
        'out_proj_b': n(ks[5], (D,), 0.05),
        'gln_g': 1.0 + n(ks[6], (D,), 0.05),        # gLN gamma / beta
        'gln_b': n(ks[7], (D,), 0.05),
    }


def globally_attentive_block(x_bcsk, params, num_heads=NUM_HEADS):
    B, D, S, K = x_bcsk.shape
    H = num_heads
    assert D % H == 0
    Dh = D // H
    KS = K * S

    # Channel-first, (k, s)-ordered token axis -> lane-dense (B, D, K*S) HBM blocks.
    x_cf = jnp.transpose(x_bcsk, (0, 1, 3, 2)).reshape(B, D, KS).astype(jnp.float32)

    # Positional encoding indexed by flat position s*K + k, re-ordered to (k, s) rows.
    enc = positional_encoding(S * K, D)                                # (S*K, D)
    enc_ks = enc.reshape(S, K, D).transpose(1, 0, 2).reshape(KS, D)    # (K*S, D)

    wq_t = params['in_proj_w'][:D].T
    wk_t = params['in_proj_w'][D:2 * D].T
    wv_t = params['in_proj_w'][2 * D:].T
    bq = params['in_proj_b'][:D].reshape(1, D)
    bk = params['in_proj_b'][D:2 * D].reshape(1, D)
    bv = params['in_proj_b'][2 * D:].reshape(1, D)
    wo_t = params['out_proj_w'].T
    bo = params['out_proj_b'].reshape(1, D)
    lnw = params['ln_in_w'].reshape(1, D)
    lnb = params['ln_in_b'].reshape(1, D)
    gamma = params['gln_g'].reshape(1, D)
    beta = params['gln_b'].reshape(1, D)

    kernel = functools.partial(_fused_galr_kernel, K=K, S=S, H=H, Dh=Dh)

    per_b = lambda b: (b, 0, 0)
    const2 = lambda b: (0, 0)

    out_cf = pl.pallas_call(
        kernel,
        out_shape=jax.ShapeDtypeStruct((B, D, KS), jnp.float32),
        grid=(B,),
        in_specs=[
            pl.BlockSpec((1, D, KS), per_b),    # x (channel-first)
            pl.BlockSpec((KS, D), const2),      # positional encoding (shared, no bcast)
            pl.BlockSpec((1, D), const2),       # ln_in weight
            pl.BlockSpec((1, D), const2),       # ln_in bias
            pl.BlockSpec((D, D), const2),       # Wq^T
            pl.BlockSpec((D, D), const2),       # Wk^T
            pl.BlockSpec((D, D), const2),       # Wv^T
            pl.BlockSpec((1, D), const2),       # bq
            pl.BlockSpec((1, D), const2),       # bk
            pl.BlockSpec((1, D), const2),       # bv
            pl.BlockSpec((D, D), const2),       # Wo^T
            pl.BlockSpec((1, D), const2),       # bo
            pl.BlockSpec((1, D), const2),       # gLN gamma
            pl.BlockSpec((1, D), const2),       # gLN beta
        ],
        out_specs=pl.BlockSpec((1, D, KS), per_b),
        compiler_params=pltpu.CompilerParams(
            dimension_semantics=("parallel",)),
    )(x_cf, enc_ks, lnw, lnb, wq_t, wk_t, wv_t, bq, bk, bv, wo_t, bo, gamma, beta)

    out = out_cf.reshape(B, D, K, S).transpose(0, 1, 3, 2)             # (B, D, S, K)
    return out


# --------------------------- pure-JAX reference -----------------------------

def reference_forward(x_bcsk, params, num_heads=NUM_HEADS):
    B, D, S, K = x_bcsk.shape
    H = num_heads
    Dh = D // H
    N = B * K
    x = jnp.transpose(x_bcsk, (0, 2, 3, 1)).astype(jnp.float32)        # (B,S,K,D)
    mu = x.mean(-1, keepdims=True)
    var = ((x - mu) ** 2).mean(-1, keepdims=True)
    xn = (x - mu) / jnp.sqrt(var + EPS) * params['ln_in_w'] + params['ln_in_b']
    enc = positional_encoding(S * K, D).reshape(S, K, D)
    xe = xn + enc[None]
    xt = jnp.transpose(xe, (1, 0, 2, 3)).reshape(S, N, D)
    qkv = xt @ params['in_proj_w'].T + params['in_proj_b']
    q, k, v = qkv[..., :D], qkv[..., D:2 * D], qkv[..., 2 * D:]
    split = lambda t: t.reshape(S, N, H, Dh)
    q, k, v = split(q) / math.sqrt(Dh), split(k), split(v)
    s = jnp.einsum('inhd,jnhd->nhij', q, k)
    p = jax.nn.softmax(s, axis=-1)
    a = jnp.einsum('nhij,jnhd->inhd', p, v).reshape(S, N, D)
    y = a @ params['out_proj_w'].T + params['out_proj_b'] + xt
    yb = y.reshape(S, B, K, D).transpose(1, 0, 2, 3)
    mu_g = yb.mean(axis=(1, 2, 3), keepdims=True)
    var_g = ((yb - mu_g) ** 2).mean(axis=(1, 2, 3), keepdims=True)
    yn = (yb - mu_g) / jnp.sqrt(var_g + EPS) * params['gln_g'] + params['gln_b']
    out = yn + x
    return jnp.transpose(out, (0, 3, 1, 2))


if __name__ == "__main__":
    B, D, S, K = 2, 32, 8, 16            # (batch, num_features, S, chunk K); D % num_heads == 0
    key = jax.random.PRNGKey(0)
    kx, kp = jax.random.split(key)
    x = jax.random.normal(kx, (B, D, S, K), jnp.float32)
    params = init_params(kp, D)

    out = jax.jit(globally_attentive_block)(x, params)
    out = jax.block_until_ready(out)
    assert out.shape == (B, D, S, K)

    ref = reference_forward(x, params)
    max_err = float(jnp.max(jnp.abs(out - ref)))
    # exact softmax normalization -> only fp32 rounding differences remain;
    # real layout / indexing bugs produce O(0.1+) errors.
    assert max_err < 2e-3, f"mismatch vs reference, max_err={max_err}"

    print("KERNEL_OK")
</pallas_src>

<mosaic_0001>
module attributes {stable_mosaic.version = 11 : i64} {
  func.func @_fused_galr_kernel(%arg0: i32, %arg1: memref<1x32x128xf32, #tpu.memory_space<vmem>>, %arg2: memref<128x32xf32, #tpu.memory_space<vmem>>, %arg3: memref<1x32xf32, #tpu.memory_space<vmem>>, %arg4: memref<1x32xf32, #tpu.memory_space<vmem>>, %arg5: memref<32x32xf32, #tpu.memory_space<vmem>>, %arg6: memref<32x32xf32, #tpu.memory_space<vmem>>, %arg7: memref<32x32xf32, #tpu.memory_space<vmem>>, %arg8: memref<1x32xf32, #tpu.memory_space<vmem>>, %arg9: memref<1x32xf32, #tpu.memory_space<vmem>>, %arg10: memref<1x32xf32, #tpu.memory_space<vmem>>, %arg11: memref<32x32xf32, #tpu.memory_space<vmem>>, %arg12: memref<1x32xf32, #tpu.memory_space<vmem>>, %arg13: memref<1x32xf32, #tpu.memory_space<vmem>>, %arg14: memref<1x32xf32, #tpu.memory_space<vmem>>, %arg15: memref<1x32x128xf32, #tpu.memory_space<vmem>>) attributes {dimension_semantics = [#tpu.dimension_semantics<parallel>], iteration_bounds = array<i64: 2>, scalar_prefetch = 0 : i64, scratch_operands = 0 : i64, tpu.core_type = #tpu.core_type<tc>, window_params = [{transform_indices = @transform_0, window_bounds = array<i64: 1, 32, 128>}, {pipeline_mode = #tpu.pipeline_mode<synchronous>, transform_indices = @transform_1, window_bounds = array<i64: 128, 32>}, {pipeline_mode = #tpu.pipeline_mode<synchronous>, transform_indices = @transform_2, window_bounds = array<i64: 1, 32>}, {pipeline_mode = #tpu.pipeline_mode<synchronous>, transform_indices = @transform_3, window_bounds = array<i64: 1, 32>}, {pipeline_mode = #tpu.pipeline_mode<synchronous>, transform_indices = @transform_4, window_bounds = array<i64: 32, 32>}, {pipeline_mode = #tpu.pipeline_mode<synchronous>, transform_indices = @transform_5, window_bounds = array<i64: 32, 32>}, {pipeline_mode = #tpu.pipeline_mode<synchronous>, transform_indices = @transform_6, window_bounds = array<i64: 32, 32>}, {pipeline_mode = #tpu.pipeline_mode<synchronous>, transform_indices = @transform_7, window_bounds = array<i64: 1, 32>}, {pipeline_mode = #tpu.pipeline_mode<synchronous>, transform_indices = @transform_8, window_bounds = array<i64: 1, 32>}, {pipeline_mode = #tpu.pipeline_mode<synchronous>, transform_indices = @transform_9, window_bounds = array<i64: 1, 32>}, {pipeline_mode = #tpu.pipeline_mode<synchronous>, transform_indices = @transform_10, window_bounds = array<i64: 32, 32>}, {pipeline_mode = #tpu.pipeline_mode<synchronous>, transform_indices = @transform_11, window_bounds = array<i64: 1, 32>}, {pipeline_mode = #tpu.pipeline_mode<synchronous>, transform_indices = @transform_12, window_bounds = array<i64: 1, 32>}, {pipeline_mode = #tpu.pipeline_mode<synchronous>, transform_indices = @transform_13, window_bounds = array<i64: 1, 32>}, {transform_indices = @transform_14, window_bounds = array<i64: 1, 32, 128>}]} {
    %c0 = arith.constant 0 : index
    %c0_0 = arith.constant 0 : index
    %c0_1 = arith.constant 0 : index
    %0 = vector.load %arg1[%c0, %c0_0, %c0_1] : memref<1x32x128xf32, #tpu.memory_space<vmem>>, vector<1x32x128xf32>
    %1 = vector.shape_cast %0 : vector<1x32x128xf32> to vector<32x128xf32>
    %2 = tpu.transpose %1, [1, 0] : vector<32x128xf32> -> vector<128x32xf32>
    %cst = arith.constant dense<0.000000e+00> : vector<128xf32>
    %3 = vector.multi_reduction <add>, %2, %cst [1] : vector<128x32xf32> to vector<128xf32>
    %4 = vector.shape_cast %3 : vector<128xf32> to vector<128x1xf32>
    %cst_2 = arith.constant 3.200000e+01 : f32
    %5 = vector.broadcast %cst_2 : f32 to vector<128x1xf32>
    %6 = arith.divf %4, %5 : vector<128x1xf32>
    %7 = vector.broadcast %6 : vector<128x1xf32> to vector<128x32xf32>
    %8 = arith.subf %2, %7 : vector<128x32xf32>
    %9 = arith.mulf %8, %8 : vector<128x32xf32>
    %cst_3 = arith.constant dense<0.000000e+00> : vector<128xf32>
    %10 = vector.multi_reduction <add>, %9, %cst_3 [1] : vector<128x32xf32> to vector<128xf32>
    %11 = vector.shape_cast %10 : vector<128xf32> to vector<128x1xf32>
    %cst_4 = arith.constant 3.200000e+01 : f32
    %12 = vector.broadcast %cst_4 : f32 to vector<128x1xf32>
    %13 = arith.divf %11, %12 : vector<128x1xf32>
    %14 = vector.broadcast %6 : vector<128x1xf32> to vector<128x32xf32>
    %15 = arith.subf %2, %14 : vector<128x32xf32>
    %cst_5 = arith.constant 9.99999996E-13 : f32
    %16 = vector.broadcast %cst_5 : f32 to vector<128x1xf32>
    %17 = arith.addf %13, %16 : vector<128x1xf32>
    %18 = math.rsqrt %17 : vector<128x1xf32>
    %19 = vector.broadcast %18 : vector<128x1xf32> to vector<128x32xf32>
    %20 = arith.mulf %15, %19 : vector<128x32xf32>
    %c0_6 = arith.constant 0 : index
    %c0_7 = arith.constant 0 : index
    %21 = vector.load %arg3[%c0_6, %c0_7] : memref<1x32xf32, #tpu.memory_space<vmem>>, vector<1x32xf32>
    %22 = vector.broadcast %21 : vector<1x32xf32> to vector<128x32xf32>
    %23 = arith.mulf %20, %22 : vector<128x32xf32>
    %c0_8 = arith.constant 0 : index
    %c0_9 = arith.constant 0 : index
    %24 = vector.load %arg4[%c0_8, %c0_9] : memref<1x32xf32, #tpu.memory_space<vmem>>, vector<1x32xf32>
    %25 = vector.broadcast %24 : vector<1x32xf32> to vector<128x32xf32>
    %26 = arith.addf %23, %25 : vector<128x32xf32>
    %c0_10 = arith.constant 0 : index
    %c0_11 = arith.constant 0 : index
    %27 = vector.load %arg2[%c0_10, %c0_11] : memref<128x32xf32, #tpu.memory_space<vmem>>, vector<128x32xf32>
    %28 = arith.addf %26, %27 : vector<128x32xf32>
    %c0_12 = arith.constant 0 : index
    %c0_13 = arith.constant 0 : index
    %29 = vector.load %arg5[%c0_12, %c0_13] : memref<32x32xf32, #tpu.memory_space<vmem>>, vector<32x32xf32>
    %cst_14 = arith.constant dense<0.000000e+00> : vector<128x32xf32>
    %30 = tpu.matmul %28, %29, %cst_14 {dimension_numbers = #tpu.dot_dimension_numbers<[1], [0], [0], [1], [0, 0, 1, 1], [], []>} : vector<128x32xf32>, vector<32x32xf32>, vector<128x32xf32> -> vector<128x32xf32>
    %c0_15 = arith.constant 0 : index
    %c0_16 = arith.constant 0 : index
    %31 = vector.load %arg8[%c0_15, %c0_16] : memref<1x32xf32, #tpu.memory_space<vmem>>, vector<1x32xf32>
    %32 = vector.broadcast %31 : vector<1x32xf32> to vector<128x32xf32>
    %33 = arith.addf %30, %32 : vector<128x32xf32>
    %c0_17 = arith.constant 0 : index
    %c0_18 = arith.constant 0 : index
    %34 = vector.load %arg6[%c0_17, %c0_18] : memref<32x32xf32, #tpu.memory_space<vmem>>, vector<32x32xf32>
    %cst_19 = arith.constant dense<0.000000e+00> : vector<128x32xf32>
    %35 = tpu.matmul %28, %34, %cst_19 {dimension_numbers = #tpu.dot_dimension_numbers<[1], [0], [0], [1], [0, 0, 1, 1], [], []>} : vector<128x32xf32>, vector<32x32xf32>, vector<128x32xf32> -> vector<128x32xf32>
    %c0_20 = arith.constant 0 : index
    %c0_21 = arith.constant 0 : index
    %36 = vector.load %arg9[%c0_20, %c0_21] : memref<1x32xf32, #tpu.memory_space<vmem>>, vector<1x32xf32>
    %37 = vector.broadcast %36 : vector<1x32xf32> to vector<128x32xf32>
    %38 = arith.addf %35, %37 : vector<128x32xf32>
    %c0_22 = arith.constant 0 : index
    %c0_23 = arith.constant 0 : index
    %39 = vector.load %arg7[%c0_22, %c0_23] : memref<32x32xf32, #tpu.memory_space<vmem>>, vector<32x32xf32>
    %cst_24 = arith.constant dense<0.000000e+00> : vector<128x32xf32>
    %40 = tpu.matmul %28, %39, %cst_24 {dimension_numbers = #tpu.dot_dimension_numbers<[1], [0], [0], [1], [0, 0, 1, 1], [], []>} : vector<128x32xf32>, vector<32x32xf32>, vector<128x32xf32> -> vector<128x32xf32>
    %c0_25 = arith.constant 0 : index
    %c0_26 = arith.constant 0 : index
    %41 = vector.load %arg10[%c0_25, %c0_26] : memref<1x32xf32, #tpu.memory_space<vmem>>, vector<1x32xf32>
    %42 = vector.broadcast %41 : vector<1x32xf32> to vector<128x32xf32>
    %43 = arith.addf %40, %42 : vector<128x32xf32>
    %c0_27 = arith.constant 0 : index
    %c0_28 = arith.constant 0 : index
    %44 = vector.load %arg11[%c0_27, %c0_28] : memref<32x32xf32, #tpu.memory_space<vmem>>, vector<32x32xf32>
    %c0_29 = arith.constant 0 : index
    %c0_30 = arith.constant 0 : index
    %45 = vector.load %arg12[%c0_29, %c0_30] : memref<1x32xf32, #tpu.memory_space<vmem>>, vector<1x32xf32>
    %46 = vector.broadcast %45 : vector<1x32xf32> to vector<128x32xf32>
    %47 = arith.addf %28, %46 : vector<128x32xf32>
    %48 = vector.extract_strided_slice %33 {offsets = [0, 0], sizes = [128, 4], strides = [1, 1]} : vector<128x32xf32> to vector<128x4xf32>
    %cst_31 = arith.constant 5.000000e-01 : f32
    %49 = vector.broadcast %cst_31 : f32 to vector<128x4xf32>
    %50 = arith.mulf %48, %49 : vector<128x4xf32>
    %51 = vector.shape_cast %50 : vector<128x4xf32> to vector<16x8x4xf32>
    %52 = vector.extract_strided_slice %38 {offsets = [0, 0], sizes = [128, 4], strides = [1, 1]} : vector<128x32xf32> to vector<128x4xf32>
    %53 = vector.shape_cast %52 : vector<128x4xf32> to vector<16x8x4xf32>
    %54 = vector.extract_strided_slice %43 {offsets = [0, 0], sizes = [128, 4], strides = [1, 1]} : vector<128x32xf32> to vector<128x4xf32>
    %55 = vector.shape_cast %54 : vector<128x4xf32> to vector<16x8x4xf32>
    %cst_32 = arith.constant dense<0.000000e+00> : vector<16x8x8xf32>
    %56 = tpu.matmul %51, %53, %cst_32 {dimension_numbers = #tpu.dot_dimension_numbers<[2], [2], [1], [1], [0, 0, 0, 1, 1, 1], [0], [0]>} : vector<16x8x4xf32>, vector<16x8x4xf32>, vector<16x8x8xf32> -> vector<16x8x8xf32>
    %cst_33 = arith.constant dense<0xFF800000> : vector<16x8xf32>
    %57 = vector.multi_reduction <maximumf>, %56, %cst_33 [2] : vector<16x8x8xf32> to vector<16x8xf32>
    %58 = vector.shape_cast %57 : vector<16x8xf32> to vector<16x8x1xf32>
    %59 = vector.broadcast %58 : vector<16x8x1xf32> to vector<16x8x8xf32>
    %60 = arith.subf %56, %59 : vector<16x8x8xf32>
    %61 = math.exp %60 : vector<16x8x8xf32>
    %cst_34 = arith.constant dense<0.000000e+00> : vector<16x8xf32>
    %62 = vector.multi_reduction <add>, %61, %cst_34 [2] : vector<16x8x8xf32> to vector<16x8xf32>
    %63 = vector.shape_cast %62 : vector<16x8xf32> to vector<16x8x1xf32>
    %64 = vector.broadcast %63 : vector<16x8x1xf32> to vector<16x8x8xf32>
    %65 = arith.divf %61, %64 : vector<16x8x8xf32>
    %cst_35 = arith.constant dense<0.000000e+00> : vector<16x8x4xf32>
    %66 = tpu.matmul %65, %55, %cst_35 {dimension_numbers = #tpu.dot_dimension_numbers<[2], [1], [1], [2], [0, 0, 0, 1, 1, 2], [0], [0]>} : vector<16x8x8xf32>, vector<16x8x4xf32>, vector<16x8x4xf32> -> vector<16x8x4xf32>
    %67 = vector.shape_cast %66 : vector<16x8x4xf32> to vector<128x4xf32>
    %68 = vector.extract_strided_slice %44 {offsets = [0, 0], sizes = [4, 32], strides = [1, 1]} : vector<32x32xf32> to vector<4x32xf32>
    %cst_36 = arith.constant dense<0.000000e+00> : vector<128x32xf32>
    %69 = tpu.matmul %67, %68, %cst_36 {dimension_numbers = #tpu.dot_dimension_numbers<[1], [0], [0], [1], [0, 0, 1, 1], [], []>} : vector<128x4xf32>, vector<4x32xf32>, vector<128x32xf32> -> vector<128x32xf32>
    %70 = arith.addf %47, %69 : vector<128x32xf32>
    %71 = vector.extract_strided_slice %33 {offsets = [0, 4], sizes = [128, 4], strides = [1, 1]} : vector<128x32xf32> to vector<128x4xf32>
    %cst_37 = arith.constant 5.000000e-01 : f32
    %72 = vector.broadcast %cst_37 : f32 to vector<128x4xf32>
    %73 = arith.mulf %71, %72 : vector<128x4xf32>
    %74 = vector.shape_cast %73 : vector<128x4xf32> to vector<16x8x4xf32>
    %75 = vector.extract_strided_slice %38 {offsets = [0, 4], sizes = [128, 4], strides = [1, 1]} : vector<128x32xf32> to vector<128x4xf32>
    %76 = vector.shape_cast %75 : vector<128x4xf32> to vector<16x8x4xf32>
    %77 = vector.extract_strided_slice %43 {offsets = [0, 4], sizes = [128, 4], strides = [1, 1]} : vector<128x32xf32> to vector<128x4xf32>
    %78 = vector.shape_cast %77 : vector<128x4xf32> to vector<16x8x4xf32>
    %cst_38 = arith.constant dense<0.000000e+00> : vector<16x8x8xf32>
    %79 = tpu.matmul %74, %76, %cst_38 {dimension_numbers = #tpu.dot_dimension_numbers<[2], [2], [1], [1], [0, 0, 0, 1, 1, 1], [0], [0]>} : vector<16x8x4xf32>, vector<16x8x4xf32>, vector<16x8x8xf32> -> vector<16x8x8xf32>
    %cst_39 = arith.constant dense<0xFF800000> : vector<16x8xf32>
    %80 = vector.multi_reduction <maximumf>, %79, %cst_39 [2] : vector<16x8x8xf32> to vector<16x8xf32>
    %81 = vector.shape_cast %80 : vector<16x8xf32> to vector<16x8x1xf32>
    %82 = vector.broadcast %81 : vector<16x8x1xf32> to vector<16x8x8xf32>
    %83 = arith.subf %79, %82 : vector<16x8x8xf32>
    %84 = math.exp %83 : vector<16x8x8xf32>
    %cst_40 = arith.constant dense<0.000000e+00> : vector<16x8xf32>
    %85 = vector.multi_reduction <add>, %84, %cst_40 [2] : vector<16x8x8xf32> to vector<16x8xf32>
    %86 = vector.shape_cast %85 : vector<16x8xf32> to vector<16x8x1xf32>
    %87 = vector.broadcast %86 : vector<16x8x1xf32> to vector<16x8x8xf32>
    %88 = arith.divf %84, %87 : vector<16x8x8xf32>
    %cst_41 = arith.constant dense<0.000000e+00> : vector<16x8x4xf32>
    %89 = tpu.matmul %88, %78, %cst_41 {dimension_numbers = #tpu.dot_dimension_numbers<[2], [1], [1], [2], [0, 0, 0, 1, 1, 2], [0], [0]>} : vector<16x8x8xf32>, vector<16x8x4xf32>, vector<16x8x4xf32> -> vector<16x8x4xf32>
    %90 = vector.shape_cast %89 : vector<16x8x4xf32> to vector<128x4xf32>
    %91 = vector.extract_strided_slice %44 {offsets = [4, 0], sizes = [4, 32], strides = [1, 1]} : vector<32x32xf32> to vector<4x32xf32>
    %cst_42 = arith.constant dense<0.000000e+00> : vector<128x32xf32>
    %92 = tpu.matmul %90, %91, %cst_42 {dimension_numbers = #tpu.dot_dimension_numbers<[1], [0], [0], [1], [0, 0, 1, 1], [], []>} : vector<128x4xf32>, vector<4x32xf32>, vector<128x32xf32> -> vector<128x32xf32>
    %93 = arith.addf %70, %92 : vector<128x32xf32>
    %94 = vector.extract_strided_slice %33 {offsets = [0, 8], sizes = [128, 4], strides = [1, 1]} : vector<128x32xf32> to vector<128x4xf32>
    %cst_43 = arith.constant 5.000000e-01 : f32
    %95 = vector.broadcast %cst_43 : f32 to vector<128x4xf32>
    %96 = arith.mulf %94, %95 : vector<128x4xf32>
    %97 = vector.shape_cast %96 : vector<128x4xf32> to vector<16x8x4xf32>
    %98 = vector.extract_strided_slice %38 {offsets = [0, 8], sizes = [128, 4], strides = [1, 1]} : vector<128x32xf32> to vector<128x4xf32>
    %99 = vector.shape_cast %98 : vector<128x4xf32> to vector<16x8x4xf32>
    %100 = vector.extract_strided_slice %43 {offsets = [0, 8], sizes = [128, 4], strides = [1, 1]} : vector<128x32xf32> to vector<128x4xf32>
    %101 = vector.shape_cast %100 : vector<128x4xf32> to vector<16x8x4xf32>
    %cst_44 = arith.constant dense<0.000000e+00> : vector<16x8x8xf32>
    %102 = tpu.matmul %97, %99, %cst_44 {dimension_numbers = #tpu.dot_dimension_numbers<[2], [2], [1], [1], [0, 0, 0, 1, 1, 1], [0], [0]>} : vector<16x8x4xf32>, vector<16x8x4xf32>, vector<16x8x8xf32> -> vector<16x8x8xf32>
    %cst_45 = arith.constant dense<0xFF800000> : vector<16x8xf32>
    %103 = vector.multi_reduction <maximumf>, %102, %cst_45 [2] : vector<16x8x8xf32> to vector<16x8xf32>
    %104 = vector.shape_cast %103 : vector<16x8xf32> to vector<16x8x1xf32>
    %105 = vector.broadcast %104 : vector<16x8x1xf32> to vector<16x8x8xf32>
    %106 = arith.subf %102, %105 : vector<16x8x8xf32>
    %107 = math.exp %106 : vector<16x8x8xf32>
    %cst_46 = arith.constant dense<0.000000e+00> : vector<16x8xf32>
    %108 = vector.multi_reduction <add>, %107, %cst_46 [2] : vector<16x8x8xf32> to vector<16x8xf32>
    %109 = vector.shape_cast %108 : vector<16x8xf32> to vector<16x8x1xf32>
    %110 = vector.broadcast %109 : vector<16x8x1xf32> to vector<16x8x8xf32>
    %111 = arith.divf %107, %110 : vector<16x8x8xf32>
    %cst_47 = arith.constant dense<0.000000e+00> : vector<16x8x4xf32>
    %112 = tpu.matmul %111, %101, %cst_47 {dimension_numbers = #tpu.dot_dimension_numbers<[2], [1], [1], [2], [0, 0, 0, 1, 1, 2], [0], [0]>} : vector<16x8x8xf32>, vector<16x8x4xf32>, vector<16x8x4xf32> -> vector<16x8x4xf32>
    %113 = vector.shape_cast %112 : vector<16x8x4xf32> to vector<128x4xf32>
    %114 = vector.extract_strided_slice %44 {offsets = [8, 0], sizes = [4, 32], strides = [1, 1]} : vector<32x32xf32> to vector<4x32xf32>
    %cst_48 = arith.constant dense<0.000000e+00> : vector<128x32xf32>
    %115 = tpu.matmul %113, %114, %cst_48 {dimension_numbers = #tpu.dot_dimension_numbers<[1], [0], [0], [1], [0, 0, 1, 1], [], []>} : vector<128x4xf32>, vector<4x32xf32>, vector<128x32xf32> -> vector<128x32xf32>
    %116 = arith.addf %93, %115 : vector<128x32xf32>
    %117 = vector.extract_strided_slice %33 {offsets = [0, 12], sizes = [128, 4], strides = [1, 1]} : vector<128x32xf32> to vector<128x4xf32>
    %cst_49 = arith.constant 5.000000e-01 : f32
    %118 = vector.broadcast %cst_49 : f32 to vector<128x4xf32>
    %119 = arith.mulf %117, %118 : vector<128x4xf32>
    %120 = vector.shape_cast %119 : vector<128x4xf32> to vector<16x8x4xf32>
    %121 = vector.extract_strided_slice %38 {offsets = [0, 12], sizes = [128, 4], strides = [1, 1]} : vector<128x32xf32> to vector<128x4xf32>
    %122 = vector.shape_cast %121 : vector<128x4xf32> to vector<16x8x4xf32>
    %123 = vector.extract_strided_slice %43 {offsets = [0, 12], sizes = [128, 4], strides = [1, 1]} : vector<128x32xf32> to vector<128x4xf32>
    %124 = vector.shape_cast %123 : vector<128x4xf32> to vector<16x8x4xf32>
    %cst_50 = arith.constant dense<0.000000e+00> : vector<16x8x8xf32>
    %125 = tpu.matmul %120, %122, %cst_50 {dimension_numbers = #tpu.dot_dimension_numbers<[2], [2], [1], [1], [0, 0, 0, 1, 1, 1], [0], [0]>} : vector<16x8x4xf32>, vector<16x8x4xf32>, vector<16x8x8xf32> -> vector<16x8x8xf32>
    %cst_51 = arith.constant dense<0xFF800000> : vector<16x8xf32>
    %126 = vector.multi_reduction <maximumf>, %125, %cst_51 [2] : vector<16x8x8xf32> to vector<16x8xf32>
    %127 = vector.shape_cast %126 : vector<16x8xf32> to vector<16x8x1xf32>
    %128 = vector.broadcast %127 : vector<16x8x1xf32> to vector<16x8x8xf32>
    %129 = arith.subf %125, %128 : vector<16x8x8xf32>
    %130 = math.exp %129 : vector<16x8x8xf32>
    %cst_52 = arith.constant dense<0.000000e+00> : vector<16x8xf32>
    %131 = vector.multi_reduction <add>, %130, %cst_52 [2] : vector<16x8x8xf32> to vector<16x8xf32>
    %132 = vector.shape_cast %131 : vector<16x8xf32> to vector<16x8x1xf32>
    %133 = vector.broadcast %132 : vector<16x8x1xf32> to vector<16x8x8xf32>
    %134 = arith.divf %130, %133 : vector<16x8x8xf32>
    %cst_53 = arith.constant dense<0.000000e+00> : vector<16x8x4xf32>
    %135 = tpu.matmul %134, %124, %cst_53 {dimension_numbers = #tpu.dot_dimension_numbers<[2], [1], [1], [2], [0, 0, 0, 1, 1, 2], [0], [0]>} : vector<16x8x8xf32>, vector<16x8x4xf32>, vector<16x8x4xf32> -> vector<16x8x4xf32>
    %136 = vector.shape_cast %135 : vector<16x8x4xf32> to vector<128x4xf32>
    %137 = vector.extract_strided_slice %44 {offsets = [12, 0], sizes = [4, 32], strides = [1, 1]} : vector<32x32xf32> to vector<4x32xf32>
    %cst_54 = arith.constant dense<0.000000e+00> : vector<128x32xf32>
    %138 = tpu.matmul %136, %137, %cst_54 {dimension_numbers = #tpu.dot_dimension_numbers<[1], [0], [0], [1], [0, 0, 1, 1], [], []>} : vector<128x4xf32>, vector<4x32xf32>, vector<128x32xf32> -> vector<128x32xf32>
    %139 = arith.addf %116, %138 : vector<128x32xf32>
    %140 = vector.extract_strided_slice %33 {offsets = [0, 16], sizes = [128, 4], strides = [1, 1]} : vector<128x32xf32> to vector<128x4xf32>
    %cst_55 = arith.constant 5.000000e-01 : f32
    %141 = vector.broadcast %cst_55 : f32 to vector<128x4xf32>
    %142 = arith.mulf %140, %141 : vector<128x4xf32>
    %143 = vector.shape_cast %142 : vector<128x4xf32> to vector<16x8x4xf32>
    %144 = vector.extract_strided_slice %38 {offsets = [0, 16], sizes = [128, 4], strides = [1, 1]} : vector<128x32xf32> to vector<128x4xf32>
    %145 = vector.shape_cast %144 : vector<128x4xf32> to vector<16x8x4xf32>
    %146 = vector.extract_strided_slice %43 {offsets = [0, 16], sizes = [128, 4], strides = [1, 1]} : vector<128x32xf32> to vector<128x4xf32>
    %147 = vector.shape_cast %146 : vector<128x4xf32> to vector<16x8x4xf32>
    %cst_56 = arith.constant dense<0.000000e+00> : vector<16x8x8xf32>
    %148 = tpu.matmul %143, %145, %cst_56 {dimension_numbers = #tpu.dot_dimension_numbers<[2], [2], [1], [1], [0, 0, 0, 1, 1, 1], [0], [0]>} : vector<16x8x4xf32>, vector<16x8x4xf32>, vector<16x8x8xf32> -> vector<16x8x8xf32>
    %cst_57 = arith.constant dense<0xFF800000> : vector<16x8xf32>
    %149 = vector.multi_reduction <maximumf>, %148, %cst_57 [2] : vector<16x8x8xf32> to vector<16x8xf32>
    %150 = vector.shape_cast %149 : vector<16x8xf32> to vector<16x8x1xf32>
    %151 = vector.broadcast %150 : vector<16x8x1xf32> to vector<16x8x8xf32>
    %152 = arith.subf %148, %151 : vector<16x8x8xf32>
    %153 = math.exp %152 : vector<16x8x8xf32>
    %cst_58 = arith.constant dense<0.000000e+00> : vector<16x8xf32>
    %154 = vector.multi_reduction <add>, %153, %cst_58 [2] : vector<16x8x8xf32> to vector<16x8xf32>
    %155 = vector.shape_cast %154 : vector<16x8xf32> to vector<16x8x1xf32>
    %156 = vector.broadcast %155 : vector<16x8x1xf32> to vector<16x8x8xf32>
    %157 = arith.divf %153, %156 : vector<16x8x8xf32>
    %cst_59 = arith.constant dense<0.000000e+00> : vector<16x8x4xf32>
    %158 = tpu.matmul %157, %147, %cst_59 {dimension_numbers = #tpu.dot_dimension_numbers<[2], [1], [1], [2], [0, 0, 0, 1, 1, 2], [0], [0]>} : vector<16x8x8xf32>, vector<16x8x4xf32>, vector<16x8x4xf32> -> vector<16x8x4xf32>
    %159 = vector.shape_cast %158 : vector<16x8x4xf32> to vector<128x4xf32>
    %160 = vector.extract_strided_slice %44 {offsets = [16, 0], sizes = [4, 32], strides = [1, 1]} : vector<32x32xf32> to vector<4x32xf32>
    %cst_60 = arith.constant dense<0.000000e+00> : vector<128x32xf32>
    %161 = tpu.matmul %159, %160, %cst_60 {dimension_numbers = #tpu.dot_dimension_numbers<[1], [0], [0], [1], [0, 0, 1, 1], [], []>} : vector<128x4xf32>, vector<4x32xf32>, vector<128x32xf32> -> vector<128x32xf32>
    %162 = arith.addf %139, %161 : vector<128x32xf32>
    %163 = vector.extract_strided_slice %33 {offsets = [0, 20], sizes = [128, 4], strides = [1, 1]} : vector<128x32xf32> to vector<128x4xf32>
    %cst_61 = arith.constant 5.000000e-01 : f32
    %164 = vector.broadcast %cst_61 : f32 to vector<128x4xf32>
    %165 = arith.mulf %163, %164 : vector<128x4xf32>
    %166 = vector.shape_cast %165 : vector<128x4xf32> to vector<16x8x4xf32>
    %167 = vector.extract_strided_slice %38 {offsets = [0, 20], sizes = [128, 4], strides = [1, 1]} : vector<128x32xf32> to vector<128x4xf32>
    %168 = vector.shape_cast %167 : vector<128x4xf32> to vector<16x8x4xf32>
    %169 = vector.extract_strided_slice %43 {offsets = [0, 20], sizes = [128, 4], strides = [1, 1]} : vector<128x32xf32> to vector<128x4xf32>
    %170 = vector.shape_cast %169 : vector<128x4xf32> to vector<16x8x4xf32>
    %cst_62 = arith.constant dense<0.000000e+00> : vector<16x8x8xf32>
    %171 = tpu.matmul %166, %168, %cst_62 {dimension_numbers = #tpu.dot_dimension_numbers<[2], [2], [1], [1], [0, 0, 0, 1, 1, 1], [0], [0]>} : vector<16x8x4xf32>, vector<16x8x4xf32>, vector<16x8x8xf32> -> vector<16x8x8xf32>
    %cst_63 = arith.constant dense<0xFF800000> : vector<16x8xf32>
    %172 = vector.multi_reduction <maximumf>, %171, %cst_63 [2] : vector<16x8x8xf32> to vector<16x8xf32>
    %173 = vector.shape_cast %172 : vector<16x8xf32> to vector<16x8x1xf32>
    %174 = vector.broadcast %173 : vector<16x8x1xf32> to vector<16x8x8xf32>
    %175 = arith.subf %171, %174 : vector<16x8x8xf32>
    %176 = math.exp %175 : vector<16x8x8xf32>
    %cst_64 = arith.constant dense<0.000000e+00> : vector<16x8xf32>
    %177 = vector.multi_reduction <add>, %176, %cst_64 [2] : vector<16x8x8xf32> to vector<16x8xf32>
    %178 = vector.shape_cast %177 : vector<16x8xf32> to vector<16x8x1xf32>
    %179 = vector.broadcast %178 : vector<16x8x1xf32> to vector<16x8x8xf32>
    %180 = arith.divf %176, %179 : vector<16x8x8xf32>
    %cst_65 = arith.constant dense<0.000000e+00> : vector<16x8x4xf32>
    %181 = tpu.matmul %180, %170, %cst_65 {dimension_numbers = #tpu.dot_dimension_numbers<[2], [1], [1], [2], [0, 0, 0, 1, 1, 2], [0], [0]>} : vector<16x8x8xf32>, vector<16x8x4xf32>, vector<16x8x4xf32> -> vector<16x8x4xf32>
    %182 = vector.shape_cast %181 : vector<16x8x4xf32> to vector<128x4xf32>
    %183 = vector.extract_strided_slice %44 {offsets = [20, 0], sizes = [4, 32], strides = [1, 1]} : vector<32x32xf32> to vector<4x32xf32>
    %cst_66 = arith.constant dense<0.000000e+00> : vector<128x32xf32>
    %184 = tpu.matmul %182, %183, %cst_66 {dimension_numbers = #tpu.dot_dimension_numbers<[1], [0], [0], [1], [0, 0, 1, 1], [], []>} : vector<128x4xf32>, vector<4x32xf32>, vector<128x32xf32> -> vector<128x32xf32>
    %185 = arith.addf %162, %184 : vector<128x32xf32>
    %186 = vector.extract_strided_slice %33 {offsets = [0, 24], sizes = [128, 4], strides = [1, 1]} : vector<128x32xf32> to vector<128x4xf32>
    %cst_67 = arith.constant 5.000000e-01 : f32
    %187 = vector.broadcast %cst_67 : f32 to vector<128x4xf32>
    %188 = arith.mulf %186, %187 : vector<128x4xf32>
    %189 = vector.shape_cast %188 : vector<128x4xf32> to vector<16x8x4xf32>
    %190 = vector.extract_strided_slice %38 {offsets = [0, 24], sizes = [128, 4], strides = [1, 1]} : vector<128x32xf32> to vector<128x4xf32>
    %191 = vector.shape_cast %190 : vector<128x4xf32> to vector<16x8x4xf32>
    %192 = vector.extract_strided_slice %43 {offsets = [0, 24], sizes = [128, 4], strides = [1, 1]} : vector<128x32xf32> to vector<128x4xf32>
    %193 = vector.shape_cast %192 : vector<128x4xf32> to vector<16x8x4xf32>
    %cst_68 = arith.constant dense<0.000000e+00> : vector<16x8x8xf32>
    %194 = tpu.matmul %189, %191, %cst_68 {dimension_numbers = #tpu.dot_dimension_numbers<[2], [2], [1], [1], [0, 0, 0, 1, 1, 1], [0], [0]>} : vector<16x8x4xf32>, vector<16x8x4xf32>, vector<16x8x8xf32> -> vector<16x8x8xf32>
    %cst_69 = arith.constant dense<0xFF800000> : vector<16x8xf32>
    %195 = vector.multi_reduction <maximumf>, %194, %cst_69 [2] : vector<16x8x8xf32> to vector<16x8xf32>
    %196 = vector.shape_cast %195 : vector<16x8xf32> to vector<16x8x1xf32>
    %197 = vector.broadcast %196 : vector<16x8x1xf32> to vector<16x8x8xf32>
    %198 = arith.subf %194, %197 : vector<16x8x8xf32>
    %199 = math.exp %198 : vector<16x8x8xf32>
    %cst_70 = arith.constant dense<0.000000e+00> : vector<16x8xf32>
    %200 = vector.multi_reduction <add>, %199, %cst_70 [2] : vector<16x8x8xf32> to vector<16x8xf32>
    %201 = vector.shape_cast %200 : vector<16x8xf32> to vector<16x8x1xf32>
    %202 = vector.broadcast %201 : vector<16x8x1xf32> to vector<16x8x8xf32>
    %203 = arith.divf %199, %202 : vector<16x8x8xf32>
    %cst_71 = arith.constant dense<0.000000e+00> : vector<16x8x4xf32>
    %204 = tpu.matmul %203, %193, %cst_71 {dimension_numbers = #tpu.dot_dimension_numbers<[2], [1], [1], [2], [0, 0, 0, 1, 1, 2], [0], [0]>} : vector<16x8x8xf32>, vector<16x8x4xf32>, vector<16x8x4xf32> -> vector<16x8x4xf32>
    %205 = vector.shape_cast %204 : vector<16x8x4xf32> to vector<128x4xf32>
    %206 = vector.extract_strided_slice %44 {offsets = [24, 0], sizes = [4, 32], strides = [1, 1]} : vector<32x32xf32> to vector<4x32xf32>
    %cst_72 = arith.constant dense<0.000000e+00> : vector<128x32xf32>
    %207 = tpu.matmul %205, %206, %cst_72 {dimension_numbers = #tpu.dot_dimension_numbers<[1], [0], [0], [1], [0, 0, 1, 1], [], []>} : vector<128x4xf32>, vector<4x32xf32>, vector<128x32xf32> -> vector<128x32xf32>
    %208 = arith.addf %185, %207 : vector<128x32xf32>
    %209 = vector.extract_strided_slice %33 {offsets = [0, 28], sizes = [128, 4], strides = [1, 1]} : vector<128x32xf32> to vector<128x4xf32>
    %cst_73 = arith.constant 5.000000e-01 : f32
    %210 = vector.broadcast %cst_73 : f32 to vector<128x4xf32>
    %211 = arith.mulf %209, %210 : vector<128x4xf32>
    %212 = vector.shape_cast %211 : vector<128x4xf32> to vector<16x8x4xf32>
    %213 = vector.extract_strided_slice %38 {offsets = [0, 28], sizes = [128, 4], strides = [1, 1]} : vector<128x32xf32> to vector<128x4xf32>
    %214 = vector.shape_cast %213 : vector<128x4xf32> to vector<16x8x4xf32>
    %215 = vector.extract_strided_slice %43 {offsets = [0, 28], sizes = [128, 4], strides = [1, 1]} : vector<128x32xf32> to vector<128x4xf32>
    %216 = vector.shape_cast %215 : vector<128x4xf32> to vector<16x8x4xf32>
    %cst_74 = arith.constant dense<0.000000e+00> : vector<16x8x8xf32>
    %217 = tpu.matmul %212, %214, %cst_74 {dimension_numbers = #tpu.dot_dimension_numbers<[2], [2], [1], [1], [0, 0, 0, 1, 1, 1], [0], [0]>} : vector<16x8x4xf32>, vector<16x8x4xf32>, vector<16x8x8xf32> -> vector<16x8x8xf32>
    %cst_75 = arith.constant dense<0xFF800000> : vector<16x8xf32>
    %218 = vector.multi_reduction <maximumf>, %217, %cst_75 [2] : vector<16x8x8xf32> to vector<16x8xf32>
    %219 = vector.shape_cast %218 : vector<16x8xf32> to vector<16x8x1xf32>
    %220 = vector.broadcast %219 : vector<16x8x1xf32> to vector<16x8x8xf32>
    %221 = arith.subf %217, %220 : vector<16x8x8xf32>
    %222 = math.exp %221 : vector<16x8x8xf32>
    %cst_76 = arith.constant dense<0.000000e+00> : vector<16x8xf32>
    %223 = vector.multi_reduction <add>, %222, %cst_76 [2] : vector<16x8x8xf32> to vector<16x8xf32>
    %224 = vector.shape_cast %223 : vector<16x8xf32> to vector<16x8x1xf32>
    %225 = vector.broadcast %224 : vector<16x8x1xf32> to vector<16x8x8xf32>
    %226 = arith.divf %222, %225 : vector<16x8x8xf32>
    %cst_77 = arith.constant dense<0.000000e+00> : vector<16x8x4xf32>
    %227 = tpu.matmul %226, %216, %cst_77 {dimension_numbers = #tpu.dot_dimension_numbers<[2], [1], [1], [2], [0, 0, 0, 1, 1, 2], [0], [0]>} : vector<16x8x8xf32>, vector<16x8x4xf32>, vector<16x8x4xf32> -> vector<16x8x4xf32>
    %228 = vector.shape_cast %227 : vector<16x8x4xf32> to vector<128x4xf32>
    %229 = vector.extract_strided_slice %44 {offsets = [28, 0], sizes = [4, 32], strides = [1, 1]} : vector<32x32xf32> to vector<4x32xf32>
    %cst_78 = arith.constant dense<0.000000e+00> : vector<128x32xf32>
    %230 = tpu.matmul %228, %229, %cst_78 {dimension_numbers = #tpu.dot_dimension_numbers<[1], [0], [0], [1], [0, 0, 1, 1], [], []>} : vector<128x4xf32>, vector<4x32xf32>, vector<128x32xf32> -> vector<128x32xf32>
    %231 = arith.addf %208, %230 : vector<128x32xf32>
    %232 = vector.shape_cast %231 : vector<128x32xf32> to vector<1x128x32xf32>
    %cst_79 = arith.constant dense<0.000000e+00> : vector<1xf32>
    %233 = vector.multi_reduction <add>, %232, %cst_79 [1, 2] : vector<1x128x32xf32> to vector<1xf32>
    %234 = vector.shape_cast %233 : vector<1xf32> to vector<1x1x1xf32>
    %235 = vector.extract %234[0, 0, 0] : f32 from vector<1x1x1xf32>
    %cst_80 = arith.constant 4.096000e+03 : f32
    %236 = arith.divf %235, %cst_80 : f32
    %237 = vector.broadcast %236 : f32 to vector<128x32xf32>
    %238 = arith.subf %231, %237 : vector<128x32xf32>
    %239 = arith.mulf %238, %238 : vector<128x32xf32>
    %240 = vector.shape_cast %239 : vector<128x32xf32> to vector<1x128x32xf32>
    %cst_81 = arith.constant dense<0.000000e+00> : vector<1xf32>
    %241 = vector.multi_reduction <add>, %240, %cst_81 [1, 2] : vector<1x128x32xf32> to vector<1xf32>
    %242 = vector.shape_cast %241 : vector<1xf32> to vector<1x1x1xf32>
    %243 = vector.extract %242[0, 0, 0] : f32 from vector<1x1x1xf32>
    %cst_82 = arith.constant 4.096000e+03 : f32
    %244 = arith.divf %243, %cst_82 : f32
    %245 = vector.broadcast %236 : f32 to vector<128x32xf32>
    %246 = arith.subf %231, %245 : vector<128x32xf32>
    %cst_83 = arith.constant 9.99999996E-13 : f32
    %247 = arith.addf %244, %cst_83 : f32
    %248 = math.rsqrt %247 : f32
    %249 = vector.broadcast %248 : f32 to vector<128x32xf32>
    %250 = arith.mulf %246, %249 : vector<128x32xf32>
    %c0_84 = arith.constant 0 : index
    %c0_85 = arith.constant 0 : index
    %251 = vector.load %arg13[%c0_84, %c0_85] : memref<1x32xf32, #tpu.memory_space<vmem>>, vector<1x32xf32>
    %252 = vector.broadcast %251 : vector<1x32xf32> to vector<128x32xf32>
    %253 = arith.mulf %250, %252 : vector<128x32xf32>
    %c0_86 = arith.constant 0 : index
    %c0_87 = arith.constant 0 : index
    %254 = vector.load %arg14[%c0_86, %c0_87] : memref<1x32xf32, #tpu.memory_space<vmem>>, vector<1x32xf32>
    %255 = vector.broadcast %254 : vector<1x32xf32> to vector<128x32xf32>
    %256 = arith.addf %253, %255 : vector<128x32xf32>
    %257 = arith.addf %256, %2 : vector<128x32xf32>
    %258 = tpu.transpose %257, [1, 0] : vector<128x32xf32> -> vector<32x128xf32>
    %c0_88 = arith.constant 0 : index
    %c0_89 = arith.constant 0 : index
    %c0_90 = arith.constant 0 : index
    %259 = vector.load %arg15[%c0_88, %c0_89, %c0_90] : memref<1x32x128xf32, #tpu.memory_space<vmem>>, vector<1x32x128xf32>
    %260 = vector.shape_cast %259 : vector<1x32x128xf32> to vector<32x128xf32>
    %261 = vector.shape_cast %258 : vector<32x128xf32> to vector<1x32x128xf32>
    tpu.vector_store %arg15[%c0_88, %c0_89, %c0_90], %261 {strides = array<i32>} : memref<1x32x128xf32, #tpu.memory_space<vmem>>, vector<1x32x128xf32>,
    return
  }
  func.func @transform_0(%arg0: i32) -> (i32, i32, i32) {
    %c0_i32 = arith.constant 0 : i32
    %c0_i32_0 = arith.constant 0 : i32
    %c0_i32_1 = arith.constant 0 : i32
    return %arg0, %c0_i32, %c0_i32_0 : i32, i32, i32
  }
  func.func @transform_1(%arg0: i32) -> (i32, i32) {
    %c0_i32 = arith.constant 0 : i32
    %c0_i32_0 = arith.constant 0 : i32
    %c0_i32_1 = arith.constant 0 : i32
    return %c0_i32, %c0_i32_0 : i32, i32
  }
  func.func @transform_2(%arg0: i32) -> (i32, i32) {
    %c0_i32 = arith.constant 0 : i32
    %c0_i32_0 = arith.constant 0 : i32
    %c0_i32_1 = arith.constant 0 : i32
    return %c0_i32, %c0_i32_0 : i32, i32
  }
  func.func @transform_3(%arg0: i32) -> (i32, i32) {
    %c0_i32 = arith.constant 0 : i32
    %c0_i32_0 = arith.constant 0 : i32
    %c0_i32_1 = arith.constant 0 : i32
    return %c0_i32, %c0_i32_0 : i32, i32
  }
  func.func @transform_4(%arg0: i32) -> (i32, i32) {
    %c0_i32 = arith.constant 0 : i32
    %c0_i32_0 = arith.constant 0 : i32
    %c0_i32_1 = arith.constant 0 : i32
    return %c0_i32, %c0_i32_0 : i32, i32
  }
  func.func @transform_5(%arg0: i32) -> (i32, i32) {
    %c0_i32 = arith.constant 0 : i32
    %c0_i32_0 = arith.constant 0 : i32
    %c0_i32_1 = arith.constant 0 : i32
    return %c0_i32, %c0_i32_0 : i32, i32
  }
  func.func @transform_6(%arg0: i32) -> (i32, i32) {
    %c0_i32 = arith.constant 0 : i32
    %c0_i32_0 = arith.constant 0 : i32
    %c0_i32_1 = arith.constant 0 : i32
    return %c0_i32, %c0_i32_0 : i32, i32
  }
  func.func @transform_7(%arg0: i32) -> (i32, i32) {
    %c0_i32 = arith.constant 0 : i32
    %c0_i32_0 = arith.constant 0 : i32
    %c0_i32_1 = arith.constant 0 : i32
    return %c0_i32, %c0_i32_0 : i32, i32
  }
  func.func @transform_8(%arg0: i32) -> (i32, i32) {
    %c0_i32 = arith.constant 0 : i32
    %c0_i32_0 = arith.constant 0 : i32
    %c0_i32_1 = arith.constant 0 : i32
    return %c0_i32, %c0_i32_0 : i32, i32
  }
  func.func @transform_9(%arg0: i32) -> (i32, i32) {
    %c0_i32 = arith.constant 0 : i32
    %c0_i32_0 = arith.constant 0 : i32
    %c0_i32_1 = arith.constant 0 : i32
    return %c0_i32, %c0_i32_0 : i32, i32
  }
  func.func @transform_10(%arg0: i32) -> (i32, i32) {
    %c0_i32 = arith.constant 0 : i32
    %c0_i32_0 = arith.constant 0 : i32
    %c0_i32_1 = arith.constant 0 : i32
    return %c0_i32, %c0_i32_0 : i32, i32
  }
  func.func @transform_11(%arg0: i32) -> (i32, i32) {
    %c0_i32 = arith.constant 0 : i32
    %c0_i32_0 = arith.constant 0 : i32
    %c0_i32_1 = arith.constant 0 : i32
    return %c0_i32, %c0_i32_0 : i32, i32
  }
  func.func @transform_12(%arg0: i32) -> (i32, i32) {
    %c0_i32 = arith.constant 0 : i32
    %c0_i32_0 = arith.constant 0 : i32
    %c0_i32_1 = arith.constant 0 : i32
    return %c0_i32, %c0_i32_0 : i32, i32
  }
  func.func @transform_13(%arg0: i32) -> (i32, i32) {
    %c0_i32 = arith.constant 0 : i32
    %c0_i32_0 = arith.constant 0 : i32
    %c0_i32_1 = arith.constant 0 : i32
    return %c0_i32, %c0_i32_0 : i32, i32
  }
  func.func @transform_14(%arg0: i32) -> (i32, i32, i32) {
    %c0_i32 = arith.constant 0 : i32
    %c0_i32_0 = arith.constant 0 : i32
    %c0_i32_1 = arith.constant 0 : i32
    return %arg0, %c0_i32, %c0_i32_0 : i32, i32, i32
  }
}

</mosaic_0001>

<bundles_post_ra>
// kernel: globally_attentive_block.1
= control target key start
LH: loop header
LB: loop body
LE: loop exit
PB: predicated region body
PF: predicated region fallthrough
CT: control target
= control target key end

     0   :  { %s27955_s29 = smov 0   ;;  %s32548_s0 = inlined_call_operand.vmem [shape: f32[2,32,128], index: 0, kind: input, shape index: {}]   ;;  %s32549_s1 = inlined_call_operand.vmem [shape: f32[128,32], index: 1, kind: input, shape index: {}]   ;;  %s32550_s2 = inlined_call_operand.vmem [shape: f32[1,32], index: 2, kind: input, shape index: {}]   ;;  %s32551_s3 = inlined_call_operand.vmem [shape: f32[1,32], index: 3, kind: input, shape index: {}]   ;;  %s32552_s4 = inlined_call_operand.vmem [shape: f32[32,32], index: 4, kind: input, shape index: {}]   ;;  %s32553_s5 = inlined_call_operand.vmem [shape: f32[32,32], index: 5, kind: input, shape index: {}]   ;;  %s32554_s6 = inlined_call_operand.vmem [shape: f32[32,32], index: 6, kind: input, shape index: {}]   ;;  %s32555_s7 = inlined_call_operand.vmem [shape: f32[1,32], index: 7, kind: input, shape index: {}]   ;;  %s32556_s8 = inlined_call_operand.vmem [shape: f32[1,32], index: 8, kind: input, shape index: {}]   ;;  %s32557_s9 = inlined_call_operand.vmem [shape: f32[1,32], index: 9, kind: input, shape index: {}]   ;;  %s32558_s10 = inlined_call_operand.vmem [shape: f32[32,32], index: 10, kind: input, shape index: {}]   ;;  %s32559_s11 = inlined_call_operand.vmem [shape: f32[1,32], index: 11, kind: input, shape index: {}]   ;;  %s32560_s12 = inlined_call_operand.vmem [shape: f32[1,32], index: 12, kind: input, shape index: {}]   ;;  %s32561_s13 = inlined_call_operand.vmem [shape: f32[1,32], index: 13, kind: input, shape index: {}]   ;;  %s32562_s14 = inlined_call_operand.vmem [shape: f32[2,32,128], index: 14, kind: output, shape index: {}]  }
   0x1 LB: > { %s24399_s30 = sadd.s32 4294967295, %s27869_s29   ;;  %p24403_p0 = scmp.ge.s32.totalorder %s27869_s29, 1  ;;  %s27869_s29 = sphi %s27955_s29, %s24_s29  }
   0x2   : > { %p412_p1 = scmp.lt.s32.totalorder %s27869_s29, 3 }
   0x4   : > { %p413_p2 = pnand %p24403_p0, %p412_p1 }
   0x6   : > { %416 = sbr.rel (%p413_p2) target bundleno = 7340 (0x1cac), region = 76 }
   0xb   : > { %p458_p3 = scmp.lt.s32.totalorder %s24399_s30, 1  ;;  %vm504_vm0 = vcmask 261120   ;;  %vm27872_vm1 = vmmov 0   ;;  %vm1351_vm2 = vcmask 31744   ;;  %vm2568_vm3 = vcmask 64512   ;;  %s27873_s20 = smov 124  }
   0xc   : > { %vm3961_vm4 = vcmask 1043456   ;;  %s27874_s25 = smov 120   ;;  %s27875_s17 = smov 116  }
   0xd   : > { %s33081_s30 = smov (!%p458_p3, %s24399_s30), 1  ;;  %s27877_s23 = smov 108  }
   0xe   : > { %s24986_s15 = sshll.u32 %s33081_s30, 5  ;;  %s27878_s26 = smov 104  }
   0xf   : > { %s462_s18 = scalar_lea.vmem %s32548_s0, %s24986_s15  ;;  %s467_s22 = scalar_lea.vmem %s32562_s14, %s24986_s15 }
  0x10   : > { %v468_v0 = vld [vmem:[%s462_s18] sm:$0xff]  ;;  %v469_v1 = vld [vmem:[%s462_s18 + $0x8] sm:$0xff]  ;;  %v470_v2 = vld [vmem:[%s462_s18 + $0x10] sm:$0xff] }
  0x11   : > { %472 = vxpose.xlu0.b32.start [1/4] (short) %v468_v0, 128  ;;  %v471_v3 = vld [vmem:[%s462_s18 + $0x18] sm:$0xff]  ;;  %s27879_s18 = smov 100  }
  0x15   : > { %473 = vxpose.xlu0.b32.cont [2/4] (short) %v469_v1, 128 }
  0x19   : > { %474 = vxpose.xlu0.b32.cont [3/4] (short) %v470_v2, 128 }
  0x1d   : > { %475 = vxpose.xlu0.b32.end [4/4] (short) %v471_v3, 128 }
  0x8d   : > { %v27971_v4 = vpop.trf.xlu0 }
  0x8e   : > { %32663 = vst [vmem:[#allocation2_spill] sm:$0xff] %v27971_v4  ;;  %v505_v21 = vsel %vm504_vm0, %v27971_v4, 0.0 }
  0x91   : > { %v27973_v5 = vpop.trf.xlu0 }
  0x92   : > { %32664 = vst [vmem:[#allocation3_spill] sm:$0xff] %v27973_v5  ;;  %v508_v29 = vsel %vm504_vm0, %v27973_v5, 0.0 }
  0x95   : > { %v27975_v6 = vpop.trf.xlu0 }
  0x96   : > { %32665 = vst [vmem:[#allocation4_spill] sm:$0xff] %v27975_v6  ;;  %v511_v30 = vsel %vm504_vm0, %v27975_v6, 0.0 }
  0x99   : > { %v27977_v7 = vpop.trf.xlu0 }
  0x9a   : > { %32666 = vst [vmem:[#allocation5_spill] sm:$0xff] %v27977_v7  ;;  %v514_v31 = vsel %vm504_vm0, %v27977_v7, 0.0 }
  0x9d   : > { %v27979_v8 = vpop.trf.xlu0 }
  0x9e   : > { %32667 = vst [vmem:[#allocation6_spill] sm:$0xff] %v27979_v8  ;;  %v517_v32 = vsel %vm504_vm0, %v27979_v8, 0.0 }
  0xa1   : > { %v27981_v9 = vpop.trf.xlu0 }
  0xa2   : > { %32668 = vst [vmem:[#allocation7_spill] sm:$0xff] %v27981_v9  ;;  %v520_v33 = vsel %vm504_vm0, %v27981_v9, 0.0 }
  0xa5   : > { %v27983_v10 = vpop.trf.xlu0 }
  0xa6   : > { %32669 = vst [vmem:[#allocation8_spill] sm:$0xff] %v27983_v10  ;;  %v523_v34 = vsel %vm504_vm0, %v27983_v10, 0.0 }
  0xa9   : > { %v27985_v11 = vpop.trf.xlu0 }
  0xaa   : > { %32670 = vst [vmem:[#allocation9_spill] sm:$0xff] %v27985_v11  ;;  %v526_v35 = vsel %vm504_vm0, %v27985_v11, 0.0 }
  0xad   : > { %v27987_v12 = vpop.trf.xlu0 }
  0xae   : > { %32671 = vst [vmem:[#allocation10_spill] sm:$0xff] %v27987_v12  ;;  %v529_v13 = vsel %vm504_vm0, %v27987_v12, 0.0 }
  0xaf   : > { %530 = vadd.xlane.f32.xlu1 %v529_v13 }
  0xb1   : > { %v27991_v14 = vpop.trf.xlu0 }
  0xb2   : > { %32672 = vst [vmem:[#allocation11_spill] sm:$0xff] %v27991_v14  ;;  %v532_v15 = vsel %vm504_vm0, %v27991_v14, 0.0 }
  0xb3   : > { %533 = vadd.xlane.f32.xlu1 %v532_v15 }
  0xb5   : > { %v27995_v16 = vpop.trf.xlu0 }
  0xb6   : > { %32673 = vst [vmem:[#allocation12_spill] sm:$0xff] %v27995_v16  ;;  %v535_v17 = vsel %vm504_vm0, %v27995_v16, 0.0 }
  0xb7   : > { %536 = vadd.xlane.f32.xlu1 %v535_v17 }
  0xb9   : > { %v27999_v18 = vpop.trf.xlu0 }
  0xba   : > { %32674 = vst [vmem:[#allocation13_spill] sm:$0xff] %v27999_v18  ;;  %v538_v19 = vsel %vm504_vm0, %v27999_v18, 0.0 }
  0xbb   : > { %539 = vadd.xlane.f32.xlu1 %v538_v19 }
  0xbd   : > { %v28003_v20 = vpop.trf.xlu0 }
  0xbe   : > { %32675 = vst [vmem:[#allocation14_spill] sm:$0xff] %v28003_v20  ;;  %v541_v22 = vsel %vm504_vm0, %v28003_v20, 0.0 }
  0xbf   : > { %506 = vadd.xlane.f32.xlu1 %v505_v21  ;;  %542 = vadd.xlane.f32.xlu0 %v541_v22 }
  0xc1   : > { %v28009_v23 = vpop.trf.xlu0 }
  0xc2   : > { %32676 = vst [vmem:[#allocation15_spill] sm:$0xff] %v28009_v23  ;;  %v544_v24 = vsel %vm504_vm0, %v28009_v23, 0.0 }
  0xc3   : > { %545 = vadd.xlane.f32.xlu1 %v544_v24 }
  0xc5   : > { %v28013_v25 = vpop.trf.xlu0 }
  0xc6   : > { %32677 = vst [vmem:[#allocation16_spill] sm:$0xff] %v28013_v25  ;;  %v547_v26 = vsel %vm504_vm0, %v28013_v25, 0.0 }
  0xc7   : > { %548 = vadd.xlane.f32.xlu1 %v547_v26 }
  0xc9   : > { %v28017_v27 = vpop.trf.xlu0 }
  0xca   : > { %32678 = vst [vmem:[#allocation17_spill] sm:$0xff] %v28017_v27  ;;  %v550_v28 = vsel %vm504_vm0, %v28017_v27, 0.0 }
  0xcb   : > { %551 = vadd.xlane.f32.xlu1 %v550_v28 }
  0xcf   : > { %509 = vadd.xlane.f32.xlu1 %v508_v29 }
  0xd3   : > { %512 = vadd.xlane.f32.xlu1 %v511_v30 }
  0xd7   : > { %515 = vadd.xlane.f32.xlu1 %v514_v31 }
  0xdb   : > { %518 = vadd.xlane.f32.xlu1 %v517_v32 }
  0xdf   : > { %521 = vadd.xlane.f32.xlu1 %v520_v33 }
  0xe3   : > { %524 = vadd.xlane.f32.xlu1 %v523_v34 }
  0xe7   : > { %527 = vadd.xlane.f32.xlu1 %v526_v35 }
 0x138   : > { %v531_v36 = vpop.xlane.xlu1 %530 }
 0x139   : > { %v562_v40 = vmul.f32 0.03125, %v531_v36 }
 0x13b   : > { %v28036_v43 = vsub.f32 %v27987_v12, %v562_v40 }
 0x13c   : > { %v534_v37 = vpop.xlane.xlu1 %533 }
 0x13d   : > { %v563_v44 = vmul.f32 0.03125, %v534_v37  ;;  %v594_v51 = vmul.f32 %v28036_v43, %v28036_v43 }
 0x13f   : > { %v28044_v48 = vsub.f32 %v27991_v14, %v563_v44  ;;  %v626_v55 = vsel %vm504_vm0, %v594_v51, 0.0 }
 0x140   : > { %v537_v38 = vpop.xlane.xlu1 %536 }
 0x141   : > { %v564_v49 = vmul.f32 0.03125, %v537_v38  ;;  %v595_v56 = vmul.f32 %v28044_v48, %v28044_v48 }
 0x143   : > { %v28050_v53 = vsub.f32 %v27995_v16, %v564_v49  ;;  %v629_v61 = vsel %vm504_vm0, %v595_v56, 0.0 }
 0x144   : > { %v540_v39 = vpop.xlane.xlu1 %539 }
 0x145   : > { %v565_v54 = vmul.f32 0.03125, %v540_v39  ;;  %v596_v62 = vmul.f32 %v28050_v53, %v28050_v53 }
 0x147   : > { %v28056_v59 = vsub.f32 %v27999_v18, %v565_v54  ;;  %v632_v2 = vsel %vm504_vm0, %v596_v62, 0.0 }
 0x148   : > { %v507_v41 = vpop.xlane.xlu1 %506  ;;  %v543_v57 = vpop.xlane.xlu0 %542 }
 0x149   : > { %v554_v42 = vmul.f32 0.03125, %v507_v41  ;;  %v566_v60 = vmul.f32 0.03125, %v543_v57  ;;  %v597_v3 = vmul.f32 %v28056_v59, %v28056_v59 }
 0x14b   : > { %v28039_v45 = vsub.f32 %v27971_v4, %v554_v42  ;;  %v28062_v0 = vsub.f32 %v28003_v20, %v566_v60  ;;  %v635_v19 = vsel %vm504_vm0, %v597_v3, 0.0 }
 0x14c   : > { %v546_v46 = vpop.xlane.xlu1 %545 }
 0x14d   : > { %v586_v47 = vmul.f32 %v28039_v45, %v28039_v45  ;;  %v567_v1 = vmul.f32 0.03125, %v546_v46  ;;  %v598_v21 = vmul.f32 %v28062_v0, %v28062_v0 }
 0x14f   : > { %v602_v50 = vsel %vm504_vm0, %v586_v47, 0.0  ;;  %v28068_v15 = vsub.f32 %v28009_v23, %v567_v1  ;;  %v638_v28 = vsel %vm504_vm0, %v598_v21, 0.0  ;;  %v792_v21 = vld [vmem:[%s32552_s4] sm:$0xff] }
 0x150   : > { %v549_v52 = vpop.xlane.xlu1 %548  ;;  %603 = vadd.xlane.f32.xlu1 %v602_v50 }
 0x151   : > { %v568_v17 = vmul.f32 0.03125, %v549_v52  ;;  %v599_v29 = vmul.f32 %v28068_v15, %v28068_v15 }
 0x153   : > { %v28074_v24 = vsub.f32 %v28013_v25, %v568_v17  ;;  %v641_v33 = vsel %vm504_vm0, %v599_v29, 0.0 }
 0x154   : > { %627 = vadd.xlane.f32.xlu1 %v626_v55  ;;  %v552_v58 = vpop.xlane.xlu1 %551 }
 0x155   : > { %v569_v26 = vmul.f32 0.03125, %v552_v58  ;;  %v600_v34 = vmul.f32 %v28074_v24, %v28074_v24 }
 0x157   : > { %v28080_v31 = vsub.f32 %v28017_v27, %v569_v26  ;;  %v644_v40 = vsel %vm504_vm0, %v600_v34, 0.0  ;;  %v28152_v34 = vld [vmem:[%s32554_s6 + $0x18] sm:$0xff] }
 0x158   : > { %630 = vadd.xlane.f32.xlu1 %v629_v61  ;;  %v510_v63 = vpop.xlane.xlu1 %509  ;;  %v795_v61 = vld [vmem:[%s32552_s4 + $0x18] sm:$0xff] }
 0x159   : > { %v555_v32 = vmul.f32 0.03125, %v510_v63  ;;  %v601_v41 = vmul.f32 %v28080_v31, %v28080_v31  ;;  %27280 = vmatprep.subr.mxu1 %v795_v61  ;;  %v794_v63 = vld [vmem:[%s32552_s4 + $0x10] sm:$0xff]  ;;  %25696 = vmatprep.subr.mxu0 %v795_v61 }
 0x15a   : > { %27284 = vmatpush3.msra.mxu1 %v795_v61  ;;  %25697 = vmatpush3.msra.mxu0 %v795_v61 }
 0x15b   : > { %v28086_v38 = vsub.f32 %v27973_v5, %v555_v32  ;;  %v647_v50 = vsel %vm504_vm0, %v601_v41, 0.0  ;;  %27281 = vmatprep.subr.mxu1 %v794_v63  ;;  %25698 = vmatprep.subr.mxu0 %v794_v63 }
 0x15c   : > { %633 = vadd.xlane.f32.xlu1 %v632_v2  ;;  %v513_v13 = vpop.xlane.xlu1 %512  ;;  %27285 = vmatpush3.msra.mxu1 %v794_v63 }
 0x15d   : > { %v556_v37 = vmul.f32 0.03125, %v513_v13  ;;  %v587_v51 = vmul.f32 %v28086_v38, %v28086_v38  ;;  %25699 = vmatpush3.msra.mxu0 %v794_v63 }
 0x15f   : > { %v28097_v46 = vsub.f32 %v27975_v6, %v556_v37  ;;  %v605_v60 = vsel %vm504_vm0, %v587_v51, 0.0 }
 0x160   : > { %636 = vadd.xlane.f32.xlu1 %v635_v19  ;;  %v516_v22 = vpop.xlane.xlu1 %515  ;;  %v793_v19 = vld [vmem:[%s32552_s4 + $0x8] sm:$0xff] }
 0x161   : > { %v557_v47 = vmul.f32 0.03125, %v516_v22  ;;  %v588_v55 = vmul.f32 %v28097_v46, %v28097_v46  ;;  %27282 = vmatprep.subr.mxu1 %v793_v19  ;;  %25700 = vmatprep.subr.mxu0 %v793_v19 }
 0x162   : > { %27286 = vmatpush3.msra.mxu1 %v793_v19  ;;  %25701 = vmatpush3.msra.mxu0 %v793_v19  ;;  %v760_v19 = vld [vmem:[%s32549_s1] sm:$0xff] }
 0x163   : > { %v28106_v56 = vsub.f32 %v27977_v7, %v557_v47  ;;  %v608_v1 = vsel %vm504_vm0, %v588_v55, 0.0  ;;  %27283 = vmatprep.subr.mxu1 %v792_v21  ;;  %25702 = vmatprep.subr.mxu0 %v792_v21 }
 0x164   : > { %v519_v30 = vpop.xlane.xlu1 %518  ;;  %639 = vadd.xlane.f32.xlu1 %v638_v28  ;;  %27287 = vmatpush3.msra.mxu1 %v792_v21 }
 0x165   : > { %v558_v57 = vmul.f32 0.03125, %v519_v30  ;;  %v589_v17 = vmul.f32 %v28106_v56, %v28106_v56  ;;  %25703 = vmatpush3.msra.mxu0 %v792_v21 }
 0x166   : > { %25760 = vmatprep.subr.mxu0 %v28152_v34 }
 0x167   : > { %v28122_v2 = vsub.f32 %v27979_v8, %v558_v57  ;;  %v611_v26 = vsel %vm504_vm0, %v589_v17, 0.0 }
 0x168   : > { %v522_v35 = vpop.xlane.xlu1 %521  ;;  %642 = vadd.xlane.f32.xlu1 %v641_v33  ;;  %v28146_v33 = vld [vmem:[%s32553_s5 + $0x18] sm:$0xff] }
 0x169   : > { %v559_v36 = vmul.f32 0.03125, %v522_v35  ;;  %v590_v28 = vmul.f32 %v28122_v2, %v28122_v2  ;;  %25728 = vmatprep.subr.mxu1 %v28146_v33 }
 0x16b   : > { %v28089_v39 = vsub.f32 %v27981_v9, %v559_v36  ;;  %v614_v29 = vsel %vm504_vm0, %v590_v28, 0.0 }
 0x16c   : > { %v525_v42 = vpop.xlane.xlu1 %524  ;;  %645 = vadd.xlane.f32.xlu1 %v644_v40 }
 0x16d   : > { %v591_v44 = vmul.f32 %v28089_v39, %v28089_v39  ;;  %v560_v3 = vmul.f32 0.03125, %v525_v42 }
 0x16f   : > { %v617_v49 = vsel %vm504_vm0, %v591_v44, 0.0  ;;  %v28134_v22 = vsub.f32 %v27983_v10, %v560_v3 }
 0x170   : > { %618 = vadd.xlane.f32.xlu0 %v617_v49  ;;  %v528_v52 = vpop.xlane.xlu1 %527  ;;  %648 = vadd.xlane.f32.xlu1 %v647_v50 }
 0x171   : > { %v561_v54 = vmul.f32 0.03125, %v528_v52  ;;  %v592_v30 = vmul.f32 %v28134_v22, %v28134_v22 }
 0x173   : > { %v28109_v58 = vsub.f32 %v27985_v11, %v561_v54  ;;  %v620_v32 = vsel %vm504_vm0, %v592_v30, 0.0 }
 0x174   : > { %606 = vadd.xlane.f32.xlu1 %v605_v60  ;;  %v28158_v60 = vld [vmem:[%s32550_s2] ss:$0 sm:$0xff] }
 0x175   : > { %v593_v62 = vmul.f32 %v28109_v58, %v28109_v58 }
 0x177   : > { %v623_v13 = vsel %vm504_vm0, %v593_v62, 0.0 }
 0x178   : > { %624 = vadd.xlane.f32.xlu0 %v623_v13  ;;  %609 = vadd.xlane.f32.xlu1 %v608_v1  ;;  %v28164_v1 = vld [vmem:[%s32551_s3] ss:$0 sm:$0xff] }
 0x17c   : > { %612 = vadd.xlane.f32.xlu1 %v611_v26 }
 0x180   : > { %615 = vadd.xlane.f32.xlu1 %v614_v29 }
 0x184   : > { %621 = vadd.xlane.f32.xlu1 %v620_v32 }
 0x1d9   : > { %v604_v35 = vpop.xlane.xlu1 %603 }
 0x1da   : > { %v650_v36 = vmul.f32 0.03125, %v604_v35 }
 0x1dc   : > { %v666_v37 = vadd.f32 1e-12, %v650_v36  ;;  %v768_v36 = vld [vmem:[%s32549_s1 + $0x40] sm:$0xff] }
 0x1dd   : > { %v628_v40 = vpop.xlane.xlu1 %627 }
 0x1de   : > { %27311 = vrsqrt.f32 %v666_v37  ;;  %v658_v41 = vmul.f32 0.03125, %v628_v40 }
 0x1e0   : > { %v674_v42 = vadd.f32 1e-12, %v658_v41 }
 0x1e1   : > { %v631_v44 = vpop.xlane.xlu1 %630 }
 0x1e2   : > { %27313 = vrsqrt.f32 %v674_v42  ;;  %v659_v47 = vmul.f32 0.03125, %v631_v44 }
 0x1e4   : > { %v675_v49 = vadd.f32 1e-12, %v659_v47 }
 0x1e5   : > { %v634_v50 = vpop.xlane.xlu1 %633 }
 0x1e6   : > { %27315 = vrsqrt.f32 %v675_v49  ;;  %v660_v51 = vmul.f32 0.03125, %v634_v50  ;;  %v769_v50 = vld [vmem:[%s32549_s1 + $0x48] sm:$0xff] }
 0x1e8   : > { %v676_v52 = vadd.f32 1e-12, %v660_v51 }
 0x1e9   : > { %v637_v54 = vpop.xlane.xlu1 %636 }
 0x1ea   : > { %27317 = vrsqrt.f32 %v676_v52  ;;  %v661_v55 = vmul.f32 0.03125, %v637_v54 }
 0x1eb   : > { %v27312_v57 = vpop.eup %27311 }
 0x1ec   : > { %v677_v61 = vadd.f32 1e-12, %v661_v55  ;;  %v698_v62 = vmul.f32 %v27312_v57, %v28039_v45 }
 0x1ed   : > { %v640_v63 = vpop.xlane.xlu1 %639 }
 0x1ee   : > { %27319 = vrsqrt.f32 %v677_v61  ;;  %v662_v3 = vmul.f32 0.03125, %v640_v63  ;;  %v721_v13 = vmul.f32 %v28158_v60, %v698_v62  ;;  %v998_v63 = vld [vmem:[%s32553_s5 + $0x10] sm:$0xff] }
 0x1ef   : > { %v27314_v17 = vpop.eup %27313 }
 0x1f0   : > { %v678_v21 = vadd.f32 1e-12, %v662_v3  ;;  %v744_v26 = vadd.f32 %v28164_v1, %v721_v13  ;;  %v706_v45 = vmul.f32 %v27314_v17, %v28036_v43 }
 0x1f1   : > { %v643_v28 = vpop.xlane.xlu1 %642 }
 0x1f2   : > { %27321 = vrsqrt.f32 %v678_v21  ;;  %v663_v29 = vmul.f32 0.03125, %v643_v28  ;;  %v28172_v30 = vadd.f32 %v760_v19, %v744_v26  ;;  %v729_v32 = vmul.f32 %v28158_v60, %v706_v45  ;;  %v997_v26 = vld [vmem:[%s32553_s5 + $0x8] sm:$0xff] }
 0x1f3   : > { %v27316_v35 = vpop.eup %27315 }
 0x1f4   : > { %32679 = vst [vmem:[#allocation18_spill] sm:$0xff] %v28172_v30  ;;  %v679_v37 = vadd.f32 1e-12, %v663_v29  ;;  %25704 = vmatprep.mubr.msk.f32.mxu0 %vm504_vm0, %v28172_v30  ;;  %v752_v40 = vadd.f32 %v28164_v1, %v729_v32  ;;  %v707_v43 = vmul.f32 %v27316_v35, %v28044_v48 }
 0x1f5   : > { %v646_v41 = vpop.xlane.xlu1 %645 }
 0x1f6   : > { %27323 = vrsqrt.f32 %v679_v37  ;;  %v664_v42 = vmul.f32 0.03125, %v646_v41  ;;  %v28182_v44 = vadd.f32 %v768_v36, %v752_v40  ;;  %v730_v47 = vmul.f32 %v28158_v60, %v707_v43 }
 0x1f7   : > { %v27318_v49 = vpop.eup %27317 }
 0x1f8   : > { %32680 = vst [vmem:[#allocation19_spill] sm:$0xff] %v28182_v44  ;;  %v680_v51 = vadd.f32 1e-12, %v664_v42  ;;  %25716 = vmatprep.mubr.msk.f32.mxu1 %vm504_vm0, %v28182_v44  ;;  %v753_v52 = vadd.f32 %v28164_v1, %v730_v47  ;;  %v708_v48 = vmul.f32 %v27318_v49, %v28050_v53  ;;  %v770_v53 = vld [vmem:[%s32549_s1 + $0x50] sm:$0xff] }
 0x1f9   : > { %v649_v54 = vpop.xlane.xlu1 %648  ;;  %v619_v13 = vpop.xlane.xlu0 %618 }
 0x1fa   : > { %27325 = vrsqrt.f32 %v680_v51  ;;  %v665_v55 = vmul.f32 0.03125, %v649_v54  ;;  %v28192_v57 = vadd.f32 %v769_v50, %v753_v52  ;;  %v731_v62 = vmul.f32 %v28158_v60, %v708_v48 }
 0x1fb   : > { %v27320_v61 = vpop.eup %27319  ;;  %v655_v32 = vmul.f32 0.03125, %v619_v13 }
 0x1fc   : > { %32681 = vst [vmem:[#allocation20_spill] sm:$0xff] %v28192_v57  ;;  %v681_v3 = vadd.f32 1e-12, %v665_v55  ;;  %25717 = vmatmul.mubr.msk.f32.vlgmr.msra.gmra.mxu1 %vm504_vm0, %v28192_v57  ;;  %v709_v17 = vmul.f32 %v27320_v61, %v28056_v59  ;;  %v754_v21 = vadd.f32 %v28164_v1, %v731_v62  ;;  %v771_v59 = vld [vmem:[%s32549_s1 + $0x58] sm:$0xff] }
 0x1fd   : > { %v607_v19 = vpop.xlane.xlu1 %606  ;;  %25729 = vmatpush3.msra.mxu1 %v28146_v33  ;;  %v996_v33 = vld [vmem:[%s32553_s5] sm:$0xff]  ;;  %v671_v50 = vadd.f32 1e-12, %v655_v32 }
 0x1fe   : > { %27327 = vrsqrt.f32 %v681_v3  ;;  %v651_v45 = vmul.f32 0.03125, %v607_v19  ;;  %v732_v28 = vmul.f32 %v28158_v60, %v709_v17  ;;  %25730 = vmatprep.subr.mxu1 %v998_v63  ;;  %v28210_v35 = vadd.f32 %v770_v53, %v754_v21  ;;  %v773_v17 = vld [vmem:[%s32549_s1 + $0x68] sm:$0xff] }
 0x1ff   : > { %v27322_v29 = vpop.eup %27321  ;;  %25731 = vmatpush3.msra.mxu1 %v998_v63 }
 0x200   : > { %32682 = vst [vmem:[#allocation21_spill] sm:$0xff] %v28210_v35  ;;  %v667_v36 = vadd.f32 1e-12, %v651_v45  ;;  %v755_v37 = vadd.f32 %v28164_v1, %v732_v28  ;;  %v710_v40 = vmul.f32 %v27322_v29, %v28062_v0  ;;  %25732 = vmatprep.subr.mxu1 %v997_v26  ;;  %25719 = vmatprep.mubr.msk.f32.mxu1 %vm504_vm0, %v28210_v35  ;;  %v772_v0 = vld [vmem:[%s32549_s1 + $0x60] sm:$0xff] }
 0x201   : > { %v610_v43 = vpop.xlane.xlu1 %609  ;;  %v625_v41 = vpop.xlane.xlu0 %624  ;;  %25733 = vmatpush3.msra.mxu1 %v997_v26 }
 0x202   : > { %27329 = vrsqrt.f32 %v667_v36  ;;  %v652_v42 = vmul.f32 0.03125, %v610_v43  ;;  %v28222_v47 = vadd.f32 %v771_v59, %v755_v37  ;;  %25734 = vmatprep.subr.mxu1 %v996_v33  ;;  %v657_v51 = vmul.f32 0.03125, %v625_v41  ;;  %v774_v59 = vld [vmem:[%s32549_s1 + $0x70] sm:$0xff] }
 0x203   : > { %v27324_v49 = vpop.eup %27323  ;;  %v733_v52 = vmul.f32 %v28158_v60, %v710_v40  ;;  %25735 = vmatpush3.msra.mxu1 %v996_v33 }
 0x204   : > { %32683 = vst [vmem:[#allocation22_spill] sm:$0xff] %v28222_v47  ;;  %v668_v48 = vadd.f32 1e-12, %v652_v42  ;;  %25720 = vmatmul.mubr.msk.f32.gmra.mxu1 %vm504_vm0, %v28222_v47  ;;  %v711_v54 = vmul.f32 %v27324_v49, %v28068_v15  ;;  %v673_v13 = vadd.f32 1e-12, %v657_v51  ;;  %v775_v49 = vld [vmem:[%s32549_s1 + $0x78] sm:$0xff] }
 0x205   : > { %v613_v55 = vpop.xlane.xlu1 %612  ;;  %v756_v61 = vadd.f32 %v28164_v1, %v733_v52 }
 0x206   : > { %27331 = vrsqrt.f32 %v668_v48  ;;  %v653_v62 = vmul.f32 0.03125, %v613_v55  ;;  %v734_v63 = vmul.f32 %v28158_v60, %v711_v54  ;;  %v761_v54 = vld [vmem:[%s32549_s1 + $0x8] sm:$0xff] }
 0x207   : > { %v27326_v3 = vpop.eup %27325  ;;  %27333 = vrsqrt.f32 %v671_v50  ;;  %v28233_v53 = vadd.f32 %v772_v0, %v756_v61 }
 0x208   : > { %v669_v19 = vadd.f32 1e-12, %v653_v62  ;;  %v757_v21 = vadd.f32 %v28164_v1, %v734_v63  ;;  %v712_v15 = vmul.f32 %v27326_v3, %v28074_v24 }
 0x209   : > { %32684 = vst [vmem:[#allocation23_spill] sm:$0xff] %v28233_v53  ;;  %25722 = vmatprep.mubr.msk.f32.mxu1 %vm504_vm0, %v28233_v53  ;;  %v616_v26 = vpop.xlane.xlu1 %615 }
 0x20a   : > { %27335 = vrsqrt.f32 %v669_v19  ;;  %v654_v45 = vmul.f32 0.03125, %v616_v26  ;;  %v28242_v28 = vadd.f32 %v773_v17, %v757_v21  ;;  %v735_v29 = vmul.f32 %v28158_v60, %v712_v15  ;;  %v1154_v19 = vld [vmem:[%s32554_s6 + $0x10] sm:$0xff] }
 0x20b   : > { %v27328_v32 = vpop.eup %27327  ;;  %27337 = vrsqrt.f32 %v673_v13  ;;  %v762_v13 = vld [vmem:[%s32549_s1 + $0x10] sm:$0xff] }
 0x20c   : > { %32685 = vst [vmem:[#allocation24_spill] sm:$0xff] %v28242_v28  ;;  %v670_v33 = vadd.f32 1e-12, %v654_v45  ;;  %25723 = vmatmul.mubr.msk.f32.gmra.mxu1 %vm504_vm0, %v28242_v28  ;;  %v758_v24 = vadd.f32 %v28164_v1, %v735_v29  ;;  %v713_v36 = vmul.f32 %v27328_v32, %v28080_v31  ;;  %v1153_v45 = vld [vmem:[%s32554_s6 + $0x8] sm:$0xff]  ;;  %v763_v32 = vld [vmem:[%s32549_s1 + $0x18] sm:$0xff] }
 0x20d   : > { %v622_v37 = vpop.xlane.xlu1 %621 }
 0x20e   : > { %27339 = vrsqrt.f32 %v670_v33  ;;  %v656_v40 = vmul.f32 0.03125, %v622_v37  ;;  %v28252_v43 = vadd.f32 %v774_v59, %v758_v24  ;;  %v736_v41 = vmul.f32 %v28158_v60, %v713_v36  ;;  %v1152_v24 = vld [vmem:[%s32554_s6] sm:$0xff] }
 0x20f   : > { %v27330_v42 = vpop.eup %27329 }
 0x210   : > { %32686 = vst [vmem:[#allocation25_spill] sm:$0xff] %v28252_v43  ;;  %v672_v50 = vadd.f32 1e-12, %v656_v40  ;;  %25725 = vmatprep.mubr.msk.f32.mxu1 %vm504_vm0, %v28252_v43  ;;  %v759_v51 = vadd.f32 %v28164_v1, %v736_v41  ;;  %v699_v31 = vmul.f32 %v27330_v42, %v28086_v38  ;;  %v764_v40 = vld [vmem:[%s32549_s1 + $0x20] sm:$0xff] }
 0x212   : > { %27341 = vrsqrt.f32 %v672_v50  ;;  %v28262_v52 = vadd.f32 %v775_v49, %v759_v51  ;;  %v722_v48 = vmul.f32 %v28158_v60, %v699_v31  ;;  %v765_v49 = vld [vmem:[%s32549_s1 + $0x28] sm:$0xff] }
 0x213   : > { %v27332_v0 = vpop.eup %27331 }
 0x214   : > { %32687 = vst [vmem:[#allocation26_spill] sm:$0xff] %v28262_v52  ;;  %v27334_v55 = vpop.eup %27333  ;;  %25726 = vmatmul.mubr.msk.f32.gmra.mxu1 %vm504_vm0, %v28262_v52  ;;  %v745_v61 = vadd.f32 %v28164_v1, %v722_v48  ;;  %v700_v62 = vmul.f32 %v27332_v0, %v28097_v46  ;;  %v766_v0 = vld [vmem:[%s32549_s1 + $0x30] sm:$0xff] }
 0x215   : > { %25736 = vmatprep.mubr.msk.f32.mxu1 %vm504_vm0, %v28172_v30  ;;  %v703_v17 = vmul.f32 %v27334_v55, %v28089_v39 }
 0x216   : > { %v28274_v38 = vadd.f32 %v761_v54, %v745_v61  ;;  %v723_v63 = vmul.f32 %v28158_v60, %v700_v62 }
 0x217   : > { %v27336_v3 = vpop.eup %27335  ;;  %v726_v59 = vmul.f32 %v28158_v60, %v703_v17 }
 0x218   : > { %32688 = vst [vmem:[#allocation27_spill] sm:$0xff] %v28274_v38  ;;  %v27338_v21 = vpop.eup %27337  ;;  %25705 = vmatmul.mubr.msk.f32.vlgmr.msra.gmra.mxu0 %vm504_vm0, %v28274_v38  ;;  %25737 = vmatmul.mubr.msk.f32.vlgmr.msra.gmra.mxu1 %vm504_vm0, %v28274_v38  ;;  %v746_v46 = vadd.f32 %v28164_v1, %v723_v63  ;;  %v701_v15 = vmul.f32 %v27336_v3, %v28106_v56 }
 0x219   : > { %25761 = vmatpush3.msra.mxu0 %v28152_v34  ;;  %v705_v56 = vmul.f32 %v27338_v21, %v28109_v58  ;;  %v749_v41 = vadd.f32 %v28164_v1, %v726_v59 }
 0x21a   : > { %v28291_v26 = vadd.f32 %v762_v13, %v746_v46  ;;  %v724_v39 = vmul.f32 %v28158_v60, %v701_v15  ;;  %25762 = vmatprep.subr.mxu0 %v1154_v19 }
 0x21b   : > { %v27340_v29 = vpop.eup %27339  ;;  %25763 = vmatpush3.msra.mxu0 %v1154_v19  ;;  %v728_v42 = vmul.f32 %v28158_v60, %v705_v56  ;;  %v28331_v48 = vadd.f32 %v765_v49, %v749_v41 }
 0x21c   : > { %32689 = vst [vmem:[#allocation28_spill] sm:$0xff] %v28291_v26  ;;  %25707 = vmatprep.mubr.msk.f32.mxu0 %vm504_vm0, %v28291_v26  ;;  %25739 = vmatprep.mubr.msk.f32.mxu1 %vm504_vm0, %v28291_v26  ;;  %v747_v34 = vadd.f32 %v28164_v1, %v724_v39  ;;  %v702_v33 = vmul.f32 %v27340_v29, %v28122_v2  ;;  %v28437_v29 = vld [vmem:[%s32556_s8] ss:$0 sm:$0xff] }
 0x21d   : > { %25764 = vmatprep.subr.mxu0 %v1153_v45  ;;  %32692 = vst [vmem:[#allocation31_spill] sm:$0xff] %v28331_v48  ;;  %v751_v54 = vadd.f32 %v28164_v1, %v728_v42 }
 0x21e   : > { %v28311_v36 = vadd.f32 %v763_v32, %v747_v34  ;;  %v725_v37 = vmul.f32 %v28158_v60, %v702_v33  ;;  %25765 = vmatpush3.msra.mxu0 %v1153_v45  ;;  %v28432_v45 = vld [vmem:[%s32555_s7] ss:$0 sm:$0xff] }
 0x21f   : > { %v27342_v58 = vpop.eup %27341  ;;  %25766 = vmatprep.subr.mxu0 %v1152_v24 }
 0x220   : > { %32690 = vst [vmem:[#allocation29_spill] sm:$0xff] %v28311_v36  ;;  %25708 = vmatmul.mubr.msk.f32.gmra.mxu0 %vm504_vm0, %v28311_v36  ;;  %25740 = vmatmul.mubr.msk.f32.gmra.mxu1 %vm504_vm0, %v28311_v36  ;;  %v748_v2 = vadd.f32 %v28164_v1, %v725_v37  ;;  %v704_v50 = vmul.f32 %v27342_v58, %v28134_v22 }
 0x221   : > { %25767 = vmatpush3.msra.mxu0 %v1152_v24 }
 0x222   : > { %v28328_v51 = vadd.f32 %v764_v40, %v748_v2  ;;  %v727_v31 = vmul.f32 %v28158_v60, %v704_v50  ;;  %v767_v60 = vld [vmem:[%s32549_s1 + $0x38] sm:$0xff] }
 0x223   : > { %v28351_v61 = vadd.f32 %v767_v60, %v751_v54 }
 0x224   : > { %32691 = vst [vmem:[#allocation30_spill] sm:$0xff] %v28328_v51  ;;  %25710 = vmatprep.mubr.msk.f32.mxu0 %vm504_vm0, %v28328_v51  ;;  %25742 = vmatprep.mubr.msk.f32.mxu1 %vm504_vm0, %v28328_v51  ;;  %v750_v22 = vadd.f32 %v28164_v1, %v727_v31  ;;  %v32572_v1 = vmov 0.0  }
 0x225   : > { %25711 = vmatmul.mubr.msk.f32.gmra.mxu0 %vm504_vm0, %v28331_v48  ;;  %25743 = vmatmul.mubr.msk.f32.gmra.mxu1 %vm504_vm0, %v28331_v48  ;;  %32694 = vst [vmem:[#allocation33_spill] sm:$0xff] %v28351_v61 }
 0x226   : > { %v28349_v55 = vadd.f32 %v766_v0, %v750_v22  ;;  %25792 = vmatprep.subr.mxu1 %v32572_v1  ;;  %25832 = vmatprep.subr.mxu0 %v32572_v1 }
 0x228   : > { %32693 = vst [vmem:[#allocation32_spill] sm:$0xff] %v28349_v55  ;;  %25713 = vmatprep.mubr.msk.f32.mxu0 %vm504_vm0, %v28349_v55  ;;  %25745 = vmatprep.mubr.msk.f32.mxu1 %vm504_vm0, %v28349_v55 }
 0x229   : > { %25714 = vmatmul.mubr.msk.f32.gmra.mxu0 %vm504_vm0, %v28351_v61  ;;  %25746 = vmatmul.mubr.msk.f32.gmra.mxu1 %vm504_vm0, %v28351_v61 }
 0x22a   : > { %25748 = vmatprep.mubr.msk.f32.mxu1 %vm504_vm0, %v28182_v44  ;;  %25768 = vmatprep.mubr.msk.f32.mxu0 %vm504_vm0, %v28172_v30 }
 0x22d   : > { %25749 = vmatmul.mubr.msk.f32.gmra.mxu1 %vm504_vm0, %v28192_v57  ;;  %25769 = vmatmul.mubr.msk.f32.vlgmr.msra.gmra.mxu0 %vm504_vm0, %v28274_v38 }
 0x22e   : > { %25751 = vmatprep.mubr.msk.f32.mxu1 %vm504_vm0, %v28210_v35  ;;  %25771 = vmatprep.mubr.msk.f32.mxu0 %vm504_vm0, %v28291_v26 }
 0x231   : > { %25752 = vmatmul.mubr.msk.f32.gmra.mxu1 %vm504_vm0, %v28222_v47  ;;  %25772 = vmatmul.mubr.msk.f32.gmra.mxu0 %vm504_vm0, %v28311_v36 }
 0x232   : > { %25754 = vmatprep.mubr.msk.f32.mxu1 %vm504_vm0, %v28233_v53  ;;  %25774 = vmatprep.mubr.msk.f32.mxu0 %vm504_vm0, %v28328_v51 }
 0x235   : > { %25755 = vmatmul.mubr.msk.f32.gmra.mxu1 %vm504_vm0, %v28242_v28  ;;  %25775 = vmatmul.mubr.msk.f32.gmra.mxu0 %vm504_vm0, %v28331_v48 }
 0x236   : > { %25757 = vmatprep.mubr.msk.f32.mxu1 %vm504_vm0, %v28252_v43  ;;  %25777 = vmatprep.mubr.msk.f32.mxu0 %vm504_vm0, %v28349_v55 }
 0x239   : > { %25758 = vmatmul.mubr.msk.f32.gmra.mxu1 %vm504_vm0, %v28262_v52  ;;  %25778 = vmatmul.mubr.msk.f32.gmra.mxu0 %vm504_vm0, %v28351_v61 }
 0x23a   : > { %25780 = vmatprep.mubr.msk.f32.mxu0 %vm504_vm0, %v28182_v44  ;;  %25794 = vmatprep.mubr.msk.f32.mxu1 %vm27872_vm1, %v32572_v1 }
 0x23d   : > { %25781 = vmatmul.mubr.msk.f32.gmra.mxu0 %vm504_vm0, %v28192_v57 }
 0x23e   : > { %25783 = vmatprep.mubr.msk.f32.mxu0 %vm504_vm0, %v28210_v35 }
 0x241   : > { %25784 = vmatmul.mubr.msk.f32.gmra.mxu0 %vm504_vm0, %v28222_v47 }
 0x242   : > { %25786 = vmatprep.mubr.msk.f32.mxu0 %vm504_vm0, %v28233_v53 }
 0x245   : > { %25787 = vmatmul.mubr.msk.f32.gmra.mxu0 %vm504_vm0, %v28242_v28 }
 0x246   : > { %25789 = vmatprep.mubr.msk.f32.mxu0 %vm504_vm0, %v28252_v43 }
 0x249   : > { %25790 = vmatmul.mubr.msk.f32.gmra.mxu0 %vm504_vm0, %v28262_v52 }
 0x24a   : > { %25834 = vmatprep.mubr.msk.f32.mxu0 %vm27872_vm1, %v32572_v1 }
 0x2bc   : > { %v28415_v62 = vpop.f32.mrf.mxu1 }
 0x2be   : > { %v957_v63 = vpop.f32.mrf.mxu1 }
 0x2c4   : > { %v28417_v3 = vpop.f32.mrf.mxu1 }
 0x2c6   : > { %v28419_v13 = vpop.f32.mrf.mxu1 }
 0x2c7   : > { %v968_v14 = vadd.f32 %v28432_v45, %v28419_v13 }
 0x2c9   : > { %v28563_v10 = vmul.f32 0.5, %v968_v14 }
 0x2cc   : > { %v28421_v17 = vpop.f32.mrf.mxu1 }
 0x2ce   : > { %v28423_v19 = vpop.f32.mrf.mxu1 }
 0x2cf   : > { %v978_v9 = vadd.f32 %v28432_v45, %v28423_v19 }
 0x2d1   : > { %v28596_v6 = vmul.f32 0.5, %v978_v9 }
 0x2d3   : > { %32701 = vst [vmem:[#allocation39_spill] sm:$0xff] %v28596_v6 }
 0x2d4   : > { %v28425_v21 = vpop.f32.mrf.mxu1 }
 0x2d6   : > { %v28427_v46 = vpop.f32.mrf.mxu1 }
 0x2d7   : > { %v988_v5 = vadd.f32 %v28432_v45, %v28427_v46 }
 0x2d8   : > { %v25706_v15 = vpop.f32.mrf.mxu0  ;;  %v25738_v39 = vpop.f32.mrf.mxu1 }
 0x2d9   : > { %v923_v24 = vadd.f32 %v25706_v15, %v28432_v45  ;;  %v28450_v37 = vadd.f32 %v25738_v39, %v28437_v29  ;;  %v28629_v55 = vmul.f32 0.5, %v988_v5 }
 0x2da   : > { %v917_v32 = vpop.f32.mrf.mxu0  ;;  %v1073_v59 = vpop.f32.mrf.mxu1 }
 0x2db   : > { %v918_v56 = vadd.f32 %v28432_v45, %v917_v32  ;;  %v28441_v34 = vadd.f32 %v28437_v29, %v1073_v59  ;;  %v28458_v41 = vmul.f32 0.5, %v923_v24  ;;  %32706 = vst [vmem:[#allocation44_spill] sm:$0xff] %v28629_v55 }
 0x2dd   : > { %v28443_v33 = vmul.f32 0.5, %v918_v56  ;;  %25793 = vmatpush3.xpose.msk.msra.mxu1 %vm1351_vm2, %v28441_v34 }
 0x2de   : > { %25797 = vmatprep.subr.mxu1 %v32572_v1 }
 0x2e0   : > { %v25709_v58 = vpop.f32.mrf.mxu0  ;;  %v25741_v40 = vpop.f32.mrf.mxu1  ;;  %25795 = vmatmul.mubr.msk.f32.vlgmr.msra.gmra.mxu1 %vm1351_vm2, %v28443_v33 }
 0x2e1   : > { %25798 = vmatpush3.xpose.msk.msra.mxu1 %vm1351_vm2, %v28450_v37  ;;  %25799 = vmatprep.mubr.msk.f32.mxu1 %vm27872_vm1, %v32572_v1  ;;  %v933_v22 = vadd.f32 %v25709_v58, %v28432_v45  ;;  %v28476_v60 = vadd.f32 %v25741_v40, %v28437_v29 }
 0x2e2   : > { %v927_v42 = vpop.f32.mrf.mxu0  ;;  %v1083_v2 = vpop.f32.mrf.mxu1  ;;  %25802 = vmatprep.subr.mxu1 %v32572_v1 }
 0x2e3   : > { %v928_v49 = vadd.f32 %v28432_v45, %v927_v42  ;;  %v28463_v50 = vadd.f32 %v28437_v29, %v1083_v2  ;;  %v28484_v56 = vmul.f32 0.5, %v933_v22 }
 0x2e4   : > { %25800 = vmatmul.mubr.msk.f32.vlgmr.msra.gmra.mxu1 %vm1351_vm2, %v28458_v41 }
 0x2e5   : > { %v28467_v31 = vmul.f32 0.5, %v928_v49  ;;  %v25712_v0 = vpop.f32.mrf.mxu0  ;;  %v25744_v54 = vpop.f32.mrf.mxu1  ;;  %25803 = vmatpush3.xpose.msk.msra.mxu1 %vm1351_vm2, %v28463_v50  ;;  %25804 = vmatprep.mubr.msk.f32.mxu1 %vm27872_vm1, %v32572_v1 }
 0x2e6   : > { %25807 = vmatprep.subr.mxu1 %v32572_v1  ;;  %v943_v22 = vadd.f32 %v25712_v0, %v28432_v45  ;;  %v28505_v27 = vadd.f32 %v25744_v54, %v28437_v29  ;;  %v28517_v0 = vld [vmem:[%s32557_s9] ss:$0 sm:$0xff] }
 0x2e7   : > { %v937_v15 = vpop.f32.mrf.mxu0  ;;  %v1093_v39 = vpop.f32.mrf.mxu1 }
 0x2e8   : > { %25805 = vmatmul.mubr.msk.f32.vlgmr.msra.gmra.mxu1 %vm1351_vm2, %v28467_v31  ;;  %v938_v24 = vadd.f32 %v28432_v45, %v937_v15  ;;  %v28489_v58 = vadd.f32 %v28437_v29, %v1093_v39  ;;  %v958_v39 = vadd.f32 %v28432_v45, %v957_v63  ;;  %v28525_v54 = vmul.f32 0.5, %v943_v22 }
 0x2e9   : > { %v25715_v32 = vpop.f32.mrf.mxu0  ;;  %v25747_v59 = vpop.f32.mrf.mxu1  ;;  %25808 = vmatpush3.xpose.msk.msra.mxu1 %vm1351_vm2, %v28476_v60  ;;  %25809 = vmatprep.mubr.msk.f32.mxu1 %vm27872_vm1, %v32572_v1 }
 0x2ea   : > { %25812 = vmatprep.subr.mxu1 %v32572_v1  ;;  %v28500_v15 = vmul.f32 0.5, %v938_v24  ;;  %v28534_v16 = vmul.f32 0.5, %v958_v39  ;;  %v953_v13 = vadd.f32 %v25715_v32, %v28432_v45  ;;  %v28568_v8 = vadd.f32 %v25747_v59, %v28437_v29 }
 0x2eb   : > { %v947_v40 = vpop.f32.mrf.mxu0  ;;  %v1103_v42 = vpop.f32.mrf.mxu1  ;;  %v963_v59 = vadd.f32 %v28415_v62, %v28432_v45 }
 0x2ec   : > { %25810 = vmatmul.mubr.msk.f32.vlgmr.msra.gmra.mxu1 %vm1351_vm2, %v28484_v56  ;;  %v28539_v12 = vadd.f32 %v28437_v29, %v1103_v42  ;;  %v28587_v7 = vmul.f32 0.5, %v953_v13 }
 0x2ed   : > { %v25750_v2 = vpop.f32.mrf.mxu1  ;;  %v28493_v49 = vpop.f32.mrf.mxu0  ;;  %25813 = vmatpush3.xpose.msk.msra.mxu1 %vm1351_vm2, %v28489_v58  ;;  %25814 = vmatprep.mubr.msk.f32.mxu1 %vm27872_vm1, %v32572_v1  ;;  %v28618_v46 = vmul.f32 0.5, %v963_v59 }
 0x2ee   : > { %25817 = vmatprep.subr.mxu1 %v32572_v1  ;;  %v28601_v4 = vadd.f32 %v25750_v2, %v28437_v29  ;;  %v973_v2 = vadd.f32 %v28417_v3, %v28432_v45 }
 0x2ef   : > { %v1113_v25 = vpop.f32.mrf.mxu1  ;;  %v28507_v23 = vpop.f32.mrf.mxu0  ;;  %32704 = vst [vmem:[#allocation42_spill] sm:$0xff] %v28618_v46 }
 0x2f0   : > { %v28510_v20 = vadd.f32 %v28437_v29, %v1113_v25  ;;  %25815 = vmatmul.mubr.msk.f32.vlgmr.msra.gmra.mxu1 %vm1351_vm2, %v28500_v15  ;;  %v948_v25 = vadd.f32 %v28432_v45, %v947_v40  ;;  %v28642_v3 = vadd.f32 %v28517_v0, %v28507_v23 }
 0x2f1   : > { %v28519_v24 = vpop.f32.mrf.mxu1  ;;  %v25773_v63 = vpop.f32.mrf.mxu0  ;;  %25818 = vmatpush3.xpose.msk.msra.mxu1 %vm1351_vm2, %v28505_v27  ;;  %25819 = vmatprep.mubr.msk.f32.mxu1 %vm27872_vm1, %v32572_v1 }
 0x2f2   : > { %v28529_v18 = vadd.f32 %v25773_v63, %v28517_v0  ;;  %25833 = vmatpush3.xpose.msk.msra.mxu0 %vm1351_vm2, %v28510_v20  ;;  %25822 = vmatprep.subr.mxu1 %v32572_v1  ;;  %v28554_v42 = vmul.f32 0.5, %v948_v25  ;;  %v28633_v44 = vadd.f32 %v28519_v24, %v28437_v29  ;;  %32709 = vst [vmem:[#allocation47_spill] sm:$0xff] %v28642_v3  ;;  %v28651_v24 = vmul.f32 0.5, %v973_v2 }
 0x2f3   : > { %v1123_v22 = vpop.f32.mrf.mxu1  ;;  %v28541_v11 = vpop.f32.mrf.mxu0  ;;  %25842 = vmatprep.subr.mxu0 %v32572_v1  ;;  %v993_v2 = vadd.f32 %v28425_v21, %v28432_v45 }
 0x2f4   : > { %32695 = vst [vmem:[#allocation34_spill] sm:$0xff] %v28529_v18  ;;  %v28545_v40 = vadd.f32 %v28437_v29, %v1123_v22  ;;  %25820 = vmatmul.mubr.msk.f32.vlgmr.msra.gmra.mxu1 %vm1351_vm2, %v28525_v54  ;;  %v32697_v22 = vmov 0.0   ;;  %32707 = vst [vmem:[#allocation45_spill] sm:$0xff] %v28633_v44 }
 0x2f5   : > { %v25756_v63 = vpop.f32.mrf.mxu1  ;;  %v25776_v39 = vpop.f32.mrf.mxu0  ;;  %25823 = vmatpush3.xpose.msk.msra.mxu1 %vm1351_vm2, %v28539_v12  ;;  %25835 = vmatmul.mubr.msk.f32.vlgmr.msra.gmra.mxu0 %vm1351_vm2, %v28534_v16  ;;  %32710 = vst [vmem:[#allocation48_spill] sm:$0xff] %v28651_v24  ;;  %v28695_v21 = vmul.f32 0.5, %v993_v2 }
 0x2f6   : > { %v28557_v1 = vadd.f32 %v25776_v39, %v28517_v0  ;;  %25843 = vmatpush3.xpose.msk.msra.mxu0 %vm1351_vm2, %v28545_v40  ;;  %25824 = vmatprep.mubr.msk.f32.mxu1 %vm27872_vm1, %v32697_v22  ;;  %v28662_v43 = vadd.f32 %v25756_v63, %v28437_v29 }
 0x2f7   : > { %v1133_v32 = vpop.f32.mrf.mxu1  ;;  %v28570_v25 = vpop.f32.mrf.mxu0  ;;  %25827 = vmatprep.subr.mxu1 %v32697_v22  ;;  %25844 = vmatprep.mubr.msk.f32.mxu0 %vm27872_vm1, %v32697_v22  ;;  %32718 = vst [vmem:[#allocation56_spill] sm:$0xff] %v28695_v21 }
 0x2f8   : > { %32696 = vst [vmem:[#allocation35_spill] sm:$0xff] %v28557_v1  ;;  %32698 = vst [vmem:[#allocation36_spill] sm:$0xff] %v28570_v25  ;;  %v28576_v39 = vadd.f32 %v28437_v29, %v1133_v32  ;;  %25825 = vmatmul.mubr.msk.f32.vlgmr.msra.gmra.mxu1 %vm1351_vm2, %v28554_v42  ;;  %25852 = vmatprep.subr.mxu0 %v32697_v22 }
 0x2f9   : > { %v25759_v14 = vpop.f32.mrf.mxu1  ;;  %v25779_v19 = vpop.f32.mrf.mxu0  ;;  %25828 = vmatpush3.xpose.msk.msra.mxu1 %vm1351_vm2, %v28568_v8  ;;  %25845 = vmatmul.mubr.msk.f32.vlgmr.msra.gmra.mxu0 %vm1351_vm2, %v28563_v10  ;;  %32712 = vst [vmem:[#allocation50_spill] sm:$0xff] %v28662_v43 }
 0x2fa   : > { %32699 = vst [vmem:[#allocation37_spill] sm:$0xff] %v28576_v39  ;;  %v28590_v32 = vadd.f32 %v25779_v19, %v28517_v0  ;;  %25853 = vmatpush3.xpose.msk.msra.mxu0 %vm1351_vm2, %v28576_v39  ;;  %25829 = vmatprep.mubr.msk.f32.mxu1 %vm27872_vm1, %v32697_v22  ;;  %v28685_v35 = vadd.f32 %v25759_v14, %v28437_v29 }
 0x2fb   : > { %v1143_v62 = vpop.f32.mrf.mxu1  ;;  %v28603_v13 = vpop.f32.mrf.mxu0  ;;  %25837 = vmatprep.subr.mxu1 %v32697_v22  ;;  %25854 = vmatprep.mubr.msk.f32.mxu0 %vm27872_vm1, %v32697_v22 }
 0x2fc   : > { %32700 = vst [vmem:[#allocation38_spill] sm:$0xff] %v28590_v32  ;;  %32702 = vst [vmem:[#allocation40_spill] sm:$0xff] %v28603_v13  ;;  %v28609_v19 = vadd.f32 %v28437_v29, %v1143_v62  ;;  %25830 = vmatmul.mubr.msk.f32.vlgmr.msra.gmra.mxu1 %vm1351_vm2, %v28587_v7  ;;  %25862 = vmatprep.subr.mxu0 %v32697_v22  ;;  %v28703_v29 = vadd.f32 %v28493_v49, %v28517_v0 }
 0x2fd   : > { %v25782_v9 = vpop.f32.mrf.mxu0  ;;  %25838 = vmatpush3.xpose.msk.msra.mxu1 %vm1351_vm2, %v28601_v4  ;;  %25855 = vmatmul.mubr.msk.f32.vlgmr.msra.gmra.mxu0 %vm1351_vm2, %v28596_v6  ;;  %32716 = vst [vmem:[#allocation54_spill] sm:$0xff] %v28685_v35 }
 0x2fe   : > { %32703 = vst [vmem:[#allocation41_spill] sm:$0xff] %v28609_v19  ;;  %v28623_v62 = vadd.f32 %v25782_v9, %v28517_v0  ;;  %25863 = vmatpush3.xpose.msk.msra.mxu0 %vm1351_vm2, %v28609_v19  ;;  %25839 = vmatprep.mubr.msk.f32.mxu1 %vm27872_vm1, %v32697_v22  ;;  %v983_v9 = vadd.f32 %v28421_v17, %v28432_v45  ;;  %32720 = vst [vmem:[#allocation58_spill] sm:$0xff] %v28703_v29 }
 0x2ff   : > { %v28635_v59 = vpop.f32.mrf.mxu0  ;;  %25847 = vmatprep.subr.mxu1 %v32697_v22  ;;  %25864 = vmatprep.mubr.msk.f32.mxu0 %vm27872_vm1, %v32697_v22 }
 0x300   : > { %32705 = vst [vmem:[#allocation43_spill] sm:$0xff] %v28623_v62  ;;  %32708 = vst [vmem:[#allocation46_spill] sm:$0xff] %v28635_v59  ;;  %25840 = vmatmul.mubr.msk.f32.vlgmr.msra.gmra.mxu1 %vm1351_vm2, %v28618_v46  ;;  %25872 = vmatprep.subr.mxu0 %v32697_v22  ;;  %v28676_v63 = vmul.f32 0.5, %v983_v9 }
 0x301   : > { %v25785_v5 = vpop.f32.mrf.mxu0  ;;  %25848 = vmatpush3.xpose.msk.msra.mxu1 %vm1351_vm2, %v28633_v44  ;;  %25865 = vmatmul.mubr.msk.f32.vlgmr.msra.gmra.mxu0 %vm1351_vm2, %v28629_v55 }
 0x302   : > { %v28656_v23 = vadd.f32 %v25785_v5, %v28517_v0  ;;  %25873 = vmatpush3.msra.mxu0 %v28642_v3  ;;  %25849 = vmatprep.mubr.msk.f32.mxu1 %vm27872_vm1, %v32697_v22  ;;  %32714 = vst [vmem:[#allocation52_spill] sm:$0xff] %v28676_v63 }
 0x303   : > { %v28664_v53 = vpop.f32.mrf.mxu0  ;;  %25857 = vmatprep.subr.mxu1 %v32697_v22  ;;  %25874 = vmatprep.mubr.msk.f32.mxu0 %vm27872_vm1, %v32697_v22 }
 0x304   : > { %32711 = vst [vmem:[#allocation49_spill] sm:$0xff] %v28656_v23  ;;  %32713 = vst [vmem:[#allocation51_spill] sm:$0xff] %v28664_v53  ;;  %25850 = vmatmul.mubr.msk.f32.vlgmr.msra.gmra.mxu1 %vm1351_vm2, %v28651_v24  ;;  %25882 = vmatprep.subr.mxu0 %v32697_v22 }
 0x305   : > { %v25788_v17 = vpop.f32.mrf.mxu0  ;;  %25858 = vmatpush3.xpose.msk.msra.mxu1 %vm1351_vm2, %v28662_v43  ;;  %25859 = vmatprep.mubr.msk.f32.mxu1 %vm27872_vm1, %v32697_v22 }
 0x306   : > { %v28681_v5 = vadd.f32 %v25788_v17, %v28517_v0  ;;  %25867 = vmatprep.subr.mxu1 %v32697_v22 }
 0x307   : > { %v28687_v51 = vpop.f32.mrf.mxu0 }
 0x308   : > { %32715 = vst [vmem:[#allocation53_spill] sm:$0xff] %v28681_v5  ;;  %32717 = vst [vmem:[#allocation55_spill] sm:$0xff] %v28687_v51  ;;  %25860 = vmatmul.mubr.msk.f32.vlgmr.msra.gmra.mxu1 %vm1351_vm2, %v28676_v63 }
 0x309   : > { %v25791_v26 = vpop.f32.mrf.mxu0  ;;  %25868 = vmatpush3.xpose.msk.msra.mxu1 %vm1351_vm2, %v28685_v35  ;;  %25869 = vmatprep.mubr.msk.f32.mxu1 %vm27872_vm1, %v32697_v22 }
 0x30a   : > { %v28698_v45 = vadd.f32 %v25791_v26, %v28517_v0  ;;  %25877 = vmatprep.subr.mxu1 %v32697_v22 }
 0x30b   : > { %v28731_v28 = vpop.f32.mrf.mxu0 }
 0x30c   : > { %32719 = vst [vmem:[#allocation57_spill] sm:$0xff] %v28698_v45  ;;  %25870 = vmatmul.mubr.msk.f32.vlgmr.msra.gmra.mxu1 %vm1351_vm2, %v28695_v21  ;;  %32721 = vst [vmem:[#allocation59_spill] sm:$0xff] %v28731_v28 }
 0x30d   : > { %25878 = vmatpush3.msra.mxu1 %v28703_v29  ;;  %25879 = vmatprep.mubr.msk.f32.mxu1 %vm27872_vm1, %v32697_v22 }
 0x30e   : > { %25887 = vmatprep.subr.mxu1 %v32697_v22 }
 0x3a0   : > { %v28711_v14 = vpop.f32.mrf.mxu1 }
 0x3a1   : > { %v2569_v26 = vsel %vm2568_vm3, %v28711_v14, -inf }
 0x3a2   : > { %2570 = vmax.xlane.f32.xlu1 %v2569_v26  ;;  %v25796_v9 = vpop.f32.mrf.mxu1 }
 0x3a4   : > { %v28715_v49 = vpop.f32.mrf.mxu1 }
 0x3a5   : > { %v2572_v17 = vsel %vm2568_vm3, %v28715_v49, -inf }
 0x3a6   : > { %2573 = vmax.xlane.f32.xlu0 %v2572_v17  ;;  %v25801_v2 = vpop.f32.mrf.mxu1 }
 0x3a8   : > { %v28719_v30 = vpop.f32.mrf.mxu1 }
 0x3a9   : > { %v2575_v57 = vsel %vm2568_vm3, %v28719_v30, -inf }
 0x3aa   : > { %2576 = vmax.xlane.f32.xlu1 %v2575_v57  ;;  %v25806_v3 = vpop.f32.mrf.mxu1 }
 0x3ac   : > { %v28723_v29 = vpop.f32.mrf.mxu1 }
 0x3ad   : > { %v2578_v26 = vsel %vm2568_vm3, %v28723_v29, -inf }
 0x3ae   : > { %2579 = vmax.xlane.f32.xlu0 %v2578_v26  ;;  %v25811_v9 = vpop.f32.mrf.mxu1 }
 0x3b0   : > { %v28727_v52 = vpop.f32.mrf.mxu1 }
 0x3b1   : > { %v2581_v17 = vsel %vm2568_vm3, %v28727_v52, -inf }
 0x3b2   : > { %2582 = vmax.xlane.f32.xlu1 %v2581_v17  ;;  %v25816_v2 = vpop.f32.mrf.mxu1 }
 0x3b4   : > { %v28733_v47 = vpop.f32.mrf.mxu1 }
 0x3b5   : > { %v28735_v57 = vpop.f32.mrf.mxu0  ;;  %v2584_v3 = vsel %vm2568_vm3, %v28733_v47, -inf }
 0x3b6   : > { %2585 = vmax.xlane.f32.xlu0 %v2584_v3  ;;  %v25821_v61 = vpop.f32.mrf.mxu1  ;;  %v2593_v5 = vsel %vm2568_vm3, %v28735_v57, -inf }
 0x3b7   : > { %v25836_v26 = vpop.f32.mrf.mxu0 }
 0x3b8   : > { %v28739_v9 = vpop.f32.mrf.mxu1 }
 0x3b9   : > { %v28741_v48 = vpop.f32.mrf.mxu0  ;;  %v2587_v17 = vsel %vm2568_vm3, %v28739_v9, -inf }
 0x3ba   : > { %2588 = vmax.xlane.f32.xlu1 %v2587_v17  ;;  %v25826_v2 = vpop.f32.mrf.mxu1 }
 0x3bb   : > { %v25846_v36 = vpop.f32.mrf.mxu0 }
 0x3bc   : > { %v28745_v38 = vpop.f32.mrf.mxu1  ;;  %v2599_v36 = vsel %vm2568_vm3, %v28741_v48, -inf }
 0x3bd   : > { %v28747_v45 = vpop.f32.mrf.mxu0  ;;  %v2590_v61 = vsel %vm2568_vm3, %v28745_v38, -inf }
 0x3be   : > { %2594 = vmax.xlane.f32.xlu1 %v2593_v5  ;;  %2591 = vmax.xlane.f32.xlu0 %v2590_v61  ;;  %v25831_v3 = vpop.f32.mrf.mxu1  ;;  %v2605_v5 = vsel %vm2568_vm3, %v28747_v45, -inf }
 0x3bf   : > { %v25856_v26 = vpop.f32.mrf.mxu0 }
 0x3c0   : > { %v28753_v28 = vpop.f32.mrf.mxu1 }
 0x3c1   : > { %v28755_v23 = vpop.f32.mrf.mxu0  ;;  %v2596_v17 = vsel %vm2568_vm3, %v28753_v28, -inf }
 0x3c2   : > { %2600 = vmax.xlane.f32.xlu1 %v2599_v36  ;;  %2597 = vmax.xlane.f32.xlu0 %v2596_v17  ;;  %v25841_v2 = vpop.f32.mrf.mxu1  ;;  %v2611_v53 = vsel %vm2568_vm3, %v28755_v23, -inf }
 0x3c3   : > { %v25866_v51 = vpop.f32.mrf.mxu0 }
 0x3c4   : > { %v28761_v62 = vpop.f32.mrf.mxu1 }
 0x3c5   : > { %v2602_v61 = vsel %vm2568_vm3, %v28761_v62, -inf }
 0x3c6   : > { %2606 = vmax.xlane.f32.xlu1 %v2605_v5  ;;  %2603 = vmax.xlane.f32.xlu0 %v2602_v61  ;;  %v25851_v3 = vpop.f32.mrf.mxu1 }
 0x3c8   : > { %v28767_v26 = vpop.f32.mrf.mxu1 }
 0x3c9   : > { %v2608_v36 = vsel %vm2568_vm3, %v28767_v26, -inf }
 0x3ca   : > { %2612 = vmax.xlane.f32.xlu1 %v2611_v53  ;;  %2609 = vmax.xlane.f32.xlu0 %v2608_v36  ;;  %v25861_v51 = vpop.f32.mrf.mxu1 }
 0x3cc   : > { %v28773_v17 = vpop.f32.mrf.mxu1 }
 0x3cd   : > { %v2614_v2 = vsel %vm2568_vm3, %v28773_v17, -inf }
 0x3ce   : > { %2615 = vmax.xlane.f32.xlu0 %v2614_v2  ;;  %v25871_v5 = vpop.f32.mrf.mxu1 }
 0x42b   : > { %v2571_v61 = vpop.xlane.xlu1 %2570 }
 0x42c   : > { %v2617_v3 = vsub.f32 %v28711_v14, %v2571_v61 }
 0x42e   : > { %v2633_v59 = vmul.f32 1.442695, %v2617_v3 }
 0x42f   : > { %v2574_v32 = vpop.xlane.xlu0 %2573 }
 0x430   : > { %27343 = vpow2.f32 %v2633_v59  ;;  %v2618_v13 = vsub.f32 %v28715_v49, %v2574_v32 }
 0x432   : > { %v2635_v1 = vmul.f32 1.442695, %v2618_v13 }
 0x433   : > { %v2577_v25 = vpop.xlane.xlu1 %2576 }
 0x434   : > { %27345 = vpow2.f32 %v2635_v1  ;;  %v2619_v53 = vsub.f32 %v28719_v30, %v2577_v25 }
 0x436   : > { %v2637_v36 = vmul.f32 1.442695, %v2619_v53 }
 0x437   : > { %v2580_v51 = vpop.xlane.xlu0 %2579 }
 0x438   : > { %27347 = vpow2.f32 %v2637_v36  ;;  %v2620_v18 = vsub.f32 %v28723_v29, %v2580_v51 }
 0x43a   : > { %v2639_v2 = vmul.f32 1.442695, %v2620_v18 }
 0x43b   : > { %v2583_v5 = vpop.xlane.xlu1 %2582 }
 0x43c   : > { %27349 = vpow2.f32 %v2639_v2  ;;  %v2621_v14 = vsub.f32 %v28727_v52, %v2583_v5 }
 0x43d   : > { %v28782_v61 = vpop.eup %27343 }
 0x43e   : > { %v2641_v59 = vmul.f32 1.442695, %v2621_v14  ;;  %v2665_v32 = vsel %vm2568_vm3, %v28782_v61, 0.0 }
 0x43f   : > { %v2586_v13 = vpop.xlane.xlu0 %2585  ;;  %2666 = vadd.xlane.f32.xlu1 %v2665_v32 }
 0x440   : > { %27351 = vpow2.f32 %v2641_v59  ;;  %v2622_v30 = vsub.f32 %v28733_v47, %v2586_v13 }
 0x441   : > { %v28787_v1 = vpop.eup %27345 }
 0x442   : > { %v2643_v25 = vmul.f32 1.442695, %v2622_v30  ;;  %v2668_v18 = vsel %vm2568_vm3, %v28787_v1, 0.0 }
 0x443   : > { %v2589_v29 = vpop.xlane.xlu1 %2588  ;;  %2669 = vadd.xlane.f32.xlu0 %v2668_v18 }
 0x444   : > { %27353 = vpow2.f32 %v2643_v25  ;;  %v2623_v52 = vsub.f32 %v28739_v9, %v2589_v29 }
 0x445   : > { %v28792_v49 = vpop.eup %27347 }
 0x446   : > { %v2645_v3 = vmul.f32 1.442695, %v2623_v52  ;;  %v2671_v53 = vsel %vm2568_vm3, %v28792_v49, 0.0 }
 0x447   : > { %2672 = vadd.xlane.f32.xlu1 %v2671_v53  ;;  %v2595_v36 = vpop.xlane.xlu1 %2594  ;;  %v2592_v47 = vpop.xlane.xlu0 %2591 }
 0x448   : > { %27355 = vpow2.f32 %v2645_v3  ;;  %v2625_v51 = vsub.f32 %v28735_v57, %v2595_v36  ;;  %v2624_v2 = vsub.f32 %v28745_v38, %v2592_v47 }
 0x449   : > { %v28798_v5 = vpop.eup %27349 }
 0x44a   : > { %v2649_v14 = vmul.f32 1.442695, %v2625_v51  ;;  %v2647_v59 = vmul.f32 1.442695, %v2624_v2  ;;  %v2674_v9 = vsel %vm2568_vm3, %v28798_v5, 0.0 }
 0x44b   : > { %v2601_v32 = vpop.xlane.xlu1 %2600  ;;  %v2598_v13 = vpop.xlane.xlu0 %2597  ;;  %2675 = vadd.xlane.f32.xlu0 %v2674_v9 }
 0x44c   : > { %27357 = vpow2.f32 %v2649_v14  ;;  %v2627_v30 = vsub.f32 %v28741_v48, %v2601_v32  ;;  %v2626_v25 = vsub.f32 %v28753_v28, %v2598_v13 }
 0x44d   : > { %v28804_v18 = vpop.eup %27351  ;;  %27359 = vpow2.f32 %v2647_v59 }
 0x44e   : > { %v2653_v57 = vmul.f32 1.442695, %v2627_v30  ;;  %v2651_v38 = vmul.f32 1.442695, %v2626_v25  ;;  %v2677_v29 = vsel %vm2568_vm3, %v28804_v18, 0.0 }
 0x44f   : > { %2678 = vadd.xlane.f32.xlu1 %v2677_v29  ;;  %v2607_v52 = vpop.xlane.xlu1 %2606  ;;  %v2604_v3 = vpop.xlane.xlu0 %2603 }
 0x450   : > { %27361 = vpow2.f32 %v2653_v57  ;;  %v2629_v53 = vsub.f32 %v28747_v45, %v2607_v52  ;;  %v2628_v36 = vsub.f32 %v28761_v62, %v2604_v3 }
 0x451   : > { %v28810_v47 = vpop.eup %27353  ;;  %27363 = vpow2.f32 %v2651_v38 }
 0x452   : > { %v2657_v28 = vmul.f32 1.442695, %v2629_v53  ;;  %v2655_v48 = vmul.f32 1.442695, %v2628_v36  ;;  %v2680_v51 = vsel %vm2568_vm3, %v28810_v47, 0.0 }
 0x453   : > { %v2613_v2 = vpop.xlane.xlu1 %2612  ;;  %v2610_v14 = vpop.xlane.xlu0 %2609  ;;  %2681 = vadd.xlane.f32.xlu0 %v2680_v51 }
 0x454   : > { %27365 = vpow2.f32 %v2657_v28  ;;  %v2631_v59 = vsub.f32 %v28755_v23, %v2613_v2  ;;  %v2630_v9 = vsub.f32 %v28767_v26, %v2610_v14 }
 0x455   : > { %v28816_v32 = vpop.eup %27355  ;;  %27367 = vpow2.f32 %v2655_v48 }
 0x456   : > { %v2661_v62 = vmul.f32 1.442695, %v2631_v59  ;;  %v2659_v45 = vmul.f32 1.442695, %v2630_v9  ;;  %v2683_v13 = vsel %vm2568_vm3, %v28816_v32, 0.0 }
 0x457   : > { %2684 = vadd.xlane.f32.xlu1 %v2683_v13  ;;  %v2616_v30 = vpop.xlane.xlu0 %2615 }
 0x458   : > { %27369 = vpow2.f32 %v2661_v62  ;;  %v2632_v25 = vsub.f32 %v28773_v17, %v2616_v30 }
 0x459   : > { %v28821_v57 = vpop.eup %27357  ;;  %27371 = vpow2.f32 %v2659_v45 }
 0x45a   : > { %v28823_v38 = vpop.eup %27359  ;;  %v2663_v23 = vmul.f32 1.442695, %v2632_v25  ;;  %v2689_v26 = vsel %vm2568_vm3, %v28821_v57, 0.0 }
 0x45b   : > { %2690 = vadd.xlane.f32.xlu1 %v2689_v26  ;;  %v2686_v29 = vsel %vm2568_vm3, %v28823_v38, 0.0 }
 0x45c   : > { %27373 = vpow2.f32 %v2663_v23  ;;  %2687 = vadd.xlane.f32.xlu0 %v2686_v29 }
 0x45d   : > { %v28829_v52 = vpop.eup %27361 }
 0x45e   : > { %v28831_v3 = vpop.eup %27363  ;;  %v2695_v17 = vsel %vm2568_vm3, %v28829_v52, 0.0 }
 0x45f   : > { %2696 = vadd.xlane.f32.xlu1 %v2695_v17  ;;  %v2692_v53 = vsel %vm2568_vm3, %v28831_v3, 0.0  ;;  %v28924_v17 = vadd.f32 %v28517_v0, %v28541_v11 }
 0x460   : > { %2693 = vadd.xlane.f32.xlu0 %v2692_v53 }
 0x461   : > { %v28837_v36 = vpop.eup %27365  ;;  %32722 = vst [vmem:[#allocation60_spill] sm:$0xff] %v28924_v17 }
 0x462   : > { %v28839_v28 = vpop.eup %27367  ;;  %v2701_v48 = vsel %vm2568_vm3, %v28837_v36, 0.0 }
 0x463   : > { %2702 = vadd.xlane.f32.xlu1 %v2701_v48  ;;  %v2698_v51 = vsel %vm2568_vm3, %v28839_v28, 0.0 }
 0x464   : > { %2699 = vadd.xlane.f32.xlu0 %v2698_v51 }
 0x465   : > { %v28845_v2 = vpop.eup %27369 }
 0x466   : > { %v28847_v14 = vpop.eup %27371  ;;  %v2707_v59 = vsel %vm2568_vm3, %v28845_v2, 0.0 }
 0x467   : > { %2708 = vadd.xlane.f32.xlu1 %v2707_v59  ;;  %v2704_v9 = vsel %vm2568_vm3, %v28847_v14, 0.0 }
 0x468   : > { %2705 = vadd.xlane.f32.xlu0 %v2704_v9 }
 0x469   : > { %v28853_v62 = vpop.eup %27373 }
 0x46a   : > { %v2710_v45 = vsel %vm2568_vm3, %v28853_v62, 0.0 }
 0x46c   : > { %2711 = vadd.xlane.f32.xlu0 %v2710_v45  ;;  %v32724_v45 = vld [vmem:[#allocation36_spill] sm:$0xff] }
 0x478   : > { %4128 = vrot.lane.b32.xlu1 %v28441_v34, %s27873_s20 }
 0x47c   : > { %4206 = vrot.lane.b32.xlu1 %v28450_v37, %s27873_s20 }
 0x480   : > { %4204 = vrot.lane.b32.xlu1 %v28458_v41, %s27873_s20 }
 0x482   : > { %4126 = vrot.lane.b32.xlu0 %v28443_v33, %s27873_s20 }
 0x484   : > { %4282 = vrot.lane.b32.xlu1 %v28467_v31, %s27873_s20 }
 0x486   : > { %4284 = vrot.lane.b32.xlu0 %v28463_v50, %s27873_s20 }
 0x488   : > { %4360 = vrot.lane.b32.xlu1 %v28484_v56, %s27873_s20 }
 0x48a   : > { %4362 = vrot.lane.b32.xlu0 %v28476_v60, %s27873_s20 }
 0x48c   : > { %4438 = vrot.lane.b32.xlu1 %v28500_v15, %s27873_s20 }
 0x48e   : > { %4440 = vrot.lane.b32.xlu0 %v28489_v58, %s27873_s20 }
 0x490   : > { %4516 = vrot.lane.b32.xlu1 %v28525_v54, %s27873_s20 }
 0x492   : > { %4518 = vrot.lane.b32.xlu0 %v28505_v27, %s27873_s20 }
 0x494   : > { %4594 = vrot.lane.b32.xlu1 %v28554_v42, %s27873_s20 }
 0x496   : > { %4596 = vrot.lane.b32.xlu0 %v28539_v12, %s27873_s20 }
 0x498   : > { %4672 = vrot.lane.b32.xlu1 %v28587_v7, %s27873_s20 }
 0x49a   : > { %4674 = vrot.lane.b32.xlu0 %v28568_v8, %s27873_s20 }
 0x49c   : > { %4830 = vrot.lane.b32.xlu1 %v28601_v4, %s27873_s20 }
 0x49e   : > { %4752 = vrot.lane.b32.xlu0 %v28510_v20, %s27873_s20 }
 0x4a0   : > { %4828 = vrot.lane.b32.xlu1 %v28618_v46, %s27873_s20 }
 0x4a2   : > { %4750 = vrot.lane.b32.xlu0 %v28534_v16, %s27873_s20 }
 0x4a4   : > { %4986 = vrot.lane.b32.xlu1 %v28633_v44, %s27873_s20 }
 0x4a6   : > { %4908 = vrot.lane.b32.xlu0 %v28545_v40, %s27873_s20 }
 0x4a8   : > { %4984 = vrot.lane.b32.xlu1 %v28651_v24, %s27873_s20 }
 0x4aa   : > { %4906 = vrot.lane.b32.xlu0 %v28563_v10, %s27873_s20 }
 0x4ac   : > { %5142 = vrot.lane.b32.xlu1 %v28662_v43, %s27873_s20 }
 0x4ae   : > { %5064 = vrot.lane.b32.xlu0 %v28576_v39, %s27873_s20 }
 0x4b0   : > { %5140 = vrot.lane.b32.xlu1 %v28676_v63, %s27873_s20 }
 0x4b2   : > { %5062 = vrot.lane.b32.xlu0 %v28596_v6, %s27873_s20 }
 0x4b4   : > { %5298 = vrot.lane.b32.xlu1 %v28685_v35, %s27873_s20 }
 0x4b6   : > { %5220 = vrot.lane.b32.xlu0 %v28609_v19, %s27873_s20  ;;  %v32742_v19 = vld [vmem:[#allocation27_spill] sm:$0xff] }
 0x4b8   : > { %5296 = vrot.lane.b32.xlu1 %v28695_v21, %s27873_s20 }
 0x4ba   : > { %5218 = vrot.lane.b32.xlu0 %v28629_v55, %s27873_s20 }
 0x4c8   : > { %v2667_v13 = vpop.xlane.xlu1 %2666 }
 0x4c9   : > { %27375 = vrcp.f32 %v2667_v13  ;;  %v28940_v13 = vadd.f32 %v28517_v0, %v32724_v45 }
 0x4cb   : > { %32725 = vst [vmem:[#allocation36_spill] sm:$0xff] %v28940_v13 }
 0x4cc   : > { %v2670_v30 = vpop.xlane.xlu0 %2669 }
 0x4cd   : > { %27377 = vrcp.f32 %v2670_v30 }
 0x4d0   : > { %v2673_v25 = vpop.xlane.xlu1 %2672 }
 0x4d1   : > { %27379 = vrcp.f32 %v2673_v25 }
 0x4d4   : > { %v2676_v23 = vpop.xlane.xlu0 %2675 }
 0x4d5   : > { %27381 = vrcp.f32 %v2676_v23 }
 0x4d6   : > { %v27376_v26 = vpop.eup %27375 }
 0x4d7   : > { %v2714_v29 = vmul.f32 %v27376_v26, %v28782_v61  ;;  %v32723_v61 = vld [vmem:[#allocation34_spill] sm:$0xff] }
 0x4d8   : > { %v2679_v53 = vpop.xlane.xlu1 %2678 }
 0x4d9   : > { %27383 = vrcp.f32 %v2679_v53  ;;  %25875 = vmatmul.mubr.msk.f32.vlgmr.msra.gmra.mxu0 %vm2568_vm3, %v2714_v29  ;;  %v32726_v29 = vld [vmem:[#allocation35_spill] sm:$0xff] }
 0x4da   : > { %v27378_v48 = vpop.eup %27377  ;;  %25883 = vmatpush3.msra.mxu0 %v28924_v17  ;;  %25884 = vmatprep.mubr.msk.f32.mxu0 %vm27872_vm1, %v32697_v22 }
 0x4db   : > { %v2716_v51 = vmul.f32 %v27378_v48, %v28787_v1  ;;  %25892 = vmatprep.subr.mxu0 %v32697_v22  ;;  %v32727_v48 = vld [vmem:[#allocation40_spill] sm:$0xff] }
 0x4dc   : > { %v2682_v59 = vpop.xlane.xlu0 %2681 }
 0x4dd   : > { %27385 = vrcp.f32 %v2682_v59  ;;  %25880 = vmatmul.mubr.msk.f32.vlgmr.msra.gmra.mxu1 %vm2568_vm3, %v2716_v51 }
 0x4de   : > { %v27380_v11 = vpop.eup %27379  ;;  %25888 = vmatpush3.msra.mxu1 %v32723_v61  ;;  %25889 = vmatprep.mubr.msk.f32.mxu1 %vm27872_vm1, %v32697_v22 }
 0x4df   : > { %v2718_v9 = vmul.f32 %v27380_v11, %v28792_v49  ;;  %25897 = vmatprep.subr.mxu1 %v32697_v22 }
 0x4e0   : > { %v2685_v1 = vpop.xlane.xlu1 %2684 }
 0x4e1   : > { %27387 = vrcp.f32 %v2685_v1  ;;  %25885 = vmatmul.mubr.msk.f32.vlgmr.msra.gmra.mxu0 %vm2568_vm3, %v2718_v9 }
 0x4e2   : > { %v27382_v30 = vpop.eup %27381  ;;  %25893 = vmatpush3.msra.mxu0 %v28940_v13  ;;  %25894 = vmatprep.mubr.msk.f32.mxu0 %vm27872_vm1, %v32697_v22 }
 0x4e3   : > { %v2720_v25 = vmul.f32 %v27382_v30, %v28798_v5  ;;  %25902 = vmatprep.subr.mxu0 %v32697_v22  ;;  %v28956_v5 = vadd.f32 %v28517_v0, %v32727_v48  ;;  %v32729_v30 = vld [vmem:[#allocation38_spill] sm:$0xff] }
 0x4e4   : > { %v2691_v49 = vpop.xlane.xlu1 %2690 }
 0x4e5   : > { %27389 = vrcp.f32 %v2691_v49  ;;  %v2688_v23 = vpop.xlane.xlu0 %2687  ;;  %25890 = vmatmul.mubr.msk.f32.vlgmr.msra.gmra.mxu1 %vm2568_vm3, %v2720_v25  ;;  %32728 = vst [vmem:[#allocation40_spill] sm:$0xff] %v28956_v5  ;;  %v32730_v49 = vld [vmem:[#allocation46_spill] sm:$0xff] }
 0x4e6   : > { %v27384_v26 = vpop.eup %27383  ;;  %27391 = vrcp.f32 %v2688_v23  ;;  %25898 = vmatpush3.msra.mxu1 %v32726_v29  ;;  %25899 = vmatprep.mubr.msk.f32.mxu1 %vm27872_vm1, %v32697_v22 }
 0x4e7   : > { %v2722_v53 = vmul.f32 %v27384_v26, %v28804_v18  ;;  %25907 = vmatprep.subr.mxu1 %v32697_v22 }
 0x4e8   : > { %v2697_v51 = vpop.xlane.xlu1 %2696 }
 0x4e9   : > { %27393 = vrcp.f32 %v2697_v51  ;;  %v2694_v59 = vpop.xlane.xlu0 %2693  ;;  %25895 = vmatmul.mubr.msk.f32.vlgmr.msra.gmra.mxu0 %vm2568_vm3, %v2722_v53  ;;  %v32732_v51 = vld [vmem:[#allocation51_spill] sm:$0xff] }
 0x4ea   : > { %v27386_v11 = vpop.eup %27385  ;;  %27395 = vrcp.f32 %v2694_v59  ;;  %25903 = vmatpush3.msra.mxu0 %v28956_v5  ;;  %25904 = vmatprep.mubr.msk.f32.mxu0 %vm27872_vm1, %v32697_v22  ;;  %v28982_v59 = vadd.f32 %v28517_v0, %v32732_v51  ;;  %v32738_v51 = vld [vmem:[#allocation59_spill] sm:$0xff] }
 0x4eb   : > { %v2724_v18 = vmul.f32 %v27386_v11, %v28810_v47  ;;  %25912 = vmatprep.subr.mxu0 %v32697_v22  ;;  %v28972_v47 = vadd.f32 %v28517_v0, %v32730_v49  ;;  %v32735_v49 = vld [vmem:[#allocation55_spill] sm:$0xff] }
 0x4ec   : > { %v2703_v9 = vpop.xlane.xlu1 %2702  ;;  %32733 = vst [vmem:[#allocation51_spill] sm:$0xff] %v28982_v59 }
 0x4ed   : > { %27397 = vrcp.f32 %v2703_v9  ;;  %v2700_v45 = vpop.xlane.xlu0 %2699  ;;  %25900 = vmatmul.mubr.msk.f32.vlgmr.msra.gmra.mxu1 %vm2568_vm3, %v2724_v18  ;;  %32731 = vst [vmem:[#allocation46_spill] sm:$0xff] %v28972_v47 }
 0x4ee   : > { %v27388_v1 = vpop.eup %27387  ;;  %27399 = vrcp.f32 %v2700_v45  ;;  %25908 = vmatpush3.msra.mxu1 %v32729_v30  ;;  %25909 = vmatprep.mubr.msk.f32.mxu1 %vm27872_vm1, %v32697_v22 }
 0x4ef   : > { %v2726_v25 = vmul.f32 %v27388_v1, %v28816_v32  ;;  %25917 = vmatprep.subr.mxu1 %v32697_v22 }
 0x4f0   : > { %v2709_v23 = vpop.xlane.xlu1 %2708 }
 0x4f1   : > { %27401 = vrcp.f32 %v2709_v23  ;;  %v2706_v26 = vpop.xlane.xlu0 %2705  ;;  %25905 = vmatmul.mubr.msk.f32.vlgmr.msra.gmra.mxu0 %vm2568_vm3, %v2726_v25  ;;  %v32734_v25 = vld [vmem:[#allocation43_spill] sm:$0xff] }
 0x4f2   : > { %v27390_v53 = vpop.eup %27389  ;;  %27403 = vrcp.f32 %v2706_v26  ;;  %25913 = vmatpush3.msra.mxu0 %v28972_v47  ;;  %25914 = vmatprep.mubr.msk.f32.mxu0 %vm27872_vm1, %v32697_v22 }
 0x4f3   : > { %v27392_v48 = vpop.eup %27391  ;;  %25922 = vmatprep.subr.mxu0 %v32697_v22  ;;  %v2730_v32 = vmul.f32 %v27390_v53, %v28821_v57 }
 0x4f4   : > { %v4129_v11 = vpop.permute.xlu1 %4128  ;;  %v2728_v18 = vmul.f32 %v27392_v48, %v28823_v38  ;;  %v28994_v38 = vadd.f32 %v28517_v0, %v32735_v49  ;;  %v32737_v48 = vld [vmem:[#allocation49_spill] sm:$0xff] }
 0x4f5   : > { %v2712_v9 = vpop.xlane.xlu0 %2711  ;;  %25915 = vmatmul.mubr.msk.f32.vlgmr.msra.gmra.mxu0 %vm2568_vm3, %v2730_v32 }
 0x4f6   : > { %v27394_v45 = vpop.eup %27393  ;;  %27405 = vrcp.f32 %v2712_v9  ;;  %25910 = vmatmul.mubr.msk.f32.vlgmr.msra.gmra.mxu1 %vm2568_vm3, %v2728_v18  ;;  %25923 = vmatpush3.msra.mxu0 %v28982_v59  ;;  %32736 = vst [vmem:[#allocation55_spill] sm:$0xff] %v28994_v38 }
 0x4f7   : > { %v27396_v1 = vpop.eup %27395  ;;  %25918 = vmatpush3.msra.mxu1 %v32734_v25  ;;  %25924 = vmatprep.mubr.msk.f32.mxu0 %vm27872_vm1, %v32697_v22  ;;  %v2734_v57 = vmul.f32 %v27394_v45, %v28829_v52 }
 0x4f8   : > { %25932 = vmatprep.subr.mxu0 %v32697_v22  ;;  %v4207_v23 = vpop.permute.xlu1 %4206  ;;  %25919 = vmatprep.mubr.msk.f32.mxu1 %vm27872_vm1, %v32697_v22  ;;  %v2732_v26 = vmul.f32 %v27396_v1, %v28831_v3  ;;  %v29010_v3 = vadd.f32 %v28517_v0, %v32738_v51 }
 0x4f9   : > { %25927 = vmatprep.subr.mxu1 %v32697_v22  ;;  %25925 = vmatmul.mubr.msk.f32.vlgmr.msra.gmra.mxu0 %vm2568_vm3, %v2734_v57  ;;  %v4127_v1 = vpop.permute.xlu0 %4126 }
 0x4fa   : > { %v27398_v53 = vpop.eup %27397  ;;  %25920 = vmatmul.mubr.msk.f32.vlgmr.msra.gmra.mxu1 %vm2568_vm3, %v2732_v26  ;;  %25933 = vmatpush3.msra.mxu0 %v28994_v38  ;;  %32739 = vst [vmem:[#allocation59_spill] sm:$0xff] %v29010_v3 }
 0x4fb   : > { %v27400_v52 = vpop.eup %27399  ;;  %25928 = vmatpush3.msra.mxu1 %v32737_v48  ;;  %25934 = vmatprep.mubr.msk.f32.mxu0 %vm27872_vm1, %v32697_v22  ;;  %v2738_v32 = vmul.f32 %v27398_v53, %v28837_v36  ;;  %v32740_v36 = vld [vmem:[#allocation53_spill] sm:$0xff] }
 0x4fc   : > { %25942 = vmatprep.subr.mxu0 %v32697_v22  ;;  %v4205_v18 = vpop.permute.xlu1 %4204  ;;  %25929 = vmatprep.mubr.msk.f32.mxu1 %vm27872_vm1, %v32697_v22  ;;  %v2736_v9 = vmul.f32 %v27400_v52, %v28839_v28  ;;  %v32741_v53 = vld [vmem:[#allocation57_spill] sm:$0xff] }
 0x4fd   : > { %25937 = vmatprep.subr.mxu1 %v32697_v22  ;;  %25935 = vmatmul.mubr.msk.f32.vlgmr.msra.gmra.mxu0 %vm2568_vm3, %v2738_v32  ;;  %v4285_v52 = vpop.permute.xlu0 %4284 }
 0x4fe   : > { %v27402_v45 = vpop.eup %27401  ;;  %25930 = vmatmul.mubr.msk.f32.vlgmr.msra.gmra.mxu1 %vm2568_vm3, %v2736_v9  ;;  %25943 = vmatpush3.msra.mxu0 %v29010_v3 }
 0x4ff   : > { %v27404_v0 = vpop.eup %27403  ;;  %25938 = vmatpush3.msra.mxu1 %v32740_v36  ;;  %25944 = vmatprep.mubr.msk.f32.mxu0 %vm27872_vm1, %v32697_v22  ;;  %v2742_v57 = vmul.f32 %v27402_v45, %v28845_v2 }
 0x500   : > { %v4283_v49 = vpop.permute.xlu1 %4282  ;;  %25939 = vmatprep.mubr.msk.f32.mxu1 %vm27872_vm1, %v32697_v22  ;;  %25947 = vmatprep.subr.mxu1 %v32697_v22  ;;  %v2740_v28 = vmul.f32 %v27404_v0, %v28847_v14 }
 0x501   : > { %25945 = vmatmul.mubr.msk.f32.vlgmr.msra.gmra.mxu0 %vm2568_vm3, %v2742_v57  ;;  %v4363_v51 = vpop.permute.xlu0 %4362 }
 0x502   : > { %25940 = vmatmul.mubr.msk.f32.vlgmr.msra.gmra.mxu1 %vm2568_vm3, %v2740_v28 }
 0x503   : > { %v27406_v26 = vpop.eup %27405  ;;  %25948 = vmatpush3.msra.mxu1 %v32741_v53  ;;  %25949 = vmatprep.mubr.msk.f32.mxu1 %vm27872_vm1, %v32697_v22 }
 0x504   : > { %v4361_v2 = vpop.permute.xlu1 %4360  ;;  %25978 = vmatprep.subr.mxu1 %v32697_v22  ;;  %v2744_v32 = vmul.f32 %v27406_v26, %v28853_v62 }
 0x505   : > { %v4441_v62 = vpop.permute.xlu0 %4440 }
 0x506   : > { %25950 = vmatmul.mubr.msk.f32.vlgmr.msra.gmra.mxu1 %vm2568_vm3, %v2744_v32 }
 0x507   : > { %25979 = vmatpush3.xpose.msk.msra.mxu1 %vm1351_vm2, %v4129_v11  ;;  %25980 = vmatprep.mubr.msk.f32.mxu1 %vm27872_vm1, %v32697_v22 }
 0x508   : > { %v4439_v14 = vpop.permute.xlu1 %4438  ;;  %25983 = vmatprep.subr.mxu1 %v32697_v22 }
 0x50a   : > { %25981 = vmatmul.mubr.msk.f32.vlgmr.msra.gmra.mxu1 %vm1351_vm2, %v4127_v1  ;;  %v1308_v1 = vld [vmem:[%s32558_s10] sm:$0xff] }
 0x50b   : > { %25984 = vmatpush3.xpose.msk.msra.mxu1 %vm1351_vm2, %v4207_v23  ;;  %25985 = vmatprep.mubr.msk.f32.mxu1 %vm27872_vm1, %v32697_v22 }
 0x50c   : > { %v4517_v9 = vpop.permute.xlu1 %4516  ;;  %25988 = vmatprep.subr.mxu1 %v32697_v22  ;;  %25952 = vmatprep.subr.msk.mxu0 %vm3961_vm4, %v1308_v1 }
 0x50d   : > { %25953 = vmatpush3.msk.msra.mxu0 %vm3961_vm4, %v1308_v1 }
 0x50e   : > { %25986 = vmatmul.mubr.msk.f32.vlgmr.msra.gmra.mxu1 %vm1351_vm2, %v4205_v18  ;;  %v4519_v18 = vpop.permute.xlu0 %4518  ;;  %26018 = vmatprep.subr.mxu0 %v32697_v22 }
 0x50f   : > { %25989 = vmatpush3.xpose.msk.msra.mxu1 %vm1351_vm2, %v4285_v52  ;;  %25990 = vmatprep.mubr.msk.f32.mxu1 %vm27872_vm1, %v32697_v22 }
 0x510   : > { %v4595_v11 = vpop.permute.xlu1 %4594  ;;  %25993 = vmatprep.subr.mxu1 %v32697_v22 }
 0x512   : > { %25991 = vmatmul.mubr.msk.f32.vlgmr.msra.gmra.mxu1 %vm1351_vm2, %v4283_v49  ;;  %v4597_v0 = vpop.permute.xlu0 %4596 }
 0x513   : > { %25994 = vmatpush3.xpose.msk.msra.mxu1 %vm1351_vm2, %v4363_v51  ;;  %25995 = vmatprep.mubr.msk.f32.mxu1 %vm27872_vm1, %v32697_v22 }
 0x514   : > { %v4673_v23 = vpop.permute.xlu1 %4672  ;;  %25998 = vmatprep.subr.mxu1 %v32697_v22 }
 0x516   : > { %25996 = vmatmul.mubr.msk.f32.vlgmr.msra.gmra.mxu1 %vm1351_vm2, %v4361_v2  ;;  %v4675_v28 = vpop.permute.xlu0 %4674 }
 0x517   : > { %25999 = vmatpush3.xpose.msk.msra.mxu1 %vm1351_vm2, %v4441_v62  ;;  %26000 = vmatprep.mubr.msk.f32.mxu1 %vm27872_vm1, %v32697_v22 }
 0x518   : > { %v4831_v45 = vpop.permute.xlu1 %4830  ;;  %26003 = vmatprep.subr.mxu1 %v32697_v22 }
 0x51a   : > { %26001 = vmatmul.mubr.msk.f32.vlgmr.msra.gmra.mxu1 %vm1351_vm2, %v4439_v14 }
 0x51b   : > { %26004 = vmatpush3.xpose.msk.msra.mxu1 %vm1351_vm2, %v4519_v18  ;;  %26005 = vmatprep.mubr.msk.f32.mxu1 %vm27872_vm1, %v32697_v22 }
 0x51c   : > { %v4829_v57 = vpop.permute.xlu1 %4828  ;;  %26008 = vmatprep.subr.mxu1 %v32697_v22 }
 0x51e   : > { %26006 = vmatmul.mubr.msk.f32.vlgmr.msra.gmra.mxu1 %vm1351_vm2, %v4517_v9 }
 0x51f   : > { %26009 = vmatpush3.xpose.msk.msra.mxu1 %vm1351_vm2, %v4597_v0  ;;  %26010 = vmatprep.mubr.msk.f32.mxu1 %vm27872_vm1, %v32697_v22 }
 0x520   : > { %v4987_v49 = vpop.permute.xlu1 %4986  ;;  %26013 = vmatprep.subr.mxu1 %v32697_v22 }
 0x522   : > { %26011 = vmatmul.mubr.msk.f32.vlgmr.msra.gmra.mxu1 %vm1351_vm2, %v4595_v11  ;;  %v4753_v11 = vpop.permute.xlu0 %4752 }
 0x523   : > { %26014 = vmatpush3.xpose.msk.msra.mxu1 %vm1351_vm2, %v4675_v28  ;;  %26015 = vmatprep.mubr.msk.f32.mxu1 %vm27872_vm1, %v32697_v22 }
 0x524   : > { %v4985_v26 = vpop.permute.xlu1 %4984  ;;  %26023 = vmatprep.subr.mxu1 %v32697_v22 }
 0x526   : > { %26016 = vmatmul.mubr.msk.f32.vlgmr.msra.gmra.mxu1 %vm1351_vm2, %v4673_v23 }
 0x527   : > { %26024 = vmatpush3.xpose.msk.msra.mxu1 %vm1351_vm2, %v4831_v45  ;;  %26025 = vmatprep.mubr.msk.f32.mxu1 %vm27872_vm1, %v32697_v22 }
 0x528   : > { %v5143_v52 = vpop.permute.xlu1 %5142  ;;  %26033 = vmatprep.subr.mxu1 %v32697_v22 }
 0x52a   : > { %26026 = vmatmul.mubr.msk.f32.vlgmr.msra.gmra.mxu1 %vm1351_vm2, %v4829_v57 }
 0x52b   : > { %26034 = vmatpush3.xpose.msk.msra.mxu1 %vm1351_vm2, %v4987_v49  ;;  %26035 = vmatprep.mubr.msk.f32.mxu1 %vm27872_vm1, %v32697_v22 }
 0x52c   : > { %v5141_v2 = vpop.permute.xlu1 %5140  ;;  %26043 = vmatprep.subr.mxu1 %v32697_v22 }
 0x52e   : > { %26036 = vmatmul.mubr.msk.f32.vlgmr.msra.gmra.mxu1 %vm1351_vm2, %v4985_v26 }
 0x52f   : > { %26044 = vmatpush3.xpose.msk.msra.mxu1 %vm1351_vm2, %v5143_v52  ;;  %26045 = vmatprep.mubr.msk.f32.mxu1 %vm27872_vm1, %v32697_v22 }
 0x530   : > { %v5299_v32 = vpop.permute.xlu1 %5298  ;;  %26053 = vmatprep.subr.mxu1 %v32697_v22 }
 0x532   : > { %26046 = vmatmul.mubr.msk.f32.vlgmr.msra.gmra.mxu1 %vm1351_vm2, %v5141_v2  ;;  %v4751_v2 = vpop.permute.xlu0 %4750 }
 0x533   : > { %26054 = vmatpush3.xpose.msk.msra.mxu1 %vm1351_vm2, %v5299_v32  ;;  %26055 = vmatprep.mubr.msk.f32.mxu1 %vm27872_vm1, %v32697_v22 }
 0x534   : > { %v5297_v14 = vpop.permute.xlu1 %5296  ;;  %26063 = vmatprep.subr.mxu1 %v32697_v22 }
 0x536   : > { %26056 = vmatmul.mubr.msk.f32.vlgmr.msra.gmra.mxu1 %vm1351_vm2, %v5297_v14 }
 0x537   : > { %26065 = vmatprep.mubr.msk.f32.mxu1 %vm27872_vm1, %v32697_v22 }
 0x599   : > { %v2814_v51 = vpop.f32.mrf.mxu0 }
 0x59a   : > { %25954 = vmatprep.mubr.msk.f32.mxu0 %vm1351_vm2, %v2814_v51 }
 0x59b   : > { %v25876_v9 = vpop.f32.mrf.mxu0 }
 0x59d   : > { %v2887_v62 = vpop.f32.mrf.mxu1 }
 0x59e   : > { %25955 = vmatmul.mubr.msk.f32.vlgmr.msra.gmra.mxu0 %vm1351_vm2, %v2887_v62  ;;  %v4909_v62 = vpop.permute.xlu0 %4908 }
 0x59f   : > { %26019 = vmatpush3.xpose.msk.msra.mxu0 %vm1351_vm2, %v4753_v11  ;;  %v25881_v23 = vpop.f32.mrf.mxu1 }
 0x5a0   : > { %26028 = vmatprep.subr.mxu0 %v32697_v22 }
 0x5a1   : > { %v2960_v18 = vpop.f32.mrf.mxu0 }
 0x5a2   : > { %25957 = vmatprep.mubr.msk.f32.mxu0 %vm1351_vm2, %v2960_v18 }
 0x5a3   : > { %v25886_v45 = vpop.f32.mrf.mxu0 }
 0x5a5   : > { %v3033_v1 = vpop.f32.mrf.mxu1 }
 0x5a6   : > { %25958 = vmatmul.mubr.msk.f32.gmra.mxu0 %vm1351_vm2, %v3033_v1 }
 0x5a7   : > { %v25891_v0 = vpop.f32.mrf.mxu1 }
 0x5a9   : > { %v3106_v57 = vpop.f32.mrf.mxu0 }
 0x5aa   : > { %25960 = vmatprep.mubr.msk.f32.mxu0 %vm1351_vm2, %v3106_v57  ;;  %v4907_v57 = vpop.permute.xlu0 %4906 }
 0x5ab   : > { %v25896_v49 = vpop.f32.mrf.mxu0 }
 0x5ad   : > { %v3179_v28 = vpop.f32.mrf.mxu1 }
 0x5ae   : > { %25961 = vmatmul.mubr.msk.f32.gmra.mxu0 %vm1351_vm2, %v3179_v28 }
 0x5af   : > { %v25901_v26 = vpop.f32.mrf.mxu1 }
 0x5b1   : > { %v3252_v52 = vpop.f32.mrf.mxu0 }
 0x5b2   : > { %25963 = vmatprep.mubr.msk.f32.mxu0 %vm1351_vm2, %v3252_v52 }
 0x5b3   : > { %v25906_v32 = vpop.f32.mrf.mxu0 }
 0x5b5   : > { %v3398_v14 = vpop.f32.mrf.mxu0 }
 0x5b6   : > { %v3325_v51 = vpop.f32.mrf.mxu1 }
 0x5b7   : > { %25964 = vmatmul.mubr.msk.f32.gmra.mxu0 %vm1351_vm2, %v3325_v51  ;;  %v25916_v9 = vpop.f32.mrf.mxu0  ;;  %v5065_v51 = vpop.permute.xlu0 %5064 }
 0x5b8   : > { %v25911_v11 = vpop.f32.mrf.mxu1  ;;  %25966 = vmatprep.mubr.msk.f32.mxu0 %vm1351_vm2, %v3398_v14 }
 0x5b9   : > { %v3544_v23 = vpop.f32.mrf.mxu0 }
 0x5ba   : > { %v3471_v18 = vpop.f32.mrf.mxu1 }
 0x5bb   : > { %25967 = vmatmul.mubr.msk.f32.gmra.mxu0 %vm1351_vm2, %v3471_v18  ;;  %v25926_v45 = vpop.f32.mrf.mxu0  ;;  %v5063_v18 = vpop.permute.xlu0 %5062 }
 0x5bc   : > { %v25921_v1 = vpop.f32.mrf.mxu1  ;;  %25969 = vmatprep.mubr.msk.f32.mxu0 %vm1351_vm2, %v3544_v23 }
 0x5bd   : > { %v3690_v0 = vpop.f32.mrf.mxu0 }
 0x5be   : > { %v3617_v49 = vpop.f32.mrf.mxu1 }
 0x5bf   : > { %25970 = vmatmul.mubr.msk.f32.gmra.mxu0 %vm1351_vm2, %v3617_v49  ;;  %v25936_v28 = vpop.f32.mrf.mxu0 }
 0x5c0   : > { %v25931_v26 = vpop.f32.mrf.mxu1  ;;  %25972 = vmatprep.mubr.msk.f32.mxu0 %vm1351_vm2, %v3690_v0 }
 0x5c1   : > { %v3836_v52 = vpop.f32.mrf.mxu0  ;;  %v5221_v26 = vpop.permute.xlu0 %5220 }
 0x5c2   : > { %v3763_v32 = vpop.f32.mrf.mxu1 }
 0x5c3   : > { %25973 = vmatmul.mubr.msk.f32.gmra.mxu0 %vm1351_vm2, %v3763_v32  ;;  %v25946_v14 = vpop.f32.mrf.mxu0 }
 0x5c4   : > { %v25941_v9 = vpop.f32.mrf.mxu1  ;;  %25975 = vmatprep.mubr.msk.f32.mxu0 %vm1351_vm2, %v3836_v52 }
 0x5c5   : > { %v5219_v32 = vpop.permute.xlu0 %5218 }
 0x5c6   : > { %v3909_v11 = vpop.f32.mrf.mxu1 }
 0x5c7   : > { %25976 = vmatmul.mubr.msk.f32.gmra.mxu0 %vm1351_vm2, %v3909_v11 }
 0x5c8   : > { %v25951_v23 = vpop.f32.mrf.mxu1  ;;  %26020 = vmatprep.mubr.msk.f32.mxu0 %vm27872_vm1, %v32697_v22 }
 0x5ca   : > { %v29124_v45 = vpop.f32.mrf.mxu1 }
 0x5cb   : > { %26021 = vmatmul.mubr.msk.f32.vlgmr.msra.gmra.mxu0 %vm1351_vm2, %v4751_v2  ;;  %v5374_v1 = vsel %vm2568_vm3, %v29124_v45, -inf }
 0x5cc   : > { %26029 = vmatpush3.xpose.msk.msra.mxu0 %vm1351_vm2, %v4909_v62  ;;  %5375 = vmax.xlane.f32.xlu0 %v5374_v1  ;;  %v25982_v0 = vpop.f32.mrf.mxu1 }
 0x5cd   : > { %26030 = vmatprep.mubr.msk.f32.mxu0 %vm27872_vm1, %v32697_v22  ;;  %26038 = vmatprep.subr.mxu0 %v32697_v22 }
 0x5ce   : > { %v4278_v49 = vpop.f32.mrf.mxu1 }
 0x5cf   : > { %26031 = vmatmul.mubr.msk.f32.vlgmr.msra.gmra.mxu0 %vm1351_vm2, %v4907_v57  ;;  %v5377_v28 = vsel %vm2568_vm3, %v4278_v49, -inf }
 0x5d0   : > { %26039 = vmatpush3.xpose.msk.msra.mxu0 %vm1351_vm2, %v5065_v51  ;;  %5378 = vmax.xlane.f32.xlu1 %v5377_v28  ;;  %v25987_v2 = vpop.f32.mrf.mxu1 }
 0x5d1   : > { %26040 = vmatprep.mubr.msk.f32.mxu0 %vm27872_vm1, %v32697_v22  ;;  %26048 = vmatprep.subr.mxu0 %v32697_v22 }
 0x5d2   : > { %v4356_v62 = vpop.f32.mrf.mxu1 }
 0x5d3   : > { %26041 = vmatmul.mubr.msk.f32.vlgmr.msra.gmra.mxu0 %vm1351_vm2, %v5063_v18  ;;  %v5380_v52 = vsel %vm2568_vm3, %v4356_v62, -inf }
 0x5d4   : > { %26049 = vmatpush3.xpose.msk.msra.mxu0 %vm1351_vm2, %v5221_v26  ;;  %5381 = vmax.xlane.f32.xlu0 %v5380_v52  ;;  %v25992_v57 = vpop.f32.mrf.mxu1 }
 0x5d5   : > { %26050 = vmatprep.mubr.msk.f32.mxu0 %vm27872_vm1, %v32697_v22  ;;  %26058 = vmatprep.subr.mxu0 %v32697_v22 }
 0x5d6   : > { %v4434_v14 = vpop.f32.mrf.mxu1 }
 0x5d7   : > { %26051 = vmatmul.mubr.msk.f32.vlgmr.msra.gmra.mxu0 %vm1351_vm2, %v5219_v32  ;;  %v5383_v51 = vsel %vm2568_vm3, %v4434_v14, -inf }
 0x5d8   : > { %5384 = vmax.xlane.f32.xlu0 %v5383_v51  ;;  %v25997_v9 = vpop.f32.mrf.mxu1  ;;  %26060 = vmatprep.mubr.msk.f32.mxu0 %vm27872_vm1, %v32697_v22 }
 0x5da   : > { %v4512_v11 = vpop.f32.mrf.mxu1 }
 0x5db   : > { %v5386_v23 = vsel %vm2568_vm3, %v4512_v11, -inf }
 0x5dc   : > { %5387 = vmax.xlane.f32.xlu1 %v5386_v23  ;;  %v26002_v18 = vpop.f32.mrf.mxu1 }
 0x5de   : > { %v29150_v1 = vpop.f32.mrf.mxu1 }
 0x5df   : > { %v5389_v0 = vsel %vm2568_vm3, %v29150_v1, -inf }
 0x5e0   : > { %5390 = vmax.xlane.f32.xlu0 %v5389_v0  ;;  %v26007_v28 = vpop.f32.mrf.mxu1 }
 0x5e2   : > { %v29154_v26 = vpop.f32.mrf.mxu1 }
 0x5e3   : > { %v5392_v2 = vsel %vm2568_vm3, %v29154_v26, -inf }
 0x5e4   : > { %5393 = vmax.xlane.f32.xlu1 %v5392_v2  ;;  %v26012_v52 = vpop.f32.mrf.mxu1 }
 0x5e6   : > { %v29158_v57 = vpop.f32.mrf.mxu1 }
 0x5e7   : > { %v5395_v32 = vsel %vm2568_vm3, %v29158_v57, -inf }
 0x5e8   : > { %5396 = vmax.xlane.f32.xlu0 %v5395_v32  ;;  %v26017_v51 = vpop.f32.mrf.mxu1 }
 0x5ea   : > { %v29162_v9 = vpop.f32.mrf.mxu1 }
 0x5eb   : > { %v5401_v23 = vsel %vm2568_vm3, %v29162_v9, -inf }
 0x5ec   : > { %5402 = vmax.xlane.f32.xlu0 %v5401_v23  ;;  %v26027_v18 = vpop.f32.mrf.mxu1 }
 0x5ee   : > { %v29166_v0 = vpop.f32.mrf.mxu1 }
 0x5ef   : > { %v5407_v28 = vsel %vm2568_vm3, %v29166_v0, -inf }
 0x5f0   : > { %5408 = vmax.xlane.f32.xlu0 %v5407_v28  ;;  %v26037_v2 = vpop.f32.mrf.mxu1 }
 0x5f2   : > { %v29170_v52 = vpop.f32.mrf.mxu1 }
 0x5f3   : > { %v5413_v32 = vsel %vm2568_vm3, %v29170_v52, -inf }
 0x5f4   : > { %5414 = vmax.xlane.f32.xlu0 %v5413_v32  ;;  %v26047_v51 = vpop.f32.mrf.mxu1  ;;  %v29182_v32 = vld [vmem:[%s32559_s11] ss:$0 sm:$0xff] }
 0x5f5   : > { %v1320_v24 = vadd.f32 %v29182_v32, %v32742_v19 }
 0x5f6   : > { %v29174_v21 = vpop.f32.mrf.mxu1 }
 0x5f7   : > { %v5419_v23 = vsel %vm2568_vm3, %v29174_v21, -inf }
 0x5f8   : > { %5420 = vmax.xlane.f32.xlu0 %v5419_v23  ;;  %v26057_v18 = vpop.f32.mrf.mxu1 }
 0x655   : > { %v5376_v35 = vpop.xlane.xlu0 %5375 }
 0x656   : > { %v5422_v63 = vsub.f32 %v29124_v45, %v5376_v35 }
 0x658   : > { %v5438_v55 = vmul.f32 1.442695, %v5422_v63 }
 0x659   : > { %v5379_v28 = vpop.xlane.xlu1 %5378 }
 0x65a   : > { %27407 = vpow2.f32 %v5438_v55  ;;  %v5423_v2 = vsub.f32 %v4278_v49, %v5379_v28 }
 0x65c   : > { %v5440_v43 = vmul.f32 1.442695, %v5423_v2  ;;  %v32744_v2 = vld [vmem:[#allocation29_spill] sm:$0xff] }
 0x65d   : > { %v5382_v51 = vpop.xlane.xlu0 %5381  ;;  %v1322_v44 = vadd.f32 %v29182_v32, %v32744_v2 }
 0x65e   : > { %27409 = vpow2.f32 %v5440_v43  ;;  %v5424_v23 = vsub.f32 %v4356_v62, %v5382_v51  ;;  %v25956_v18 = vpop.f32.mrf.mxu0 }
 0x65f   : > { %v29186_v6 = vadd.f32 %v25956_v18, %v1320_v24 }
 0x660   : > { %v5442_v35 = vmul.f32 1.442695, %v5424_v23  ;;  %v29188_v45 = vpop.f32.mrf.mxu0 }
 0x661   : > { %v5385_v63 = vpop.xlane.xlu0 %5384  ;;  %32743 = vst [vmem:[#allocation57_spill] sm:$0xff] %v29188_v45 }
 0x662   : > { %27411 = vpow2.f32 %v5442_v35  ;;  %v5425_v55 = vsub.f32 %v4434_v14, %v5385_v63 }
 0x664   : > { %v5444_v49 = vmul.f32 1.442695, %v5425_v55 }
 0x665   : > { %v5388_v28 = vpop.xlane.xlu1 %5387 }
 0x666   : > { %27413 = vpow2.f32 %v5444_v49  ;;  %v5426_v39 = vsub.f32 %v4512_v11, %v5388_v28  ;;  %v25959_v46 = vpop.f32.mrf.mxu0 }
 0x667   : > { %v29192_v19 = vpop.eup %27407  ;;  %v29194_v43 = vadd.f32 %v25959_v46, %v1322_v44  ;;  %v32746_v44 = vld [vmem:[#allocation31_spill] sm:$0xff] }
 0x668   : > { %v5446_v24 = vmul.f32 1.442695, %v5426_v39  ;;  %v5470_v62 = vsel %vm2568_vm3, %v29192_v19, 0.0  ;;  %v29201_v18 = vpop.f32.mrf.mxu0  ;;  %v1324_v39 = vadd.f32 %v29182_v32, %v32746_v44  ;;  %v32748_v44 = vld [vmem:[#allocation33_spill] sm:$0xff] }
 0x669   : > { %v5391_v51 = vpop.xlane.xlu0 %5390  ;;  %5471 = vadd.xlane.f32.xlu1 %v5470_v62  ;;  %32745 = vst [vmem:[#allocation27_spill] sm:$0xff] %v29201_v18 }
 0x66a   : > { %27415 = vpow2.f32 %v5446_v24  ;;  %v5427_v14 = vsub.f32 %v29150_v1, %v5391_v51 }
 0x66b   : > { %v29199_v23 = vpop.eup %27409 }
 0x66c   : > { %v5448_v35 = vmul.f32 1.442695, %v5427_v14  ;;  %v5473_v11 = vsel %vm2568_vm3, %v29199_v23, 0.0 }
 0x66d   : > { %v5394_v63 = vpop.xlane.xlu1 %5393  ;;  %5474 = vadd.xlane.f32.xlu0 %v5473_v11 }
 0x66e   : > { %27417 = vpow2.f32 %v5448_v35  ;;  %v5428_v46 = vsub.f32 %v29154_v26, %v5394_v63  ;;  %v25962_v55 = vpop.f32.mrf.mxu0 }
 0x66f   : > { %v29208_v49 = vpop.eup %27411  ;;  %v29210_v1 = vadd.f32 %v25962_v55, %v1324_v39  ;;  %v1326_v39 = vadd.f32 %v29182_v32, %v32748_v44 }
 0x670   : > { %v5450_v28 = vmul.f32 1.442695, %v5428_v46  ;;  %v5476_v2 = vsel %vm2568_vm3, %v29208_v49, 0.0  ;;  %v29219_v35 = vpop.f32.mrf.mxu0 }
 0x671   : > { %5477 = vadd.xlane.f32.xlu1 %v5476_v2  ;;  %v5397_v24 = vpop.xlane.xlu0 %5396  ;;  %32747 = vst [vmem:[#allocation29_spill] sm:$0xff] %v29219_v35 }
 0x672   : > { %27419 = vpow2.f32 %v5450_v28  ;;  %v5429_v62 = vsub.f32 %v29158_v57, %v5397_v24 }
 0x673   : > { %v29215_v51 = vpop.eup %27413 }
 0x674   : > { %v5452_v14 = vmul.f32 1.442695, %v5429_v62  ;;  %v5479_v26 = vsel %vm2568_vm3, %v29215_v51, 0.0 }
 0x675   : > { %v5403_v11 = vpop.xlane.xlu0 %5402  ;;  %5480 = vadd.xlane.f32.xlu0 %v5479_v26 }
 0x676   : > { %27421 = vpow2.f32 %v5452_v14  ;;  %v5431_v63 = vsub.f32 %v29162_v9, %v5403_v11 }
 0x677   : > { %v29224_v46 = vpop.eup %27415  ;;  %v25965_v55 = vpop.f32.mrf.mxu0 }
 0x678   : > { %v5456_v57 = vmul.f32 1.442695, %v5431_v63  ;;  %v29226_v28 = vadd.f32 %v25965_v55, %v1326_v39  ;;  %v5482_v2 = vsel %vm2568_vm3, %v29224_v46, 0.0 }
 0x679   : > { %v29230_v24 = vpop.f32.mrf.mxu0  ;;  %5483 = vadd.xlane.f32.xlu1 %v5482_v2  ;;  %v5409_v62 = vpop.xlane.xlu0 %5408  ;;  %v32753_v2 = vld [vmem:[#allocation22_spill] sm:$0xff] }
 0x67a   : > { %32749 = vst [vmem:[#allocation31_spill] sm:$0xff] %v29226_v28  ;;  %32750 = vst [vmem:[#allocation33_spill] sm:$0xff] %v29230_v24  ;;  %27423 = vpow2.f32 %v5456_v57  ;;  %v5433_v14 = vsub.f32 %v29166_v0, %v5409_v62  ;;  %v1330_v57 = vadd.f32 %v29182_v32, %v32753_v2  ;;  %v32763_v28 = vld [vmem:[#allocation47_spill] sm:$0xff] }
 0x67b   : > { %v29233_v9 = vpop.eup %27417  ;;  %v29235_v26 = vpop.f32.mrf.mxu0 }
 0x67c   : > { %32751 = vst [vmem:[#allocation61_spill] sm:$0xff] %v29235_v26  ;;  %v5460_v11 = vmul.f32 1.442695, %v5433_v14  ;;  %v5485_v63 = vsel %vm2568_vm3, %v29233_v9, 0.0 }
 0x67d   : > { %v29239_v44 = vpop.f32.mrf.mxu0  ;;  %v5415_v39 = vpop.xlane.xlu0 %5414  ;;  %5486 = vadd.xlane.f32.xlu0 %v5485_v63  ;;  %v32756_v63 = vld [vmem:[#allocation24_spill] sm:$0xff] }
 0x67e   : > { %32752 = vst [vmem:[#allocation62_spill] sm:$0xff] %v29239_v44  ;;  %27425 = vpow2.f32 %v5460_v11  ;;  %v5435_v55 = vsub.f32 %v29170_v52, %v5415_v39  ;;  %v1332_v11 = vadd.f32 %v29182_v32, %v32756_v63 }
 0x67f   : > { %v29244_v24 = vpop.eup %27419  ;;  %v25971_v0 = vpop.f32.mrf.mxu0 }
 0x680   : > { %v5464_v62 = vmul.f32 1.442695, %v5435_v55  ;;  %v29246_v35 = vadd.f32 %v25971_v0, %v1330_v57  ;;  %v5488_v14 = vsel %vm2568_vm3, %v29244_v24, 0.0  ;;  %v32759_v0 = vld [vmem:[#allocation26_spill] sm:$0xff] }
 0x681   : > { %v29250_v18 = vpop.f32.mrf.mxu0  ;;  %5489 = vadd.xlane.f32.xlu1 %v5488_v14  ;;  %v1334_v44 = vadd.f32 %v29182_v32, %v32759_v0 }
 0x682   : > { %32754 = vst [vmem:[#allocation22_spill] sm:$0xff] %v29246_v35  ;;  %32755 = vst [vmem:[#allocation63_spill] sm:$0xff] %v29250_v18  ;;  %27427 = vpow2.f32 %v5464_v62 }
 0x683   : > { %v29254_v52 = vpop.eup %27421  ;;  %v25974_v39 = vpop.f32.mrf.mxu0 }
 0x684   : > { %v29256_v2 = vadd.f32 %v25974_v39, %v1332_v11  ;;  %v5491_v55 = vsel %vm2568_vm3, %v29254_v52, 0.0 }
 0x685   : > { %v29260_v57 = vpop.f32.mrf.mxu0  ;;  %5492 = vadd.xlane.f32.xlu0 %v5491_v55 }
 0x686   : > { %32757 = vst [vmem:[#allocation24_spill] sm:$0xff] %v29256_v2  ;;  %32758 = vst [vmem:[#allocation64_spill] sm:$0xff] %v29260_v57 }
 0x687   : > { %v29264_v18 = vpop.eup %27423  ;;  %v25977_v62 = vpop.f32.mrf.mxu0 }
 0x688   : > { %v29266_v14 = vadd.f32 %v25977_v62, %v1334_v44  ;;  %v5497_v63 = vsel %vm2568_vm3, %v29264_v18, 0.0 }
 0x689   : > { %v29270_v45 = vpop.f32.mrf.mxu0  ;;  %5498 = vadd.xlane.f32.xlu0 %v5497_v63 }
 0x68a   : > { %32760 = vst [vmem:[#allocation26_spill] sm:$0xff] %v29266_v14  ;;  %32761 = vst [vmem:[#allocation65_spill] sm:$0xff] %v29270_v45 }
 0x68b   : > { %v29272_v11 = vpop.eup %27425  ;;  %v4824_v39 = vpop.f32.mrf.mxu0 }
 0x68c   : > { %v5398_v57 = vsel %vm2568_vm3, %v4824_v39, -inf  ;;  %v5503_v55 = vsel %vm2568_vm3, %v29272_v11, 0.0 }
 0x68d   : > { %v26022_v32 = vpop.f32.mrf.mxu0  ;;  %5399 = vmax.xlane.f32.xlu1 %v5398_v57  ;;  %5504 = vadd.xlane.f32.xlu0 %v5503_v55 }
 0x68e   : > { %v32762_v32 = vld [vmem:[#allocation58_spill] sm:$0xff] }
 0x68f   : > { %v29277_v0 = vpop.eup %27427  ;;  %v4980_v44 = vpop.f32.mrf.mxu0 }
 0x690   : > { %v5404_v62 = vsel %vm2568_vm3, %v4980_v44, -inf  ;;  %v5509_v45 = vsel %vm2568_vm3, %v29277_v0, 0.0 }
 0x691   : > { %v26032_v63 = vpop.f32.mrf.mxu0  ;;  %5405 = vmax.xlane.f32.xlu1 %v5404_v62  ;;  %5510 = vadd.xlane.f32.xlu0 %v5509_v45  ;;  %v5421_v45 = vpop.xlane.xlu0 %5420 }
 0x693   : > { %v5136_v14 = vpop.f32.mrf.mxu0 }
 0x694   : > { %v5410_v2 = vsel %vm2568_vm3, %v5136_v14, -inf }
 0x695   : > { %v26042_v35 = vpop.f32.mrf.mxu0  ;;  %5411 = vmax.xlane.f32.xlu1 %v5410_v2 }
 0x696   : > { %v5437_v35 = vsub.f32 %v29174_v21, %v5421_v45 }
 0x697   : > { %v29283_v26 = vpop.f32.mrf.mxu0 }
 0x698   : > { %v5416_v57 = vsel %vm2568_vm3, %v29283_v26, -inf  ;;  %v5468_v2 = vmul.f32 1.442695, %v5437_v35 }
 0x699   : > { %v26052_v55 = vpop.f32.mrf.mxu0  ;;  %5417 = vmax.xlane.f32.xlu1 %v5416_v57 }
 0x69a   : > { %27429 = vpow2.f32 %v5468_v2 }
 0x6a7   : > { %5628 = vrot.lane.b32.xlu0 %v32762_v32, %s27873_s20  ;;  %v29308_v62 = vpop.eup %27429 }
 0x6a8   : > { %v5515_v21 = vsel %vm2568_vm3, %v29308_v62, 0.0 }
 0x6aa   : > { %5551 = vrot.lane.b32.xlu1 %v32763_v28, %s27873_s20 }
 0x6ab   : > { %5705 = vrot.lane.b32.xlu0 %v28924_v17, %s27873_s20 }
 0x6af   : > { %5782 = vrot.lane.b32.xlu0 %v32723_v61, %s27873_s20 }
 0x6b3   : > { %5859 = vrot.lane.b32.xlu0 %v28940_v13, %s27873_s20 }
 0x6b7   : > { %5936 = vrot.lane.b32.xlu0 %v32726_v29, %s27873_s20 }
 0x6bb   : > { %6013 = vrot.lane.b32.xlu0 %v28956_v5, %s27873_s20 }
 0x6bf   : > { %6090 = vrot.lane.b32.xlu0 %v32729_v30, %s27873_s20 }
 0x6c3   : > { %6167 = vrot.lane.b32.xlu0 %v28972_v47, %s27873_s20 }
 0x6c7   : > { %6321 = vrot.lane.b32.xlu0 %v28982_v59, %s27873_s20 }
 0x6cb   : > { %6398 = vrot.lane.b32.xlu0 %v32737_v48, %s27873_s20 }
 0x6ce   : > { %5516 = vadd.xlane.f32.xlu1 %v5515_v21 }
 0x6cf   : > { %6475 = vrot.lane.b32.xlu0 %v28994_v38, %s27873_s20 }
 0x6d3   : > { %6552 = vrot.lane.b32.xlu0 %v32740_v36, %s27873_s20 }
 0x6df   : > { %6244 = vrot.lane.b32.xlu1 %v32734_v25, %s27873_s20 }
 0x6f2   : > { %v5472_v57 = vpop.xlane.xlu1 %5471 }
 0x6f6   : > { %v5475_v63 = vpop.xlane.xlu0 %5474 }
 0x6f7   : > { %27431 = vrcp.f32 %v5475_v63 }
 0x6f8   : > { %27433 = vrcp.f32 %v5472_v57 }
 0x6fa   : > { %v5478_v45 = vpop.xlane.xlu1 %5477 }
 0x6fe   : > { %v5481_v55 = vpop.xlane.xlu0 %5480 }
 0x6ff   : > { %27435 = vrcp.f32 %v5481_v55 }
 0x700   : > { %27437 = vrcp.f32 %v5478_v45 }
 0x702   : > { %v5484_v2 = vpop.xlane.xlu1 %5483 }
 0x704   : > { %v27432_v29 = vpop.eup %27431 }
 0x705   : > { %v5521_v57 = vmul.f32 %v27432_v29, %v29199_v23 }
 0x706   : > { %v5487_v35 = vpop.xlane.xlu0 %5486 }
 0x70a   : > { %v5490_v48 = vpop.xlane.xlu1 %5489 }
 0x70e   : > { %v5493_v47 = vpop.xlane.xlu0 %5492 }
 0x712   : > { %v29320_v59 = vpop.xlane.xlu0 %5498 }
 0x716   : > { %v5400_v21 = vpop.xlane.xlu1 %5399  ;;  %v29322_v38 = vpop.xlane.xlu0 %5504 }
 0x717   : > { %v5430_v36 = vsub.f32 %v4824_v39, %v5400_v21 }
 0x719   : > { %v5454_v30 = vmul.f32 1.442695, %v5430_v36 }
 0x71a   : > { %v5406_v25 = vpop.xlane.xlu1 %5405  ;;  %v29324_v5 = vpop.xlane.xlu0 %5510 }
 0x71b   : > { %27439 = vpow2.f32 %v5454_v30  ;;  %v5432_v13 = vsub.f32 %v4980_v44, %v5406_v25 }
 0x71c   : > { %27441 = vrcp.f32 %v5484_v2 }
 0x71d   : > { %v5458_v63 = vmul.f32 1.442695, %v5432_v13  ;;  %27443 = vrcp.f32 %v5487_v35  ;;  %v27434_v13 = vpop.eup %27433 }
 0x71e   : > { %v5412_v61 = vpop.xlane.xlu1 %5411  ;;  %v5629_v17 = vpop.permute.xlu0 %5628  ;;  %v5519_v23 = vmul.f32 %v27434_v13, %v29192_v19 }
 0x71f   : > { %27445 = vpow2.f32 %v5458_v63  ;;  %v5434_v28 = vsub.f32 %v5136_v14, %v5412_v61  ;;  %26064 = vmatpush3.msra.mxu1 %v5629_v17  ;;  %v27436_v44 = vpop.eup %27435 }
 0x720   : > { %26066 = vmatmul.mubr.msk.f32.vlgmr.msra.gmra.mxu1 %vm2568_vm3, %v5521_v57  ;;  %26073 = vmatprep.subr.mxu1 %v32697_v22  ;;  %27447 = vrcp.f32 %v5490_v48  ;;  %v27438_v14 = vpop.eup %27437 }
 0x721   : > { %v5462_v36 = vmul.f32 1.442695, %v5434_v28  ;;  %26075 = vmatprep.mubr.msk.f32.mxu1 %vm27872_vm1, %v32697_v22  ;;  %v5525_v28 = vmul.f32 %v27436_v44, %v29215_v51  ;;  %v5523_v51 = vmul.f32 %v27438_v14, %v29208_v49 }
 0x722   : > { %v5418_v30 = vpop.xlane.xlu1 %5417  ;;  %v5706_v25 = vpop.permute.xlu0 %5705 }
 0x723   : > { %27449 = vpow2.f32 %v5462_v36  ;;  %v5436_v39 = vsub.f32 %v29283_v26, %v5418_v30 }
 0x724   : > { %27451 = vrcp.f32 %v5493_v47 }
 0x725   : > { %v5466_v29 = vmul.f32 1.442695, %v5436_v39 }
 0x726   : > { %v5552_v61 = vpop.permute.xlu1 %5551  ;;  %v5783_v17 = vpop.permute.xlu0 %5782 }
 0x727   : > { %27453 = vpow2.f32 %v5466_v29  ;;  %26059 = vmatpush3.msra.mxu0 %v5552_v61  ;;  %26074 = vmatpush3.msra.mxu1 %v5783_v17 }
 0x728   : > { %v29334_v48 = vpop.eup %27439  ;;  %26061 = vmatmul.mubr.msk.f32.vlgmr.msra.gmra.mxu0 %vm2568_vm3, %v5519_v23  ;;  %26068 = vmatprep.subr.mxu0 %v32697_v22  ;;  %27455 = vrcp.f32 %v29320_v59 }
 0x729   : > { %26076 = vmatmul.mubr.msk.f32.vlgmr.msra.gmra.mxu1 %vm2568_vm3, %v5525_v28  ;;  %26069 = vmatpush3.msra.mxu0 %v5706_v25  ;;  %v5494_v47 = vsel %vm2568_vm3, %v29334_v48, 0.0  ;;  %v27442_v26 = vpop.eup %27441  ;;  %27457 = vrcp.f32 %v29322_v38 }
 0x72a   : > { %5495 = vadd.xlane.f32.xlu1 %v5494_v47  ;;  %v5860_v19 = vpop.permute.xlu0 %5859  ;;  %26070 = vmatprep.mubr.msk.f32.mxu0 %vm27872_vm1, %v32697_v22  ;;  %v27444_v55 = vpop.eup %27443  ;;  %v5527_v2 = vmul.f32 %v27442_v26, %v29224_v46  ;;  %27459 = vrcp.f32 %v29324_v5  ;;  %v32766_v26 = vld [vmem:[#allocation45_spill] sm:$0xff] }
 0x72b   : > { %26078 = vmatprep.subr.mxu0 %v32697_v22  ;;  %26083 = vmatprep.subr.mxu1 %v32697_v22  ;;  %v5529_v21 = vmul.f32 %v27444_v55, %v29233_v9  ;;  %v32769_v55 = vld [vmem:[#allocation41_spill] sm:$0xff] }
 0x72c   : > { %v29346_v45 = vpop.eup %27445  ;;  %26071 = vmatmul.mubr.msk.f32.vlgmr.msra.gmra.mxu0 %vm2568_vm3, %v5523_v51  ;;  %26085 = vmatprep.mubr.msk.f32.mxu1 %vm27872_vm1, %v32697_v22  ;;  %v32768_v51 = vld [vmem:[#allocation48_spill] sm:$0xff] }
 0x72d   : > { %26079 = vmatpush3.msra.mxu0 %v5860_v19  ;;  %v5500_v35 = vsel %vm2568_vm3, %v29346_v45, 0.0  ;;  %26080 = vmatprep.mubr.msk.f32.mxu0 %vm27872_vm1, %v32697_v22  ;;  %v27448_v63 = vpop.eup %27447  ;;  %v32767_v19 = vld [vmem:[#allocation39_spill] sm:$0xff] }
 0x72e   : > { %5501 = vadd.xlane.f32.xlu1 %v5500_v35  ;;  %v5937_v49 = vpop.permute.xlu0 %5936  ;;  %26088 = vmatprep.subr.mxu0 %v32697_v22  ;;  %v5531_v9 = vmul.f32 %v27448_v63, %v29244_v24  ;;  %v32770_v35 = vld [vmem:[#allocation50_spill] sm:$0xff]  ;;  %v32774_v63 = vld [vmem:[#allocation56_spill] sm:$0xff] }
 0x72f   : > { %26084 = vmatpush3.msra.mxu1 %v5937_v49  ;;  %v32771_v49 = vld [vmem:[#allocation44_spill] sm:$0xff] }
 0x730   : > { %v29358_v57 = vpop.eup %27449  ;;  %26081 = vmatmul.mubr.msk.f32.vlgmr.msra.gmra.mxu0 %vm2568_vm3, %v5527_v2  ;;  %26086 = vmatmul.mubr.msk.f32.vlgmr.msra.gmra.mxu1 %vm2568_vm3, %v5529_v21  ;;  %v32772_v2 = vld [vmem:[#allocation52_spill] sm:$0xff]  ;;  %v32773_v21 = vld [vmem:[#allocation54_spill] sm:$0xff] }
 0x731   : > { %v5506_v36 = vsel %vm2568_vm3, %v29358_v57, 0.0  ;;  %26090 = vmatprep.mubr.msk.f32.mxu0 %vm27872_vm1, %v32697_v22  ;;  %26093 = vmatprep.subr.mxu1 %v32697_v22  ;;  %v27452_v30 = vpop.eup %27451 }
 0x732   : > { %5507 = vadd.xlane.f32.xlu1 %v5506_v36  ;;  %v6014_v46 = vpop.permute.xlu0 %6013  ;;  %26095 = vmatprep.mubr.msk.f32.mxu1 %vm27872_vm1, %v32697_v22  ;;  %v5533_v24 = vmul.f32 %v27452_v30, %v29254_v52 }
 0x733   : > { %26089 = vmatpush3.msra.mxu0 %v6014_v46 }
 0x734   : > { %v29370_v25 = vpop.eup %27453  ;;  %26091 = vmatmul.mubr.msk.f32.vlgmr.msra.gmra.mxu0 %vm2568_vm3, %v5531_v9  ;;  %26098 = vmatprep.subr.mxu0 %v32697_v22 }
 0x735   : > { %v5512_v13 = vsel %vm2568_vm3, %v29370_v25, 0.0  ;;  %26100 = vmatprep.mubr.msk.f32.mxu0 %vm27872_vm1, %v32697_v22  ;;  %v27456_v29 = vpop.eup %27455 }
 0x736   : > { %5513 = vadd.xlane.f32.xlu0 %v5512_v13  ;;  %v6091_v39 = vpop.permute.xlu0 %6090  ;;  %v5537_v17 = vmul.f32 %v27456_v29, %v29264_v18  ;;  %v27458_v23 = vpop.eup %27457 }
 0x737   : > { %26094 = vmatpush3.msra.mxu1 %v6091_v39  ;;  %v5541_v18 = vmul.f32 %v27458_v23, %v29272_v11  ;;  %v27460_v14 = vpop.eup %27459  ;;  %v32764_v11 = vld [vmem:[#allocation42_spill] sm:$0xff] }
 0x738   : > { %26096 = vmatmul.mubr.msk.f32.vlgmr.msra.gmra.mxu1 %vm2568_vm3, %v5533_v24  ;;  %26103 = vmatprep.subr.mxu1 %v32697_v22  ;;  %v5545_v47 = vmul.f32 %v27460_v14, %v29277_v0  ;;  %v32765_v0 = vld [vmem:[#allocation37_spill] sm:$0xff]  ;;  %v27857_v14 = vld [vmem:[%s32558_s10] sm:$0xff] }
 0x739   : > { %26105 = vmatprep.mubr.msk.f32.mxu1 %vm27872_vm1, %v32697_v22 }
 0x73a   : > { %v6168_v44 = vpop.permute.xlu0 %6167 }
 0x73b   : > { %26099 = vmatpush3.msra.mxu0 %v6168_v44 }
 0x73c   : > { %26108 = vmatprep.subr.mxu0 %v32697_v22 }
 0x73e   : > { %v29394_v52 = vpop.permute.xlu0 %6321 }
 0x742   : > { %v6399_v59 = vpop.permute.xlu0 %6398 }
 0x743   : > { %6629 = vrot.lane.b32.xlu1 %v29010_v3, %s27873_s20 }
 0x746   : > { %v29409_v61 = vpop.permute.xlu0 %6475 }
 0x747   : > { %6996 = vrot.lane.b32.xlu1 %v28441_v34, %s27874_s25 }
 0x74a   : > { %v6553_v28 = vpop.permute.xlu0 %6552 }
 0x74b   : > { %7074 = vrot.lane.b32.xlu1 %v28450_v37, %s27874_s25 }
 0x74c   : > { %6706 = vrot.lane.b32.xlu0 %v32741_v53, %s27873_s20  ;;  %s27876_s20 = smov 112  }
 0x74f   : > { %7152 = vrot.lane.b32.xlu1 %v28463_v50, %s27874_s25 }
 0x750   : > { %6994 = vrot.lane.b32.xlu0 %v28443_v33, %s27874_s25 }
 0x753   : > { %7230 = vrot.lane.b32.xlu1 %v28476_v60, %s27874_s25 }
 0x754   : > { %7072 = vrot.lane.b32.xlu0 %v28458_v41, %s27874_s25 }
 0x757   : > { %7308 = vrot.lane.b32.xlu1 %v28489_v58, %s27874_s25  ;;  %v5517_v38 = vpop.xlane.xlu1 %5516 }
 0x758   : > { %7150 = vrot.lane.b32.xlu0 %v28467_v31, %s27874_s25  ;;  %27461 = vrcp.f32 %v5517_v38 }
 0x75b   : > { %7386 = vrot.lane.b32.xlu1 %v28505_v27, %s27874_s25  ;;  %v6245_v5 = vpop.permute.xlu1 %6244 }
 0x75c   : > { %7228 = vrot.lane.b32.xlu0 %v28484_v56, %s27874_s25  ;;  %26104 = vmatpush3.msra.mxu1 %v6245_v5 }
 0x75d   : > { %26106 = vmatmul.mubr.msk.f32.vlgmr.msra.gmra.mxu1 %vm2568_vm3, %v5537_v17  ;;  %26113 = vmatprep.subr.mxu1 %v32697_v22 }
 0x75e   : > { %26114 = vmatpush3.msra.mxu1 %v6399_v59  ;;  %26115 = vmatprep.mubr.msk.f32.mxu1 %vm27872_vm1, %v32697_v22 }
 0x75f   : > { %7464 = vrot.lane.b32.xlu1 %v28539_v12, %s27874_s25  ;;  %26123 = vmatprep.subr.mxu1 %v32697_v22 }
 0x760   : > { %7306 = vrot.lane.b32.xlu0 %v28500_v15, %s27874_s25 }
 0x761   : > { %26116 = vmatmul.mubr.msk.f32.vlgmr.msra.gmra.mxu1 %vm2568_vm3, %v5541_v18 }
 0x762   : > { %26124 = vmatpush3.msra.mxu1 %v6553_v28  ;;  %26125 = vmatprep.mubr.msk.f32.mxu1 %vm27872_vm1, %v32697_v22  ;;  %v6782_v28 = vrot.slane %v27857_v14, 4 }
 0x763   : > { %7542 = vrot.lane.b32.xlu1 %v28568_v8, %s27874_s25  ;;  %26133 = vmatprep.subr.mxu1 %v32697_v22 }
 0x764   : > { %7384 = vrot.lane.b32.xlu0 %v28525_v54, %s27874_s25 }
 0x765   : > { %26126 = vmatmul.mubr.msk.f32.vlgmr.msra.gmra.mxu1 %vm2568_vm3, %v5545_v47  ;;  %v27462_v39 = vpop.eup %27461 }
 0x766   : > { %26135 = vmatprep.mubr.msk.f32.mxu1 %vm27872_vm1, %v32697_v22  ;;  %v5549_v5 = vmul.f32 %v27462_v39, %v29308_v62 }
 0x767   : > { %7620 = vrot.lane.b32.xlu1 %v28510_v20, %s27874_s25 }
 0x768   : > { %7462 = vrot.lane.b32.xlu0 %v28554_v42, %s27874_s25 }
 0x76b   : > { %7618 = vrot.lane.b32.xlu1 %v28534_v16, %s27874_s25 }
 0x76c   : > { %7540 = vrot.lane.b32.xlu0 %v28587_v7, %s27874_s25 }
 0x76f   : > { %7776 = vrot.lane.b32.xlu1 %v28545_v40, %s27874_s25 }
 0x770   : > { %7698 = vrot.lane.b32.xlu0 %v28601_v4, %s27874_s25 }
 0x773   : > { %7774 = vrot.lane.b32.xlu1 %v28563_v10, %s27874_s25 }
 0x774   : > { %7696 = vrot.lane.b32.xlu0 %v32764_v11, %s27874_s25 }
 0x777   : > { %7932 = vrot.lane.b32.xlu1 %v32765_v0, %s27874_s25 }
 0x778   : > { %7854 = vrot.lane.b32.xlu0 %v32766_v26, %s27874_s25 }
 0x77b   : > { %7930 = vrot.lane.b32.xlu1 %v32767_v19, %s27874_s25 }
 0x77c   : > { %7852 = vrot.lane.b32.xlu0 %v32768_v51, %s27874_s25 }
 0x77f   : > { %8088 = vrot.lane.b32.xlu1 %v32769_v55, %s27874_s25 }
 0x780   : > { %8010 = vrot.lane.b32.xlu0 %v32770_v35, %s27874_s25 }
 0x783   : > { %8086 = vrot.lane.b32.xlu1 %v32771_v49, %s27874_s25 }
 0x784   : > { %8008 = vrot.lane.b32.xlu0 %v32772_v2, %s27874_s25 }
 0x788   : > { %8166 = vrot.lane.b32.xlu0 %v32773_v21, %s27874_s25 }
 0x78c   : > { %8164 = vrot.lane.b32.xlu0 %v32774_v63, %s27874_s25 }
 0x7b3   : > { %v5496_v36 = vpop.xlane.xlu1 %5495 }
 0x7b4   : > { %27463 = vrcp.f32 %v5496_v36 }
 0x7b7   : > { %v5502_v46 = vpop.xlane.xlu1 %5501 }
 0x7b8   : > { %27465 = vrcp.f32 %v5502_v46 }
 0x7bb   : > { %v5508_v9 = vpop.xlane.xlu1 %5507 }
 0x7bc   : > { %27467 = vrcp.f32 %v5508_v9 }
 0x7bf   : > { %v6630_v30 = vpop.permute.xlu1 %6629  ;;  %v5514_v13 = vpop.xlane.xlu0 %5513 }
 0x7c0   : > { %27469 = vrcp.f32 %v5514_v13 }
 0x7c1   : > { %v27464_v24 = vpop.eup %27463 }
 0x7c2   : > { %v5535_v44 = vmul.f32 %v27464_v24, %v29334_v48 }
 0x7c3   : > { %v6997_v59 = vpop.permute.xlu1 %6996  ;;  %v6707_v29 = vpop.permute.xlu0 %6706 }
 0x7c4   : > { %26101 = vmatmul.mubr.msk.f32.vlgmr.msra.gmra.mxu0 %vm2568_vm3, %v5535_v44  ;;  %26134 = vmatpush3.msra.mxu1 %v6707_v29 }
 0x7c5   : > { %v27466_v38 = vpop.eup %27465  ;;  %26109 = vmatpush3.msra.mxu0 %v29394_v52  ;;  %26136 = vmatmul.mubr.msk.f32.vlgmr.msra.gmra.mxu1 %vm2568_vm3, %v5549_v5 }
 0x7c6   : > { %26164 = vmatprep.subr.mxu1 %v32697_v22  ;;  %26110 = vmatprep.mubr.msk.f32.mxu0 %vm27872_vm1, %v32697_v22  ;;  %v5539_v17 = vmul.f32 %v27466_v38, %v29346_v45 }
 0x7c7   : > { %26165 = vmatpush3.xpose.msk.msra.mxu1 %vm1351_vm2, %v6997_v59  ;;  %v7075_v48 = vpop.permute.xlu1 %7074  ;;  %26118 = vmatprep.subr.mxu0 %v32697_v22  ;;  %v6995_v62 = vpop.permute.xlu0 %6994 }
 0x7c8   : > { %26111 = vmatmul.mubr.msk.f32.vlgmr.msra.gmra.mxu0 %vm2568_vm3, %v5539_v17  ;;  %26166 = vmatprep.mubr.msk.f32.mxu1 %vm27872_vm1, %v32697_v22 }
 0x7c9   : > { %v27468_v52 = vpop.eup %27467  ;;  %26119 = vmatpush3.msra.mxu0 %v29409_v61  ;;  %26169 = vmatprep.subr.mxu1 %v32697_v22 }
 0x7ca   : > { %26167 = vmatmul.mubr.msk.f32.vlgmr.msra.gmra.mxu1 %vm1351_vm2, %v6995_v62  ;;  %26120 = vmatprep.mubr.msk.f32.mxu0 %vm27872_vm1, %v32697_v22  ;;  %v5543_v45 = vmul.f32 %v27468_v52, %v29358_v57 }
 0x7cb   : > { %26170 = vmatpush3.xpose.msk.msra.mxu1 %vm1351_vm2, %v7075_v48  ;;  %v7153_v23 = vpop.permute.xlu1 %7152  ;;  %26128 = vmatprep.subr.mxu0 %v32697_v22  ;;  %v7073_v18 = vpop.permute.xlu0 %7072 }
 0x7cc   : > { %26121 = vmatmul.mubr.msk.f32.vlgmr.msra.gmra.mxu0 %vm2568_vm3, %v5543_v45  ;;  %26171 = vmatprep.mubr.msk.f32.mxu1 %vm27872_vm1, %v32697_v22 }
 0x7cd   : > { %v27470_v61 = vpop.eup %27469  ;;  %26129 = vmatpush3.msra.mxu0 %v6630_v30  ;;  %26174 = vmatprep.subr.mxu1 %v32697_v22 }
 0x7ce   : > { %26172 = vmatmul.mubr.msk.f32.vlgmr.msra.gmra.mxu1 %vm1351_vm2, %v7073_v18  ;;  %26130 = vmatprep.mubr.msk.f32.mxu0 %vm27872_vm1, %v32697_v22  ;;  %v5547_v57 = vmul.f32 %v27470_v61, %v29370_v25 }
 0x7cf   : > { %26175 = vmatpush3.xpose.msk.msra.mxu1 %vm1351_vm2, %v7153_v23  ;;  %v7231_v47 = vpop.permute.xlu1 %7230  ;;  %v7151_v36 = vpop.permute.xlu0 %7150  ;;  %26176 = vmatprep.mubr.msk.f32.mxu1 %vm27872_vm1, %v32697_v22 }
 0x7d0   : > { %26131 = vmatmul.mubr.msk.f32.vlgmr.msra.gmra.mxu0 %vm2568_vm3, %v5547_v57  ;;  %26179 = vmatprep.subr.mxu1 %v32697_v22 }
 0x7d1   : > { %26138 = vmatprep.subr.msk.mxu0 %vm3961_vm4, %v6782_v28 }
 0x7d2   : > { %26177 = vmatmul.mubr.msk.f32.vlgmr.msra.gmra.mxu1 %vm1351_vm2, %v7151_v36  ;;  %26139 = vmatpush3.msk.msra.mxu0 %vm3961_vm4, %v6782_v28 }
 0x7d3   : > { %26180 = vmatpush3.xpose.msk.msra.mxu1 %vm1351_vm2, %v7231_v47  ;;  %v7309_v25 = vpop.permute.xlu1 %7308  ;;  %v7229_v46 = vpop.permute.xlu0 %7228  ;;  %26181 = vmatprep.mubr.msk.f32.mxu1 %vm27872_vm1, %v32697_v22 }
 0x7d4   : > { %26184 = vmatprep.subr.mxu1 %v32697_v22  ;;  %26204 = vmatprep.subr.mxu0 %v32697_v22 }
 0x7d6   : > { %26182 = vmatmul.mubr.msk.f32.vlgmr.msra.gmra.mxu1 %vm1351_vm2, %v7229_v46 }
 0x7d7   : > { %26185 = vmatpush3.xpose.msk.msra.mxu1 %vm1351_vm2, %v7309_v25  ;;  %v7387_v9 = vpop.permute.xlu1 %7386  ;;  %v7307_v30 = vpop.permute.xlu0 %7306  ;;  %26186 = vmatprep.mubr.msk.f32.mxu1 %vm27872_vm1, %v32697_v22 }
 0x7d8   : > { %26189 = vmatprep.subr.mxu1 %v32697_v22 }
 0x7da   : > { %26187 = vmatmul.mubr.msk.f32.vlgmr.msra.gmra.mxu1 %vm1351_vm2, %v7307_v30 }
 0x7db   : > { %26190 = vmatpush3.xpose.msk.msra.mxu1 %vm1351_vm2, %v7387_v9  ;;  %v7385_v13 = vpop.permute.xlu0 %7384  ;;  %26191 = vmatprep.mubr.msk.f32.mxu1 %vm27872_vm1, %v32697_v22  ;;  %v7465_v39 = vpop.permute.xlu1 %7464 }
 0x7dc   : > { %26194 = vmatprep.subr.mxu1 %v32697_v22 }
 0x7de   : > { %26192 = vmatmul.mubr.msk.f32.vlgmr.msra.gmra.mxu1 %vm1351_vm2, %v7385_v13 }
 0x7df   : > { %26195 = vmatpush3.xpose.msk.msra.mxu1 %vm1351_vm2, %v7465_v39  ;;  %v7463_v24 = vpop.permute.xlu0 %7462  ;;  %26196 = vmatprep.mubr.msk.f32.mxu1 %vm27872_vm1, %v32697_v22  ;;  %v7543_v59 = vpop.permute.xlu1 %7542 }
 0x7e0   : > { %v5700_v44 = vpop.f32.mrf.mxu1  ;;  %26199 = vmatprep.subr.mxu1 %v32697_v22 }
 0x7e2   : > { %26197 = vmatmul.mubr.msk.f32.vlgmr.msra.gmra.mxu1 %vm1351_vm2, %v7463_v24  ;;  %v26067_v29 = vpop.f32.mrf.mxu1 }
 0x7e3   : > { %26200 = vmatpush3.xpose.msk.msra.mxu1 %vm1351_vm2, %v7543_v59  ;;  %v7541_v5 = vpop.permute.xlu0 %7540  ;;  %26201 = vmatprep.mubr.msk.f32.mxu1 %vm27872_vm1, %v32697_v22  ;;  %v7621_v62 = vpop.permute.xlu1 %7620 }
 0x7e4   : > { %26209 = vmatprep.subr.mxu1 %v32697_v22 }
 0x7e6   : > { %26202 = vmatmul.mubr.msk.f32.vlgmr.msra.gmra.mxu1 %vm1351_vm2, %v7541_v5 }
 0x7e7   : > { %v7699_v38 = vpop.permute.xlu0 %7698  ;;  %26211 = vmatprep.mubr.msk.f32.mxu1 %vm27872_vm1, %v32697_v22 }
 0x7e8   : > { %v5623_v17 = vpop.f32.mrf.mxu0  ;;  %26210 = vmatpush3.xpose.msk.msra.mxu1 %vm1351_vm2, %v7699_v38 }
 0x7e9   : > { %v5854_v48 = vpop.f32.mrf.mxu1  ;;  %26140 = vmatprep.mubr.msk.f32.mxu0 %vm1351_vm2, %v5623_v17  ;;  %26219 = vmatprep.subr.mxu1 %v32697_v22 }
 0x7ea   : > { %v26062_v52 = vpop.f32.mrf.mxu0  ;;  %26141 = vmatmul.mubr.msk.f32.vlgmr.msra.gmra.mxu0 %vm1351_vm2, %v5700_v44 }
 0x7eb   : > { %v26077_v45 = vpop.f32.mrf.mxu1  ;;  %26205 = vmatpush3.xpose.msk.msra.mxu0 %vm1351_vm2, %v7621_v62  ;;  %v7697_v23 = vpop.permute.xlu0 %7696 }
 0x7ec   : > { %v5777_v18 = vpop.f32.mrf.mxu0  ;;  %26214 = vmatprep.subr.mxu0 %v32697_v22  ;;  %26212 = vmatmul.mubr.msk.f32.vlgmr.msra.gmra.mxu1 %vm1351_vm2, %v7697_v23  ;;  %v7619_v52 = vpop.permute.xlu1 %7618 }
 0x7ed   : > { %26143 = vmatprep.mubr.msk.f32.mxu0 %vm1351_vm2, %v5777_v18  ;;  %26221 = vmatprep.mubr.msk.f32.mxu1 %vm27872_vm1, %v32697_v22 }
 0x7ee   : > { %v26072_v61 = vpop.f32.mrf.mxu0  ;;  %26144 = vmatmul.mubr.msk.f32.gmra.mxu0 %vm1351_vm2, %v5854_v48 }
 0x7ef   : > { %v7855_v14 = vpop.permute.xlu0 %7854 }
 0x7f0   : > { %v5931_v28 = vpop.f32.mrf.mxu0  ;;  %v6008_v57 = vpop.f32.mrf.mxu1  ;;  %26220 = vmatpush3.xpose.msk.msra.mxu1 %vm1351_vm2, %v7855_v14 }
 0x7f1   : > { %26146 = vmatprep.mubr.msk.f32.mxu0 %vm1351_vm2, %v5931_v28  ;;  %26229 = vmatprep.subr.mxu1 %v32697_v22  ;;  %v7777_v45 = vpop.permute.xlu1 %7776 }
 0x7f2   : > { %v26082_v47 = vpop.f32.mrf.mxu0  ;;  %26147 = vmatmul.mubr.msk.f32.gmra.mxu0 %vm1351_vm2, %v6008_v57  ;;  %v26087_v36 = vpop.f32.mrf.mxu1 }
 0x7f3   : > { %v7853_v25 = vpop.permute.xlu0 %7852 }
 0x7f4   : > { %v6085_v46 = vpop.f32.mrf.mxu0  ;;  %26222 = vmatmul.mubr.msk.f32.vlgmr.msra.gmra.mxu1 %vm1351_vm2, %v7853_v25 }
 0x7f5   : > { %26149 = vmatprep.mubr.msk.f32.mxu0 %vm1351_vm2, %v6085_v46  ;;  %26231 = vmatprep.mubr.msk.f32.mxu1 %vm27872_vm1, %v32697_v22  ;;  %v7775_v57 = vpop.permute.xlu1 %7774 }
 0x7f6   : > { %v26092_v9 = vpop.f32.mrf.mxu0 }
 0x7f7   : > { %v8011_v30 = vpop.permute.xlu0 %8010 }
 0x7f8   : > { %v6162_v13 = vpop.f32.mrf.mxu1  ;;  %26230 = vmatpush3.xpose.msk.msra.mxu1 %vm1351_vm2, %v8011_v30 }
 0x7f9   : > { %26150 = vmatmul.mubr.msk.f32.gmra.mxu0 %vm1351_vm2, %v6162_v13  ;;  %26239 = vmatprep.subr.mxu1 %v32697_v22 }
 0x7fa   : > { %v26097_v39 = vpop.f32.mrf.mxu1 }
 0x7fb   : > { %v8009_v24 = vpop.permute.xlu0 %8008  ;;  %v7933_v39 = vpop.permute.xlu1 %7932 }
 0x7fc   : > { %26232 = vmatmul.mubr.msk.f32.vlgmr.msra.gmra.mxu1 %vm1351_vm2, %v8009_v24 }
 0x7fd   : > { %26241 = vmatprep.mubr.msk.f32.mxu1 %vm27872_vm1, %v32697_v22 }
 0x7ff   : > { %v8167_v44 = vpop.permute.xlu0 %8166 }
 0x800   : > { %26240 = vmatpush3.xpose.msk.msra.mxu1 %vm1351_vm2, %v8167_v44 }
 0x801   : > { %26249 = vmatprep.subr.mxu1 %v32697_v22 }
 0x803   : > { %v8165_v59 = vpop.permute.xlu0 %8164 }
 0x804   : > { %26242 = vmatmul.mubr.msk.f32.vlgmr.msra.gmra.mxu1 %vm1351_vm2, %v8165_v59 }
 0x805   : > { %26251 = vmatprep.mubr.msk.f32.mxu1 %vm27872_vm1, %v32697_v22 }
 0x81d   : > { %v6316_v29 = vpop.f32.mrf.mxu1 }
 0x81f   : > { %v26107_v5 = vpop.f32.mrf.mxu1 }
 0x821   : > { %v6470_v38 = vpop.f32.mrf.mxu1 }
 0x823   : > { %v26117_v17 = vpop.f32.mrf.mxu1 }
 0x825   : > { %v6624_v48 = vpop.f32.mrf.mxu1 }
 0x827   : > { %v26127_v62 = vpop.f32.mrf.mxu1 }
 0x884   : > { %v6239_v23 = vpop.f32.mrf.mxu0 }
 0x885   : > { %v6778_v18 = vpop.f32.mrf.mxu1  ;;  %26152 = vmatprep.mubr.msk.f32.mxu0 %vm1351_vm2, %v6239_v23 }
 0x886   : > { %v26102_v61 = vpop.f32.mrf.mxu0  ;;  %26153 = vmatmul.mubr.msk.f32.gmra.mxu0 %vm1351_vm2, %v6316_v29 }
 0x887   : > { %v26137_v14 = vpop.f32.mrf.mxu1 }
 0x888   : > { %v6393_v28 = vpop.f32.mrf.mxu0 }
 0x889   : > { %26155 = vmatprep.mubr.msk.f32.mxu0 %vm1351_vm2, %v6393_v28 }
 0x88a   : > { %v29576_v47 = vpop.f32.mrf.mxu1  ;;  %v26112_v36 = vpop.f32.mrf.mxu0  ;;  %26156 = vmatmul.mubr.msk.f32.gmra.mxu0 %vm1351_vm2, %v6470_v38 }
 0x88b   : > { %v8242_v25 = vsel %vm2568_vm3, %v29576_v47, -inf }
 0x88c   : > { %8243 = vmax.xlane.f32.xlu1 %v8242_v25  ;;  %v26168_v46 = vpop.f32.mrf.mxu1  ;;  %v6547_v9 = vpop.f32.mrf.mxu0 }
 0x88d   : > { %26158 = vmatprep.mubr.msk.f32.mxu0 %vm1351_vm2, %v6547_v9 }
 0x88e   : > { %v29582_v30 = vpop.f32.mrf.mxu1  ;;  %v26122_v13 = vpop.f32.mrf.mxu0  ;;  %26159 = vmatmul.mubr.msk.f32.gmra.mxu0 %vm1351_vm2, %v6624_v48 }
 0x88f   : > { %v8245_v24 = vsel %vm2568_vm3, %v29582_v30, -inf  ;;  %v7931_v48 = vpop.permute.xlu1 %7930 }
 0x890   : > { %8246 = vmax.xlane.f32.xlu0 %v8245_v24  ;;  %v26173_v44 = vpop.f32.mrf.mxu1  ;;  %v6701_v59 = vpop.f32.mrf.mxu0 }
 0x891   : > { %26161 = vmatprep.mubr.msk.f32.mxu0 %vm1351_vm2, %v6701_v59 }
 0x892   : > { %v29588_v29 = vpop.f32.mrf.mxu1  ;;  %v26132_v5 = vpop.f32.mrf.mxu0  ;;  %26162 = vmatmul.mubr.msk.f32.gmra.mxu0 %vm1351_vm2, %v6778_v18 }
 0x893   : > { %v8248_v38 = vsel %vm2568_vm3, %v29588_v29, -inf  ;;  %26206 = vmatprep.mubr.msk.f32.mxu0 %vm27872_vm1, %v32697_v22  ;;  %v8089_v14 = vpop.permute.xlu1 %8088 }
 0x894   : > { %8249 = vmax.xlane.f32.xlu0 %v8248_v38  ;;  %v26178_v17 = vpop.f32.mrf.mxu1 }
 0x896   : > { %v29595_v62 = vpop.f32.mrf.mxu1  ;;  %26207 = vmatmul.mubr.msk.f32.vlgmr.msra.gmra.mxu0 %vm1351_vm2, %v7619_v52 }
 0x897   : > { %26215 = vmatpush3.xpose.msk.msra.mxu0 %vm1351_vm2, %v7777_v45  ;;  %v8251_v23 = vsel %vm2568_vm3, %v29595_v62, -inf  ;;  %26216 = vmatprep.mubr.msk.f32.mxu0 %vm27872_vm1, %v32697_v22  ;;  %v8087_v25 = vpop.permute.xlu1 %8086 }
 0x898   : > { %8252 = vmax.xlane.f32.xlu0 %v8251_v23  ;;  %v26183_v18 = vpop.f32.mrf.mxu1  ;;  %26224 = vmatprep.subr.mxu0 %v32697_v22 }
 0x89a   : > { %v29604_v61 = vpop.f32.mrf.mxu1  ;;  %26217 = vmatmul.mubr.msk.f32.vlgmr.msra.gmra.mxu0 %vm1351_vm2, %v7775_v57 }
 0x89b   : > { %26225 = vmatpush3.xpose.msk.msra.mxu0 %vm1351_vm2, %v7933_v39  ;;  %v8254_v52 = vsel %vm2568_vm3, %v29604_v61, -inf  ;;  %26226 = vmatprep.mubr.msk.f32.mxu0 %vm27872_vm1, %v32697_v22 }
 0x89c   : > { %8255 = vmax.xlane.f32.xlu1 %v8254_v52  ;;  %v26188_v45 = vpop.f32.mrf.mxu1  ;;  %26234 = vmatprep.subr.mxu0 %v32697_v22 }
 0x89e   : > { %v29613_v28 = vpop.f32.mrf.mxu1  ;;  %26227 = vmatmul.mubr.msk.f32.vlgmr.msra.gmra.mxu0 %vm1351_vm2, %v7931_v48 }
 0x89f   : > { %26235 = vmatpush3.xpose.msk.msra.mxu0 %vm1351_vm2, %v8089_v14  ;;  %v8257_v57 = vsel %vm2568_vm3, %v29613_v28, -inf  ;;  %26236 = vmatprep.mubr.msk.f32.mxu0 %vm27872_vm1, %v32697_v22 }
 0x8a0   : > { %8258 = vmax.xlane.f32.xlu0 %v8257_v57  ;;  %v26193_v36 = vpop.f32.mrf.mxu1  ;;  %26244 = vmatprep.subr.mxu0 %v32697_v22 }
 0x8a2   : > { %v29622_v46 = vpop.f32.mrf.mxu1  ;;  %26237 = vmatmul.mubr.msk.f32.vlgmr.msra.gmra.mxu0 %vm1351_vm2, %v8087_v25 }
 0x8a3   : > { %v8260_v9 = vsel %vm2568_vm3, %v29622_v46, -inf  ;;  %26246 = vmatprep.mubr.msk.f32.mxu0 %vm27872_vm1, %v32697_v22 }
 0x8a4   : > { %8261 = vmax.xlane.f32.xlu1 %v8260_v9  ;;  %v26198_v13 = vpop.f32.mrf.mxu1 }
 0x8a6   : > { %v29629_v39 = vpop.f32.mrf.mxu1 }
 0x8a7   : > { %v8263_v24 = vsel %vm2568_vm3, %v29629_v39, -inf }
 0x8a8   : > { %8264 = vmax.xlane.f32.xlu0 %v8263_v24  ;;  %v26203_v44 = vpop.f32.mrf.mxu1 }
 0x8aa   : > { %v26142_v59 = vpop.f32.mrf.mxu0 }
 0x8ab   : > { %v29634_v5 = vadd.f32 %v26142_v59, %v29186_v6 }
 0x8ac   : > { %v29636_v38 = vpop.f32.mrf.mxu0  ;;  %v29638_v17 = vpop.f32.mrf.mxu1 }
 0x8ad   : > { %32775 = vst [vmem:[#allocation42_spill] sm:$0xff] %v29634_v5  ;;  %32776 = vst [vmem:[#allocation37_spill] sm:$0xff] %v29636_v38  ;;  %v8269_v23 = vsel %vm2568_vm3, %v29638_v17, -inf }
 0x8ae   : > { %v26145_v48 = vpop.f32.mrf.mxu0  ;;  %8270 = vmax.xlane.f32.xlu0 %v8269_v23  ;;  %v26213_v14 = vpop.f32.mrf.mxu1 }
 0x8af   : > { %v29643_v18 = vadd.f32 %v26145_v48, %v29194_v43  ;;  %v32781_v43 = vld [vmem:[#allocation31_spill] sm:$0xff] }
 0x8b0   : > { %v29645_v52 = vpop.f32.mrf.mxu0 }
 0x8b1   : > { %32777 = vst [vmem:[#allocation45_spill] sm:$0xff] %v29643_v18  ;;  %32778 = vst [vmem:[#allocation39_spill] sm:$0xff] %v29645_v52 }
 0x8b2   : > { %v26148_v45 = vpop.f32.mrf.mxu0 }
 0x8b3   : > { %v29648_v57 = vadd.f32 %v26148_v45, %v29210_v1 }
 0x8b4   : > { %v29650_v6 = vpop.f32.mrf.mxu1  ;;  %v29654_v25 = vpop.f32.mrf.mxu0 }
 0x8b5   : > { %32779 = vst [vmem:[#allocation48_spill] sm:$0xff] %v29648_v57  ;;  %v8275_v36 = vsel %vm2568_vm3, %v29650_v6, -inf  ;;  %32780 = vst [vmem:[#allocation41_spill] sm:$0xff] %v29654_v25 }
 0x8b6   : > { %8276 = vmax.xlane.f32.xlu0 %v8275_v36  ;;  %v26223_v9 = vpop.f32.mrf.mxu1 }
 0x8b9   : > { %v26151_v13 = vpop.f32.mrf.mxu0 }
 0x8ba   : > { %v29657_v24 = vadd.f32 %v26151_v13, %v32781_v43 }
 0x8bc   : > { %32782 = vst [vmem:[#allocation31_spill] sm:$0xff] %v29657_v24  ;;  %v29659_v44 = vpop.f32.mrf.mxu1 }
 0x8bd   : > { %v8281_v59 = vsel %vm2568_vm3, %v29659_v44, -inf }
 0x8be   : > { %8282 = vmax.xlane.f32.xlu0 %v8281_v59  ;;  %v26233_v1 = vpop.f32.mrf.mxu1 }
 0x8c4   : > { %v29663_v48 = vpop.f32.mrf.mxu1 }
 0x8c5   : > { %v8287_v23 = vsel %vm2568_vm3, %v29663_v48, -inf }
 0x8c6   : > { %8288 = vmax.xlane.f32.xlu0 %v8287_v23  ;;  %v26243_v14 = vpop.f32.mrf.mxu1 }
 0x915   : > { %v8244_v45 = vpop.xlane.xlu1 %8243 }
 0x916   : > { %v8290_v36 = vsub.f32 %v29576_v47, %v8244_v45 }
 0x918   : > { %v8306_v9 = vmul.f32 1.442695, %v8290_v36 }
 0x919   : > { %v8247_v13 = vpop.xlane.xlu0 %8246 }
 0x91a   : > { %27471 = vpow2.f32 %v8306_v9  ;;  %v8291_v43 = vsub.f32 %v29582_v30, %v8247_v13 }
 0x91c   : > { %v8308_v25 = vmul.f32 1.442695, %v8291_v43 }
 0x91d   : > { %v8250_v52 = vpop.xlane.xlu0 %8249 }
 0x91e   : > { %27473 = vpow2.f32 %v8308_v25  ;;  %v8292_v59 = vsub.f32 %v29588_v29, %v8250_v52 }
 0x920   : > { %v8310_v1 = vmul.f32 1.442695, %v8292_v59 }
 0x921   : > { %v8253_v38 = vpop.xlane.xlu0 %8252 }
 0x922   : > { %27475 = vpow2.f32 %v8310_v1  ;;  %v8293_v24 = vsub.f32 %v29595_v62, %v8253_v38 }
 0x924   : > { %v8312_v23 = vmul.f32 1.442695, %v8293_v24 }
 0x925   : > { %v8256_v14 = vpop.xlane.xlu1 %8255 }
 0x926   : > { %27477 = vpow2.f32 %v8312_v23  ;;  %v8294_v47 = vsub.f32 %v29604_v61, %v8256_v14 }
 0x927   : > { %v29672_v45 = vpop.eup %27471 }
 0x928   : > { %v8314_v36 = vmul.f32 1.442695, %v8294_v47  ;;  %v8338_v30 = vsel %vm2568_vm3, %v29672_v45, 0.0 }
 0x929   : > { %v8259_v9 = vpop.xlane.xlu0 %8258  ;;  %8339 = vadd.xlane.f32.xlu1 %v8338_v30 }
 0x92a   : > { %27479 = vpow2.f32 %v8314_v36  ;;  %v8295_v29 = vsub.f32 %v29613_v28, %v8259_v9 }
 0x92b   : > { %v29677_v52 = vpop.eup %27473 }
 0x92c   : > { %v8316_v25 = vmul.f32 1.442695, %v8295_v29  ;;  %v8341_v62 = vsel %vm2568_vm3, %v29677_v52, 0.0 }
 0x92d   : > { %v8262_v38 = vpop.xlane.xlu1 %8261  ;;  %8342 = vadd.xlane.f32.xlu0 %v8341_v62 }
 0x92e   : > { %27481 = vpow2.f32 %v8316_v25  ;;  %v8296_v61 = vsub.f32 %v29622_v46, %v8262_v38 }
 0x92f   : > { %v29682_v24 = vpop.eup %27475 }
 0x930   : > { %v8318_v13 = vmul.f32 1.442695, %v8296_v61  ;;  %v8344_v43 = vsel %vm2568_vm3, %v29682_v24, 0.0 }
 0x931   : > { %8345 = vadd.xlane.f32.xlu1 %v8344_v43  ;;  %v8265_v59 = vpop.xlane.xlu0 %8264  ;;  %v32783_v43 = vld [vmem:[#allocation20_spill] sm:$0xff] }
 0x932   : > { %27483 = vpow2.f32 %v8318_v13  ;;  %v8297_v28 = vsub.f32 %v29629_v39, %v8265_v59 }
 0x933   : > { %v29687_v1 = vpop.eup %27477 }
 0x934   : > { %v8320_v23 = vmul.f32 1.442695, %v8297_v28  ;;  %v8347_v14 = vsel %vm2568_vm3, %v29687_v1, 0.0 }
 0x935   : > { %8348 = vadd.xlane.f32.xlu0 %v8347_v14 }
 0x936   : > { %27485 = vpow2.f32 %v8320_v23  ;;  %v29711_v23 = vpop.f32.mrf.mxu0 }
 0x937   : > { %v29691_v46 = vpop.eup %27479  ;;  %v8271_v47 = vpop.xlane.xlu0 %8270  ;;  %32784 = vst [vmem:[#allocation20_spill] sm:$0xff] %v29711_v23 }
 0x938   : > { %v8350_v36 = vsel %vm2568_vm3, %v29691_v46, 0.0  ;;  %v8299_v30 = vsub.f32 %v29638_v17, %v8271_v47  ;;  %v27858_v17 = vld [vmem:[%s32559_s11] ss:$0 sm:$0xff]  ;;  %v32785_v47 = vld [vmem:[#allocation61_spill] sm:$0xff] }
 0x939   : > { %8351 = vadd.xlane.f32.xlu1 %v8350_v36  ;;  %v1328_v59 = vadd.f32 %v27858_v17, %v32783_v43  ;;  %v32788_v43 = vld [vmem:[#allocation22_spill] sm:$0xff] }
 0x93a   : > { %v8324_v39 = vmul.f32 1.442695, %v8299_v30 }
 0x93b   : > { %v29696_v9 = vpop.eup %27481  ;;  %v4119_v36 = vadd.f32 %v32785_v47, %v1328_v59  ;;  %v32791_v47 = vld [vmem:[#allocation24_spill] sm:$0xff] }
 0x93c   : > { %v8353_v29 = vsel %vm2568_vm3, %v29696_v9, 0.0  ;;  %27487 = vpow2.f32 %v8324_v39 }
 0x93d   : > { %8354 = vadd.xlane.f32.xlu0 %v8353_v29 }
 0x93f   : > { %v29700_v25 = vpop.eup %27483  ;;  %v8277_v62 = vpop.xlane.xlu0 %8276 }
 0x940   : > { %v8356_v38 = vsel %vm2568_vm3, %v29700_v25, 0.0  ;;  %v8301_v61 = vsub.f32 %v29650_v6, %v8277_v62 }
 0x941   : > { %8357 = vadd.xlane.f32.xlu1 %v8356_v38 }
 0x942   : > { %v8328_v28 = vmul.f32 1.442695, %v8301_v61 }
 0x943   : > { %v29705_v13 = vpop.eup %27485 }
 0x944   : > { %v8359_v14 = vsel %vm2568_vm3, %v29705_v13, 0.0  ;;  %27489 = vpow2.f32 %v8328_v28 }
 0x945   : > { %8360 = vadd.xlane.f32.xlu0 %v8359_v14 }
 0x946   : > { %v26154_v6 = vpop.f32.mrf.mxu0 }
 0x947   : > { %v29716_v30 = vadd.f32 %v26154_v6, %v4119_v36  ;;  %v8283_v39 = vpop.xlane.xlu0 %8282 }
 0x948   : > { %v29718_v29 = vpop.f32.mrf.mxu0  ;;  %v8303_v62 = vsub.f32 %v29659_v44, %v8283_v39 }
 0x949   : > { %32786 = vst [vmem:[#allocation61_spill] sm:$0xff] %v29716_v30  ;;  %32787 = vst [vmem:[#allocation66_spill] sm:$0xff] %v29718_v29  ;;  %v29721_v38 = vpop.eup %27487 }
 0x94a   : > { %v26157_v61 = vpop.f32.mrf.mxu0  ;;  %v8332_v17 = vmul.f32 1.442695, %v8303_v62  ;;  %v8365_v59 = vsel %vm2568_vm3, %v29721_v38, 0.0  ;;  %v32794_v62 = vld [vmem:[#allocation26_spill] sm:$0xff] }
 0x94b   : > { %v29724_v23 = vadd.f32 %v26157_v61, %v32788_v43  ;;  %8366 = vadd.xlane.f32.xlu0 %v8365_v59 }
 0x94c   : > { %v29728_v28 = vpop.f32.mrf.mxu0  ;;  %27491 = vpow2.f32 %v8332_v17 }
 0x94d   : > { %32789 = vst [vmem:[#allocation22_spill] sm:$0xff] %v29724_v23  ;;  %32790 = vst [vmem:[#allocation67_spill] sm:$0xff] %v29728_v28  ;;  %v32797_v23 = vld [vmem:[#allocation47_spill] sm:$0xff] }
 0x94e   : > { %v26160_v14 = vpop.f32.mrf.mxu0 }
 0x94f   : > { %v29731_v36 = vadd.f32 %v26160_v14, %v32791_v47 }
 0x950   : > { %v29733_v6 = vpop.f32.mrf.mxu0 }
 0x951   : > { %32792 = vst [vmem:[#allocation24_spill] sm:$0xff] %v29731_v36  ;;  %32793 = vst [vmem:[#allocation68_spill] sm:$0xff] %v29733_v6  ;;  %v29735_v44 = vpop.eup %27489 }
 0x952   : > { %v26163_v39 = vpop.f32.mrf.mxu0  ;;  %v8371_v61 = vsel %vm2568_vm3, %v29735_v44, 0.0 }
 0x953   : > { %v29738_v29 = vadd.f32 %v26163_v39, %v32794_v62  ;;  %8372 = vadd.xlane.f32.xlu0 %v8371_v61 }
 0x954   : > { %v29742_v43 = vpop.f32.mrf.mxu0 }
 0x955   : > { %32795 = vst [vmem:[#allocation26_spill] sm:$0xff] %v29738_v29  ;;  %32796 = vst [vmem:[#allocation69_spill] sm:$0xff] %v29742_v43 }
 0x956   : > { %v7692_v59 = vpop.f32.mrf.mxu0 }
 0x957   : > { %v8266_v17 = vsel %vm2568_vm3, %v7692_v59, -inf }
 0x958   : > { %v26208_v28 = vpop.f32.mrf.mxu0  ;;  %8267 = vmax.xlane.f32.xlu1 %v8266_v17 }
 0x959   : > { %v29745_v14 = vpop.eup %27491 }
 0x95a   : > { %v7848_v47 = vpop.f32.mrf.mxu0  ;;  %v8377_v6 = vsel %vm2568_vm3, %v29745_v14, 0.0 }
 0x95b   : > { %v8272_v39 = vsel %vm2568_vm3, %v7848_v47, -inf  ;;  %8378 = vadd.xlane.f32.xlu0 %v8377_v6  ;;  %v32798_v6 = vld [vmem:[#allocation60_spill] sm:$0xff] }
 0x95c   : > { %v26218_v62 = vpop.f32.mrf.mxu0  ;;  %8273 = vmax.xlane.f32.xlu1 %v8272_v39  ;;  %v32799_v39 = vld [vmem:[#allocation34_spill] sm:$0xff] }
 0x95d   : > { %v32800_v62 = vld [vmem:[#allocation36_spill] sm:$0xff] }
 0x95e   : > { %v8004_v29 = vpop.f32.mrf.mxu0 }
 0x95f   : > { %v8278_v61 = vsel %vm2568_vm3, %v8004_v29, -inf }
 0x960   : > { %v26228_v43 = vpop.f32.mrf.mxu0  ;;  %8279 = vmax.xlane.f32.xlu1 %v8278_v61 }
 0x961   : > { %v8289_v43 = vpop.xlane.xlu0 %8288 }
 0x962   : > { %v29751_v36 = vpop.f32.mrf.mxu0  ;;  %v8305_v61 = vsub.f32 %v29663_v48, %v8289_v43  ;;  %v32807_v48 = vld [vmem:[#allocation49_spill] sm:$0xff] }
 0x963   : > { %v8284_v28 = vsel %vm2568_vm3, %v29751_v36, -inf }
 0x964   : > { %v26238_v17 = vpop.f32.mrf.mxu0  ;;  %8285 = vmax.xlane.f32.xlu1 %v8284_v28  ;;  %v32801_v28 = vld [vmem:[#allocation35_spill] sm:$0xff] }
 0x965   : > { %v8336_v17 = vmul.f32 1.442695, %v8305_v61  ;;  %v32808_v61 = vld [vmem:[#allocation55_spill] sm:$0xff] }
 0x967   : > { %27493 = vpow2.f32 %v8336_v17  ;;  %v32809_v17 = vld [vmem:[#allocation53_spill] sm:$0xff] }
 0x971   : > { %8494 = vrot.lane.b32.xlu0 %v32762_v32, %s27874_s25  ;;  %v32802_v32 = vld [vmem:[#allocation40_spill] sm:$0xff] }
 0x975   : > { %8418 = vrot.lane.b32.xlu1 %v32797_v23, %s27874_s25  ;;  %8570 = vrot.lane.b32.xlu0 %v32798_v6, %s27874_s25  ;;  %v32803_v23 = vld [vmem:[#allocation38_spill] sm:$0xff]  ;;  %v32804_v6 = vld [vmem:[#allocation43_spill] sm:$0xff] }
 0x979   : > { %8646 = vrot.lane.b32.xlu0 %v32799_v39, %s27874_s25  ;;  %v32805_v39 = vld [vmem:[#allocation51_spill] sm:$0xff] }
 0x97d   : > { %8722 = vrot.lane.b32.xlu0 %v32800_v62, %s27874_s25  ;;  %v29776_v62 = vpop.eup %27493 }
 0x97e   : > { %32806 = vst [vmem:[#allocation70_spill] sm:$0xff] %v29776_v62  ;;  %v8383_v43 = vsel %vm2568_vm3, %v29776_v62, 0.0 }
 0x981   : > { %8798 = vrot.lane.b32.xlu0 %v32801_v28, %s27874_s25 }
 0x985   : > { %8874 = vrot.lane.b32.xlu0 %v32802_v32, %s27874_s25 }
 0x989   : > { %8950 = vrot.lane.b32.xlu0 %v32803_v23, %s27874_s25 }
 0x98d   : > { %9102 = vrot.lane.b32.xlu0 %v32804_v6, %s27874_s25  ;;  %v32810_v6 = vld [vmem:[#allocation46_spill] sm:$0xff] }
 0x991   : > { %9178 = vrot.lane.b32.xlu0 %v32805_v39, %s27874_s25 }
 0x995   : > { %9254 = vrot.lane.b32.xlu0 %v32807_v48, %s27874_s25 }
 0x999   : > { %8384 = vadd.xlane.f32.xlu1 %v8383_v43  ;;  %9330 = vrot.lane.b32.xlu0 %v32808_v61, %s27874_s25 }
 0x99d   : > { %9406 = vrot.lane.b32.xlu0 %v32809_v17, %s27874_s25 }
 0x9aa   : > { %9026 = vrot.lane.b32.xlu1 %v32810_v6, %s27874_s25 }
 0x9b2   : > { %v8340_v39 = vpop.xlane.xlu1 %8339 }
 0x9b6   : > { %v8343_v23 = vpop.xlane.xlu0 %8342 }
 0x9b7   : > { %27495 = vrcp.f32 %v8343_v23 }
 0x9b8   : > { %27497 = vrcp.f32 %v8340_v39 }
 0x9ba   : > { %v8346_v28 = vpop.xlane.xlu1 %8345 }
 0x9be   : > { %v8349_v32 = vpop.xlane.xlu0 %8348 }
 0x9bf   : > { %27499 = vrcp.f32 %v8349_v32 }
 0x9c0   : > { %27501 = vrcp.f32 %v8346_v28 }
 0x9c2   : > { %v8352_v48 = vpop.xlane.xlu1 %8351 }
 0x9c4   : > { %v27496_v21 = vpop.eup %27495 }
 0x9c5   : > { %v8389_v49 = vmul.f32 %v27496_v21, %v29677_v52 }
 0x9c6   : > { %v8355_v30 = vpop.xlane.xlu0 %8354 }
 0x9ca   : > { %v8358_v18 = vpop.xlane.xlu1 %8357 }
 0x9ce   : > { %v8361_v57 = vpop.xlane.xlu0 %8360 }
 0x9d4   : > { %v8367_v5 = vpop.xlane.xlu0 %8366 }
 0x9dc   : > { %v29788_v43 = vpop.xlane.xlu0 %8372 }
 0x9e1   : > { %v8268_v61 = vpop.xlane.xlu1 %8267 }
 0x9e2   : > { %v8298_v62 = vsub.f32 %v7692_v59, %v8268_v61 }
 0x9e4   : > { %v8322_v17 = vmul.f32 1.442695, %v8298_v62  ;;  %v29790_v63 = vpop.xlane.xlu0 %8378  ;;  %v27498_v62 = vpop.eup %27497 }
 0x9e5   : > { %v8274_v6 = vpop.xlane.xlu1 %8273 }
 0x9e6   : > { %27503 = vpow2.f32 %v8322_v17  ;;  %v8300_v2 = vsub.f32 %v7848_v47, %v8274_v6  ;;  %v27500_v6 = vpop.eup %27499 }
 0x9e7   : > { %27505 = vrcp.f32 %v8352_v48  ;;  %v27502_v28 = vpop.eup %27501 }
 0x9e8   : > { %v8326_v23 = vmul.f32 1.442695, %v8300_v2  ;;  %27507 = vrcp.f32 %v8355_v30  ;;  %v8495_v35 = vpop.permute.xlu0 %8494  ;;  %v8387_v30 = vmul.f32 %v27498_v62, %v29672_v45  ;;  %v8391_v45 = vmul.f32 %v27502_v28, %v29682_v24 }
 0x9e9   : > { %v8280_v39 = vpop.xlane.xlu1 %8279  ;;  %26250 = vmatpush3.msra.mxu1 %v8495_v35  ;;  %v8393_v35 = vmul.f32 %v27500_v6, %v29687_v1 }
 0x9ea   : > { %27509 = vpow2.f32 %v8326_v23  ;;  %v8302_v32 = vsub.f32 %v8004_v29, %v8280_v39  ;;  %26252 = vmatmul.mubr.msk.f32.vlgmr.msra.gmra.mxu1 %vm2568_vm3, %v8389_v49  ;;  %26259 = vmatprep.subr.mxu1 %v32697_v22 }
 0x9eb   : > { %26261 = vmatprep.mubr.msk.f32.mxu1 %vm27872_vm1, %v32697_v22  ;;  %27511 = vrcp.f32 %v8358_v18 }
 0x9ec   : > { %v8330_v59 = vmul.f32 1.442695, %v8302_v32  ;;  %v8571_v47 = vpop.permute.xlu0 %8570 }
 0x9ed   : > { %v8286_v2 = vpop.xlane.xlu1 %8285 }
 0x9ee   : > { %27513 = vpow2.f32 %v8330_v59  ;;  %v8304_v21 = vsub.f32 %v29751_v36, %v8286_v2 }
 0x9ef   : > { %27515 = vrcp.f32 %v8361_v57 }
 0x9f0   : > { %v8334_v52 = vmul.f32 1.442695, %v8304_v21  ;;  %v8647_v49 = vpop.permute.xlu0 %8646 }
 0x9f1   : > { %v8419_v29 = vpop.permute.xlu1 %8418  ;;  %26260 = vmatpush3.msra.mxu1 %v8647_v49 }
 0x9f2   : > { %27517 = vpow2.f32 %v8334_v52  ;;  %26245 = vmatpush3.msra.mxu0 %v8419_v29  ;;  %26262 = vmatmul.mubr.msk.f32.vlgmr.msra.gmra.mxu1 %vm2568_vm3, %v8393_v35 }
 0x9f3   : > { %v29800_v48 = vpop.eup %27503  ;;  %26247 = vmatmul.mubr.msk.f32.vlgmr.msra.gmra.mxu0 %vm2568_vm3, %v8387_v30  ;;  %26254 = vmatprep.subr.mxu0 %v32697_v22  ;;  %27519 = vrcp.f32 %v8367_v5 }
 0x9f4   : > { %v8362_v18 = vsel %vm2568_vm3, %v29800_v48, 0.0  ;;  %26256 = vmatprep.mubr.msk.f32.mxu0 %vm27872_vm1, %v32697_v22  ;;  %v27506_v57 = vpop.eup %27505  ;;  %26255 = vmatpush3.msra.mxu0 %v8571_v47  ;;  %v8723_v1 = vpop.permute.xlu0 %8722  ;;  %27521 = vrcp.f32 %v29788_v43 }
 0x9f5   : > { %8363 = vadd.xlane.f32.xlu1 %v8362_v18  ;;  %v27508_v36 = vpop.eup %27507  ;;  %26264 = vmatprep.subr.mxu0 %v32697_v22  ;;  %v8395_v5 = vmul.f32 %v27506_v57, %v29691_v46  ;;  %27523 = vrcp.f32 %v29790_v63  ;;  %v32811_v18 = vld [vmem:[#allocation50_spill] sm:$0xff]  ;;  %v32812_v57 = vld [vmem:[#allocation44_spill] sm:$0xff] }
 0x9f6   : > { %26269 = vmatprep.subr.mxu1 %v32697_v22  ;;  %26271 = vmatprep.mubr.msk.f32.mxu1 %vm27872_vm1, %v32697_v22  ;;  %v8397_v17 = vmul.f32 %v27508_v36, %v29696_v9  ;;  %v32815_v36 = vld [vmem:[#allocation56_spill] sm:$0xff] }
 0x9f7   : > { %v29812_v61 = vpop.eup %27509  ;;  %26257 = vmatmul.mubr.msk.f32.vlgmr.msra.gmra.mxu0 %vm2568_vm3, %v8391_v45  ;;  %v32813_v45 = vld [vmem:[#allocation52_spill] sm:$0xff] }
 0x9f8   : > { %26265 = vmatpush3.msra.mxu0 %v8723_v1  ;;  %v8368_v24 = vsel %vm2568_vm3, %v29812_v61, 0.0  ;;  %26266 = vmatprep.mubr.msk.f32.mxu0 %vm27872_vm1, %v32697_v22  ;;  %v8799_v23 = vpop.permute.xlu0 %8798  ;;  %v27512_v39 = vpop.eup %27511  ;;  %v32814_v1 = vld [vmem:[#allocation54_spill] sm:$0xff] }
 0x9f9   : > { %8369 = vadd.xlane.f32.xlu1 %v8368_v24  ;;  %26274 = vmatprep.subr.mxu0 %v32697_v22  ;;  %v8399_v46 = vmul.f32 %v27512_v39, %v29700_v25 }
 0x9fa   : > { %26270 = vmatpush3.msra.mxu1 %v8799_v23 }
 0x9fb   : > { %v29824_v32 = vpop.eup %27513  ;;  %26272 = vmatmul.mubr.msk.f32.vlgmr.msra.gmra.mxu1 %vm2568_vm3, %v8397_v17  ;;  %26267 = vmatmul.mubr.msk.f32.vlgmr.msra.gmra.mxu0 %vm2568_vm3, %v8395_v5 }
 0x9fc   : > { %v8374_v59 = vsel %vm2568_vm3, %v29824_v32, 0.0  ;;  %26276 = vmatprep.mubr.msk.f32.mxu0 %vm27872_vm1, %v32697_v22  ;;  %26279 = vmatprep.subr.mxu1 %v32697_v22  ;;  %v8875_v9 = vpop.permute.xlu0 %8874  ;;  %v27516_v62 = vpop.eup %27515 }
 0x9fd   : > { %8375 = vadd.xlane.f32.xlu1 %v8374_v59  ;;  %26281 = vmatprep.mubr.msk.f32.mxu1 %vm27872_vm1, %v32697_v22  ;;  %v8401_v25 = vmul.f32 %v27516_v62, %v29705_v13  ;;  %v32816_v62 = vld [vmem:[#allocation70_spill] sm:$0xff] }
 0x9fe   : > { %26275 = vmatpush3.msra.mxu0 %v8875_v9 }
 0x9ff   : > { %v29837_v47 = vpop.eup %27517  ;;  %26277 = vmatmul.mubr.msk.f32.vlgmr.msra.gmra.mxu0 %vm2568_vm3, %v8399_v46  ;;  %26284 = vmatprep.subr.mxu0 %v32697_v22 }
 0xa00   : > { %v8380_v2 = vsel %vm2568_vm3, %v29837_v47, 0.0  ;;  %26286 = vmatprep.mubr.msk.f32.mxu0 %vm27872_vm1, %v32697_v22  ;;  %v8951_v43 = vpop.permute.xlu0 %8950  ;;  %v27520_v6 = vpop.eup %27519 }
 0xa01   : > { %8381 = vadd.xlane.f32.xlu0 %v8380_v2  ;;  %26280 = vmatpush3.msra.mxu1 %v8951_v43  ;;  %v8405_v21 = vmul.f32 %v27520_v6, %v29721_v38  ;;  %v27522_v30 = vpop.eup %27521 }
 0xa02   : > { %26282 = vmatmul.mubr.msk.f32.vlgmr.msra.gmra.mxu1 %vm2568_vm3, %v8401_v25  ;;  %26289 = vmatprep.subr.mxu1 %v32697_v22  ;;  %v8409_v35 = vmul.f32 %v27522_v30, %v29735_v44  ;;  %v27524_v38 = vpop.eup %27523 }
 0xa03   : > { %26291 = vmatprep.mubr.msk.f32.mxu1 %vm27872_vm1, %v32697_v22  ;;  %v8413_v44 = vmul.f32 %v27524_v38, %v29745_v14 }
 0xa04   : > { %v9103_v52 = vpop.permute.xlu0 %9102 }
 0xa05   : > { %26290 = vmatpush3.msra.mxu1 %v9103_v52 }
 0xa06   : > { %26292 = vmatmul.mubr.msk.f32.vlgmr.msra.gmra.mxu1 %vm2568_vm3, %v8405_v21  ;;  %26299 = vmatprep.subr.mxu1 %v32697_v22 }
 0xa07   : > { %26301 = vmatprep.mubr.msk.f32.mxu1 %vm27872_vm1, %v32697_v22 }
 0xa08   : > { %v29856_v13 = vpop.permute.xlu0 %9178 }
 0xa0c   : > { %v9255_v49 = vpop.permute.xlu0 %9254 }
 0xa0d   : > { %26300 = vmatpush3.msra.mxu1 %v9255_v49 }
 0xa0e   : > { %9482 = vrot.lane.b32.xlu1 %v29010_v3, %s27874_s25  ;;  %26302 = vmatmul.mubr.msk.f32.vlgmr.msra.gmra.mxu1 %vm2568_vm3, %v8409_v35 }
 0xa0f   : > { %26309 = vmatprep.subr.mxu1 %v32697_v22  ;;  %26311 = vmatprep.mubr.msk.f32.mxu1 %vm27872_vm1, %v32697_v22 }
 0xa10   : > { %v29865_v63 = vpop.permute.xlu0 %9330 }
 0xa12   : > { %9848 = vrot.lane.b32.xlu1 %v28441_v34, %s27875_s17 }
 0xa14   : > { %v9407_v29 = vpop.permute.xlu0 %9406 }
 0xa15   : > { %26310 = vmatpush3.msra.mxu1 %v9407_v29 }
 0xa16   : > { %9926 = vrot.lane.b32.xlu1 %v28450_v37, %s27875_s17  ;;  %26312 = vmatmul.mubr.msk.f32.vlgmr.msra.gmra.mxu1 %vm2568_vm3, %v8413_v44 }
 0xa17   : > { %9558 = vrot.lane.b32.xlu0 %v32741_v53, %s27874_s25  ;;  %26319 = vmatprep.subr.mxu1 %v32697_v22 }
 0xa18   : > { %26321 = vmatprep.mubr.msk.f32.mxu1 %vm27872_vm1, %v32697_v22 }
 0xa1a   : > { %10004 = vrot.lane.b32.xlu1 %v28463_v50, %s27875_s17 }
 0xa1b   : > { %9846 = vrot.lane.b32.xlu0 %v28443_v33, %s27875_s17 }
 0xa1e   : > { %10082 = vrot.lane.b32.xlu1 %v28476_v60, %s27875_s17 }
 0xa1f   : > { %9924 = vrot.lane.b32.xlu0 %v28458_v41, %s27875_s17 }
 0xa22   : > { %10160 = vrot.lane.b32.xlu1 %v28489_v58, %s27875_s17  ;;  %v8385_v14 = vpop.xlane.xlu1 %8384 }
 0xa23   : > { %10002 = vrot.lane.b32.xlu0 %v28467_v31, %s27875_s17  ;;  %27525 = vrcp.f32 %v8385_v14 }
 0xa26   : > { %10238 = vrot.lane.b32.xlu1 %v28505_v27, %s27875_s17  ;;  %v9027_v28 = vpop.permute.xlu1 %9026 }
 0xa27   : > { %10080 = vrot.lane.b32.xlu0 %v28484_v56, %s27875_s17  ;;  %26285 = vmatpush3.msra.mxu0 %v9027_v28 }
 0xa28   : > { %26294 = vmatprep.subr.mxu0 %v32697_v22 }
 0xa2a   : > { %10316 = vrot.lane.b32.xlu1 %v28539_v12, %s27875_s17 }
 0xa2b   : > { %10158 = vrot.lane.b32.xlu0 %v28500_v15, %s27875_s17 }
 0xa2e   : > { %10394 = vrot.lane.b32.xlu1 %v28568_v8, %s27875_s17 }
 0xa2f   : > { %10236 = vrot.lane.b32.xlu0 %v28525_v54, %s27875_s17 }
 0xa30   : > { %v27526_v59 = vpop.eup %27525 }
 0xa31   : > { %v8417_v2 = vmul.f32 %v27526_v59, %v32816_v62 }
 0xa32   : > { %10472 = vrot.lane.b32.xlu1 %v28510_v20, %s27875_s17 }
 0xa33   : > { %10314 = vrot.lane.b32.xlu0 %v28554_v42, %s27875_s17 }
 0xa36   : > { %10470 = vrot.lane.b32.xlu1 %v28534_v16, %s27875_s17 }
 0xa37   : > { %10392 = vrot.lane.b32.xlu0 %v28587_v7, %s27875_s17 }
 0xa3a   : > { %10628 = vrot.lane.b32.xlu1 %v28545_v40, %s27875_s17 }
 0xa3b   : > { %10550 = vrot.lane.b32.xlu0 %v28601_v4, %s27875_s17 }
 0xa3e   : > { %10626 = vrot.lane.b32.xlu1 %v28563_v10, %s27875_s17 }
 0xa3f   : > { %10548 = vrot.lane.b32.xlu0 %v32764_v11, %s27875_s17 }
 0xa42   : > { %10784 = vrot.lane.b32.xlu1 %v32765_v0, %s27875_s17 }
 0xa43   : > { %10706 = vrot.lane.b32.xlu0 %v32766_v26, %s27875_s17 }
 0xa46   : > { %10782 = vrot.lane.b32.xlu1 %v32767_v19, %s27875_s17 }
 0xa47   : > { %10704 = vrot.lane.b32.xlu0 %v32768_v51, %s27875_s17 }
 0xa4a   : > { %10940 = vrot.lane.b32.xlu1 %v32769_v55, %s27875_s17 }
 0xa4b   : > { %10862 = vrot.lane.b32.xlu0 %v32811_v18, %s27875_s17 }
 0xa4e   : > { %10938 = vrot.lane.b32.xlu1 %v32812_v57, %s27875_s17 }
 0xa4f   : > { %10860 = vrot.lane.b32.xlu0 %v32813_v45, %s27875_s17 }
 0xa53   : > { %11018 = vrot.lane.b32.xlu0 %v32814_v1, %s27875_s17 }
 0xa57   : > { %11016 = vrot.lane.b32.xlu0 %v32815_v36, %s27875_s17 }
 0xa7e   : > { %v8364_v24 = vpop.xlane.xlu1 %8363 }
 0xa7f   : > { %27527 = vrcp.f32 %v8364_v24 }
 0xa82   : > { %v8370_v5 = vpop.xlane.xlu1 %8369 }
 0xa83   : > { %27529 = vrcp.f32 %v8370_v5 }
 0xa86   : > { %v8376_v17 = vpop.xlane.xlu1 %8375 }
 0xa87   : > { %27531 = vrcp.f32 %v8376_v17 }
 0xa8a   : > { %v9483_v23 = vpop.permute.xlu1 %9482  ;;  %v8382_v39 = vpop.xlane.xlu0 %8381 }
 0xa8b   : > { %27533 = vrcp.f32 %v8382_v39 }
 0xa8c   : > { %v27528_v46 = vpop.eup %27527 }
 0xa8d   : > { %v8403_v9 = vmul.f32 %v27528_v46, %v29800_v48 }
 0xa8e   : > { %v9849_v25 = vpop.permute.xlu1 %9848  ;;  %v9559_v43 = vpop.permute.xlu0 %9558 }
 0xa8f   : > { %26287 = vmatmul.mubr.msk.f32.vlgmr.msra.gmra.mxu0 %vm2568_vm3, %v8403_v9  ;;  %26320 = vmatpush3.msra.mxu1 %v9559_v43 }
 0xa90   : > { %v27530_v6 = vpop.eup %27529  ;;  %26295 = vmatpush3.msra.mxu0 %v29856_v13  ;;  %26322 = vmatmul.mubr.msk.f32.vlgmr.msra.gmra.mxu1 %vm2568_vm3, %v8417_v2 }
 0xa91   : > { %v8407_v21 = vmul.f32 %v27530_v6, %v29812_v61  ;;  %26350 = vmatprep.subr.mxu1 %v32697_v22  ;;  %26296 = vmatprep.mubr.msk.f32.mxu0 %vm27872_vm1, %v32697_v22 }
 0xa92   : > { %26351 = vmatpush3.xpose.msk.msra.mxu1 %vm1351_vm2, %v9849_v25  ;;  %v9927_v48 = vpop.permute.xlu1 %9926  ;;  %26304 = vmatprep.subr.mxu0 %v32697_v22  ;;  %v9847_v52 = vpop.permute.xlu0 %9846 }
 0xa93   : > { %26297 = vmatmul.mubr.msk.f32.vlgmr.msra.gmra.mxu0 %vm2568_vm3, %v8407_v21  ;;  %26352 = vmatprep.mubr.msk.f32.mxu1 %vm27872_vm1, %v32697_v22 }
 0xa94   : > { %v27532_v13 = vpop.eup %27531  ;;  %26305 = vmatpush3.msra.mxu0 %v29865_v63  ;;  %26355 = vmatprep.subr.mxu1 %v32697_v22  ;;  %v1309_v63 = vld [vmem:[%s32558_s10 + $0x8] sm:$0xff] }
 0xa95   : > { %v8411_v61 = vmul.f32 %v27532_v13, %v29824_v32  ;;  %26353 = vmatmul.mubr.msk.f32.vlgmr.msra.gmra.mxu1 %vm1351_vm2, %v9847_v52  ;;  %26306 = vmatprep.mubr.msk.f32.mxu0 %vm27872_vm1, %v32697_v22 }
 0xa96   : > { %26356 = vmatpush3.xpose.msk.msra.mxu1 %vm1351_vm2, %v9927_v48  ;;  %v10005_v30 = vpop.permute.xlu1 %10004  ;;  %26314 = vmatprep.subr.mxu0 %v32697_v22  ;;  %v9925_v35 = vpop.permute.xlu0 %9924 }
 0xa97   : > { %26307 = vmatmul.mubr.msk.f32.vlgmr.msra.gmra.mxu0 %vm2568_vm3, %v8411_v61  ;;  %26357 = vmatprep.mubr.msk.f32.mxu1 %vm27872_vm1, %v32697_v22 }
 0xa98   : > { %v27534_v49 = vpop.eup %27533  ;;  %26315 = vmatpush3.msra.mxu0 %v9483_v23  ;;  %26360 = vmatprep.subr.mxu1 %v32697_v22 }
 0xa99   : > { %v8415_v32 = vmul.f32 %v27534_v49, %v29837_v47  ;;  %26358 = vmatmul.mubr.msk.f32.vlgmr.msra.gmra.mxu1 %vm1351_vm2, %v9925_v35  ;;  %26316 = vmatprep.mubr.msk.f32.mxu0 %vm27872_vm1, %v32697_v22 }
 0xa9a   : > { %26361 = vmatpush3.xpose.msk.msra.mxu1 %vm1351_vm2, %v10005_v30  ;;  %v10083_v38 = vpop.permute.xlu1 %10082  ;;  %v10003_v44 = vpop.permute.xlu0 %10002  ;;  %26362 = vmatprep.mubr.msk.f32.mxu1 %vm27872_vm1, %v32697_v22 }
 0xa9b   : > { %26317 = vmatmul.mubr.msk.f32.vlgmr.msra.gmra.mxu0 %vm2568_vm3, %v8415_v32  ;;  %26365 = vmatprep.subr.mxu1 %v32697_v22 }
 0xa9c   : > { %26324 = vmatprep.subr.msk.mxu0 %vm3961_vm4, %v1309_v63 }
 0xa9d   : > { %26363 = vmatmul.mubr.msk.f32.vlgmr.msra.gmra.mxu1 %vm1351_vm2, %v10003_v44  ;;  %26325 = vmatpush3.msk.msra.mxu0 %vm3961_vm4, %v1309_v63 }
 0xa9e   : > { %26366 = vmatpush3.xpose.msk.msra.mxu1 %vm1351_vm2, %v10083_v38  ;;  %v10161_v47 = vpop.permute.xlu1 %10160  ;;  %v10081_v29 = vpop.permute.xlu0 %10080  ;;  %26367 = vmatprep.mubr.msk.f32.mxu1 %vm27872_vm1, %v32697_v22 }
 0xa9f   : > { %26370 = vmatprep.subr.mxu1 %v32697_v22  ;;  %26390 = vmatprep.subr.mxu0 %v32697_v22 }
 0xaa1   : > { %26368 = vmatmul.mubr.msk.f32.vlgmr.msra.gmra.mxu1 %vm1351_vm2, %v10081_v29 }
 0xaa2   : > { %26371 = vmatpush3.xpose.msk.msra.mxu1 %vm1351_vm2, %v10161_v47  ;;  %v10239_v14 = vpop.permute.xlu1 %10238  ;;  %v10159_v28 = vpop.permute.xlu0 %10158  ;;  %26372 = vmatprep.mubr.msk.f32.mxu1 %vm27872_vm1, %v32697_v22 }
 0xaa3   : > { %26375 = vmatprep.subr.mxu1 %v32697_v22 }
 0xaa5   : > { %26373 = vmatmul.mubr.msk.f32.vlgmr.msra.gmra.mxu1 %vm1351_vm2, %v10159_v28 }
 0xaa6   : > { %26376 = vmatpush3.xpose.msk.msra.mxu1 %vm1351_vm2, %v10239_v14  ;;  %v10237_v24 = vpop.permute.xlu0 %10236  ;;  %26377 = vmatprep.mubr.msk.f32.mxu1 %vm27872_vm1, %v32697_v22  ;;  %v10317_v5 = vpop.permute.xlu1 %10316 }
 0xaa7   : > { %26380 = vmatprep.subr.mxu1 %v32697_v22 }
 0xaa9   : > { %26378 = vmatmul.mubr.msk.f32.vlgmr.msra.gmra.mxu1 %vm1351_vm2, %v10237_v24 }
 0xaaa   : > { %26381 = vmatpush3.xpose.msk.msra.mxu1 %vm1351_vm2, %v10317_v5  ;;  %v10315_v17 = vpop.permute.xlu0 %10314  ;;  %26382 = vmatprep.mubr.msk.f32.mxu1 %vm27872_vm1, %v32697_v22  ;;  %v8566_v23 = vpop.f32.mrf.mxu1 }
 0xaab   : > { %26385 = vmatprep.subr.mxu1 %v32697_v22  ;;  %v10395_v39 = vpop.permute.xlu1 %10394 }
 0xaac   : > { %v26253_v59 = vpop.f32.mrf.mxu1 }
 0xaad   : > { %26383 = vmatmul.mubr.msk.f32.vlgmr.msra.gmra.mxu1 %vm1351_vm2, %v10315_v17 }
 0xaae   : > { %26386 = vmatpush3.xpose.msk.msra.mxu1 %vm1351_vm2, %v10395_v39  ;;  %v10393_v46 = vpop.permute.xlu0 %10392  ;;  %26387 = vmatprep.mubr.msk.f32.mxu1 %vm27872_vm1, %v32697_v22 }
 0xaaf   : > { %26395 = vmatprep.subr.mxu1 %v32697_v22  ;;  %v10473_v25 = vpop.permute.xlu1 %10472 }
 0xab1   : > { %26388 = vmatmul.mubr.msk.f32.vlgmr.msra.gmra.mxu1 %vm1351_vm2, %v10393_v46 }
 0xab2   : > { %v10551_v9 = vpop.permute.xlu0 %10550  ;;  %26397 = vmatprep.mubr.msk.f32.mxu1 %vm27872_vm1, %v32697_v22  ;;  %v8718_v62 = vpop.f32.mrf.mxu1 }
 0xab3   : > { %v8490_v2 = vpop.f32.mrf.mxu0  ;;  %26396 = vmatpush3.xpose.msk.msra.mxu1 %vm1351_vm2, %v10551_v9  ;;  %v10471_v9 = vpop.permute.xlu1 %10470 }
 0xab4   : > { %26326 = vmatprep.mubr.msk.f32.mxu0 %vm1351_vm2, %v8490_v2  ;;  %26405 = vmatprep.subr.mxu1 %v32697_v22  ;;  %v26263_v43 = vpop.f32.mrf.mxu1 }
 0xab5   : > { %v26248_v6 = vpop.f32.mrf.mxu0  ;;  %26327 = vmatmul.mubr.msk.f32.vlgmr.msra.gmra.mxu0 %vm1351_vm2, %v8566_v23 }
 0xab6   : > { %26391 = vmatpush3.xpose.msk.msra.mxu0 %vm1351_vm2, %v10473_v25  ;;  %v10549_v21 = vpop.permute.xlu0 %10548 }
 0xab7   : > { %v8642_v48 = vpop.f32.mrf.mxu0  ;;  %26398 = vmatmul.mubr.msk.f32.vlgmr.msra.gmra.mxu1 %vm1351_vm2, %v10549_v21  ;;  %26400 = vmatprep.subr.mxu0 %v32697_v22 }
 0xab8   : > { %26329 = vmatprep.mubr.msk.f32.mxu0 %vm1351_vm2, %v8642_v48  ;;  %26407 = vmatprep.mubr.msk.f32.mxu1 %vm27872_vm1, %v32697_v22 }
 0xab9   : > { %v26258_v52 = vpop.f32.mrf.mxu0  ;;  %26330 = vmatmul.mubr.msk.f32.gmra.mxu0 %vm1351_vm2, %v8718_v62  ;;  %v10629_v62 = vpop.permute.xlu1 %10628 }
 0xaba   : > { %v10707_v13 = vpop.permute.xlu0 %10706 }
 0xabb   : > { %v8870_v61 = vpop.f32.mrf.mxu1  ;;  %v8794_v30 = vpop.f32.mrf.mxu0  ;;  %26406 = vmatpush3.xpose.msk.msra.mxu1 %vm1351_vm2, %v10707_v13 }
 0xabc   : > { %26332 = vmatprep.mubr.msk.f32.mxu0 %vm1351_vm2, %v8794_v30  ;;  %26415 = vmatprep.subr.mxu1 %v32697_v22 }
 0xabd   : > { %v26273_v35 = vpop.f32.mrf.mxu1  ;;  %v26268_v49 = vpop.f32.mrf.mxu0  ;;  %26333 = vmatmul.mubr.msk.f32.gmra.mxu0 %vm1351_vm2, %v8870_v61 }
 0xabe   : > { %v10705_v32 = vpop.permute.xlu0 %10704  ;;  %v10627_v48 = vpop.permute.xlu1 %10626 }
 0xabf   : > { %v8946_v63 = vpop.f32.mrf.mxu0  ;;  %26408 = vmatmul.mubr.msk.f32.vlgmr.msra.gmra.mxu1 %vm1351_vm2, %v10705_v32 }
 0xac0   : > { %26335 = vmatprep.mubr.msk.f32.mxu0 %vm1351_vm2, %v8946_v63  ;;  %26417 = vmatprep.mubr.msk.f32.mxu1 %vm27872_vm1, %v32697_v22 }
 0xac1   : > { %v26278_v38 = vpop.f32.mrf.mxu0 }
 0xac2   : > { %v10863_v44 = vpop.permute.xlu0 %10862  ;;  %v9022_v47 = vpop.f32.mrf.mxu1 }
 0xac3   : > { %26416 = vmatpush3.xpose.msk.msra.mxu1 %vm1351_vm2, %v10863_v44  ;;  %26336 = vmatmul.mubr.msk.f32.gmra.mxu0 %vm1351_vm2, %v9022_v47  ;;  %v10785_v63 = vpop.permute.xlu1 %10784 }
 0xac4   : > { %26425 = vmatprep.subr.mxu1 %v32697_v22  ;;  %v26283_v29 = vpop.f32.mrf.mxu1 }
 0xac6   : > { %v10861_v14 = vpop.permute.xlu0 %10860  ;;  %v9174_v28 = vpop.f32.mrf.mxu1 }
 0xac7   : > { %26418 = vmatmul.mubr.msk.f32.vlgmr.msra.gmra.mxu1 %vm1351_vm2, %v10861_v14 }
 0xac8   : > { %26427 = vmatprep.mubr.msk.f32.mxu1 %vm27872_vm1, %v32697_v22  ;;  %v26293_v24 = vpop.f32.mrf.mxu1 }
 0xaca   : > { %v11019_v5 = vpop.permute.xlu0 %11018 }
 0xacb   : > { %26426 = vmatpush3.xpose.msk.msra.mxu1 %vm1351_vm2, %v11019_v5  ;;  %v10783_v5 = vpop.permute.xlu1 %10782 }
 0xacc   : > { %26435 = vmatprep.subr.mxu1 %v32697_v22 }
 0xace   : > { %v11017_v17 = vpop.permute.xlu0 %11016  ;;  %v9326_v23 = vpop.f32.mrf.mxu1 }
 0xacf   : > { %26428 = vmatmul.mubr.msk.f32.vlgmr.msra.gmra.mxu1 %vm1351_vm2, %v11017_v17 }
 0xad0   : > { %26437 = vmatprep.mubr.msk.f32.mxu1 %vm27872_vm1, %v32697_v22  ;;  %v26303_v39 = vpop.f32.mrf.mxu1 }
 0xad6   : > { %v9478_v59 = vpop.f32.mrf.mxu1 }
 0xad8   : > { %v26313_v46 = vpop.f32.mrf.mxu1 }
 0xad9   : > { %v10941_v46 = vpop.permute.xlu1 %10940 }
 0xb4f   : > { %v9098_v2 = vpop.f32.mrf.mxu0 }
 0xb50   : > { %v9630_v25 = vpop.f32.mrf.mxu1  ;;  %26338 = vmatprep.mubr.msk.f32.mxu0 %vm1351_vm2, %v9098_v2 }
 0xb51   : > { %v26288_v43 = vpop.f32.mrf.mxu0  ;;  %26339 = vmatmul.mubr.msk.f32.gmra.mxu0 %vm1351_vm2, %v9174_v28 }
 0xb52   : > { %v26323_v6 = vpop.f32.mrf.mxu1 }
 0xb53   : > { %v9250_v21 = vpop.f32.mrf.mxu0  ;;  %v10939_v6 = vpop.permute.xlu1 %10938 }
 0xb54   : > { %26341 = vmatprep.mubr.msk.f32.mxu0 %vm1351_vm2, %v9250_v21 }
 0xb55   : > { %v30041_v52 = vpop.f32.mrf.mxu1  ;;  %v26298_v13 = vpop.f32.mrf.mxu0  ;;  %26342 = vmatmul.mubr.msk.f32.gmra.mxu0 %vm1351_vm2, %v9326_v23 }
 0xb56   : > { %v11094_v61 = vsel %vm2568_vm3, %v30041_v52, -inf }
 0xb57   : > { %11095 = vmax.xlane.f32.xlu1 %v11094_v61  ;;  %v26354_v30 = vpop.f32.mrf.mxu1  ;;  %v9402_v35 = vpop.f32.mrf.mxu0 }
 0xb58   : > { %26344 = vmatprep.mubr.msk.f32.mxu0 %vm1351_vm2, %v9402_v35 }
 0xb59   : > { %v30047_v49 = vpop.f32.mrf.mxu1  ;;  %v26308_v32 = vpop.f32.mrf.mxu0  ;;  %26345 = vmatmul.mubr.msk.f32.gmra.mxu0 %vm1351_vm2, %v9478_v59 }
 0xb5a   : > { %v11097_v38 = vsel %vm2568_vm3, %v30047_v49, -inf }
 0xb5b   : > { %11098 = vmax.xlane.f32.xlu0 %v11097_v38  ;;  %v26359_v44 = vpop.f32.mrf.mxu1  ;;  %v9554_v47 = vpop.f32.mrf.mxu0 }
 0xb5c   : > { %26347 = vmatprep.mubr.msk.f32.mxu0 %vm1351_vm2, %v9554_v47 }
 0xb5d   : > { %v30053_v29 = vpop.f32.mrf.mxu1  ;;  %v26318_v14 = vpop.f32.mrf.mxu0  ;;  %26348 = vmatmul.mubr.msk.f32.gmra.mxu0 %vm1351_vm2, %v9630_v25 }
 0xb5e   : > { %v11100_v28 = vsel %vm2568_vm3, %v30053_v29, -inf  ;;  %26392 = vmatprep.mubr.msk.f32.mxu0 %vm27872_vm1, %v32697_v22 }
 0xb5f   : > { %11101 = vmax.xlane.f32.xlu0 %v11100_v28  ;;  %v26364_v24 = vpop.f32.mrf.mxu1 }
 0xb61   : > { %v30060_v17 = vpop.f32.mrf.mxu1  ;;  %26393 = vmatmul.mubr.msk.f32.vlgmr.msra.gmra.mxu0 %vm1351_vm2, %v10471_v9 }
 0xb62   : > { %26401 = vmatpush3.xpose.msk.msra.mxu0 %vm1351_vm2, %v10629_v62  ;;  %v11103_v23 = vsel %vm2568_vm3, %v30060_v17, -inf  ;;  %26402 = vmatprep.mubr.msk.f32.mxu0 %vm27872_vm1, %v32697_v22 }
 0xb63   : > { %11104 = vmax.xlane.f32.xlu1 %v11103_v23  ;;  %v26369_v39 = vpop.f32.mrf.mxu1  ;;  %26410 = vmatprep.subr.mxu0 %v32697_v22 }
 0xb65   : > { %v30069_v59 = vpop.f32.mrf.mxu1  ;;  %26403 = vmatmul.mubr.msk.f32.vlgmr.msra.gmra.mxu0 %vm1351_vm2, %v10627_v48 }
 0xb66   : > { %26411 = vmatpush3.xpose.msk.msra.mxu0 %vm1351_vm2, %v10785_v63  ;;  %v11106_v9 = vsel %vm2568_vm3, %v30069_v59, -inf  ;;  %26412 = vmatprep.mubr.msk.f32.mxu0 %vm27872_vm1, %v32697_v22  ;;  %v32817_v63 = vld [vmem:[#allocation42_spill] sm:$0xff] }
 0xb67   : > { %11107 = vmax.xlane.f32.xlu0 %v11106_v9  ;;  %v26374_v62 = vpop.f32.mrf.mxu1  ;;  %26420 = vmatprep.subr.mxu0 %v32697_v22  ;;  %v32823_v9 = vld [vmem:[#allocation48_spill] sm:$0xff] }
 0xb69   : > { %v30078_v2 = vpop.f32.mrf.mxu1  ;;  %26413 = vmatmul.mubr.msk.f32.vlgmr.msra.gmra.mxu0 %vm1351_vm2, %v10783_v5  ;;  %v32820_v5 = vld [vmem:[#allocation45_spill] sm:$0xff] }
 0xb6a   : > { %26421 = vmatpush3.xpose.msk.msra.mxu0 %vm1351_vm2, %v10941_v46  ;;  %v11109_v25 = vsel %vm2568_vm3, %v30078_v2, -inf  ;;  %26422 = vmatprep.mubr.msk.f32.mxu0 %vm27872_vm1, %v32697_v22 }
 0xb6b   : > { %11110 = vmax.xlane.f32.xlu1 %v11109_v25  ;;  %v26379_v43 = vpop.f32.mrf.mxu1  ;;  %26430 = vmatprep.subr.mxu0 %v32697_v22 }
 0xb6d   : > { %v30087_v21 = vpop.f32.mrf.mxu1  ;;  %26423 = vmatmul.mubr.msk.f32.vlgmr.msra.gmra.mxu0 %vm1351_vm2, %v10939_v6 }
 0xb6e   : > { %v11112_v48 = vsel %vm2568_vm3, %v30087_v21, -inf  ;;  %26432 = vmatprep.mubr.msk.f32.mxu0 %vm27872_vm1, %v32697_v22 }
 0xb6f   : > { %11113 = vmax.xlane.f32.xlu0 %v11112_v48  ;;  %v26384_v13 = vpop.f32.mrf.mxu1 }
 0xb71   : > { %v10466_v61 = vpop.f32.mrf.mxu1 }
 0xb72   : > { %v11115_v30 = vsel %vm2568_vm3, %v10466_v61, -inf }
 0xb73   : > { %11116 = vmax.xlane.f32.xlu1 %v11115_v30  ;;  %v26389_v35 = vpop.f32.mrf.mxu1  ;;  %v32826_v30 = vld [vmem:[#allocation31_spill] sm:$0xff] }
 0xb75   : > { %v26328_v32 = vpop.f32.mrf.mxu0 }
 0xb76   : > { %v30096_v38 = vadd.f32 %v26328_v32, %v32817_v63 }
 0xb77   : > { %v30098_v44 = vpop.f32.mrf.mxu0  ;;  %v10622_v47 = vpop.f32.mrf.mxu1 }
 0xb78   : > { %32818 = vst [vmem:[#allocation50_spill] sm:$0xff] %v30096_v38  ;;  %32819 = vst [vmem:[#allocation70_spill] sm:$0xff] %v30098_v44  ;;  %v11121_v14 = vsel %vm2568_vm3, %v10622_v47, -inf }
 0xb79   : > { %v26331_v28 = vpop.f32.mrf.mxu0  ;;  %11122 = vmax.xlane.f32.xlu1 %v11121_v14  ;;  %v26399_v24 = vpop.f32.mrf.mxu1 }
 0xb7a   : > { %v30102_v23 = vadd.f32 %v26331_v28, %v32820_v5 }
 0xb7b   : > { %v30104_v39 = vpop.f32.mrf.mxu0 }
 0xb7c   : > { %32821 = vst [vmem:[#allocation42_spill] sm:$0xff] %v30102_v23  ;;  %32822 = vst [vmem:[#allocation45_spill] sm:$0xff] %v30104_v39 }
 0xb7d   : > { %v26334_v46 = vpop.f32.mrf.mxu0 }
 0xb7e   : > { %v30107_v62 = vadd.f32 %v26334_v46, %v32823_v9 }
 0xb7f   : > { %v10778_v25 = vpop.f32.mrf.mxu1  ;;  %v30110_v48 = vpop.f32.mrf.mxu0 }
 0xb80   : > { %32824 = vst [vmem:[#allocation48_spill] sm:$0xff] %v30107_v62  ;;  %v11127_v43 = vsel %vm2568_vm3, %v10778_v25, -inf  ;;  %32825 = vst [vmem:[#allocation71_spill] sm:$0xff] %v30110_v48 }
 0xb81   : > { %11128 = vmax.xlane.f32.xlu1 %v11127_v43  ;;  %v26409_v6 = vpop.f32.mrf.mxu1 }
 0xb83   : > { %v26337_v13 = vpop.f32.mrf.mxu0 }
 0xb84   : > { %v30113_v35 = vadd.f32 %v26337_v13, %v32826_v30 }
 0xb86   : > { %32827 = vst [vmem:[#allocation31_spill] sm:$0xff] %v30113_v35 }
 0xb87   : > { %v10934_v32 = vpop.f32.mrf.mxu1 }
 0xb88   : > { %v11133_v63 = vsel %vm2568_vm3, %v10934_v32, -inf }
 0xb89   : > { %11134 = vmax.xlane.f32.xlu1 %v11133_v63  ;;  %v26419_v14 = vpop.f32.mrf.mxu1 }
 0xb8f   : > { %v30116_v28 = vpop.f32.mrf.mxu1 }
 0xb90   : > { %v11139_v24 = vsel %vm2568_vm3, %v30116_v28, -inf }
 0xb91   : > { %11140 = vmax.xlane.f32.xlu1 %v11139_v24  ;;  %v26429_v5 = vpop.f32.mrf.mxu1 }
 0xbe0   : > { %v11096_v46 = vpop.xlane.xlu1 %11095 }
 0xbe1   : > { %v11142_v9 = vsub.f32 %v30041_v52, %v11096_v46 }
 0xbe3   : > { %v11158_v43 = vmul.f32 1.442695, %v11142_v9 }
 0xbe4   : > { %v11099_v6 = vpop.xlane.xlu0 %11098 }
 0xbe5   : > { %27535 = vpow2.f32 %v11158_v43  ;;  %v11143_v13 = vsub.f32 %v30047_v49, %v11099_v6 }
 0xbe7   : > { %v11160_v30 = vmul.f32 1.442695, %v11143_v13 }
 0xbe9   : > { %27537 = vpow2.f32 %v11160_v30 }
 0xbec   : > { %v11105_v48 = vpop.xlane.xlu1 %11104 }
 0xbed   : > { %v11145_v63 = vsub.f32 %v30060_v17, %v11105_v48 }
 0xbef   : > { %v11164_v14 = vmul.f32 1.442695, %v11145_v63 }
 0xbf1   : > { %27539 = vpow2.f32 %v11164_v14 }
 0xbf2   : > { %v30123_v39 = vpop.eup %27535 }
 0xbf3   : > { %v11190_v24 = vsel %vm2568_vm3, %v30123_v39, 0.0 }
 0xbf4   : > { %v11111_v5 = vpop.xlane.xlu1 %11110  ;;  %11191 = vadd.xlane.f32.xlu0 %v11190_v24 }
 0xbf5   : > { %v11147_v52 = vsub.f32 %v30078_v2, %v11111_v5 }
 0xbf6   : > { %v30128_v46 = vpop.eup %27537 }
 0xbf7   : > { %v11168_v9 = vmul.f32 1.442695, %v11147_v52  ;;  %v11193_v49 = vsel %vm2568_vm3, %v30128_v46, 0.0 }
 0xbf8   : > { %11194 = vadd.xlane.f32.xlu1 %v11193_v49  ;;  %v30142_v49 = vpop.f32.mrf.mxu0 }
 0xbf9   : > { %27541 = vpow2.f32 %v11168_v9  ;;  %32828 = vst [vmem:[#allocation72_spill] sm:$0xff] %v30142_v49 }
 0xbfc   : > { %v11117_v17 = vpop.xlane.xlu1 %11116 }
 0xbfd   : > { %v11149_v48 = vsub.f32 %v10466_v61, %v11117_v17 }
 0xbfe   : > { %v30132_v43 = vpop.eup %27539 }
 0xbff   : > { %v11172_v6 = vmul.f32 1.442695, %v11149_v48  ;;  %v11199_v13 = vsel %vm2568_vm3, %v30132_v43, 0.0  ;;  %v32829_v48 = vld [vmem:[#allocation61_spill] sm:$0xff] }
 0xc00   : > { %11200 = vadd.xlane.f32.xlu1 %v11199_v13 }
 0xc01   : > { %27543 = vpow2.f32 %v11172_v6 }
 0xc02   : > { %v11123_v30 = vpop.xlane.xlu1 %11122 }
 0xc03   : > { %v11151_v2 = vsub.f32 %v10622_v47, %v11123_v30 }
 0xc05   : > { %v11176_v63 = vmul.f32 1.442695, %v11151_v2 }
 0xc06   : > { %v30136_v14 = vpop.eup %27541 }
 0xc07   : > { %27545 = vpow2.f32 %v11176_v63  ;;  %v11205_v24 = vsel %vm2568_vm3, %v30136_v14, 0.0 }
 0xc08   : > { %11206 = vadd.xlane.f32.xlu1 %v11205_v24 }
 0xc0a   : > { %v11129_v5 = vpop.xlane.xlu1 %11128 }
 0xc0b   : > { %v11153_v61 = vsub.f32 %v10778_v25, %v11129_v5 }
 0xc0d   : > { %v11180_v52 = vmul.f32 1.442695, %v11153_v61  ;;  %v32832_v61 = vld [vmem:[#allocation22_spill] sm:$0xff] }
 0xc0e   : > { %v30140_v9 = vpop.eup %27543 }
 0xc0f   : > { %27547 = vpow2.f32 %v11180_v52  ;;  %v11211_v17 = vsel %vm2568_vm3, %v30140_v9, 0.0 }
 0xc10   : > { %11212 = vadd.xlane.f32.xlu1 %v11211_v17  ;;  %v11102_v17 = vpop.xlane.xlu0 %11101 }
 0xc11   : > { %v26340_v47 = vpop.f32.mrf.mxu0 }
 0xc12   : > { %v30147_v6 = vadd.f32 %v26340_v47, %v32829_v48  ;;  %v11135_v13 = vpop.xlane.xlu1 %11134  ;;  %v32835_v48 = vld [vmem:[#allocation24_spill] sm:$0xff] }
 0xc13   : > { %v11155_v30 = vsub.f32 %v10934_v32, %v11135_v13  ;;  %v30149_v2 = vpop.f32.mrf.mxu0  ;;  %v11144_v32 = vsub.f32 %v30053_v29, %v11102_v17 }
 0xc14   : > { %32830 = vst [vmem:[#allocation61_spill] sm:$0xff] %v30147_v6  ;;  %32831 = vst [vmem:[#allocation73_spill] sm:$0xff] %v30149_v2  ;;  %v30151_v63 = vpop.eup %27545  ;;  %v11108_v2 = vpop.xlane.xlu0 %11107 }
 0xc15   : > { %v11184_v25 = vmul.f32 1.442695, %v11155_v30  ;;  %v26343_v24 = vpop.f32.mrf.mxu0  ;;  %v11217_v5 = vsel %vm2568_vm3, %v30151_v63, 0.0 }
 0xc16   : > { %v30156_v52 = vadd.f32 %v26343_v24, %v32832_v61  ;;  %11218 = vadd.xlane.f32.xlu1 %v11217_v5  ;;  %v11162_v5 = vmul.f32 1.442695, %v11144_v32  ;;  %v32838_v61 = vld [vmem:[#allocation26_spill] sm:$0xff] }
 0xc17   : > { %27549 = vpow2.f32 %v11184_v25  ;;  %v30158_v49 = vpop.f32.mrf.mxu0  ;;  %v11146_v25 = vsub.f32 %v30069_v59, %v11108_v2 }
 0xc18   : > { %32833 = vst [vmem:[#allocation22_spill] sm:$0xff] %v30156_v52  ;;  %32834 = vst [vmem:[#allocation74_spill] sm:$0xff] %v30158_v49  ;;  %v11114_v29 = vpop.xlane.xlu0 %11113  ;;  %27551 = vpow2.f32 %v11162_v5 }
 0xc19   : > { %v26346_v47 = vpop.f32.mrf.mxu0 }
 0xc1a   : > { %v30162_v13 = vadd.f32 %v26346_v47, %v32835_v48  ;;  %v11166_v48 = vmul.f32 1.442695, %v11146_v25 }
 0xc1b   : > { %v30164_v30 = vpop.f32.mrf.mxu0 }
 0xc1c   : > { %32836 = vst [vmem:[#allocation24_spill] sm:$0xff] %v30162_v13  ;;  %32837 = vst [vmem:[#allocation75_spill] sm:$0xff] %v30164_v30  ;;  %v30166_v44 = vpop.eup %27547  ;;  %v11148_v30 = vsub.f32 %v30087_v21, %v11114_v29  ;;  %27553 = vpow2.f32 %v11166_v48 }
 0xc1d   : > { %v26349_v6 = vpop.f32.mrf.mxu0  ;;  %v11223_v24 = vsel %vm2568_vm3, %v30166_v44, 0.0 }
 0xc1e   : > { %v30172_v49 = vadd.f32 %v26349_v6, %v32838_v61  ;;  %11224 = vadd.xlane.f32.xlu1 %v11223_v24  ;;  %v11170_v2 = vmul.f32 1.442695, %v11148_v30 }
 0xc1f   : > { %v30174_v17 = vpop.f32.mrf.mxu0 }
 0xc20   : > { %32839 = vst [vmem:[#allocation26_spill] sm:$0xff] %v30172_v49  ;;  %32840 = vst [vmem:[#allocation76_spill] sm:$0xff] %v30174_v17  ;;  %27555 = vpow2.f32 %v11170_v2  ;;  %v32847_v17 = vld [vmem:[#allocation38_spill] sm:$0xff] }
 0xc21   : > { %v30176_v47 = vpop.f32.mrf.mxu0 }
 0xc22   : > { %v11118_v13 = vsel %vm2568_vm3, %v30176_v47, -inf }
 0xc23   : > { %v26394_v52 = vpop.f32.mrf.mxu0  ;;  %11119 = vmax.xlane.f32.xlu0 %v11118_v13 }
 0xc24   : > { %v30181_v32 = vpop.eup %27549 }
 0xc25   : > { %v30183_v59 = vpop.f32.mrf.mxu0  ;;  %v11229_v6 = vsel %vm2568_vm3, %v30181_v32, 0.0  ;;  %v30197_v30 = vpop.eup %27551 }
 0xc26   : > { %11230 = vadd.xlane.f32.xlu1 %v11229_v6  ;;  %v11124_v24 = vsel %vm2568_vm3, %v30183_v59, -inf  ;;  %v11196_v48 = vsel %vm2568_vm3, %v30197_v30, 0.0 }
 0xc27   : > { %v26404_v5 = vpop.f32.mrf.mxu0  ;;  %11125 = vmax.xlane.f32.xlu0 %v11124_v24 }
 0xc28   : > { %v32841_v5 = vld [vmem:[#allocation58_spill] sm:$0xff] }
 0xc29   : > { %v30189_v21 = vpop.f32.mrf.mxu0  ;;  %v30201_v6 = vpop.eup %27553 }
 0xc2a   : > { %v11130_v52 = vsel %vm2568_vm3, %v30189_v21, -inf  ;;  %v11202_v2 = vsel %vm2568_vm3, %v30201_v6, 0.0 }
 0xc2b   : > { %v26414_v13 = vpop.f32.mrf.mxu0  ;;  %11131 = vmax.xlane.f32.xlu0 %v11130_v52 }
 0xc2c   : > { %v32842_v13 = vld [vmem:[#allocation60_spill] sm:$0xff] }
 0xc2d   : > { %v30193_v25 = vpop.f32.mrf.mxu0  ;;  %v30205_v24 = vpop.eup %27555 }
 0xc2e   : > { %v11136_v61 = vsel %vm2568_vm3, %v30193_v25, -inf  ;;  %v11208_v52 = vsel %vm2568_vm3, %v30205_v24, 0.0 }
 0xc2f   : > { %v26424_v29 = vpop.f32.mrf.mxu0  ;;  %11137 = vmax.xlane.f32.xlu0 %v11136_v61  ;;  %v32843_v61 = vld [vmem:[#allocation34_spill] sm:$0xff] }
 0xc30   : > { %v32844_v29 = vld [vmem:[#allocation36_spill] sm:$0xff] }
 0xc33   : > { %11197 = vadd.xlane.f32.xlu0 %v11196_v48  ;;  %v32845_v48 = vld [vmem:[#allocation35_spill] sm:$0xff] }
 0xc37   : > { %11203 = vadd.xlane.f32.xlu0 %v11202_v2  ;;  %11346 = vrot.lane.b32.xlu1 %v32841_v5, %s27875_s17  ;;  %v32846_v2 = vld [vmem:[#allocation40_spill] sm:$0xff]  ;;  %v11141_v5 = vpop.xlane.xlu1 %11140 }
 0xc3b   : > { %11209 = vadd.xlane.f32.xlu0 %v11208_v52  ;;  %11422 = vrot.lane.b32.xlu1 %v32842_v13, %s27875_s17  ;;  %v32848_v52 = vld [vmem:[#allocation47_spill] sm:$0xff]  ;;  %v32849_v13 = vld [vmem:[#allocation46_spill] sm:$0xff] }
 0xc3f   : > { %11498 = vrot.lane.b32.xlu1 %v32843_v61, %s27875_s17  ;;  %v11157_v61 = vsub.f32 %v30116_v28, %v11141_v5 }
 0xc41   : > { %v11188_v49 = vmul.f32 1.442695, %v11157_v61 }
 0xc43   : > { %11574 = vrot.lane.b32.xlu1 %v32844_v29, %s27875_s17  ;;  %v32850_v29 = vld [vmem:[#allocation43_spill] sm:$0xff]  ;;  %27557 = vpow2.f32 %v11188_v49 }
 0xc47   : > { %11650 = vrot.lane.b32.xlu1 %v32845_v48, %s27875_s17  ;;  %v32851_v48 = vld [vmem:[#allocation49_spill] sm:$0xff] }
 0xc4b   : > { %11726 = vrot.lane.b32.xlu1 %v32846_v2, %s27875_s17  ;;  %v32852_v2 = vld [vmem:[#allocation55_spill] sm:$0xff] }
 0xc4f   : > { %11802 = vrot.lane.b32.xlu1 %v32847_v17, %s27875_s17  ;;  %v32853_v17 = vld [vmem:[#allocation53_spill] sm:$0xff] }
 0xc51   : > { %11270 = vrot.lane.b32.xlu0 %v32848_v52, %s27875_s17 }
 0xc53   : > { %11878 = vrot.lane.b32.xlu1 %v32849_v13, %s27875_s17  ;;  %v30238_v13 = vpop.eup %27557 }
 0xc54   : > { %32854 = vst [vmem:[#allocation77_spill] sm:$0xff] %v30238_v13  ;;  %v11235_v28 = vsel %vm2568_vm3, %v30238_v13, 0.0 }
 0xc57   : > { %11954 = vrot.lane.b32.xlu1 %v32850_v29, %s27875_s17 }
 0xc5b   : > { %12106 = vrot.lane.b32.xlu1 %v32851_v48, %s27875_s17 }
 0xc5f   : > { %12182 = vrot.lane.b32.xlu1 %v32852_v2, %s27875_s17 }
 0xc63   : > { %12258 = vrot.lane.b32.xlu1 %v32853_v17, %s27875_s17 }
 0xc67   : > { %12334 = vrot.lane.b32.xlu1 %v29010_v3, %s27875_s17 }
 0xc70   : > { %11236 = vadd.xlane.f32.xlu0 %v11235_v28 }
 0xc7d   : > { %v11192_v52 = vpop.xlane.xlu0 %11191 }
 0xc81   : > { %v11195_v5 = vpop.xlane.xlu1 %11194 }
 0xc82   : > { %27559 = vrcp.f32 %v11195_v5 }
 0xc89   : > { %v11201_v61 = vpop.xlane.xlu1 %11200 }
 0xc8a   : > { %27561 = vrcp.f32 %v11201_v61 }
 0xc8f   : > { %v27560_v23 = vpop.eup %27559 }
 0xc90   : > { %v11241_v13 = vmul.f32 %v27560_v23, %v30128_v46 }
 0xc91   : > { %v11207_v29 = vpop.xlane.xlu1 %11206 }
 0xc99   : > { %v11213_v49 = vpop.xlane.xlu1 %11212 }
 0xc9f   : > { %v11219_v48 = vpop.xlane.xlu1 %11218 }
 0xca7   : > { %v11225_v2 = vpop.xlane.xlu1 %11224 }
 0xcac   : > { %v11120_v35 = vpop.xlane.xlu0 %11119 }
 0xcad   : > { %v11150_v17 = vsub.f32 %v30176_v47, %v11120_v35 }
 0xcaf   : > { %v11174_v62 = vmul.f32 1.442695, %v11150_v17  ;;  %v30243_v3 = vpop.xlane.xlu1 %11230 }
 0xcb0   : > { %v11126_v38 = vpop.xlane.xlu0 %11125 }
 0xcb1   : > { %27563 = vpow2.f32 %v11174_v62  ;;  %v11152_v28 = vsub.f32 %v30183_v59, %v11126_v38  ;;  %v27562_v38 = vpop.eup %27561 }
 0xcb2   : > { %27565 = vrcp.f32 %v11207_v29 }
 0xcb3   : > { %v11178_v5 = vmul.f32 1.442695, %v11152_v28  ;;  %v11347_v36 = vpop.permute.xlu1 %11346 }
 0xcb4   : > { %v11132_v57 = vpop.xlane.xlu0 %11131  ;;  %26436 = vmatpush3.msra.mxu1 %v11347_v36  ;;  %v11245_v36 = vmul.f32 %v27562_v38, %v30132_v43 }
 0xcb5   : > { %27567 = vpow2.f32 %v11178_v5  ;;  %v11154_v61 = vsub.f32 %v30189_v21, %v11132_v57  ;;  %26438 = vmatmul.mubr.msk.f32.vlgmr.msra.gmra.mxu1 %vm2568_vm3, %v11241_v13  ;;  %26445 = vmatprep.subr.mxu1 %v32697_v22 }
 0xcb6   : > { %26447 = vmatprep.mubr.msk.f32.mxu1 %vm27872_vm1, %v32697_v22  ;;  %27569 = vrcp.f32 %v11192_v52 }
 0xcb7   : > { %v11182_v62 = vmul.f32 1.442695, %v11154_v61  ;;  %v11423_v35 = vpop.permute.xlu1 %11422 }
 0xcb8   : > { %v11138_v23 = vpop.xlane.xlu0 %11137 }
 0xcb9   : > { %27571 = vpow2.f32 %v11182_v62  ;;  %v11156_v46 = vsub.f32 %v30193_v25, %v11138_v23 }
 0xcba   : > { %27573 = vrcp.f32 %v11213_v49 }
 0xcbb   : > { %v11186_v17 = vmul.f32 1.442695, %v11156_v46  ;;  %v11499_v57 = vpop.permute.xlu1 %11498 }
 0xcbc   : > { %v11198_v47 = vpop.xlane.xlu0 %11197  ;;  %26446 = vmatpush3.msra.mxu1 %v11499_v57 }
 0xcbd   : > { %27575 = vpow2.f32 %v11186_v17  ;;  %26448 = vmatmul.mubr.msk.f32.vlgmr.msra.gmra.mxu1 %vm2568_vm3, %v11245_v36  ;;  %26455 = vmatprep.subr.mxu1 %v32697_v22 }
 0xcbe   : > { %v30256_v59 = vpop.eup %27563  ;;  %27577 = vrcp.f32 %v11198_v47  ;;  %26457 = vmatprep.mubr.msk.f32.mxu1 %vm27872_vm1, %v32697_v22 }
 0xcbf   : > { %v11575_v21 = vpop.permute.xlu1 %11574  ;;  %v11214_v43 = vsel %vm2568_vm3, %v30256_v59, 0.0  ;;  %v27566_v25 = vpop.eup %27565 }
 0xcc0   : > { %v11204_v13 = vpop.xlane.xlu0 %11203  ;;  %11215 = vadd.xlane.f32.xlu0 %v11214_v43  ;;  %v11249_v52 = vmul.f32 %v27566_v25, %v30136_v14 }
 0xcc1   : > { %27579 = vrcp.f32 %v11204_v13 }
 0xcc2   : > { %v30262_v29 = vpop.eup %27567  ;;  %27581 = vrcp.f32 %v11219_v48 }
 0xcc3   : > { %v11651_v49 = vpop.permute.xlu1 %11650  ;;  %v11220_v28 = vsel %vm2568_vm3, %v30262_v29, 0.0  ;;  %v27570_v61 = vpop.eup %27569 }
 0xcc4   : > { %v11210_v5 = vpop.xlane.xlu0 %11209  ;;  %11221 = vadd.xlane.f32.xlu0 %v11220_v28  ;;  %26456 = vmatpush3.msra.mxu1 %v11651_v49  ;;  %v11239_v23 = vmul.f32 %v27570_v61, %v30123_v39  ;;  %v32857_v61 = vld [vmem:[#allocation56_spill] sm:$0xff] }
 0xcc5   : > { %27583 = vrcp.f32 %v11210_v5  ;;  %26458 = vmatmul.mubr.msk.f32.vlgmr.msra.gmra.mxu1 %vm2568_vm3, %v11249_v52  ;;  %26465 = vmatprep.subr.mxu1 %v32697_v22 }
 0xcc6   : > { %v30269_v62 = vpop.eup %27571  ;;  %26467 = vmatprep.mubr.msk.f32.mxu1 %vm27872_vm1, %v32697_v22  ;;  %27585 = vrcp.f32 %v11225_v2 }
 0xcc7   : > { %v11727_v14 = vpop.permute.xlu1 %11726  ;;  %v11226_v48 = vsel %vm2568_vm3, %v30269_v62, 0.0  ;;  %v27574_v38 = vpop.eup %27573  ;;  %27587 = vrcp.f32 %v30243_v3 }
 0xcc8   : > { %v11271_v46 = vpop.permute.xlu0 %11270  ;;  %11227 = vadd.xlane.f32.xlu0 %v11226_v48  ;;  %v11253_v57 = vmul.f32 %v27574_v38, %v30140_v9 }
 0xcc9   : > { %26431 = vmatpush3.msra.mxu0 %v11271_v46 }
 0xcca   : > { %v30276_v36 = vpop.eup %27575  ;;  %26433 = vmatmul.mubr.msk.f32.vlgmr.msra.gmra.mxu0 %vm2568_vm3, %v11239_v23  ;;  %26440 = vmatprep.subr.mxu0 %v32697_v22 }
 0xccb   : > { %v27578_v17 = vpop.eup %27577  ;;  %26441 = vmatpush3.msra.mxu0 %v11423_v35  ;;  %v11803_v2 = vpop.permute.xlu1 %11802  ;;  %v11232_v47 = vsel %vm2568_vm3, %v30276_v36, 0.0  ;;  %26442 = vmatprep.mubr.msk.f32.mxu0 %vm27872_vm1, %v32697_v22 }
 0xccc   : > { %v11243_v39 = vmul.f32 %v27578_v17, %v30197_v30  ;;  %11233 = vadd.xlane.f32.xlu1 %v11232_v47  ;;  %26466 = vmatpush3.msra.mxu1 %v11803_v2 }
 0xccd   : > { %26450 = vmatprep.subr.mxu0 %v32697_v22  ;;  %26468 = vmatmul.mubr.msk.f32.vlgmr.msra.gmra.mxu1 %vm2568_vm3, %v11253_v57 }
 0xcce   : > { %v27580_v43 = vpop.eup %27579  ;;  %26443 = vmatmul.mubr.msk.f32.vlgmr.msra.gmra.mxu0 %vm2568_vm3, %v11243_v39  ;;  %26475 = vmatprep.subr.mxu1 %v32697_v22 }
 0xccf   : > { %v11247_v9 = vmul.f32 %v27580_v43, %v30201_v6  ;;  %26451 = vmatpush3.msra.mxu0 %v11575_v21  ;;  %v11879_v35 = vpop.permute.xlu1 %11878  ;;  %26452 = vmatprep.mubr.msk.f32.mxu0 %vm27872_vm1, %v32697_v22  ;;  %v27582_v30 = vpop.eup %27581  ;;  %v32858_v43 = vld [vmem:[#allocation77_spill] sm:$0xff] }
 0xcd0   : > { %26460 = vmatprep.subr.mxu0 %v32697_v22  ;;  %26477 = vmatprep.mubr.msk.f32.mxu1 %vm27872_vm1, %v32697_v22  ;;  %v11257_v13 = vmul.f32 %v27582_v30, %v30151_v63 }
 0xcd2   : > { %v27584_v25 = vpop.eup %27583  ;;  %26453 = vmatmul.mubr.msk.f32.vlgmr.msra.gmra.mxu0 %vm2568_vm3, %v11247_v9 }
 0xcd3   : > { %v11251_v3 = vmul.f32 %v27584_v25, %v30205_v24  ;;  %26461 = vmatpush3.msra.mxu0 %v11727_v14  ;;  %v11955_v6 = vpop.permute.xlu1 %11954  ;;  %26462 = vmatprep.mubr.msk.f32.mxu0 %vm27872_vm1, %v32697_v22  ;;  %v27586_v21 = vpop.eup %27585 }
 0xcd4   : > { %26476 = vmatpush3.msra.mxu1 %v11955_v6  ;;  %26470 = vmatprep.subr.mxu0 %v32697_v22  ;;  %v11261_v63 = vmul.f32 %v27586_v21, %v30166_v44  ;;  %v27588_v49 = vpop.eup %27587  ;;  %v32855_v44 = vld [vmem:[#allocation51_spill] sm:$0xff] }
 0xcd5   : > { %26478 = vmatmul.mubr.msk.f32.vlgmr.msra.gmra.mxu1 %vm2568_vm3, %v11257_v13  ;;  %26485 = vmatprep.subr.mxu1 %v32697_v22  ;;  %v11265_v28 = vmul.f32 %v27588_v49, %v30181_v32  ;;  %v32856_v32 = vld [vmem:[#allocation44_spill] sm:$0xff]  ;;  %v27859_v21 = vld [vmem:[%s32558_s10 + $0x8] sm:$0xff] }
 0xcd6   : > { %26463 = vmatmul.mubr.msk.f32.vlgmr.msra.gmra.mxu0 %vm2568_vm3, %v11251_v3  ;;  %26487 = vmatprep.mubr.msk.f32.mxu1 %vm27872_vm1, %v32697_v22 }
 0xcd7   : > { %26471 = vmatpush3.msra.mxu0 %v11879_v35  ;;  %v12107_v24 = vpop.permute.xlu1 %12106  ;;  %26472 = vmatprep.mubr.msk.f32.mxu0 %vm27872_vm1, %v32697_v22 }
 0xcd8   : > { %26486 = vmatpush3.msra.mxu1 %v12107_v24  ;;  %26480 = vmatprep.subr.mxu0 %v32697_v22 }
 0xcd9   : > { %26488 = vmatmul.mubr.msk.f32.vlgmr.msra.gmra.mxu1 %vm2568_vm3, %v11261_v63  ;;  %26495 = vmatprep.subr.mxu1 %v32697_v22  ;;  %v12486_v63 = vrot.slane %v27859_v21, 4 }
 0xcda   : > { %26497 = vmatprep.mubr.msk.f32.mxu1 %vm27872_vm1, %v32697_v22 }
 0xcdb   : > { %v30316_v52 = vpop.permute.xlu1 %12182 }
 0xcdd   : > { %12410 = vrot.lane.b32.xlu1 %v32741_v53, %s27875_s17 }
 0xcde   : > { %12030 = vrot.lane.b32.xlu0 %v32855_v44, %s27875_s17 }
 0xcdf   : > { %v12259_v5 = vpop.permute.xlu1 %12258 }
 0xce0   : > { %26496 = vmatpush3.msra.mxu1 %v12259_v5 }
 0xce1   : > { %12700 = vrot.lane.b32.xlu1 %v28441_v34, %s27876_s20  ;;  %26498 = vmatmul.mubr.msk.f32.vlgmr.msra.gmra.mxu1 %vm2568_vm3, %v11265_v28 }
 0xce2   : > { %12698 = vrot.lane.b32.xlu0 %v28443_v33, %s27876_s20  ;;  %26505 = vmatprep.subr.mxu1 %v32697_v22 }
 0xce3   : > { %26507 = vmatprep.mubr.msk.f32.mxu1 %vm27872_vm1, %v32697_v22  ;;  %v12335_v23 = vpop.permute.xlu1 %12334 }
 0xce5   : > { %12778 = vrot.lane.b32.xlu1 %v28450_v37, %s27876_s20 }
 0xce6   : > { %12776 = vrot.lane.b32.xlu0 %v28458_v41, %s27876_s20 }
 0xce9   : > { %12856 = vrot.lane.b32.xlu1 %v28463_v50, %s27876_s20 }
 0xcea   : > { %12854 = vrot.lane.b32.xlu0 %v28467_v31, %s27876_s20 }
 0xced   : > { %12934 = vrot.lane.b32.xlu1 %v28476_v60, %s27876_s20 }
 0xcee   : > { %12932 = vrot.lane.b32.xlu0 %v28484_v56, %s27876_s20 }
 0xcf1   : > { %13012 = vrot.lane.b32.xlu1 %v28489_v58, %s27876_s20 }
 0xcf2   : > { %13010 = vrot.lane.b32.xlu0 %v28500_v15, %s27876_s20 }
 0xcf5   : > { %13090 = vrot.lane.b32.xlu1 %v28505_v27, %s27876_s20 }
 0xcf6   : > { %13088 = vrot.lane.b32.xlu0 %v28525_v54, %s27876_s20 }
 0xcf9   : > { %13168 = vrot.lane.b32.xlu1 %v28539_v12, %s27876_s20  ;;  %v11237_v14 = vpop.xlane.xlu0 %11236 }
 0xcfa   : > { %13166 = vrot.lane.b32.xlu0 %v28554_v42, %s27876_s20  ;;  %27589 = vrcp.f32 %v11237_v14 }
 0xcfd   : > { %13246 = vrot.lane.b32.xlu1 %v28568_v8, %s27876_s20 }
 0xcfe   : > { %13244 = vrot.lane.b32.xlu0 %v28587_v7, %s27876_s20 }
 0xd01   : > { %13324 = vrot.lane.b32.xlu1 %v28510_v20, %s27876_s20 }
 0xd02   : > { %13402 = vrot.lane.b32.xlu0 %v28601_v4, %s27876_s20 }
 0xd05   : > { %13322 = vrot.lane.b32.xlu1 %v28534_v16, %s27876_s20 }
 0xd06   : > { %13400 = vrot.lane.b32.xlu0 %v32764_v11, %s27876_s20 }
 0xd07   : > { %v27590_v2 = vpop.eup %27589 }
 0xd08   : > { %v11269_v9 = vmul.f32 %v27590_v2, %v32858_v43 }
 0xd09   : > { %13480 = vrot.lane.b32.xlu1 %v28545_v40, %s27876_s20 }
 0xd0a   : > { %13558 = vrot.lane.b32.xlu0 %v32766_v26, %s27876_s20 }
 0xd0d   : > { %13478 = vrot.lane.b32.xlu1 %v28563_v10, %s27876_s20 }
 0xd0e   : > { %13556 = vrot.lane.b32.xlu0 %v32768_v51, %s27876_s20 }
 0xd11   : > { %13636 = vrot.lane.b32.xlu1 %v32765_v0, %s27876_s20 }
 0xd12   : > { %13714 = vrot.lane.b32.xlu0 %v32811_v18, %s27876_s20 }
 0xd15   : > { %13634 = vrot.lane.b32.xlu1 %v32767_v19, %s27876_s20 }
 0xd16   : > { %13712 = vrot.lane.b32.xlu0 %v32813_v45, %s27876_s20 }
 0xd19   : > { %13792 = vrot.lane.b32.xlu1 %v32769_v55, %s27876_s20 }
 0xd1a   : > { %13870 = vrot.lane.b32.xlu0 %v32814_v1, %s27876_s20 }
 0xd1d   : > { %13790 = vrot.lane.b32.xlu1 %v32856_v32, %s27876_s20 }
 0xd1e   : > { %13868 = vrot.lane.b32.xlu0 %v32857_v61, %s27876_s20 }
 0xd49   : > { %v11216_v48 = vpop.xlane.xlu0 %11215 }
 0xd4a   : > { %27591 = vrcp.f32 %v11216_v48 }
 0xd4d   : > { %v11222_v38 = vpop.xlane.xlu0 %11221 }
 0xd4e   : > { %27593 = vrcp.f32 %v11222_v38 }
 0xd51   : > { %v11228_v46 = vpop.xlane.xlu0 %11227 }
 0xd52   : > { %27595 = vrcp.f32 %v11228_v46 }
 0xd55   : > { %v12031_v17 = vpop.permute.xlu0 %12030  ;;  %v11234_v57 = vpop.xlane.xlu1 %11233 }
 0xd56   : > { %27597 = vrcp.f32 %v11234_v57 }
 0xd57   : > { %v27592_v47 = vpop.eup %27591 }
 0xd58   : > { %v11255_v39 = vmul.f32 %v27592_v47, %v30256_v59 }
 0xd59   : > { %v12699_v35 = vpop.permute.xlu0 %12698  ;;  %v12411_v30 = vpop.permute.xlu1 %12410 }
 0xd5a   : > { %26473 = vmatmul.mubr.msk.f32.vlgmr.msra.gmra.mxu0 %vm2568_vm3, %v11255_v39  ;;  %26506 = vmatpush3.msra.mxu1 %v12411_v30 }
 0xd5b   : > { %v27594_v25 = vpop.eup %27593  ;;  %26481 = vmatpush3.msra.mxu0 %v12031_v17  ;;  %26508 = vmatmul.mubr.msk.f32.vlgmr.msra.gmra.mxu1 %vm2568_vm3, %v11269_v9 }
 0xd5c   : > { %v11259_v13 = vmul.f32 %v27594_v25, %v30262_v29  ;;  %26482 = vmatprep.mubr.msk.f32.mxu0 %vm27872_vm1, %v32697_v22  ;;  %26490 = vmatprep.subr.mxu0 %v32697_v22 }
 0xd5d   : > { %v12777_v3 = vpop.permute.xlu0 %12776  ;;  %26536 = vmatprep.subr.mxu1 %v32697_v22  ;;  %v12701_v59 = vpop.permute.xlu1 %12700  ;;  %26538 = vmatprep.mubr.msk.f32.mxu1 %vm27872_vm1, %v32697_v22 }
 0xd5e   : > { %26483 = vmatmul.mubr.msk.f32.vlgmr.msra.gmra.mxu0 %vm2568_vm3, %v11259_v13  ;;  %26537 = vmatpush3.xpose.msk.msra.mxu1 %vm1351_vm2, %v12701_v59 }
 0xd5f   : > { %v27596_v6 = vpop.eup %27595  ;;  %26491 = vmatpush3.msra.mxu0 %v30316_v52  ;;  %26492 = vmatprep.mubr.msk.f32.mxu0 %vm27872_vm1, %v32697_v22 }
 0xd60   : > { %v11263_v29 = vmul.f32 %v27596_v6, %v30269_v62  ;;  %26500 = vmatprep.subr.mxu0 %v32697_v22  ;;  %26541 = vmatprep.subr.mxu1 %v32697_v22 }
 0xd61   : > { %v12855_v24 = vpop.permute.xlu0 %12854  ;;  %26539 = vmatmul.mubr.msk.f32.vlgmr.msra.gmra.mxu1 %vm1351_vm2, %v12699_v35  ;;  %v12779_v49 = vpop.permute.xlu1 %12778 }
 0xd62   : > { %26493 = vmatmul.mubr.msk.f32.vlgmr.msra.gmra.mxu0 %vm2568_vm3, %v11263_v29  ;;  %26542 = vmatpush3.xpose.msk.msra.mxu1 %vm1351_vm2, %v12779_v49 }
 0xd63   : > { %v27598_v52 = vpop.eup %27597  ;;  %26501 = vmatpush3.msra.mxu0 %v12335_v23  ;;  %26543 = vmatprep.mubr.msk.f32.mxu1 %vm27872_vm1, %v32697_v22 }
 0xd64   : > { %v11267_v62 = vmul.f32 %v27598_v52, %v30276_v36  ;;  %26502 = vmatprep.mubr.msk.f32.mxu0 %vm27872_vm1, %v32697_v22  ;;  %26546 = vmatprep.subr.mxu1 %v32697_v22 }
 0xd65   : > { %v12933_v28 = vpop.permute.xlu0 %12932  ;;  %26544 = vmatmul.mubr.msk.f32.vlgmr.msra.gmra.mxu1 %vm1351_vm2, %v12777_v3  ;;  %v12857_v5 = vpop.permute.xlu1 %12856  ;;  %26510 = vmatprep.subr.msk.mxu0 %vm3961_vm4, %v12486_v63 }
 0xd66   : > { %26503 = vmatmul.mubr.msk.f32.vlgmr.msra.gmra.mxu0 %vm2568_vm3, %v11267_v62  ;;  %26547 = vmatpush3.xpose.msk.msra.mxu1 %vm1351_vm2, %v12857_v5 }
 0xd67   : > { %26548 = vmatprep.mubr.msk.f32.mxu1 %vm27872_vm1, %v32697_v22  ;;  %26551 = vmatprep.subr.mxu1 %v32697_v22 }
 0xd68   : > { %26511 = vmatpush3.msk.msra.mxu0 %vm3961_vm4, %v12486_v63 }
 0xd69   : > { %v13011_v36 = vpop.permute.xlu0 %13010  ;;  %26549 = vmatmul.mubr.msk.f32.vlgmr.msra.gmra.mxu1 %vm1351_vm2, %v12855_v24  ;;  %v12935_v14 = vpop.permute.xlu1 %12934  ;;  %26576 = vmatprep.subr.mxu0 %v32697_v22 }
 0xd6a   : > { %26552 = vmatpush3.xpose.msk.msra.mxu1 %vm1351_vm2, %v12935_v14  ;;  %26553 = vmatprep.mubr.msk.f32.mxu1 %vm27872_vm1, %v32697_v22 }
 0xd6b   : > { %26556 = vmatprep.subr.mxu1 %v32697_v22 }
 0xd6d   : > { %v13089_v48 = vpop.permute.xlu0 %13088  ;;  %26554 = vmatmul.mubr.msk.f32.vlgmr.msra.gmra.mxu1 %vm1351_vm2, %v12933_v28  ;;  %v13013_v38 = vpop.permute.xlu1 %13012 }
 0xd6e   : > { %26557 = vmatpush3.xpose.msk.msra.mxu1 %vm1351_vm2, %v13013_v38  ;;  %26558 = vmatprep.mubr.msk.f32.mxu1 %vm27872_vm1, %v32697_v22 }
 0xd6f   : > { %26561 = vmatprep.subr.mxu1 %v32697_v22 }
 0xd71   : > { %v13167_v23 = vpop.permute.xlu0 %13166  ;;  %26559 = vmatmul.mubr.msk.f32.vlgmr.msra.gmra.mxu1 %vm1351_vm2, %v13011_v36  ;;  %v13091_v46 = vpop.permute.xlu1 %13090 }
 0xd72   : > { %26562 = vmatpush3.xpose.msk.msra.mxu1 %vm1351_vm2, %v13091_v46  ;;  %26563 = vmatprep.mubr.msk.f32.mxu1 %vm27872_vm1, %v32697_v22 }
 0xd73   : > { %26566 = vmatprep.subr.mxu1 %v32697_v22 }
 0xd75   : > { %v13245_v17 = vpop.permute.xlu0 %13244  ;;  %26564 = vmatmul.mubr.msk.f32.vlgmr.msra.gmra.mxu1 %vm1351_vm2, %v13089_v48  ;;  %v13169_v57 = vpop.permute.xlu1 %13168 }
 0xd76   : > { %v11418_v2 = vpop.f32.mrf.mxu1  ;;  %26567 = vmatpush3.xpose.msk.msra.mxu1 %vm1351_vm2, %v13169_v57  ;;  %26568 = vmatprep.mubr.msk.f32.mxu1 %vm27872_vm1, %v32697_v22 }
 0xd77   : > { %26571 = vmatprep.subr.mxu1 %v32697_v22 }
 0xd78   : > { %v26439_v47 = vpop.f32.mrf.mxu1 }
 0xd79   : > { %v13403_v39 = vpop.permute.xlu0 %13402  ;;  %26569 = vmatmul.mubr.msk.f32.vlgmr.msra.gmra.mxu1 %vm1351_vm2, %v13167_v23  ;;  %v13247_v43 = vpop.permute.xlu1 %13246 }
 0xd7a   : > { %26572 = vmatpush3.xpose.msk.msra.mxu1 %vm1351_vm2, %v13247_v43  ;;  %26573 = vmatprep.mubr.msk.f32.mxu1 %vm27872_vm1, %v32697_v22 }
 0xd7b   : > { %26581 = vmatprep.subr.mxu1 %v32697_v22 }
 0xd7d   : > { %v13401_v9 = vpop.permute.xlu0 %13400  ;;  %26574 = vmatmul.mubr.msk.f32.vlgmr.msra.gmra.mxu1 %vm1351_vm2, %v13245_v17  ;;  %v11570_v35 = vpop.f32.mrf.mxu1 }
 0xd7e   : > { %26582 = vmatpush3.xpose.msk.msra.mxu1 %vm1351_vm2, %v13403_v39  ;;  %26583 = vmatprep.mubr.msk.f32.mxu1 %vm27872_vm1, %v32697_v22  ;;  %v13325_v21 = vpop.permute.xlu1 %13324 }
 0xd7f   : > { %26591 = vmatprep.subr.mxu1 %v32697_v22  ;;  %v26449_v30 = vpop.f32.mrf.mxu1 }
 0xd81   : > { %v13559_v25 = vpop.permute.xlu0 %13558  ;;  %26584 = vmatmul.mubr.msk.f32.vlgmr.msra.gmra.mxu1 %vm1351_vm2, %v13401_v9 }
 0xd82   : > { %26592 = vmatpush3.xpose.msk.msra.mxu1 %vm1351_vm2, %v13559_v25  ;;  %26593 = vmatprep.mubr.msk.f32.mxu1 %vm27872_vm1, %v32697_v22  ;;  %v13323_v43 = vpop.permute.xlu1 %13322 }
 0xd83   : > { %26601 = vmatprep.subr.mxu1 %v32697_v22 }
 0xd85   : > { %v13557_v13 = vpop.permute.xlu0 %13556  ;;  %v11722_v3 = vpop.f32.mrf.mxu1 }
 0xd86   : > { %26594 = vmatmul.mubr.msk.f32.vlgmr.msra.gmra.mxu1 %vm1351_vm2, %v13557_v13  ;;  %v13481_v9 = vpop.permute.xlu1 %13480 }
 0xd87   : > { %26603 = vmatprep.mubr.msk.f32.mxu1 %vm27872_vm1, %v32697_v22  ;;  %v26459_v59 = vpop.f32.mrf.mxu1 }
 0xd89   : > { %v13715_v6 = vpop.permute.xlu0 %13714 }
 0xd8a   : > { %v11342_v29 = vpop.f32.mrf.mxu0  ;;  %26602 = vmatpush3.xpose.msk.msra.mxu1 %vm1351_vm2, %v13715_v6  ;;  %v13479_v59 = vpop.permute.xlu1 %13478 }
 0xd8b   : > { %26512 = vmatprep.mubr.msk.f32.mxu0 %vm1351_vm2, %v11342_v29  ;;  %26611 = vmatprep.subr.mxu1 %v32697_v22 }
 0xd8c   : > { %v26434_v63 = vpop.f32.mrf.mxu0  ;;  %26513 = vmatmul.mubr.msk.f32.vlgmr.msra.gmra.mxu0 %vm1351_vm2, %v11418_v2 }
 0xd8d   : > { %26577 = vmatpush3.xpose.msk.msra.mxu0 %vm1351_vm2, %v13325_v21  ;;  %v13713_v24 = vpop.permute.xlu0 %13712  ;;  %v11874_v49 = vpop.f32.mrf.mxu1 }
 0xd8e   : > { %v11494_v52 = vpop.f32.mrf.mxu0  ;;  %26604 = vmatmul.mubr.msk.f32.vlgmr.msra.gmra.mxu1 %vm1351_vm2, %v13713_v24  ;;  %26586 = vmatprep.subr.mxu0 %v32697_v22 }
 0xd8f   : > { %26515 = vmatprep.mubr.msk.f32.mxu0 %vm1351_vm2, %v11494_v52  ;;  %26613 = vmatprep.mubr.msk.f32.mxu1 %vm27872_vm1, %v32697_v22  ;;  %v26469_v62 = vpop.f32.mrf.mxu1  ;;  %v13637_v52 = vpop.permute.xlu1 %13636 }
 0xd90   : > { %v26444_v28 = vpop.f32.mrf.mxu0  ;;  %26516 = vmatmul.mubr.msk.f32.gmra.mxu0 %vm1351_vm2, %v11570_v35 }
 0xd91   : > { %v13871_v5 = vpop.permute.xlu0 %13870 }
 0xd92   : > { %v11646_v36 = vpop.f32.mrf.mxu0  ;;  %26612 = vmatpush3.xpose.msk.msra.mxu1 %vm1351_vm2, %v13871_v5 }
 0xd93   : > { %26518 = vmatprep.mubr.msk.f32.mxu0 %vm1351_vm2, %v11646_v36  ;;  %26621 = vmatprep.subr.mxu1 %v32697_v22 }
 0xd94   : > { %v26454_v14 = vpop.f32.mrf.mxu0  ;;  %26519 = vmatmul.mubr.msk.f32.gmra.mxu0 %vm1351_vm2, %v11722_v3 }
 0xd95   : > { %v13869_v48 = vpop.permute.xlu0 %13868  ;;  %v12026_v38 = vpop.f32.mrf.mxu1 }
 0xd96   : > { %v11798_v23 = vpop.f32.mrf.mxu0  ;;  %26614 = vmatmul.mubr.msk.f32.vlgmr.msra.gmra.mxu1 %vm1351_vm2, %v13869_v48 }
 0xd97   : > { %26521 = vmatprep.mubr.msk.f32.mxu0 %vm1351_vm2, %v11798_v23  ;;  %26623 = vmatprep.mubr.msk.f32.mxu1 %vm27872_vm1, %v32697_v22  ;;  %v26479_v46 = vpop.f32.mrf.mxu1  ;;  %v13635_v23 = vpop.permute.xlu1 %13634 }
 0xd98   : > { %v26464_v17 = vpop.f32.mrf.mxu0  ;;  %26522 = vmatmul.mubr.msk.f32.gmra.mxu0 %vm1351_vm2, %v11874_v49 }
 0xd99   : > { %v12178_v57 = vpop.f32.mrf.mxu1 }
 0xd9b   : > { %v26489_v2 = vpop.f32.mrf.mxu1 }
 0xda1   : > { %v12330_v47 = vpop.f32.mrf.mxu1 }
 0xda3   : > { %v26499_v39 = vpop.f32.mrf.mxu1 }
 0xe1a   : > { %v11950_v35 = vpop.f32.mrf.mxu0 }
 0xe1b   : > { %v12482_v30 = vpop.f32.mrf.mxu1  ;;  %26524 = vmatprep.mubr.msk.f32.mxu0 %vm1351_vm2, %v11950_v35 }
 0xe1c   : > { %v26474_v25 = vpop.f32.mrf.mxu0  ;;  %26525 = vmatmul.mubr.msk.f32.gmra.mxu0 %vm1351_vm2, %v12026_v38 }
 0xe1d   : > { %v26509_v13 = vpop.f32.mrf.mxu1 }
 0xe1e   : > { %v12102_v3 = vpop.f32.mrf.mxu0 }
 0xe1f   : > { %26527 = vmatprep.mubr.msk.f32.mxu0 %vm1351_vm2, %v12102_v3 }
 0xe20   : > { %v26484_v6 = vpop.f32.mrf.mxu0  ;;  %26528 = vmatmul.mubr.msk.f32.gmra.mxu0 %vm1351_vm2, %v12178_v57 }
 0xe21   : > { %v30493_v29 = vpop.f32.mrf.mxu1 }
 0xe22   : > { %v12254_v21 = vpop.f32.mrf.mxu0  ;;  %v13946_v63 = vsel %vm2568_vm3, %v30493_v29, -inf }
 0xe23   : > { %26530 = vmatprep.mubr.msk.f32.mxu0 %vm1351_vm2, %v12254_v21  ;;  %13947 = vmax.xlane.f32.xlu1 %v13946_v63  ;;  %v26540_v24 = vpop.f32.mrf.mxu1 }
 0xe24   : > { %v26494_v49 = vpop.f32.mrf.mxu0  ;;  %26531 = vmatmul.mubr.msk.f32.gmra.mxu0 %vm1351_vm2, %v12330_v47  ;;  %v13793_v47 = vpop.permute.xlu1 %13792 }
 0xe25   : > { %v30499_v62 = vpop.f32.mrf.mxu1 }
 0xe26   : > { %v12406_v28 = vpop.f32.mrf.mxu0  ;;  %v13949_v5 = vsel %vm2568_vm3, %v30499_v62, -inf }
 0xe27   : > { %26533 = vmatprep.mubr.msk.f32.mxu0 %vm1351_vm2, %v12406_v28  ;;  %13950 = vmax.xlane.f32.xlu0 %v13949_v5  ;;  %v26545_v36 = vpop.f32.mrf.mxu1 }
 0xe28   : > { %v26504_v14 = vpop.f32.mrf.mxu0  ;;  %26534 = vmatmul.mubr.msk.f32.gmra.mxu0 %vm1351_vm2, %v12482_v30  ;;  %v13791_v25 = vpop.permute.xlu1 %13790 }
 0xe29   : > { %v30505_v48 = vpop.f32.mrf.mxu1  ;;  %26578 = vmatprep.mubr.msk.f32.mxu0 %vm27872_vm1, %v32697_v22 }
 0xe2a   : > { %v13952_v38 = vsel %vm2568_vm3, %v30505_v48, -inf }
 0xe2b   : > { %13953 = vmax.xlane.f32.xlu0 %v13952_v38  ;;  %v26550_v46 = vpop.f32.mrf.mxu1 }
 0xe2c   : > { %26579 = vmatmul.mubr.msk.f32.vlgmr.msra.gmra.mxu0 %vm1351_vm2, %v13323_v43 }
 0xe2d   : > { %26587 = vmatpush3.xpose.msk.msra.mxu0 %vm1351_vm2, %v13481_v9  ;;  %v30513_v17 = vpop.f32.mrf.mxu1  ;;  %26588 = vmatprep.mubr.msk.f32.mxu0 %vm27872_vm1, %v32697_v22 }
 0xe2e   : > { %26596 = vmatprep.subr.mxu0 %v32697_v22  ;;  %v13955_v57 = vsel %vm2568_vm3, %v30513_v17, -inf }
 0xe2f   : > { %13956 = vmax.xlane.f32.xlu0 %v13955_v57  ;;  %v26555_v2 = vpop.f32.mrf.mxu1 }
 0xe30   : > { %26589 = vmatmul.mubr.msk.f32.vlgmr.msra.gmra.mxu0 %vm1351_vm2, %v13479_v59 }
 0xe31   : > { %26597 = vmatpush3.xpose.msk.msra.mxu0 %vm1351_vm2, %v13637_v52  ;;  %v30522_v39 = vpop.f32.mrf.mxu1  ;;  %26598 = vmatprep.mubr.msk.f32.mxu0 %vm27872_vm1, %v32697_v22 }
 0xe32   : > { %26606 = vmatprep.subr.mxu0 %v32697_v22  ;;  %v13958_v43 = vsel %vm2568_vm3, %v30522_v39, -inf }
 0xe33   : > { %13959 = vmax.xlane.f32.xlu1 %v13958_v43  ;;  %v26560_v9 = vpop.f32.mrf.mxu1 }
 0xe34   : > { %26599 = vmatmul.mubr.msk.f32.vlgmr.msra.gmra.mxu0 %vm1351_vm2, %v13635_v23  ;;  %v32859_v23 = vld [vmem:[#allocation50_spill] sm:$0xff] }
 0xe35   : > { %26607 = vmatpush3.xpose.msk.msra.mxu0 %vm1351_vm2, %v13793_v47  ;;  %v30531_v35 = vpop.f32.mrf.mxu1  ;;  %26608 = vmatprep.mubr.msk.f32.mxu0 %vm27872_vm1, %v32697_v22 }
 0xe36   : > { %v13961_v30 = vsel %vm2568_vm3, %v30531_v35, -inf  ;;  %26616 = vmatprep.subr.mxu0 %v32697_v22 }
 0xe37   : > { %13962 = vmax.xlane.f32.xlu0 %v13961_v30  ;;  %v26565_v13 = vpop.f32.mrf.mxu1  ;;  %v32862_v30 = vld [vmem:[#allocation42_spill] sm:$0xff] }
 0xe38   : > { %26609 = vmatmul.mubr.msk.f32.vlgmr.msra.gmra.mxu0 %vm1351_vm2, %v13791_v25 }
 0xe39   : > { %v30539_v3 = vpop.f32.mrf.mxu1  ;;  %26618 = vmatprep.mubr.msk.f32.mxu0 %vm27872_vm1, %v32697_v22 }
 0xe3a   : > { %v13964_v59 = vsel %vm2568_vm3, %v30539_v3, -inf }
 0xe3b   : > { %13965 = vmax.xlane.f32.xlu1 %v13964_v59  ;;  %v26570_v6 = vpop.f32.mrf.mxu1 }
 0xe3c   : > { %v32865_v6 = vld [vmem:[#allocation48_spill] sm:$0xff] }
 0xe3d   : > { %v30545_v21 = vpop.f32.mrf.mxu1 }
 0xe3e   : > { %v13967_v63 = vsel %vm2568_vm3, %v30545_v21, -inf }
 0xe3f   : > { %13968 = vmax.xlane.f32.xlu0 %v13967_v63  ;;  %v26575_v24 = vpop.f32.mrf.mxu1 }
 0xe41   : > { %v30549_v49 = vpop.f32.mrf.mxu1 }
 0xe42   : > { %v13973_v52 = vsel %vm2568_vm3, %v30549_v49, -inf }
 0xe43   : > { %13974 = vmax.xlane.f32.xlu0 %v13973_v52  ;;  %v26585_v28 = vpop.f32.mrf.mxu1 }
 0xe46   : > { %v30553_v5 = vpop.f32.mrf.mxu1 }
 0xe47   : > { %v13979_v36 = vsel %vm2568_vm3, %v30553_v5, -inf }
 0xe48   : > { %13980 = vmax.xlane.f32.xlu0 %v13979_v36  ;;  %v26595_v14 = vpop.f32.mrf.mxu1 }
 0xe4c   : > { %v26514_v38 = vpop.f32.mrf.mxu0 }
 0xe4d   : > { %v30558_v46 = vadd.f32 %v26514_v38, %v32859_v23  ;;  %v32868_v38 = vld [vmem:[#allocation31_spill] sm:$0xff] }
 0xe4e   : > { %v30560_v57 = vpop.f32.mrf.mxu0  ;;  %v30562_v2 = vpop.f32.mrf.mxu1 }
 0xe4f   : > { %32860 = vst [vmem:[#allocation77_spill] sm:$0xff] %v30558_v46  ;;  %32861 = vst [vmem:[#allocation50_spill] sm:$0xff] %v30560_v57  ;;  %v13985_v47 = vsel %vm2568_vm3, %v30562_v2, -inf }
 0xe50   : > { %v26517_v43 = vpop.f32.mrf.mxu0  ;;  %13986 = vmax.xlane.f32.xlu0 %v13985_v47  ;;  %v26605_v9 = vpop.f32.mrf.mxu1 }
 0xe51   : > { %v30567_v25 = vadd.f32 %v26517_v43, %v32862_v30 }
 0xe52   : > { %v30569_v13 = vpop.f32.mrf.mxu0 }
 0xe53   : > { %32863 = vst [vmem:[#allocation42_spill] sm:$0xff] %v30567_v25  ;;  %32864 = vst [vmem:[#allocation78_spill] sm:$0xff] %v30569_v13 }
 0xe54   : > { %v26520_v59 = vpop.f32.mrf.mxu0 }
 0xe55   : > { %v30572_v63 = vadd.f32 %v26520_v59, %v32865_v6 }
 0xe56   : > { %v30574_v24 = vpop.f32.mrf.mxu0  ;;  %v30576_v52 = vpop.f32.mrf.mxu1 }
 0xe57   : > { %32866 = vst [vmem:[#allocation48_spill] sm:$0xff] %v30572_v63  ;;  %32867 = vst [vmem:[#allocation79_spill] sm:$0xff] %v30574_v24  ;;  %v13991_v28 = vsel %vm2568_vm3, %v30576_v52, -inf }
 0xe58   : > { %v26523_v36 = vpop.f32.mrf.mxu0  ;;  %13992 = vmax.xlane.f32.xlu0 %v13991_v28  ;;  %v26615_v14 = vpop.f32.mrf.mxu1 }
 0xe59   : > { %v30581_v23 = vadd.f32 %v26523_v36, %v32868_v38 }
 0xe5b   : > { %32869 = vst [vmem:[#allocation31_spill] sm:$0xff] %v30581_v23 }
 0xeac   : > { %v13948_v47 = vpop.xlane.xlu1 %13947 }
 0xead   : > { %v13994_v43 = vsub.f32 %v30493_v29, %v13948_v47 }
 0xeaf   : > { %v14010_v9 = vmul.f32 1.442695, %v13994_v43 }
 0xeb0   : > { %v13951_v30 = vpop.xlane.xlu0 %13950 }
 0xeb1   : > { %27599 = vpow2.f32 %v14010_v9  ;;  %v13995_v59 = vsub.f32 %v30499_v62, %v13951_v30 }
 0xeb3   : > { %v14012_v6 = vmul.f32 1.442695, %v13995_v59 }
 0xeb4   : > { %v13954_v24 = vpop.xlane.xlu0 %13953 }
 0xeb5   : > { %27601 = vpow2.f32 %v14012_v6  ;;  %v13996_v13 = vsub.f32 %v30505_v48, %v13954_v24 }
 0xeb7   : > { %v14014_v57 = vmul.f32 1.442695, %v13996_v13 }
 0xeb8   : > { %v13957_v63 = vpop.xlane.xlu0 %13956 }
 0xeb9   : > { %27603 = vpow2.f32 %v14014_v57  ;;  %v13997_v28 = vsub.f32 %v30513_v17, %v13957_v63 }
 0xebb   : > { %v14016_v36 = vmul.f32 1.442695, %v13997_v28 }
 0xebc   : > { %v13960_v14 = vpop.xlane.xlu1 %13959 }
 0xebd   : > { %27605 = vpow2.f32 %v14016_v36  ;;  %v13998_v29 = vsub.f32 %v30522_v39, %v13960_v14 }
 0xebe   : > { %v30588_v38 = vpop.eup %27599 }
 0xebf   : > { %v14018_v47 = vmul.f32 1.442695, %v13998_v29  ;;  %v14042_v62 = vsel %vm2568_vm3, %v30588_v38, 0.0 }
 0xec0   : > { %v13963_v43 = vpop.xlane.xlu0 %13962  ;;  %14043 = vadd.xlane.f32.xlu1 %v14042_v62 }
 0xec1   : > { %27607 = vpow2.f32 %v14018_v47  ;;  %v13999_v48 = vsub.f32 %v30531_v35, %v13963_v43 }
 0xec2   : > { %v30593_v13 = vpop.eup %27601 }
 0xec3   : > { %v14020_v57 = vmul.f32 1.442695, %v13999_v48  ;;  %v14045_v17 = vsel %vm2568_vm3, %v30593_v13, 0.0 }
 0xec4   : > { %v13966_v63 = vpop.xlane.xlu1 %13965  ;;  %14046 = vadd.xlane.f32.xlu0 %v14045_v17 }
 0xec5   : > { %27609 = vpow2.f32 %v14020_v57  ;;  %v14000_v39 = vsub.f32 %v30539_v3, %v13966_v63 }
 0xec6   : > { %v30598_v24 = vpop.eup %27603 }
 0xec7   : > { %v14022_v9 = vmul.f32 1.442695, %v14000_v39  ;;  %v14048_v30 = vsel %vm2568_vm3, %v30598_v24, 0.0 }
 0xec8   : > { %14049 = vadd.xlane.f32.xlu1 %v14048_v30  ;;  %v13969_v59 = vpop.xlane.xlu0 %13968  ;;  %v30623_v30 = vpop.f32.mrf.mxu0 }
 0xec9   : > { %27611 = vpow2.f32 %v14022_v9  ;;  %v14001_v35 = vsub.f32 %v30545_v21, %v13969_v59  ;;  %32870 = vst [vmem:[#allocation80_spill] sm:$0xff] %v30623_v30 }
 0xeca   : > { %v30603_v6 = vpop.eup %27605 }
 0xecb   : > { %v14024_v28 = vmul.f32 1.442695, %v14001_v35  ;;  %v14051_v36 = vsel %vm2568_vm3, %v30603_v6, 0.0 }
 0xecc   : > { %v13975_v14 = vpop.xlane.xlu0 %13974  ;;  %14052 = vadd.xlane.f32.xlu0 %v14051_v36  ;;  %v32871_v36 = vld [vmem:[#allocation61_spill] sm:$0xff] }
 0xecd   : > { %27613 = vpow2.f32 %v14024_v28  ;;  %v14003_v3 = vsub.f32 %v30549_v49, %v13975_v14 }
 0xece   : > { %v30608_v29 = vpop.eup %27607 }
 0xecf   : > { %v14028_v47 = vmul.f32 1.442695, %v14003_v3  ;;  %v14054_v62 = vsel %vm2568_vm3, %v30608_v29, 0.0 }
 0xed0   : > { %14055 = vadd.xlane.f32.xlu1 %v14054_v62 }
 0xed1   : > { %27615 = vpow2.f32 %v14028_v47  ;;  %v13981_v21 = vpop.xlane.xlu0 %13980 }
 0xed2   : > { %v30612_v43 = vpop.eup %27609  ;;  %v14005_v48 = vsub.f32 %v30553_v5, %v13981_v21 }
 0xed3   : > { %v14057_v57 = vsel %vm2568_vm3, %v30612_v43, 0.0 }
 0xed4   : > { %v14032_v17 = vmul.f32 1.442695, %v14005_v48  ;;  %14058 = vadd.xlane.f32.xlu0 %v14057_v57 }
 0xed6   : > { %v30617_v63 = vpop.eup %27611  ;;  %27617 = vpow2.f32 %v14032_v17 }
 0xed7   : > { %v14060_v49 = vsel %vm2568_vm3, %v30617_v63, 0.0 }
 0xed8   : > { %14061 = vadd.xlane.f32.xlu1 %v14060_v49 }
 0xed9   : > { %v13987_v39 = vpop.xlane.xlu0 %13986 }
 0xeda   : > { %v30621_v9 = vpop.eup %27613  ;;  %v14007_v59 = vsub.f32 %v30562_v2, %v13987_v39  ;;  %v32874_v2 = vld [vmem:[#allocation22_spill] sm:$0xff] }
 0xedb   : > { %v14063_v5 = vsel %vm2568_vm3, %v30621_v9, 0.0 }
 0xedc   : > { %v14036_v35 = vmul.f32 1.442695, %v14007_v59  ;;  %v26526_v28 = vpop.f32.mrf.mxu0  ;;  %14064 = vadd.xlane.f32.xlu0 %v14063_v5  ;;  %v32877_v59 = vld [vmem:[#allocation24_spill] sm:$0xff] }
 0xedd   : > { %v30629_v14 = vadd.f32 %v26526_v28, %v32871_v36  ;;  %v32880_v36 = vld [vmem:[#allocation26_spill] sm:$0xff] }
 0xede   : > { %v30631_v3 = vpop.eup %27615  ;;  %27619 = vpow2.f32 %v14036_v35  ;;  %v30633_v47 = vpop.f32.mrf.mxu0 }
 0xedf   : > { %32872 = vst [vmem:[#allocation61_spill] sm:$0xff] %v30629_v14  ;;  %32873 = vst [vmem:[#allocation81_spill] sm:$0xff] %v30633_v47  ;;  %v14069_v62 = vsel %vm2568_vm3, %v30631_v3, 0.0 }
 0xee0   : > { %v26529_v21 = vpop.f32.mrf.mxu0  ;;  %14070 = vadd.xlane.f32.xlu0 %v14069_v62 }
 0xee1   : > { %v30638_v48 = vadd.f32 %v26529_v21, %v32874_v2 }
 0xee2   : > { %v30640_v57 = vpop.f32.mrf.mxu0 }
 0xee3   : > { %32875 = vst [vmem:[#allocation22_spill] sm:$0xff] %v30638_v48  ;;  %32876 = vst [vmem:[#allocation82_spill] sm:$0xff] %v30640_v57  ;;  %v30642_v17 = vpop.eup %27617  ;;  %v32888_v48 = vld [vmem:[#allocation35_spill] sm:$0xff] }
 0xee4   : > { %v26532_v49 = vpop.f32.mrf.mxu0  ;;  %v14075_v39 = vsel %vm2568_vm3, %v30642_v17, 0.0 }
 0xee5   : > { %v30647_v5 = vadd.f32 %v26532_v49, %v32877_v59  ;;  %14076 = vadd.xlane.f32.xlu0 %v14075_v39 }
 0xee6   : > { %v30649_v35 = vpop.f32.mrf.mxu0 }
 0xee7   : > { %32878 = vst [vmem:[#allocation24_spill] sm:$0xff] %v30647_v5  ;;  %32879 = vst [vmem:[#allocation83_spill] sm:$0xff] %v30649_v35 }
 0xee8   : > { %v26535_v28 = vpop.f32.mrf.mxu0 }
 0xee9   : > { %v30652_v62 = vadd.f32 %v26535_v28, %v32880_v36 }
 0xeea   : > { %v30654_v21 = vpop.f32.mrf.mxu0 }
 0xeeb   : > { %32881 = vst [vmem:[#allocation26_spill] sm:$0xff] %v30652_v62  ;;  %32882 = vst [vmem:[#allocation84_spill] sm:$0xff] %v30654_v21  ;;  %v30656_v2 = vpop.eup %27619 }
 0xeec   : > { %v13396_v30 = vpop.f32.mrf.mxu0  ;;  %v14081_v47 = vsel %vm2568_vm3, %v30656_v2, 0.0 }
 0xeed   : > { %14082 = vadd.xlane.f32.xlu0 %v14081_v47  ;;  %v13970_v57 = vsel %vm2568_vm3, %v13396_v30, -inf }
 0xeee   : > { %v26580_v49 = vpop.f32.mrf.mxu0  ;;  %13971 = vmax.xlane.f32.xlu1 %v13970_v57  ;;  %v32883_v57 = vld [vmem:[#allocation58_spill] sm:$0xff] }
 0xeef   : > { %v32885_v49 = vld [vmem:[#allocation47_spill] sm:$0xff] }
 0xef0   : > { %v13552_v39 = vpop.f32.mrf.mxu0 }
 0xef1   : > { %v13976_v59 = vsel %vm2568_vm3, %v13552_v39, -inf }
 0xef2   : > { %v26590_v35 = vpop.f32.mrf.mxu0  ;;  %13977 = vmax.xlane.f32.xlu1 %v13976_v59  ;;  %v32886_v59 = vld [vmem:[#allocation34_spill] sm:$0xff] }
 0xef3   : > { %v32884_v35 = vld [vmem:[#allocation60_spill] sm:$0xff] }
 0xef4   : > { %v30662_v28 = vpop.f32.mrf.mxu0 }
 0xef5   : > { %v13982_v36 = vsel %vm2568_vm3, %v30662_v28, -inf }
 0xef6   : > { %v26600_v21 = vpop.f32.mrf.mxu0  ;;  %13983 = vmax.xlane.f32.xlu1 %v13982_v36  ;;  %v13993_v36 = vpop.xlane.xlu0 %13992 }
 0xef7   : > { %v32887_v21 = vld [vmem:[#allocation36_spill] sm:$0xff] }
 0xef8   : > { %v30666_v62 = vpop.f32.mrf.mxu0 }
 0xef9   : > { %v13988_v47 = vsel %vm2568_vm3, %v30666_v62, -inf }
 0xefa   : > { %v26610_v5 = vpop.f32.mrf.mxu0  ;;  %13989 = vmax.xlane.f32.xlu1 %v13988_v47  ;;  %v32889_v47 = vld [vmem:[#allocation40_spill] sm:$0xff] }
 0xefb   : > { %v14009_v5 = vsub.f32 %v30576_v52, %v13993_v36  ;;  %v32894_v52 = vld [vmem:[#allocation55_spill] sm:$0xff] }
 0xf03   : > { %14198 = vrot.lane.b32.xlu0 %v32883_v57, %s27876_s20  ;;  %v14040_v57 = vmul.f32 1.442695, %v14009_v5  ;;  %v32895_v5 = vld [vmem:[#allocation53_spill] sm:$0xff] }
 0xf05   : > { %27621 = vpow2.f32 %v14040_v57  ;;  %v32896_v57 = vld [vmem:[#allocation46_spill] sm:$0xff] }
 0xf07   : > { %14274 = vrot.lane.b32.xlu0 %v32884_v35, %s27876_s20  ;;  %v32890_v35 = vld [vmem:[#allocation38_spill] sm:$0xff] }
 0xf0b   : > { %14122 = vrot.lane.b32.xlu1 %v32885_v49, %s27876_s20  ;;  %14350 = vrot.lane.b32.xlu0 %v32886_v59, %s27876_s20  ;;  %v32891_v49 = vld [vmem:[#allocation43_spill] sm:$0xff] }
 0xf0f   : > { %14426 = vrot.lane.b32.xlu0 %v32887_v21, %s27876_s20  ;;  %v32892_v21 = vld [vmem:[#allocation49_spill] sm:$0xff] }
 0xf13   : > { %14502 = vrot.lane.b32.xlu0 %v32888_v48, %s27876_s20  ;;  %v30693_v48 = vpop.eup %27621 }
 0xf14   : > { %32893 = vst [vmem:[#allocation85_spill] sm:$0xff] %v30693_v48  ;;  %v14087_v36 = vsel %vm2568_vm3, %v30693_v48, 0.0 }
 0xf17   : > { %14578 = vrot.lane.b32.xlu0 %v32889_v47, %s27876_s20 }
 0xf1b   : > { %14654 = vrot.lane.b32.xlu0 %v32890_v35, %s27876_s20 }
 0xf1f   : > { %14806 = vrot.lane.b32.xlu0 %v32891_v49, %s27876_s20 }
 0xf23   : > { %14882 = vrot.lane.b32.xlu0 %v32855_v44, %s27876_s20 }
 0xf27   : > { %14958 = vrot.lane.b32.xlu0 %v32892_v21, %s27876_s20 }
 0xf2b   : > { %15034 = vrot.lane.b32.xlu0 %v32894_v52, %s27876_s20 }
 0xf2f   : > { %15110 = vrot.lane.b32.xlu0 %v32895_v5, %s27876_s20  ;;  %14088 = vadd.xlane.f32.xlu1 %v14087_v36 }
 0xf40   : > { %14730 = vrot.lane.b32.xlu1 %v32896_v57, %s27876_s20 }
 0xf49   : > { %v14044_v21 = vpop.xlane.xlu1 %14043 }
 0xf4d   : > { %v14047_v49 = vpop.xlane.xlu0 %14046 }
 0xf4e   : > { %27623 = vrcp.f32 %v14047_v49 }
 0xf51   : > { %v14050_v59 = vpop.xlane.xlu1 %14049 }
 0xf55   : > { %v14053_v44 = vpop.xlane.xlu0 %14052 }
 0xf56   : > { %27625 = vrcp.f32 %v14053_v44 }
 0xf57   : > { %27627 = vrcp.f32 %v14044_v21 }
 0xf59   : > { %v14056_v23 = vpop.xlane.xlu1 %14055 }
 0xf5b   : > { %v27624_v5 = vpop.eup %27623 }
 0xf5c   : > { %v14093_v57 = vmul.f32 %v27624_v5, %v30593_v13 }
 0xf5d   : > { %v14059_v35 = vpop.xlane.xlu0 %14058 }
 0xf5e   : > { %27629 = vrcp.f32 %v14059_v35 }
 0xf5f   : > { %27631 = vrcp.f32 %v14050_v59 }
 0xf61   : > { %v14062_v25 = vpop.xlane.xlu1 %14061 }
 0xf65   : > { %v14065_v47 = vpop.xlane.xlu0 %14064 }
 0xf69   : > { %v14071_v14 = vpop.xlane.xlu0 %14070 }
 0xf6e   : > { %v30703_v52 = vpop.xlane.xlu0 %14076 }
 0xf76   : > { %v30705_v46 = vpop.xlane.xlu0 %14082 }
 0xf77   : > { %v13972_v36 = vpop.xlane.xlu1 %13971 }
 0xf78   : > { %v14002_v48 = vsub.f32 %v13396_v30, %v13972_v36  ;;  %v27626_v30 = vpop.eup %27625 }
 0xf79   : > { %v14097_v35 = vmul.f32 %v27626_v30, %v30603_v6  ;;  %v27628_v59 = vpop.eup %27627 }
 0xf7a   : > { %v14026_v61 = vmul.f32 1.442695, %v14002_v48  ;;  %v14199_v1 = vpop.permute.xlu0 %14198  ;;  %v27630_v6 = vpop.eup %27629 }
 0xf7b   : > { %v13978_v49 = vpop.xlane.xlu1 %13977  ;;  %26622 = vmatpush3.msra.mxu1 %v14199_v1 }
 0xf7c   : > { %27633 = vpow2.f32 %v14026_v61  ;;  %v14004_v45 = vsub.f32 %v13552_v39, %v13978_v49  ;;  %26624 = vmatmul.mubr.msk.f32.vlgmr.msra.gmra.mxu1 %vm2568_vm3, %v14093_v57  ;;  %26631 = vmatprep.subr.mxu1 %v32697_v22 }
 0xf7d   : > { %26633 = vmatprep.mubr.msk.f32.mxu1 %vm27872_vm1, %v32697_v22  ;;  %27635 = vrcp.f32 %v14056_v23 }
 0xf7e   : > { %v14030_v44 = vmul.f32 1.442695, %v14004_v45  ;;  %v14275_v21 = vpop.permute.xlu0 %14274 }
 0xf7f   : > { %v13984_v13 = vpop.xlane.xlu1 %13983 }
 0xf80   : > { %27637 = vpow2.f32 %v14030_v44  ;;  %v14006_v48 = vsub.f32 %v30662_v28, %v13984_v13  ;;  %v14091_v28 = vmul.f32 %v27628_v59, %v30588_v38 }
 0xf81   : > { %27639 = vrcp.f32 %v14065_v47  ;;  %v27632_v47 = vpop.eup %27631 }
 0xf82   : > { %v14034_v1 = vmul.f32 1.442695, %v14006_v48  ;;  %v14351_v61 = vpop.permute.xlu0 %14350  ;;  %27641 = vrcp.f32 %v14062_v25  ;;  %v14095_v38 = vmul.f32 %v27632_v47, %v30598_v24 }
 0xf83   : > { %v13990_v39 = vpop.xlane.xlu1 %13989  ;;  %26632 = vmatpush3.msra.mxu1 %v14351_v61 }
 0xf84   : > { %27643 = vpow2.f32 %v14034_v1  ;;  %v14008_v5 = vsub.f32 %v30666_v62, %v13990_v39  ;;  %26634 = vmatmul.mubr.msk.f32.vlgmr.msra.gmra.mxu1 %vm2568_vm3, %v14097_v35  ;;  %26641 = vmatprep.subr.mxu1 %v32697_v22  ;;  %v14101_v62 = vmul.f32 %v27630_v6, %v30612_v43 }
 0xf85   : > { %26643 = vmatprep.mubr.msk.f32.mxu1 %vm27872_vm1, %v32697_v22  ;;  %27645 = vrcp.f32 %v14071_v14 }
 0xf86   : > { %v14038_v45 = vmul.f32 1.442695, %v14008_v5  ;;  %v14427_v23 = vpop.permute.xlu0 %14426 }
 0xf87   : > { %v14123_v25 = vpop.permute.xlu1 %14122 }
 0xf88   : > { %27647 = vpow2.f32 %v14038_v45  ;;  %26617 = vmatpush3.msra.mxu0 %v14123_v25 }
 0xf89   : > { %v30720_v57 = vpop.eup %27633  ;;  %26619 = vmatmul.mubr.msk.f32.vlgmr.msra.gmra.mxu0 %vm2568_vm3, %v14091_v28  ;;  %26626 = vmatprep.subr.mxu0 %v32697_v22  ;;  %27649 = vrcp.f32 %v30703_v52  ;;  %v32897_v28 = vld [vmem:[#allocation59_spill] sm:$0xff] }
 0xf8a   : > { %26627 = vmatpush3.msra.mxu0 %v14275_v21  ;;  %v14503_v36 = vpop.permute.xlu0 %14502  ;;  %v14066_v14 = vsel %vm2568_vm3, %v30720_v57, 0.0  ;;  %26628 = vmatprep.mubr.msk.f32.mxu0 %vm27872_vm1, %v32697_v22  ;;  %v27636_v49 = vpop.eup %27635  ;;  %27651 = vrcp.f32 %v30705_v46 }
 0xf8b   : > { %14067 = vadd.xlane.f32.xlu1 %v14066_v14  ;;  %26642 = vmatpush3.msra.mxu1 %v14503_v36  ;;  %v14099_v30 = vmul.f32 %v27636_v49, %v30608_v29  ;;  %v32899_v36 = vld [vmem:[#allocation54_spill] sm:$0xff]  ;;  %v32900_v14 = vld [vmem:[#allocation56_spill] sm:$0xff] }
 0xf8c   : > { %26636 = vmatprep.subr.mxu0 %v32697_v22  ;;  %26644 = vmatmul.mubr.msk.f32.vlgmr.msra.gmra.mxu1 %vm2568_vm3, %v14101_v62  ;;  %v32898_v62 = vld [vmem:[#allocation52_spill] sm:$0xff] }
 0xf8d   : > { %v30732_v44 = vpop.eup %27637  ;;  %26629 = vmatmul.mubr.msk.f32.vlgmr.msra.gmra.mxu0 %vm2568_vm3, %v14095_v38  ;;  %26651 = vmatprep.subr.mxu1 %v32697_v22 }
 0xf8e   : > { %26637 = vmatpush3.msra.mxu0 %v14427_v23  ;;  %v14579_v43 = vpop.permute.xlu0 %14578  ;;  %v14072_v24 = vsel %vm2568_vm3, %v30732_v44, 0.0  ;;  %26638 = vmatprep.mubr.msk.f32.mxu0 %vm27872_vm1, %v32697_v22  ;;  %v27640_v21 = vpop.eup %27639 }
 0xf8f   : > { %14073 = vadd.xlane.f32.xlu1 %v14072_v24  ;;  %26646 = vmatprep.subr.mxu0 %v32697_v22  ;;  %v27642_v13 = vpop.eup %27641  ;;  %v14105_v52 = vmul.f32 %v27640_v21, %v30621_v9 }
 0xf90   : > { %26653 = vmatprep.mubr.msk.f32.mxu1 %vm27872_vm1, %v32697_v22  ;;  %v14103_v61 = vmul.f32 %v27642_v13, %v30617_v63 }
 0xf91   : > { %v30745_v48 = vpop.eup %27643  ;;  %26639 = vmatmul.mubr.msk.f32.vlgmr.msra.gmra.mxu0 %vm2568_vm3, %v14099_v30 }
 0xf92   : > { %26647 = vmatpush3.msra.mxu0 %v14579_v43  ;;  %v14655_v35 = vpop.permute.xlu0 %14654  ;;  %v14078_v1 = vsel %vm2568_vm3, %v30745_v48, 0.0  ;;  %26648 = vmatprep.mubr.msk.f32.mxu0 %vm27872_vm1, %v32697_v22  ;;  %v27646_v29 = vpop.eup %27645 }
 0xf93   : > { %14079 = vadd.xlane.f32.xlu1 %v14078_v1  ;;  %26652 = vmatpush3.msra.mxu1 %v14655_v35  ;;  %v14109_v9 = vmul.f32 %v27646_v29, %v30631_v3  ;;  %v32901_v35 = vld [vmem:[#allocation85_spill] sm:$0xff] }
 0xf94   : > { %26654 = vmatmul.mubr.msk.f32.vlgmr.msra.gmra.mxu1 %vm2568_vm3, %v14105_v52  ;;  %26661 = vmatprep.subr.mxu1 %v32697_v22 }
 0xf95   : > { %v30756_v39 = vpop.eup %27647  ;;  %26649 = vmatmul.mubr.msk.f32.vlgmr.msra.gmra.mxu0 %vm2568_vm3, %v14103_v61  ;;  %26663 = vmatprep.mubr.msk.f32.mxu1 %vm27872_vm1, %v32697_v22 }
 0xf96   : > { %v14807_v59 = vpop.permute.xlu0 %14806  ;;  %v14084_v63 = vsel %vm2568_vm3, %v30756_v39, 0.0  ;;  %26656 = vmatprep.subr.mxu0 %v32697_v22  ;;  %26658 = vmatprep.mubr.msk.f32.mxu0 %vm27872_vm1, %v32697_v22  ;;  %v27650_v46 = vpop.eup %27649 }
 0xf97   : > { %14085 = vadd.xlane.f32.xlu0 %v14084_v63  ;;  %26662 = vmatpush3.msra.mxu1 %v14807_v59  ;;  %v14113_v5 = vmul.f32 %v27650_v46, %v30642_v17  ;;  %v27652_v6 = vpop.eup %27651 }
 0xf98   : > { %26664 = vmatmul.mubr.msk.f32.vlgmr.msra.gmra.mxu1 %vm2568_vm3, %v14109_v9  ;;  %26671 = vmatprep.subr.mxu1 %v32697_v22  ;;  %v14117_v25 = vmul.f32 %v27652_v6, %v30656_v2 }
 0xf99   : > { %26673 = vmatprep.mubr.msk.f32.mxu1 %vm27872_vm1, %v32697_v22 }
 0xf9a   : > { %v30772_v3 = vpop.permute.xlu0 %14882 }
 0xf9e   : > { %v14959_v45 = vpop.permute.xlu0 %14958 }
 0xf9f   : > { %26672 = vmatpush3.msra.mxu1 %v14959_v45 }
 0xfa0   : > { %26674 = vmatmul.mubr.msk.f32.vlgmr.msra.gmra.mxu1 %vm2568_vm3, %v14113_v5  ;;  %26681 = vmatprep.subr.mxu1 %v32697_v22 }
 0xfa1   : > { %26683 = vmatprep.mubr.msk.f32.mxu1 %vm27872_vm1, %v32697_v22 }
 0xfa2   : > { %v30779_v23 = vpop.permute.xlu0 %15034 }
 0xfa4   : > { %15186 = vrot.lane.b32.xlu1 %v32897_v28, %s27876_s20 }
 0xfa6   : > { %v15111_v47 = vpop.permute.xlu0 %15110 }
 0xfa7   : > { %26682 = vmatpush3.msra.mxu1 %v15111_v47 }
 0xfa8   : > { %15552 = vrot.lane.b32.xlu1 %v28441_v34, %s27877_s23  ;;  %26684 = vmatmul.mubr.msk.f32.vlgmr.msra.gmra.mxu1 %vm2568_vm3, %v14117_v25 }
 0xfa9   : > { %26691 = vmatprep.subr.mxu1 %v32697_v22  ;;  %26693 = vmatprep.mubr.msk.f32.mxu1 %vm27872_vm1, %v32697_v22 }
 0xfac   : > { %15630 = vrot.lane.b32.xlu1 %v28450_v37, %s27877_s23 }
 0xfad   : > { %15262 = vrot.lane.b32.xlu0 %v32741_v53, %s27876_s20 }
 0xfb0   : > { %15708 = vrot.lane.b32.xlu1 %v28463_v50, %s27877_s23 }
 0xfb1   : > { %15550 = vrot.lane.b32.xlu0 %v28443_v33, %s27877_s23 }
 0xfb4   : > { %15786 = vrot.lane.b32.xlu1 %v28476_v60, %s27877_s23 }
 0xfb5   : > { %15628 = vrot.lane.b32.xlu0 %v28458_v41, %s27877_s23 }
 0xfb8   : > { %15864 = vrot.lane.b32.xlu1 %v28489_v58, %s27877_s23  ;;  %v14089_v17 = vpop.xlane.xlu1 %14088 }
 0xfb9   : > { %15706 = vrot.lane.b32.xlu0 %v28467_v31, %s27877_s23  ;;  %27653 = vrcp.f32 %v14089_v17 }
 0xfbc   : > { %15942 = vrot.lane.b32.xlu1 %v28505_v27, %s27877_s23  ;;  %v14731_v2 = vpop.permute.xlu1 %14730 }
 0xfbd   : > { %15784 = vrot.lane.b32.xlu0 %v28484_v56, %s27877_s23  ;;  %26657 = vmatpush3.msra.mxu0 %v14731_v2 }
 0xfbe   : > { %26666 = vmatprep.subr.mxu0 %v32697_v22 }
 0xfc0   : > { %16020 = vrot.lane.b32.xlu1 %v28539_v12, %s27877_s23 }
 0xfc1   : > { %15862 = vrot.lane.b32.xlu0 %v28500_v15, %s27877_s23 }
 0xfc4   : > { %16098 = vrot.lane.b32.xlu1 %v28568_v8, %s27877_s23 }
 0xfc5   : > { %15940 = vrot.lane.b32.xlu0 %v28525_v54, %s27877_s23 }
 0xfc6   : > { %v27654_v30 = vpop.eup %27653 }
 0xfc7   : > { %v14121_v1 = vmul.f32 %v27654_v30, %v32901_v35 }
 0xfc8   : > { %16176 = vrot.lane.b32.xlu1 %v28510_v20, %s27877_s23 }
 0xfc9   : > { %16018 = vrot.lane.b32.xlu0 %v28554_v42, %s27877_s23 }
 0xfcc   : > { %16174 = vrot.lane.b32.xlu1 %v28534_v16, %s27877_s23 }
 0xfcd   : > { %16096 = vrot.lane.b32.xlu0 %v28587_v7, %s27877_s23 }
 0xfd0   : > { %16332 = vrot.lane.b32.xlu1 %v28545_v40, %s27877_s23 }
 0xfd1   : > { %16254 = vrot.lane.b32.xlu0 %v28601_v4, %s27877_s23 }
 0xfd4   : > { %16330 = vrot.lane.b32.xlu1 %v28563_v10, %s27877_s23 }
 0xfd5   : > { %16252 = vrot.lane.b32.xlu0 %v32764_v11, %s27877_s23 }
 0xfd8   : > { %16488 = vrot.lane.b32.xlu1 %v32765_v0, %s27877_s23 }
 0xfd9   : > { %16410 = vrot.lane.b32.xlu0 %v32766_v26, %s27877_s23 }
 0xfdc   : > { %16486 = vrot.lane.b32.xlu1 %v32767_v19, %s27877_s23 }
 0xfdd   : > { %16408 = vrot.lane.b32.xlu0 %v32768_v51, %s27877_s23 }
 0xfe0   : > { %16644 = vrot.lane.b32.xlu1 %v32769_v55, %s27877_s23 }
 0xfe1   : > { %16566 = vrot.lane.b32.xlu0 %v32811_v18, %s27877_s23 }
 0xfe4   : > { %16642 = vrot.lane.b32.xlu1 %v32856_v32, %s27877_s23 }
 0xfe5   : > { %16564 = vrot.lane.b32.xlu0 %v32898_v62, %s27877_s23 }
 0xfe9   : > { %16722 = vrot.lane.b32.xlu0 %v32899_v36, %s27877_s23 }
 0xfed   : > { %16720 = vrot.lane.b32.xlu0 %v32900_v14, %s27877_s23 }
0x1014   : > { %v14068_v38 = vpop.xlane.xlu1 %14067 }
0x1015   : > { %27655 = vrcp.f32 %v14068_v38 }
0x1018   : > { %v14074_v49 = vpop.xlane.xlu1 %14073 }
0x1019   : > { %27657 = vrcp.f32 %v14074_v49 }
0x101c   : > { %v14080_v43 = vpop.xlane.xlu1 %14079 }
0x101d   : > { %27659 = vrcp.f32 %v14080_v43 }
0x1020   : > { %v15187_v24 = vpop.permute.xlu1 %15186  ;;  %v14086_v21 = vpop.xlane.xlu0 %14085 }
0x1021   : > { %27661 = vrcp.f32 %v14086_v21 }
0x1022   : > { %v27656_v13 = vpop.eup %27655 }
0x1023   : > { %v14107_v52 = vmul.f32 %v27656_v13, %v30720_v57 }
0x1024   : > { %v15553_v29 = vpop.permute.xlu1 %15552  ;;  %v15263_v61 = vpop.permute.xlu0 %15262 }
0x1025   : > { %26659 = vmatmul.mubr.msk.f32.vlgmr.msra.gmra.mxu0 %vm2568_vm3, %v14107_v52  ;;  %26692 = vmatpush3.msra.mxu1 %v15263_v61 }
0x1026   : > { %v27658_v9 = vpop.eup %27657  ;;  %26667 = vmatpush3.msra.mxu0 %v30772_v3  ;;  %26694 = vmatmul.mubr.msk.f32.vlgmr.msra.gmra.mxu1 %vm2568_vm3, %v14121_v1 }
0x1027   : > { %v14111_v59 = vmul.f32 %v27658_v9, %v30732_v44  ;;  %26722 = vmatprep.subr.mxu1 %v32697_v22  ;;  %26668 = vmatprep.mubr.msk.f32.mxu0 %vm27872_vm1, %v32697_v22 }
0x1028   : > { %26723 = vmatpush3.xpose.msk.msra.mxu1 %vm1351_vm2, %v15553_v29  ;;  %v15631_v57 = vpop.permute.xlu1 %15630  ;;  %26676 = vmatprep.subr.mxu0 %v32697_v22  ;;  %v15551_v63 = vpop.permute.xlu0 %15550 }
0x1029   : > { %26669 = vmatmul.mubr.msk.f32.vlgmr.msra.gmra.mxu0 %vm2568_vm3, %v14111_v59  ;;  %26724 = vmatprep.mubr.msk.f32.mxu1 %vm27872_vm1, %v32697_v22 }
0x102a   : > { %v27660_v3 = vpop.eup %27659  ;;  %26677 = vmatpush3.msra.mxu0 %v30779_v23  ;;  %26727 = vmatprep.subr.mxu1 %v32697_v22  ;;  %v1310_v23 = vld [vmem:[%s32558_s10 + $0x10] sm:$0xff] }
0x102b   : > { %v14115_v44 = vmul.f32 %v27660_v3, %v30745_v48  ;;  %26725 = vmatmul.mubr.msk.f32.vlgmr.msra.gmra.mxu1 %vm1351_vm2, %v15551_v63  ;;  %26678 = vmatprep.mubr.msk.f32.mxu0 %vm27872_vm1, %v32697_v22 }
0x102c   : > { %26728 = vmatpush3.xpose.msk.msra.mxu1 %vm1351_vm2, %v15631_v57  ;;  %v15709_v46 = vpop.permute.xlu1 %15708  ;;  %26686 = vmatprep.subr.mxu0 %v32697_v22  ;;  %v15629_v5 = vpop.permute.xlu0 %15628 }
0x102d   : > { %26679 = vmatmul.mubr.msk.f32.vlgmr.msra.gmra.mxu0 %vm2568_vm3, %v14115_v44  ;;  %26729 = vmatprep.mubr.msk.f32.mxu1 %vm27872_vm1, %v32697_v22 }
0x102e   : > { %v27662_v45 = vpop.eup %27661  ;;  %26687 = vmatpush3.msra.mxu0 %v15187_v24  ;;  %26732 = vmatprep.subr.mxu1 %v32697_v22 }
0x102f   : > { %v14119_v48 = vmul.f32 %v27662_v45, %v30756_v39  ;;  %26730 = vmatmul.mubr.msk.f32.vlgmr.msra.gmra.mxu1 %vm1351_vm2, %v15629_v5  ;;  %26688 = vmatprep.mubr.msk.f32.mxu0 %vm27872_vm1, %v32697_v22 }
0x1030   : > { %26733 = vmatpush3.xpose.msk.msra.mxu1 %vm1351_vm2, %v15709_v46  ;;  %v15787_v6 = vpop.permute.xlu1 %15786  ;;  %v15707_v25 = vpop.permute.xlu0 %15706  ;;  %26734 = vmatprep.mubr.msk.f32.mxu1 %vm27872_vm1, %v32697_v22 }
0x1031   : > { %26689 = vmatmul.mubr.msk.f32.vlgmr.msra.gmra.mxu0 %vm2568_vm3, %v14119_v48  ;;  %26737 = vmatprep.subr.mxu1 %v32697_v22 }
0x1032   : > { %26696 = vmatprep.subr.msk.mxu0 %vm3961_vm4, %v1310_v23 }
0x1033   : > { %26735 = vmatmul.mubr.msk.f32.vlgmr.msra.gmra.mxu1 %vm1351_vm2, %v15707_v25  ;;  %26697 = vmatpush3.msk.msra.mxu0 %vm3961_vm4, %v1310_v23 }
0x1034   : > { %26738 = vmatpush3.xpose.msk.msra.mxu1 %vm1351_vm2, %v15787_v6  ;;  %v15865_v39 = vpop.permute.xlu1 %15864  ;;  %v15785_v47 = vpop.permute.xlu0 %15784  ;;  %26739 = vmatprep.mubr.msk.f32.mxu1 %vm27872_vm1, %v32697_v22 }
0x1035   : > { %26742 = vmatprep.subr.mxu1 %v32697_v22  ;;  %26762 = vmatprep.subr.mxu0 %v32697_v22 }
0x1037   : > { %26740 = vmatmul.mubr.msk.f32.vlgmr.msra.gmra.mxu1 %vm1351_vm2, %v15785_v47 }
0x1038   : > { %26743 = vmatpush3.xpose.msk.msra.mxu1 %vm1351_vm2, %v15865_v39  ;;  %v15943_v17 = vpop.permute.xlu1 %15942  ;;  %v15863_v2 = vpop.permute.xlu0 %15862  ;;  %26744 = vmatprep.mubr.msk.f32.mxu1 %vm27872_vm1, %v32697_v22 }
0x1039   : > { %26747 = vmatprep.subr.mxu1 %v32697_v22 }
0x103b   : > { %26745 = vmatmul.mubr.msk.f32.vlgmr.msra.gmra.mxu1 %vm1351_vm2, %v15863_v2 }
0x103c   : > { %26748 = vmatpush3.xpose.msk.msra.mxu1 %vm1351_vm2, %v15943_v17  ;;  %v15941_v38 = vpop.permute.xlu0 %15940  ;;  %26749 = vmatprep.mubr.msk.f32.mxu1 %vm27872_vm1, %v32697_v22  ;;  %v16021_v49 = vpop.permute.xlu1 %16020 }
0x103d   : > { %v14270_v43 = vpop.f32.mrf.mxu1  ;;  %26752 = vmatprep.subr.mxu1 %v32697_v22 }
0x103f   : > { %v26625_v24 = vpop.f32.mrf.mxu1  ;;  %26750 = vmatmul.mubr.msk.f32.vlgmr.msra.gmra.mxu1 %vm1351_vm2, %v15941_v38 }
0x1040   : > { %26753 = vmatpush3.xpose.msk.msra.mxu1 %vm1351_vm2, %v16021_v49  ;;  %v16019_v21 = vpop.permute.xlu0 %16018  ;;  %26754 = vmatprep.mubr.msk.f32.mxu1 %vm27872_vm1, %v32697_v22  ;;  %v16099_v30 = vpop.permute.xlu1 %16098 }
0x1041   : > { %26757 = vmatprep.subr.mxu1 %v32697_v22 }
0x1043   : > { %26755 = vmatmul.mubr.msk.f32.vlgmr.msra.gmra.mxu1 %vm1351_vm2, %v16019_v21 }
0x1044   : > { %26758 = vmatpush3.xpose.msk.msra.mxu1 %vm1351_vm2, %v16099_v30  ;;  %v16097_v13 = vpop.permute.xlu0 %16096  ;;  %26759 = vmatprep.mubr.msk.f32.mxu1 %vm27872_vm1, %v32697_v22  ;;  %v14422_v52 = vpop.f32.mrf.mxu1 }
0x1045   : > { %26767 = vmatprep.subr.mxu1 %v32697_v22  ;;  %v16177_v61 = vpop.permute.xlu1 %16176 }
0x1046   : > { %v26635_v35 = vpop.f32.mrf.mxu1 }
0x1047   : > { %26760 = vmatmul.mubr.msk.f32.vlgmr.msra.gmra.mxu1 %vm1351_vm2, %v16097_v13 }
0x1048   : > { %v16255_v1 = vpop.permute.xlu0 %16254  ;;  %26769 = vmatprep.mubr.msk.f32.mxu1 %vm27872_vm1, %v32697_v22 }
0x1049   : > { %v14194_v29 = vpop.f32.mrf.mxu0  ;;  %26768 = vmatpush3.xpose.msk.msra.mxu1 %vm1351_vm2, %v16255_v1 }
0x104a   : > { %26698 = vmatprep.mubr.msk.f32.mxu0 %vm1351_vm2, %v14194_v29  ;;  %26777 = vmatprep.subr.mxu1 %v32697_v22 }
0x104b   : > { %v26620_v9 = vpop.f32.mrf.mxu0  ;;  %26699 = vmatmul.mubr.msk.f32.vlgmr.msra.gmra.mxu0 %vm1351_vm2, %v14270_v43 }
0x104c   : > { %26763 = vmatpush3.xpose.msk.msra.mxu0 %vm1351_vm2, %v16177_v61  ;;  %v16253_v59 = vpop.permute.xlu0 %16252  ;;  %v14574_v57 = vpop.f32.mrf.mxu1 }
0x104d   : > { %v14346_v63 = vpop.f32.mrf.mxu0  ;;  %26770 = vmatmul.mubr.msk.f32.vlgmr.msra.gmra.mxu1 %vm1351_vm2, %v16253_v59  ;;  %26772 = vmatprep.subr.mxu0 %v32697_v22 }
0x104e   : > { %26701 = vmatprep.mubr.msk.f32.mxu0 %vm1351_vm2, %v14346_v63  ;;  %26779 = vmatprep.mubr.msk.f32.mxu1 %vm27872_vm1, %v32697_v22  ;;  %v26645_v3 = vpop.f32.mrf.mxu1 }
0x104f   : > { %v26630_v44 = vpop.f32.mrf.mxu0  ;;  %26702 = vmatmul.mubr.msk.f32.gmra.mxu0 %vm1351_vm2, %v14422_v52  ;;  %v16175_v52 = vpop.permute.xlu1 %16174 }
0x1050   : > { %v16411_v46 = vpop.permute.xlu0 %16410 }
0x1051   : > { %v14498_v5 = vpop.f32.mrf.mxu0  ;;  %26778 = vmatpush3.xpose.msk.msra.mxu1 %vm1351_vm2, %v16411_v46 }
0x1052   : > { %26704 = vmatprep.mubr.msk.f32.mxu0 %vm1351_vm2, %v14498_v5  ;;  %26787 = vmatprep.subr.mxu1 %v32697_v22 }
0x1053   : > { %v26640_v45 = vpop.f32.mrf.mxu0  ;;  %26705 = vmatmul.mubr.msk.f32.gmra.mxu0 %vm1351_vm2, %v14574_v57  ;;  %v16333_v35 = vpop.permute.xlu1 %16332 }
0x1054   : > { %v16409_v48 = vpop.permute.xlu0 %16408  ;;  %v14726_v23 = vpop.f32.mrf.mxu1 }
0x1055   : > { %v14650_v6 = vpop.f32.mrf.mxu0  ;;  %26780 = vmatmul.mubr.msk.f32.vlgmr.msra.gmra.mxu1 %vm1351_vm2, %v16409_v48 }
0x1056   : > { %26707 = vmatprep.mubr.msk.f32.mxu0 %vm1351_vm2, %v14650_v6  ;;  %26789 = vmatprep.mubr.msk.f32.mxu1 %vm27872_vm1, %v32697_v22  ;;  %v26655_v25 = vpop.f32.mrf.mxu1 }
0x1057   : > { %v26650_v39 = vpop.f32.mrf.mxu0  ;;  %26708 = vmatmul.mubr.msk.f32.gmra.mxu0 %vm1351_vm2, %v14726_v23  ;;  %v16331_v57 = vpop.permute.xlu1 %16330 }
0x1058   : > { %v16567_v47 = vpop.permute.xlu0 %16566  ;;  %v14878_v17 = vpop.f32.mrf.mxu1 }
0x1059   : > { %26788 = vmatpush3.xpose.msk.msra.mxu1 %vm1351_vm2, %v16567_v47 }
0x105a   : > { %26797 = vmatprep.subr.mxu1 %v32697_v22  ;;  %v26665_v2 = vpop.f32.mrf.mxu1 }
0x105b   : > { %v16489_v23 = vpop.permute.xlu1 %16488 }
0x105c   : > { %v16565_v38 = vpop.permute.xlu0 %16564 }
0x105d   : > { %26790 = vmatmul.mubr.msk.f32.vlgmr.msra.gmra.mxu1 %vm1351_vm2, %v16565_v38 }
0x105e   : > { %26799 = vmatprep.mubr.msk.f32.mxu1 %vm27872_vm1, %v32697_v22 }
0x1060   : > { %v16723_v49 = vpop.permute.xlu0 %16722  ;;  %v15030_v43 = vpop.f32.mrf.mxu1 }
0x1061   : > { %26798 = vmatpush3.xpose.msk.msra.mxu1 %vm1351_vm2, %v16723_v49  ;;  %v16487_v49 = vpop.permute.xlu1 %16486 }
0x1062   : > { %26807 = vmatprep.subr.mxu1 %v32697_v22  ;;  %v26675_v24 = vpop.f32.mrf.mxu1 }
0x1064   : > { %v16721_v21 = vpop.permute.xlu0 %16720 }
0x1065   : > { %26800 = vmatmul.mubr.msk.f32.vlgmr.msra.gmra.mxu1 %vm1351_vm2, %v16721_v21 }
0x1066   : > { %26809 = vmatprep.mubr.msk.f32.mxu1 %vm27872_vm1, %v32697_v22 }
0x1068   : > { %v15182_v30 = vpop.f32.mrf.mxu1 }
0x106a   : > { %v26685_v13 = vpop.f32.mrf.mxu1 }
0x106b   : > { %v16645_v13 = vpop.permute.xlu1 %16644 }
0x10e5   : > { %v14802_v1 = vpop.f32.mrf.mxu0 }
0x10e6   : > { %v15334_v29 = vpop.f32.mrf.mxu1  ;;  %26710 = vmatprep.mubr.msk.f32.mxu0 %vm1351_vm2, %v14802_v1 }
0x10e7   : > { %v26660_v61 = vpop.f32.mrf.mxu0  ;;  %26711 = vmatmul.mubr.msk.f32.gmra.mxu0 %vm1351_vm2, %v14878_v17 }
0x10e8   : > { %v26695_v9 = vpop.f32.mrf.mxu1 }
0x10e9   : > { %v14954_v59 = vpop.f32.mrf.mxu0  ;;  %v16643_v9 = vpop.permute.xlu1 %16642 }
0x10ea   : > { %26713 = vmatprep.mubr.msk.f32.mxu0 %vm1351_vm2, %v14954_v59 }
0x10eb   : > { %v30957_v63 = vpop.f32.mrf.mxu1  ;;  %v26670_v3 = vpop.f32.mrf.mxu0  ;;  %26714 = vmatmul.mubr.msk.f32.gmra.mxu0 %vm1351_vm2, %v15030_v43 }
0x10ec   : > { %v16798_v44 = vsel %vm2568_vm3, %v30957_v63, -inf }
0x10ed   : > { %16799 = vmax.xlane.f32.xlu1 %v16798_v44  ;;  %v26726_v46 = vpop.f32.mrf.mxu1  ;;  %v15106_v5 = vpop.f32.mrf.mxu0 }
0x10ee   : > { %26716 = vmatprep.mubr.msk.f32.mxu0 %vm1351_vm2, %v15106_v5 }
0x10ef   : > { %v30963_v45 = vpop.f32.mrf.mxu1  ;;  %v26680_v48 = vpop.f32.mrf.mxu0  ;;  %26717 = vmatmul.mubr.msk.f32.gmra.mxu0 %vm1351_vm2, %v15182_v30 }
0x10f0   : > { %v16801_v6 = vsel %vm2568_vm3, %v30963_v45, -inf }
0x10f1   : > { %16802 = vmax.xlane.f32.xlu0 %v16801_v6  ;;  %v26731_v25 = vpop.f32.mrf.mxu1  ;;  %v15258_v39 = vpop.f32.mrf.mxu0 }
0x10f2   : > { %26719 = vmatprep.mubr.msk.f32.mxu0 %vm1351_vm2, %v15258_v39 }
0x10f3   : > { %v30969_v47 = vpop.f32.mrf.mxu1  ;;  %v26690_v17 = vpop.f32.mrf.mxu0  ;;  %26720 = vmatmul.mubr.msk.f32.gmra.mxu0 %vm1351_vm2, %v15334_v29 }
0x10f4   : > { %v16804_v2 = vsel %vm2568_vm3, %v30969_v47, -inf  ;;  %26764 = vmatprep.mubr.msk.f32.mxu0 %vm27872_vm1, %v32697_v22 }
0x10f5   : > { %16805 = vmax.xlane.f32.xlu0 %v16804_v2  ;;  %v26736_v38 = vpop.f32.mrf.mxu1 }
0x10f7   : > { %v30976_v43 = vpop.f32.mrf.mxu1  ;;  %26765 = vmatmul.mubr.msk.f32.vlgmr.msra.gmra.mxu0 %vm1351_vm2, %v16175_v52 }
0x10f8   : > { %26773 = vmatpush3.xpose.msk.msra.mxu0 %vm1351_vm2, %v16333_v35  ;;  %v16807_v24 = vsel %vm2568_vm3, %v30976_v43, -inf  ;;  %26774 = vmatprep.mubr.msk.f32.mxu0 %vm27872_vm1, %v32697_v22 }
0x10f9   : > { %16808 = vmax.xlane.f32.xlu1 %v16807_v24  ;;  %v26741_v21 = vpop.f32.mrf.mxu1  ;;  %26782 = vmatprep.subr.mxu0 %v32697_v22 }
0x10fb   : > { %v30985_v30 = vpop.f32.mrf.mxu1  ;;  %26775 = vmatmul.mubr.msk.f32.vlgmr.msra.gmra.mxu0 %vm1351_vm2, %v16331_v57 }
0x10fc   : > { %26783 = vmatpush3.xpose.msk.msra.mxu0 %vm1351_vm2, %v16489_v23  ;;  %v16810_v52 = vsel %vm2568_vm3, %v30985_v30, -inf  ;;  %26784 = vmatprep.mubr.msk.f32.mxu0 %vm27872_vm1, %v32697_v22  ;;  %v32902_v23 = vld [vmem:[#allocation77_spill] sm:$0xff] }
0x10fd   : > { %16811 = vmax.xlane.f32.xlu0 %v16810_v52  ;;  %v26746_v35 = vpop.f32.mrf.mxu1  ;;  %26792 = vmatprep.subr.mxu0 %v32697_v22  ;;  %v32908_v52 = vld [vmem:[#allocation48_spill] sm:$0xff] }
0x10ff   : > { %v30994_v1 = vpop.f32.mrf.mxu1  ;;  %26785 = vmatmul.mubr.msk.f32.vlgmr.msra.gmra.mxu0 %vm1351_vm2, %v16487_v49  ;;  %v32905_v49 = vld [vmem:[#allocation42_spill] sm:$0xff] }
0x1100   : > { %26793 = vmatpush3.xpose.msk.msra.mxu0 %vm1351_vm2, %v16645_v13  ;;  %v16813_v29 = vsel %vm2568_vm3, %v30994_v1, -inf  ;;  %26794 = vmatprep.mubr.msk.f32.mxu0 %vm27872_vm1, %v32697_v22 }
0x1101   : > { %16814 = vmax.xlane.f32.xlu1 %v16813_v29  ;;  %v26751_v61 = vpop.f32.mrf.mxu1  ;;  %26802 = vmatprep.subr.mxu0 %v32697_v22 }
0x1103   : > { %v31003_v59 = vpop.f32.mrf.mxu1  ;;  %26795 = vmatmul.mubr.msk.f32.vlgmr.msra.gmra.mxu0 %vm1351_vm2, %v16643_v9 }
0x1104   : > { %v16816_v57 = vsel %vm2568_vm3, %v31003_v59, -inf  ;;  %26804 = vmatprep.mubr.msk.f32.mxu0 %vm27872_vm1, %v32697_v22 }
0x1105   : > { %16817 = vmax.xlane.f32.xlu0 %v16816_v57  ;;  %v26756_v3 = vpop.f32.mrf.mxu1 }
0x1107   : > { %v16170_v44 = vpop.f32.mrf.mxu1 }
0x1108   : > { %v16819_v46 = vsel %vm2568_vm3, %v16170_v44, -inf }
0x1109   : > { %16820 = vmax.xlane.f32.xlu1 %v16819_v46  ;;  %v26761_v5 = vpop.f32.mrf.mxu1  ;;  %v32911_v46 = vld [vmem:[#allocation31_spill] sm:$0xff] }
0x110b   : > { %v26700_v48 = vpop.f32.mrf.mxu0 }
0x110c   : > { %v31012_v6 = vadd.f32 %v26700_v48, %v32902_v23 }
0x110d   : > { %v31014_v25 = vpop.f32.mrf.mxu0  ;;  %v16326_v39 = vpop.f32.mrf.mxu1 }
0x110e   : > { %32903 = vst [vmem:[#allocation85_spill] sm:$0xff] %v31012_v6  ;;  %32904 = vst [vmem:[#allocation77_spill] sm:$0xff] %v31014_v25  ;;  %v16825_v17 = vsel %vm2568_vm3, %v16326_v39, -inf }
0x110f   : > { %v26703_v2 = vpop.f32.mrf.mxu0  ;;  %16826 = vmax.xlane.f32.xlu1 %v16825_v17  ;;  %v26771_v38 = vpop.f32.mrf.mxu1 }
0x1110   : > { %v31018_v24 = vadd.f32 %v26703_v2, %v32905_v49 }
0x1111   : > { %v31020_v21 = vpop.f32.mrf.mxu0 }
0x1112   : > { %32906 = vst [vmem:[#allocation42_spill] sm:$0xff] %v31018_v24  ;;  %32907 = vst [vmem:[#allocation86_spill] sm:$0xff] %v31020_v21 }
0x1113   : > { %v26706_v13 = vpop.f32.mrf.mxu0 }
0x1114   : > { %v31023_v35 = vadd.f32 %v26706_v13, %v32908_v52 }
0x1115   : > { %v31025_v29 = vpop.f32.mrf.mxu0  ;;  %v16482_v61 = vpop.f32.mrf.mxu1 }
0x1116   : > { %32909 = vst [vmem:[#allocation48_spill] sm:$0xff] %v31023_v35  ;;  %32910 = vst [vmem:[#allocation87_spill] sm:$0xff] %v31025_v29  ;;  %v16831_v9 = vsel %vm2568_vm3, %v16482_v61, -inf }
0x1117   : > { %v26709_v57 = vpop.f32.mrf.mxu0  ;;  %16832 = vmax.xlane.f32.xlu1 %v16831_v9  ;;  %v26781_v3 = vpop.f32.mrf.mxu1 }
0x1118   : > { %v31029_v5 = vadd.f32 %v26709_v57, %v32911_v46 }
0x111a   : > { %32912 = vst [vmem:[#allocation31_spill] sm:$0xff] %v31029_v5 }
0x111d   : > { %v16638_v48 = vpop.f32.mrf.mxu1 }
0x111e   : > { %v16837_v23 = vsel %vm2568_vm3, %v16638_v48, -inf }
0x111f   : > { %16838 = vmax.xlane.f32.xlu1 %v16837_v23  ;;  %v26791_v17 = vpop.f32.mrf.mxu1 }
0x1125   : > { %v31032_v2 = vpop.f32.mrf.mxu1 }
0x1126   : > { %v16843_v38 = vsel %vm2568_vm3, %v31032_v2, -inf }
0x1127   : > { %16844 = vmax.xlane.f32.xlu1 %v16843_v38  ;;  %v26801_v49 = vpop.f32.mrf.mxu1 }
0x1176   : > { %v16800_v13 = vpop.xlane.xlu1 %16799 }
0x1177   : > { %v16846_v52 = vsub.f32 %v30957_v63, %v16800_v13 }
0x1179   : > { %v16862_v9 = vmul.f32 1.442695, %v16846_v52 }
0x117a   : > { %v16803_v3 = vpop.xlane.xlu0 %16802 }
0x117b   : > { %27663 = vpow2.f32 %v16862_v9  ;;  %v16847_v57 = vsub.f32 %v30963_v45, %v16803_v3 }
0x117d   : > { %v16864_v46 = vmul.f32 1.442695, %v16847_v57 }
0x117f   : > { %27665 = vpow2.f32 %v16864_v46 }
0x1182   : > { %v16809_v5 = vpop.xlane.xlu1 %16808 }
0x1183   : > { %v16849_v23 = vsub.f32 %v30976_v43, %v16809_v5 }
0x1185   : > { %v16868_v17 = vmul.f32 1.442695, %v16849_v23 }
0x1187   : > { %27667 = vpow2.f32 %v16868_v17 }
0x1188   : > { %v31039_v35 = vpop.eup %27663 }
0x1189   : > { %v16894_v38 = vsel %vm2568_vm3, %v31039_v35, 0.0 }
0x118a   : > { %v16815_v49 = vpop.xlane.xlu1 %16814  ;;  %16895 = vadd.xlane.f32.xlu0 %v16894_v38 }
0x118b   : > { %v16851_v63 = vsub.f32 %v30994_v1, %v16815_v49 }
0x118c   : > { %v31044_v13 = vpop.eup %27665 }
0x118d   : > { %v16872_v52 = vmul.f32 1.442695, %v16851_v63  ;;  %v16897_v45 = vsel %vm2568_vm3, %v31044_v13, 0.0 }
0x118e   : > { %16898 = vadd.xlane.f32.xlu1 %v16897_v45  ;;  %v31058_v45 = vpop.f32.mrf.mxu0 }
0x118f   : > { %27669 = vpow2.f32 %v16872_v52  ;;  %32913 = vst [vmem:[#allocation88_spill] sm:$0xff] %v31058_v45 }
0x1192   : > { %v16821_v43 = vpop.xlane.xlu1 %16820 }
0x1193   : > { %v16853_v5 = vsub.f32 %v16170_v44, %v16821_v43 }
0x1194   : > { %v31048_v9 = vpop.eup %27667 }
0x1195   : > { %v16876_v3 = vmul.f32 1.442695, %v16853_v5  ;;  %v16903_v57 = vsel %vm2568_vm3, %v31048_v9, 0.0  ;;  %v32914_v5 = vld [vmem:[#allocation61_spill] sm:$0xff] }
0x1196   : > { %16904 = vadd.xlane.f32.xlu1 %v16903_v57 }
0x1197   : > { %27671 = vpow2.f32 %v16876_v3 }
0x1198   : > { %v16827_v46 = vpop.xlane.xlu1 %16826 }
0x1199   : > { %v16855_v1 = vsub.f32 %v16326_v39, %v16827_v46 }
0x119b   : > { %v16880_v23 = vmul.f32 1.442695, %v16855_v1 }
0x119c   : > { %v31052_v17 = vpop.eup %27669 }
0x119d   : > { %27673 = vpow2.f32 %v16880_v23  ;;  %v16909_v38 = vsel %vm2568_vm3, %v31052_v17, 0.0 }
0x119e   : > { %16910 = vadd.xlane.f32.xlu1 %v16909_v38 }
0x11a0   : > { %v16833_v49 = vpop.xlane.xlu1 %16832 }
0x11a1   : > { %v16857_v44 = vsub.f32 %v16482_v61, %v16833_v49 }
0x11a3   : > { %v16884_v63 = vmul.f32 1.442695, %v16857_v44  ;;  %v32917_v44 = vld [vmem:[#allocation22_spill] sm:$0xff] }
0x11a4   : > { %v31056_v52 = vpop.eup %27671 }
0x11a5   : > { %27675 = vpow2.f32 %v16884_v63  ;;  %v16915_v43 = vsel %vm2568_vm3, %v31056_v52, 0.0 }
0x11a6   : > { %16916 = vadd.xlane.f32.xlu1 %v16915_v43  ;;  %v16806_v43 = vpop.xlane.xlu0 %16805 }
0x11a7   : > { %v26712_v39 = vpop.f32.mrf.mxu0 }
0x11a8   : > { %v31063_v3 = vadd.f32 %v26712_v39, %v32914_v5  ;;  %v16839_v57 = vpop.xlane.xlu1 %16838  ;;  %v32920_v5 = vld [vmem:[#allocation24_spill] sm:$0xff] }
0x11a9   : > { %v16859_v46 = vsub.f32 %v16638_v48, %v16839_v57  ;;  %v31065_v1 = vpop.f32.mrf.mxu0  ;;  %v16848_v48 = vsub.f32 %v30969_v47, %v16806_v43 }
0x11aa   : > { %32915 = vst [vmem:[#allocation61_spill] sm:$0xff] %v31063_v3  ;;  %32916 = vst [vmem:[#allocation89_spill] sm:$0xff] %v31065_v1  ;;  %v31067_v23 = vpop.eup %27673  ;;  %v16812_v1 = vpop.xlane.xlu0 %16811 }
0x11ab   : > { %v16888_v61 = vmul.f32 1.442695, %v16859_v46  ;;  %v26715_v38 = vpop.f32.mrf.mxu0  ;;  %v16921_v49 = vsel %vm2568_vm3, %v31067_v23, 0.0 }
0x11ac   : > { %v31072_v63 = vadd.f32 %v26715_v38, %v32917_v44  ;;  %16922 = vadd.xlane.f32.xlu1 %v16921_v49  ;;  %v16866_v49 = vmul.f32 1.442695, %v16848_v48  ;;  %v32923_v44 = vld [vmem:[#allocation26_spill] sm:$0xff] }
0x11ad   : > { %27677 = vpow2.f32 %v16888_v61  ;;  %v31074_v45 = vpop.f32.mrf.mxu0  ;;  %v16850_v61 = vsub.f32 %v30985_v30, %v16812_v1 }
0x11ae   : > { %32918 = vst [vmem:[#allocation22_spill] sm:$0xff] %v31072_v63  ;;  %32919 = vst [vmem:[#allocation90_spill] sm:$0xff] %v31074_v45  ;;  %v16818_v47 = vpop.xlane.xlu0 %16817  ;;  %27679 = vpow2.f32 %v16866_v49 }
0x11af   : > { %v26718_v39 = vpop.f32.mrf.mxu0 }
0x11b0   : > { %v31078_v57 = vadd.f32 %v26718_v39, %v32920_v5  ;;  %v16870_v5 = vmul.f32 1.442695, %v16850_v61 }
0x11b1   : > { %v31080_v46 = vpop.f32.mrf.mxu0 }
0x11b2   : > { %32921 = vst [vmem:[#allocation24_spill] sm:$0xff] %v31078_v57  ;;  %32922 = vst [vmem:[#allocation91_spill] sm:$0xff] %v31080_v46  ;;  %v31082_v3 = vpop.eup %27675  ;;  %v16852_v57 = vsub.f32 %v31003_v59, %v16818_v47  ;;  %27681 = vpow2.f32 %v16870_v5 }
0x11b3   : > { %v26721_v29 = vpop.f32.mrf.mxu0  ;;  %v16927_v38 = vsel %vm2568_vm3, %v31082_v3, 0.0 }
0x11b4   : > { %v31088_v63 = vadd.f32 %v26721_v29, %v32923_v44  ;;  %16928 = vadd.xlane.f32.xlu1 %v16927_v38  ;;  %v16874_v1 = vmul.f32 1.442695, %v16852_v57 }
0x11b5   : > { %v31090_v43 = vpop.f32.mrf.mxu0 }
0x11b6   : > { %32924 = vst [vmem:[#allocation26_spill] sm:$0xff] %v31088_v63  ;;  %32925 = vst [vmem:[#allocation92_spill] sm:$0xff] %v31090_v43  ;;  %27683 = vpow2.f32 %v16874_v1  ;;  %v16845_v63 = vpop.xlane.xlu1 %16844 }
0x11b7   : > { %v31092_v39 = vpop.f32.mrf.mxu0 }
0x11b8   : > { %v16822_v46 = vsel %vm2568_vm3, %v31092_v39, -inf }
0x11b9   : > { %v26766_v45 = vpop.f32.mrf.mxu0  ;;  %16823 = vmax.xlane.f32.xlu0 %v16822_v46 }
0x11ba   : > { %v31097_v48 = vpop.eup %27677 }
0x11bb   : > { %v31099_v30 = vpop.f32.mrf.mxu0  ;;  %v16933_v29 = vsel %vm2568_vm3, %v31097_v48, 0.0  ;;  %v31113_v57 = vpop.eup %27679 }
0x11bc   : > { %16934 = vadd.xlane.f32.xlu1 %v16933_v29  ;;  %v16828_v38 = vsel %vm2568_vm3, %v31099_v30, -inf  ;;  %v16900_v5 = vsel %vm2568_vm3, %v31113_v57, 0.0 }
0x11bd   : > { %v26776_v49 = vpop.f32.mrf.mxu0  ;;  %16829 = vmax.xlane.f32.xlu0 %v16828_v38 }
0x11be   : > { %v32926_v49 = vld [vmem:[#allocation58_spill] sm:$0xff] }
0x11bf   : > { %v31105_v59 = vpop.f32.mrf.mxu0  ;;  %v31117_v29 = vpop.eup %27681 }
0x11c0   : > { %v16834_v45 = vsel %vm2568_vm3, %v31105_v59, -inf  ;;  %v16906_v1 = vsel %vm2568_vm3, %v31117_v29, 0.0 }
0x11c1   : > { %v26786_v46 = vpop.f32.mrf.mxu0  ;;  %16835 = vmax.xlane.f32.xlu0 %v16834_v45 }
0x11c2   : > { %v32927_v46 = vld [vmem:[#allocation60_spill] sm:$0xff] }
0x11c3   : > { %v31109_v61 = vpop.f32.mrf.mxu0  ;;  %v31121_v38 = vpop.eup %27683 }
0x11c4   : > { %v16840_v44 = vsel %vm2568_vm3, %v31109_v61, -inf  ;;  %v16912_v45 = vsel %vm2568_vm3, %v31121_v38, 0.0 }
0x11c5   : > { %v26796_v47 = vpop.f32.mrf.mxu0  ;;  %16841 = vmax.xlane.f32.xlu0 %v16840_v44  ;;  %v32928_v44 = vld [vmem:[#allocation34_spill] sm:$0xff] }
0x11c6   : > { %v32929_v47 = vld [vmem:[#allocation36_spill] sm:$0xff] }
0x11c9   : > { %16901 = vadd.xlane.f32.xlu0 %v16900_v5  ;;  %v32930_v5 = vld [vmem:[#allocation35_spill] sm:$0xff] }
0x11cd   : > { %16907 = vadd.xlane.f32.xlu0 %v16906_v1  ;;  %17050 = vrot.lane.b32.xlu1 %v32926_v49, %s27877_s23  ;;  %v32931_v1 = vld [vmem:[#allocation40_spill] sm:$0xff]  ;;  %v32932_v49 = vld [vmem:[#allocation38_spill] sm:$0xff] }
0x11d1   : > { %16913 = vadd.xlane.f32.xlu0 %v16912_v45  ;;  %17126 = vrot.lane.b32.xlu1 %v32927_v46, %s27877_s23  ;;  %v32933_v45 = vld [vmem:[#allocation47_spill] sm:$0xff]  ;;  %v32934_v46 = vld [vmem:[#allocation46_spill] sm:$0xff] }
0x11d5   : > { %17202 = vrot.lane.b32.xlu1 %v32928_v44, %s27877_s23  ;;  %v16861_v44 = vsub.f32 %v31032_v2, %v16845_v63 }
0x11d7   : > { %v16892_v43 = vmul.f32 1.442695, %v16861_v44 }
0x11d9   : > { %17278 = vrot.lane.b32.xlu1 %v32929_v47, %s27877_s23  ;;  %v32935_v47 = vld [vmem:[#allocation43_spill] sm:$0xff]  ;;  %27685 = vpow2.f32 %v16892_v43 }
0x11dd   : > { %17354 = vrot.lane.b32.xlu1 %v32930_v5, %s27877_s23  ;;  %v32936_v5 = vld [vmem:[#allocation49_spill] sm:$0xff] }
0x11e1   : > { %17430 = vrot.lane.b32.xlu1 %v32931_v1, %s27877_s23  ;;  %v32937_v1 = vld [vmem:[#allocation55_spill] sm:$0xff] }
0x11e5   : > { %17506 = vrot.lane.b32.xlu1 %v32932_v49, %s27877_s23  ;;  %v32938_v49 = vld [vmem:[#allocation53_spill] sm:$0xff] }
0x11e7   : > { %16974 = vrot.lane.b32.xlu0 %v32933_v45, %s27877_s23 }
0x11e9   : > { %17582 = vrot.lane.b32.xlu1 %v32934_v46, %s27877_s23  ;;  %v31154_v46 = vpop.eup %27685 }
0x11ea   : > { %32939 = vst [vmem:[#allocation93_spill] sm:$0xff] %v31154_v46  ;;  %v16939_v2 = vsel %vm2568_vm3, %v31154_v46, 0.0 }
0x11ed   : > { %17658 = vrot.lane.b32.xlu1 %v32935_v47, %s27877_s23 }
0x11f1   : > { %17810 = vrot.lane.b32.xlu1 %v32936_v5, %s27877_s23 }
0x11f5   : > { %17886 = vrot.lane.b32.xlu1 %v32937_v1, %s27877_s23 }
0x11f9   : > { %17962 = vrot.lane.b32.xlu1 %v32938_v49, %s27877_s23 }
0x11fd   : > { %18038 = vrot.lane.b32.xlu1 %v32897_v28, %s27877_s23 }
0x1206   : > { %16940 = vadd.xlane.f32.xlu0 %v16939_v2 }
0x1213   : > { %v16896_v45 = vpop.xlane.xlu0 %16895 }
0x1217   : > { %v16899_v63 = vpop.xlane.xlu1 %16898 }
0x1218   : > { %27687 = vrcp.f32 %v16899_v63 }
0x121f   : > { %v16905_v44 = vpop.xlane.xlu1 %16904 }
0x1220   : > { %27689 = vrcp.f32 %v16905_v44 }
0x1225   : > { %v27688_v6 = vpop.eup %27687 }
0x1226   : > { %v16945_v46 = vmul.f32 %v27688_v6, %v31044_v13 }
0x1227   : > { %v16911_v47 = vpop.xlane.xlu1 %16910 }
0x122f   : > { %v16917_v43 = vpop.xlane.xlu1 %16916 }
0x1235   : > { %v16923_v5 = vpop.xlane.xlu1 %16922 }
0x123d   : > { %v16929_v1 = vpop.xlane.xlu1 %16928 }
0x1242   : > { %v16824_v24 = vpop.xlane.xlu0 %16823 }
0x1243   : > { %v16854_v49 = vsub.f32 %v31092_v39, %v16824_v24 }
0x1245   : > { %v16878_v21 = vmul.f32 1.442695, %v16854_v49  ;;  %v31159_v28 = vpop.xlane.xlu1 %16934 }
0x1246   : > { %v16830_v25 = vpop.xlane.xlu0 %16829 }
0x1247   : > { %27691 = vpow2.f32 %v16878_v21  ;;  %v16856_v2 = vsub.f32 %v31099_v30, %v16830_v25  ;;  %v27690_v25 = vpop.eup %27689 }
0x1248   : > { %27693 = vrcp.f32 %v16911_v47 }
0x1249   : > { %v16882_v63 = vmul.f32 1.442695, %v16856_v2  ;;  %v17051_v14 = vpop.permute.xlu1 %17050 }
0x124a   : > { %v16836_v32 = vpop.xlane.xlu0 %16835  ;;  %26808 = vmatpush3.msra.mxu1 %v17051_v14  ;;  %v16949_v14 = vmul.f32 %v27690_v25, %v31048_v9 }
0x124b   : > { %27695 = vpow2.f32 %v16882_v63  ;;  %v16858_v44 = vsub.f32 %v31105_v59, %v16836_v32  ;;  %26810 = vmatmul.mubr.msk.f32.vlgmr.msra.gmra.mxu1 %vm2568_vm3, %v16945_v46  ;;  %26817 = vmatprep.subr.mxu1 %v32697_v22 }
0x124c   : > { %26819 = vmatprep.mubr.msk.f32.mxu1 %vm27872_vm1, %v32697_v22  ;;  %27697 = vrcp.f32 %v16896_v45 }
0x124d   : > { %v16886_v24 = vmul.f32 1.442695, %v16858_v44  ;;  %v17127_v21 = vpop.permute.xlu1 %17126 }
0x124e   : > { %v16842_v6 = vpop.xlane.xlu0 %16841 }
0x124f   : > { %27699 = vpow2.f32 %v16886_v24  ;;  %v16860_v13 = vsub.f32 %v31109_v61, %v16842_v6 }
0x1250   : > { %27701 = vrcp.f32 %v16917_v43 }
0x1251   : > { %v16890_v39 = vmul.f32 1.442695, %v16860_v13  ;;  %v17203_v32 = vpop.permute.xlu1 %17202 }
0x1252   : > { %v16902_v30 = vpop.xlane.xlu0 %16901  ;;  %26818 = vmatpush3.msra.mxu1 %v17203_v32 }
0x1253   : > { %27703 = vpow2.f32 %v16890_v39  ;;  %26820 = vmatmul.mubr.msk.f32.vlgmr.msra.gmra.mxu1 %vm2568_vm3, %v16949_v14  ;;  %26827 = vmatprep.subr.mxu1 %v32697_v22 }
0x1254   : > { %v31172_v59 = vpop.eup %27691  ;;  %27705 = vrcp.f32 %v16902_v30  ;;  %26829 = vmatprep.mubr.msk.f32.mxu1 %vm27872_vm1, %v32697_v22 }
0x1255   : > { %v17279_v49 = vpop.permute.xlu1 %17278  ;;  %v16918_v9 = vsel %vm2568_vm3, %v31172_v59, 0.0  ;;  %v27694_v61 = vpop.eup %27693 }
0x1256   : > { %v16908_v46 = vpop.xlane.xlu0 %16907  ;;  %16919 = vadd.xlane.f32.xlu0 %v16918_v9  ;;  %v16953_v45 = vmul.f32 %v27694_v61, %v31052_v17 }
0x1257   : > { %27707 = vrcp.f32 %v16908_v46 }
0x1258   : > { %v31178_v47 = vpop.eup %27695  ;;  %27709 = vrcp.f32 %v16923_v5 }
0x1259   : > { %v17355_v43 = vpop.permute.xlu1 %17354  ;;  %v16924_v2 = vsel %vm2568_vm3, %v31178_v47, 0.0  ;;  %v27698_v44 = vpop.eup %27697 }
0x125a   : > { %v16914_v63 = vpop.xlane.xlu0 %16913  ;;  %16925 = vadd.xlane.f32.xlu0 %v16924_v2  ;;  %26828 = vmatpush3.msra.mxu1 %v17355_v43  ;;  %v16943_v6 = vmul.f32 %v27698_v44, %v31039_v35  ;;  %v32942_v44 = vld [vmem:[#allocation56_spill] sm:$0xff] }
0x125b   : > { %27711 = vrcp.f32 %v16914_v63  ;;  %26830 = vmatmul.mubr.msk.f32.vlgmr.msra.gmra.mxu1 %vm2568_vm3, %v16953_v45  ;;  %26837 = vmatprep.subr.mxu1 %v32697_v22 }
0x125c   : > { %v31185_v24 = vpop.eup %27699  ;;  %26839 = vmatprep.mubr.msk.f32.mxu1 %vm27872_vm1, %v32697_v22  ;;  %27713 = vrcp.f32 %v16929_v1 }
0x125d   : > { %v17431_v17 = vpop.permute.xlu1 %17430  ;;  %v16930_v5 = vsel %vm2568_vm3, %v31185_v24, 0.0  ;;  %v27702_v25 = vpop.eup %27701  ;;  %27715 = vrcp.f32 %v31159_v28 }
0x125e   : > { %v16975_v13 = vpop.permute.xlu0 %16974  ;;  %16931 = vadd.xlane.f32.xlu0 %v16930_v5  ;;  %v16957_v32 = vmul.f32 %v27702_v25, %v31056_v52 }
0x125f   : > { %26803 = vmatpush3.msra.mxu0 %v16975_v13 }
0x1260   : > { %v31192_v14 = vpop.eup %27703  ;;  %26805 = vmatmul.mubr.msk.f32.vlgmr.msra.gmra.mxu0 %vm2568_vm3, %v16943_v6  ;;  %26812 = vmatprep.subr.mxu0 %v32697_v22 }
0x1261   : > { %v27706_v39 = vpop.eup %27705  ;;  %26813 = vmatpush3.msra.mxu0 %v17127_v21  ;;  %v17507_v1 = vpop.permute.xlu1 %17506  ;;  %v16936_v30 = vsel %vm2568_vm3, %v31192_v14, 0.0  ;;  %26814 = vmatprep.mubr.msk.f32.mxu0 %vm27872_vm1, %v32697_v22 }
0x1262   : > { %v16947_v35 = vmul.f32 %v27706_v39, %v31113_v57  ;;  %16937 = vadd.xlane.f32.xlu1 %v16936_v30  ;;  %26838 = vmatpush3.msra.mxu1 %v17507_v1 }
0x1263   : > { %26822 = vmatprep.subr.mxu0 %v32697_v22  ;;  %26840 = vmatmul.mubr.msk.f32.vlgmr.msra.gmra.mxu1 %vm2568_vm3, %v16957_v32 }
0x1264   : > { %v27708_v9 = vpop.eup %27707  ;;  %26815 = vmatmul.mubr.msk.f32.vlgmr.msra.gmra.mxu0 %vm2568_vm3, %v16947_v35  ;;  %26847 = vmatprep.subr.mxu1 %v32697_v22 }
0x1265   : > { %v16951_v52 = vmul.f32 %v27708_v9, %v31117_v29  ;;  %26823 = vmatpush3.msra.mxu0 %v17279_v49  ;;  %v17583_v21 = vpop.permute.xlu1 %17582  ;;  %26824 = vmatprep.mubr.msk.f32.mxu0 %vm27872_vm1, %v32697_v22  ;;  %v27710_v57 = vpop.eup %27709  ;;  %v32943_v9 = vld [vmem:[#allocation93_spill] sm:$0xff] }
0x1266   : > { %26832 = vmatprep.subr.mxu0 %v32697_v22  ;;  %26849 = vmatprep.mubr.msk.f32.mxu1 %vm27872_vm1, %v32697_v22  ;;  %v16961_v46 = vmul.f32 %v27710_v57, %v31067_v23 }
0x1268   : > { %v27712_v61 = vpop.eup %27711  ;;  %26825 = vmatmul.mubr.msk.f32.vlgmr.msra.gmra.mxu0 %vm2568_vm3, %v16951_v52 }
0x1269   : > { %v16955_v28 = vmul.f32 %v27712_v61, %v31121_v38  ;;  %26833 = vmatpush3.msra.mxu0 %v17431_v17  ;;  %v17659_v29 = vpop.permute.xlu1 %17658  ;;  %26834 = vmatprep.mubr.msk.f32.mxu0 %vm27872_vm1, %v32697_v22  ;;  %v27714_v49 = vpop.eup %27713 }
0x126a   : > { %26848 = vmatpush3.msra.mxu1 %v17659_v29  ;;  %26842 = vmatprep.subr.mxu0 %v32697_v22  ;;  %v16965_v23 = vmul.f32 %v27714_v49, %v31082_v3  ;;  %v27716_v43 = vpop.eup %27715  ;;  %v32940_v3 = vld [vmem:[#allocation51_spill] sm:$0xff]  ;;  %v27860_v49 = vld [vmem:[%s32558_s10 + $0x10] sm:$0xff] }
0x126b   : > { %26850 = vmatmul.mubr.msk.f32.vlgmr.msra.gmra.mxu1 %vm2568_vm3, %v16961_v46  ;;  %26857 = vmatprep.subr.mxu1 %v32697_v22  ;;  %v16969_v2 = vmul.f32 %v27716_v43, %v31097_v48  ;;  %v32941_v48 = vld [vmem:[#allocation44_spill] sm:$0xff] }
0x126c   : > { %26835 = vmatmul.mubr.msk.f32.vlgmr.msra.gmra.mxu0 %vm2568_vm3, %v16955_v28  ;;  %26859 = vmatprep.mubr.msk.f32.mxu1 %vm27872_vm1, %v32697_v22 }
0x126d   : > { %26843 = vmatpush3.msra.mxu0 %v17583_v21  ;;  %v17811_v38 = vpop.permute.xlu1 %17810  ;;  %26844 = vmatprep.mubr.msk.f32.mxu0 %vm27872_vm1, %v32697_v22 }
0x126e   : > { %26858 = vmatpush3.msra.mxu1 %v17811_v38  ;;  %26852 = vmatprep.subr.mxu0 %v32697_v22 }
0x126f   : > { %26860 = vmatmul.mubr.msk.f32.vlgmr.msra.gmra.mxu1 %vm2568_vm3, %v16965_v23  ;;  %26867 = vmatprep.subr.mxu1 %v32697_v22  ;;  %v18190_v23 = vrot.slane %v27860_v49, 4 }
0x1270   : > { %26869 = vmatprep.mubr.msk.f32.mxu1 %vm27872_vm1, %v32697_v22 }
0x1271   : > { %v31232_v45 = vpop.permute.xlu1 %17886 }
0x1273   : > { %18114 = vrot.lane.b32.xlu1 %v32741_v53, %s27877_s23 }
0x1274   : > { %17734 = vrot.lane.b32.xlu0 %v32940_v3, %s27877_s23 }
0x1275   : > { %v17963_v63 = vpop.permute.xlu1 %17962 }
0x1276   : > { %26868 = vmatpush3.msra.mxu1 %v17963_v63 }
0x1277   : > { %18404 = vrot.lane.b32.xlu1 %v28441_v34, %s27878_s26  ;;  %26870 = vmatmul.mubr.msk.f32.vlgmr.msra.gmra.mxu1 %vm2568_vm3, %v16969_v2 }
0x1278   : > { %18402 = vrot.lane.b32.xlu0 %v28443_v33, %s27878_s26  ;;  %26877 = vmatprep.subr.mxu1 %v32697_v22 }
0x1279   : > { %26879 = vmatprep.mubr.msk.f32.mxu1 %vm27872_vm1, %v32697_v22  ;;  %v18039_v6 = vpop.permute.xlu1 %18038 }
0x127b   : > { %18482 = vrot.lane.b32.xlu1 %v28450_v37, %s27878_s26 }
0x127c   : > { %18480 = vrot.lane.b32.xlu0 %v28458_v41, %s27878_s26 }
0x127f   : > { %18560 = vrot.lane.b32.xlu1 %v28463_v50, %s27878_s26 }
0x1280   : > { %18558 = vrot.lane.b32.xlu0 %v28467_v31, %s27878_s26 }
0x1283   : > { %18638 = vrot.lane.b32.xlu1 %v28476_v60, %s27878_s26 }
0x1284   : > { %18636 = vrot.lane.b32.xlu0 %v28484_v56, %s27878_s26 }
0x1287   : > { %18716 = vrot.lane.b32.xlu1 %v28489_v58, %s27878_s26 }
0x1288   : > { %18714 = vrot.lane.b32.xlu0 %v28500_v15, %s27878_s26 }
0x128b   : > { %18794 = vrot.lane.b32.xlu1 %v28505_v27, %s27878_s26 }
0x128c   : > { %18792 = vrot.lane.b32.xlu0 %v28525_v54, %s27878_s26 }
0x128f   : > { %18872 = vrot.lane.b32.xlu1 %v28539_v12, %s27878_s26  ;;  %v16941_v17 = vpop.xlane.xlu0 %16940 }
0x1290   : > { %18870 = vrot.lane.b32.xlu0 %v28554_v42, %s27878_s26  ;;  %27717 = vrcp.f32 %v16941_v17 }
0x1293   : > { %18950 = vrot.lane.b32.xlu1 %v28568_v8, %s27878_s26 }
0x1294   : > { %18948 = vrot.lane.b32.xlu0 %v28587_v7, %s27878_s26 }
0x1297   : > { %19028 = vrot.lane.b32.xlu1 %v28510_v20, %s27878_s26 }
0x1298   : > { %19106 = vrot.lane.b32.xlu0 %v28601_v4, %s27878_s26 }
0x129b   : > { %19026 = vrot.lane.b32.xlu1 %v28534_v16, %s27878_s26 }
0x129c   : > { %19104 = vrot.lane.b32.xlu0 %v32764_v11, %s27878_s26 }
0x129d   : > { %v27718_v1 = vpop.eup %27717 }
0x129e   : > { %v16973_v52 = vmul.f32 %v27718_v1, %v32943_v9 }
0x129f   : > { %19184 = vrot.lane.b32.xlu1 %v28545_v40, %s27878_s26 }
0x12a0   : > { %19262 = vrot.lane.b32.xlu0 %v32766_v26, %s27878_s26 }
0x12a3   : > { %19182 = vrot.lane.b32.xlu1 %v28563_v10, %s27878_s26 }
0x12a4   : > { %19260 = vrot.lane.b32.xlu0 %v32768_v51, %s27878_s26 }
0x12a7   : > { %19340 = vrot.lane.b32.xlu1 %v32765_v0, %s27878_s26 }
0x12a8   : > { %19418 = vrot.lane.b32.xlu0 %v32811_v18, %s27878_s26 }
0x12ab   : > { %19338 = vrot.lane.b32.xlu1 %v32767_v19, %s27878_s26 }
0x12ac   : > { %19416 = vrot.lane.b32.xlu0 %v32898_v62, %s27878_s26 }
0x12af   : > { %19496 = vrot.lane.b32.xlu1 %v32769_v55, %s27878_s26 }
0x12b0   : > { %19574 = vrot.lane.b32.xlu0 %v32899_v36, %s27878_s26  ;;  %v32955_v36 = vld [vmem:[#allocation77_spill] sm:$0xff] }
0x12b3   : > { %19494 = vrot.lane.b32.xlu1 %v32941_v48, %s27878_s26 }
0x12b4   : > { %19572 = vrot.lane.b32.xlu0 %v32942_v44, %s27878_s26 }
0x12df   : > { %v16920_v5 = vpop.xlane.xlu0 %16919 }
0x12e0   : > { %27719 = vrcp.f32 %v16920_v5 }
0x12e3   : > { %v16926_v25 = vpop.xlane.xlu0 %16925 }
0x12e4   : > { %27721 = vrcp.f32 %v16926_v25 }
0x12e7   : > { %v16932_v13 = vpop.xlane.xlu0 %16931 }
0x12e8   : > { %27723 = vrcp.f32 %v16932_v13 }
0x12eb   : > { %v17735_v39 = vpop.permute.xlu0 %17734  ;;  %v16938_v32 = vpop.xlane.xlu1 %16937 }
0x12ec   : > { %27725 = vrcp.f32 %v16938_v32 }
0x12ed   : > { %v27720_v30 = vpop.eup %27719 }
0x12ee   : > { %v16959_v35 = vmul.f32 %v27720_v30, %v31172_v59 }
0x12ef   : > { %v18403_v21 = vpop.permute.xlu0 %18402  ;;  %v18115_v57 = vpop.permute.xlu1 %18114 }
0x12f0   : > { %26845 = vmatmul.mubr.msk.f32.vlgmr.msra.gmra.mxu0 %vm2568_vm3, %v16959_v35  ;;  %26878 = vmatpush3.msra.mxu1 %v18115_v57 }
0x12f1   : > { %v27722_v61 = vpop.eup %27721  ;;  %26853 = vmatpush3.msra.mxu0 %v17735_v39  ;;  %26880 = vmatmul.mubr.msk.f32.vlgmr.msra.gmra.mxu1 %vm2568_vm3, %v16973_v52 }
0x12f2   : > { %v16963_v46 = vmul.f32 %v27722_v61, %v31178_v47  ;;  %26854 = vmatprep.mubr.msk.f32.mxu0 %vm27872_vm1, %v32697_v22  ;;  %26862 = vmatprep.subr.mxu0 %v32697_v22 }
0x12f3   : > { %v18481_v28 = vpop.permute.xlu0 %18480  ;;  %26908 = vmatprep.subr.mxu1 %v32697_v22  ;;  %v18405_v59 = vpop.permute.xlu1 %18404  ;;  %26910 = vmatprep.mubr.msk.f32.mxu1 %vm27872_vm1, %v32697_v22 }
0x12f4   : > { %26855 = vmatmul.mubr.msk.f32.vlgmr.msra.gmra.mxu0 %vm2568_vm3, %v16963_v46  ;;  %26909 = vmatpush3.xpose.msk.msra.mxu1 %vm1351_vm2, %v18405_v59 }
0x12f5   : > { %v27724_v29 = vpop.eup %27723  ;;  %26863 = vmatpush3.msra.mxu0 %v31232_v45  ;;  %26864 = vmatprep.mubr.msk.f32.mxu0 %vm27872_vm1, %v32697_v22 }
0x12f6   : > { %v16967_v47 = vmul.f32 %v27724_v29, %v31185_v24  ;;  %26872 = vmatprep.subr.mxu0 %v32697_v22  ;;  %26913 = vmatprep.subr.mxu1 %v32697_v22 }
0x12f7   : > { %v18559_v38 = vpop.permute.xlu0 %18558  ;;  %26911 = vmatmul.mubr.msk.f32.vlgmr.msra.gmra.mxu1 %vm1351_vm2, %v18403_v21  ;;  %v18483_v43 = vpop.permute.xlu1 %18482 }
0x12f8   : > { %26865 = vmatmul.mubr.msk.f32.vlgmr.msra.gmra.mxu0 %vm2568_vm3, %v16967_v47  ;;  %26914 = vmatpush3.xpose.msk.msra.mxu1 %vm1351_vm2, %v18483_v43 }
0x12f9   : > { %v27726_v45 = vpop.eup %27725  ;;  %26873 = vmatpush3.msra.mxu0 %v18039_v6  ;;  %26915 = vmatprep.mubr.msk.f32.mxu1 %vm27872_vm1, %v32697_v22 }
0x12fa   : > { %v16971_v24 = vmul.f32 %v27726_v45, %v31192_v14  ;;  %26874 = vmatprep.mubr.msk.f32.mxu0 %vm27872_vm1, %v32697_v22  ;;  %26918 = vmatprep.subr.mxu1 %v32697_v22 }
0x12fb   : > { %v18637_v2 = vpop.permute.xlu0 %18636  ;;  %26916 = vmatmul.mubr.msk.f32.vlgmr.msra.gmra.mxu1 %vm1351_vm2, %v18481_v28  ;;  %v18561_v63 = vpop.permute.xlu1 %18560  ;;  %26882 = vmatprep.subr.msk.mxu0 %vm3961_vm4, %v18190_v23 }
0x12fc   : > { %26875 = vmatmul.mubr.msk.f32.vlgmr.msra.gmra.mxu0 %vm2568_vm3, %v16971_v24  ;;  %26919 = vmatpush3.xpose.msk.msra.mxu1 %vm1351_vm2, %v18561_v63 }
0x12fd   : > { %26920 = vmatprep.mubr.msk.f32.mxu1 %vm27872_vm1, %v32697_v22  ;;  %26923 = vmatprep.subr.mxu1 %v32697_v22 }
0x12fe   : > { %26883 = vmatpush3.msk.msra.mxu0 %vm3961_vm4, %v18190_v23 }
0x12ff   : > { %v18715_v14 = vpop.permute.xlu0 %18714  ;;  %26921 = vmatmul.mubr.msk.f32.vlgmr.msra.gmra.mxu1 %vm1351_vm2, %v18559_v38  ;;  %v18639_v17 = vpop.permute.xlu1 %18638  ;;  %26948 = vmatprep.subr.mxu0 %v32697_v22 }
0x1300   : > { %26924 = vmatpush3.xpose.msk.msra.mxu1 %vm1351_vm2, %v18639_v17  ;;  %26925 = vmatprep.mubr.msk.f32.mxu1 %vm27872_vm1, %v32697_v22 }
0x1301   : > { %26928 = vmatprep.subr.mxu1 %v32697_v22 }
0x1303   : > { %v18793_v5 = vpop.permute.xlu0 %18792  ;;  %26926 = vmatmul.mubr.msk.f32.vlgmr.msra.gmra.mxu1 %vm1351_vm2, %v18637_v2  ;;  %v18717_v25 = vpop.permute.xlu1 %18716 }
0x1304   : > { %26929 = vmatpush3.xpose.msk.msra.mxu1 %vm1351_vm2, %v18717_v25  ;;  %26930 = vmatprep.mubr.msk.f32.mxu1 %vm27872_vm1, %v32697_v22 }
0x1305   : > { %26933 = vmatprep.subr.mxu1 %v32697_v22 }
0x1307   : > { %v18871_v6 = vpop.permute.xlu0 %18870  ;;  %26931 = vmatmul.mubr.msk.f32.vlgmr.msra.gmra.mxu1 %vm1351_vm2, %v18715_v14  ;;  %v18795_v13 = vpop.permute.xlu1 %18794 }
0x1308   : > { %26934 = vmatpush3.xpose.msk.msra.mxu1 %vm1351_vm2, %v18795_v13  ;;  %26935 = vmatprep.mubr.msk.f32.mxu1 %vm27872_vm1, %v32697_v22 }
0x1309   : > { %26938 = vmatprep.subr.mxu1 %v32697_v22 }
0x130b   : > { %v18949_v39 = vpop.permute.xlu0 %18948  ;;  %26936 = vmatmul.mubr.msk.f32.vlgmr.msra.gmra.mxu1 %vm1351_vm2, %v18793_v5  ;;  %v18873_v32 = vpop.permute.xlu1 %18872 }
0x130c   : > { %v17122_v1 = vpop.f32.mrf.mxu1  ;;  %26939 = vmatpush3.xpose.msk.msra.mxu1 %vm1351_vm2, %v18873_v32  ;;  %26940 = vmatprep.mubr.msk.f32.mxu1 %vm27872_vm1, %v32697_v22 }
0x130d   : > { %26943 = vmatprep.subr.mxu1 %v32697_v22 }
0x130e   : > { %v26811_v30 = vpop.f32.mrf.mxu1 }
0x130f   : > { %v19107_v35 = vpop.permute.xlu0 %19106  ;;  %26941 = vmatmul.mubr.msk.f32.vlgmr.msra.gmra.mxu1 %vm1351_vm2, %v18871_v6  ;;  %v18951_v9 = vpop.permute.xlu1 %18950 }
0x1310   : > { %26944 = vmatpush3.xpose.msk.msra.mxu1 %vm1351_vm2, %v18951_v9  ;;  %26945 = vmatprep.mubr.msk.f32.mxu1 %vm27872_vm1, %v32697_v22 }
0x1311   : > { %26953 = vmatprep.subr.mxu1 %v32697_v22 }
0x1313   : > { %v19105_v52 = vpop.permute.xlu0 %19104  ;;  %26946 = vmatmul.mubr.msk.f32.vlgmr.msra.gmra.mxu1 %vm1351_vm2, %v18949_v39  ;;  %v17274_v21 = vpop.f32.mrf.mxu1 }
0x1314   : > { %26954 = vmatpush3.xpose.msk.msra.mxu1 %vm1351_vm2, %v19107_v35  ;;  %26955 = vmatprep.mubr.msk.f32.mxu1 %vm27872_vm1, %v32697_v22  ;;  %v19029_v49 = vpop.permute.xlu1 %19028 }
0x1315   : > { %26963 = vmatprep.subr.mxu1 %v32697_v22  ;;  %v26821_v57 = vpop.f32.mrf.mxu1 }
0x1317   : > { %v19263_v61 = vpop.permute.xlu0 %19262  ;;  %26956 = vmatmul.mubr.msk.f32.vlgmr.msra.gmra.mxu1 %vm1351_vm2, %v19105_v52 }
0x1318   : > { %26964 = vmatpush3.xpose.msk.msra.mxu1 %vm1351_vm2, %v19263_v61  ;;  %26965 = vmatprep.mubr.msk.f32.mxu1 %vm27872_vm1, %v32697_v22  ;;  %v19027_v9 = vpop.permute.xlu1 %19026 }
0x1319   : > { %26973 = vmatprep.subr.mxu1 %v32697_v22 }
0x131b   : > { %v19261_v46 = vpop.permute.xlu0 %19260  ;;  %v17426_v28 = vpop.f32.mrf.mxu1 }
0x131c   : > { %26966 = vmatmul.mubr.msk.f32.vlgmr.msra.gmra.mxu1 %vm1351_vm2, %v19261_v46  ;;  %v19185_v52 = vpop.permute.xlu1 %19184 }
0x131d   : > { %26975 = vmatprep.mubr.msk.f32.mxu1 %vm27872_vm1, %v32697_v22  ;;  %v26831_v59 = vpop.f32.mrf.mxu1 }
0x131f   : > { %v19419_v29 = vpop.permute.xlu0 %19418 }
0x1320   : > { %v17046_v47 = vpop.f32.mrf.mxu0  ;;  %26974 = vmatpush3.xpose.msk.msra.mxu1 %vm1351_vm2, %v19419_v29  ;;  %v19183_v59 = vpop.permute.xlu1 %19182 }
0x1321   : > { %26884 = vmatprep.mubr.msk.f32.mxu0 %vm1351_vm2, %v17046_v47  ;;  %26983 = vmatprep.subr.mxu1 %v32697_v22 }
0x1322   : > { %v26806_v23 = vpop.f32.mrf.mxu0  ;;  %26885 = vmatmul.mubr.msk.f32.vlgmr.msra.gmra.mxu0 %vm1351_vm2, %v17122_v1 }
0x1323   : > { %26949 = vmatpush3.xpose.msk.msra.mxu0 %vm1351_vm2, %v19029_v49  ;;  %v19417_v38 = vpop.permute.xlu0 %19416  ;;  %v17578_v43 = vpop.f32.mrf.mxu1 }
0x1324   : > { %v17198_v45 = vpop.f32.mrf.mxu0  ;;  %26976 = vmatmul.mubr.msk.f32.vlgmr.msra.gmra.mxu1 %vm1351_vm2, %v19417_v38  ;;  %26958 = vmatprep.subr.mxu0 %v32697_v22 }
0x1325   : > { %26887 = vmatprep.mubr.msk.f32.mxu0 %vm1351_vm2, %v17198_v45  ;;  %26985 = vmatprep.mubr.msk.f32.mxu1 %vm27872_vm1, %v32697_v22  ;;  %v26841_v24 = vpop.f32.mrf.mxu1  ;;  %v19341_v45 = vpop.permute.xlu1 %19340 }
0x1326   : > { %v26816_v2 = vpop.f32.mrf.mxu0  ;;  %26888 = vmatmul.mubr.msk.f32.gmra.mxu0 %vm1351_vm2, %v17274_v21 }
0x1327   : > { %v19575_v63 = vpop.permute.xlu0 %19574 }
0x1328   : > { %v17350_v14 = vpop.f32.mrf.mxu0  ;;  %26984 = vmatpush3.xpose.msk.msra.mxu1 %vm1351_vm2, %v19575_v63 }
0x1329   : > { %26890 = vmatprep.mubr.msk.f32.mxu0 %vm1351_vm2, %v17350_v14  ;;  %26993 = vmatprep.subr.mxu1 %v32697_v22 }
0x132a   : > { %v26826_v17 = vpop.f32.mrf.mxu0  ;;  %26891 = vmatmul.mubr.msk.f32.gmra.mxu0 %vm1351_vm2, %v17426_v28 }
0x132b   : > { %v19573_v5 = vpop.permute.xlu0 %19572  ;;  %v17730_v25 = vpop.f32.mrf.mxu1 }
0x132c   : > { %v17502_v6 = vpop.f32.mrf.mxu0  ;;  %26986 = vmatmul.mubr.msk.f32.vlgmr.msra.gmra.mxu1 %vm1351_vm2, %v19573_v5 }
0x132d   : > { %26893 = vmatprep.mubr.msk.f32.mxu0 %vm1351_vm2, %v17502_v6  ;;  %26995 = vmatprep.mubr.msk.f32.mxu1 %vm27872_vm1, %v32697_v22  ;;  %v26851_v13 = vpop.f32.mrf.mxu1  ;;  %v19339_v6 = vpop.permute.xlu1 %19338 }
0x132e   : > { %v26836_v39 = vpop.f32.mrf.mxu0  ;;  %26894 = vmatmul.mubr.msk.f32.gmra.mxu0 %vm1351_vm2, %v17578_v43 }
0x132f   : > { %v17882_v32 = vpop.f32.mrf.mxu1 }
0x1331   : > { %v26861_v1 = vpop.f32.mrf.mxu1 }
0x1337   : > { %v18034_v30 = vpop.f32.mrf.mxu1 }
0x1339   : > { %v26871_v35 = vpop.f32.mrf.mxu1 }
0x13b0   : > { %v17654_v21 = vpop.f32.mrf.mxu0 }
0x13b1   : > { %v18186_v57 = vpop.f32.mrf.mxu1  ;;  %26896 = vmatprep.mubr.msk.f32.mxu0 %vm1351_vm2, %v17654_v21 }
0x13b2   : > { %v26846_v61 = vpop.f32.mrf.mxu0  ;;  %26897 = vmatmul.mubr.msk.f32.gmra.mxu0 %vm1351_vm2, %v17730_v25 }
0x13b3   : > { %v26881_v46 = vpop.f32.mrf.mxu1 }
0x13b4   : > { %v17806_v28 = vpop.f32.mrf.mxu0 }
0x13b5   : > { %26899 = vmatprep.mubr.msk.f32.mxu0 %vm1351_vm2, %v17806_v28 }
0x13b6   : > { %v26856_v29 = vpop.f32.mrf.mxu0  ;;  %26900 = vmatmul.mubr.msk.f32.gmra.mxu0 %vm1351_vm2, %v17882_v32 }
0x13b7   : > { %v31409_v47 = vpop.f32.mrf.mxu1 }
0x13b8   : > { %v17958_v49 = vpop.f32.mrf.mxu0  ;;  %v19650_v23 = vsel %vm2568_vm3, %v31409_v47, -inf }
0x13b9   : > { %26902 = vmatprep.mubr.msk.f32.mxu0 %vm1351_vm2, %v17958_v49  ;;  %19651 = vmax.xlane.f32.xlu1 %v19650_v23  ;;  %v26912_v38 = vpop.f32.mrf.mxu1 }
0x13ba   : > { %v26866_v43 = vpop.f32.mrf.mxu0  ;;  %26903 = vmatmul.mubr.msk.f32.gmra.mxu0 %vm1351_vm2, %v18034_v30  ;;  %v19497_v30 = vpop.permute.xlu1 %19496 }
0x13bb   : > { %v31415_v24 = vpop.f32.mrf.mxu1 }
0x13bc   : > { %v18110_v2 = vpop.f32.mrf.mxu0  ;;  %v19653_v63 = vsel %vm2568_vm3, %v31415_v24, -inf }
0x13bd   : > { %26905 = vmatprep.mubr.msk.f32.mxu0 %vm1351_vm2, %v18110_v2  ;;  %19654 = vmax.xlane.f32.xlu0 %v19653_v63  ;;  %v26917_v14 = vpop.f32.mrf.mxu1  ;;  %v31472_v2 = vld [vmem:[%s32559_s11] ss:$0 sm:$0xff] }
0x13be   : > { %v26876_v17 = vpop.f32.mrf.mxu0  ;;  %26906 = vmatmul.mubr.msk.f32.gmra.mxu0 %vm1351_vm2, %v18186_v57  ;;  %v19495_v61 = vpop.permute.xlu1 %19494  ;;  %v32944_v63 = vld [vmem:[#allocation18_spill] sm:$0xff] }
0x13bf   : > { %v31421_v5 = vpop.f32.mrf.mxu1  ;;  %26950 = vmatprep.mubr.msk.f32.mxu0 %vm27872_vm1, %v32697_v22  ;;  %v1319_v14 = vadd.f32 %v31472_v2, %v32944_v63 }
0x13c0   : > { %v19656_v25 = vsel %vm2568_vm3, %v31421_v5, -inf }
0x13c1   : > { %19657 = vmax.xlane.f32.xlu0 %v19656_v25  ;;  %v26922_v13 = vpop.f32.mrf.mxu1  ;;  %v32945_v25 = vld [vmem:[#allocation57_spill] sm:$0xff] }
0x13c2   : > { %26951 = vmatmul.mubr.msk.f32.vlgmr.msra.gmra.mxu0 %vm1351_vm2, %v19027_v9 }
0x13c3   : > { %26959 = vmatpush3.xpose.msk.msra.mxu0 %vm1351_vm2, %v19185_v52  ;;  %v31429_v39 = vpop.f32.mrf.mxu1  ;;  %26960 = vmatprep.mubr.msk.f32.mxu0 %vm27872_vm1, %v32697_v22 }
0x13c4   : > { %26968 = vmatprep.subr.mxu0 %v32697_v22  ;;  %v19659_v32 = vsel %vm2568_vm3, %v31429_v39, -inf }
0x13c5   : > { %19660 = vmax.xlane.f32.xlu0 %v19659_v32  ;;  %v26927_v1 = vpop.f32.mrf.mxu1  ;;  %v32946_v32 = vld [vmem:[#allocation28_spill] sm:$0xff] }
0x13c6   : > { %26961 = vmatmul.mubr.msk.f32.vlgmr.msra.gmra.mxu0 %vm1351_vm2, %v19183_v59  ;;  %v1321_v1 = vadd.f32 %v31472_v2, %v32946_v32  ;;  %v32953_v32 = vld [vmem:[#allocation29_spill] sm:$0xff] }
0x13c7   : > { %26969 = vmatpush3.xpose.msk.msra.mxu0 %vm1351_vm2, %v19341_v45  ;;  %v31438_v35 = vpop.f32.mrf.mxu1  ;;  %26970 = vmatprep.mubr.msk.f32.mxu0 %vm27872_vm1, %v32697_v22 }
0x13c8   : > { %26978 = vmatprep.subr.mxu0 %v32697_v22  ;;  %v19662_v9 = vsel %vm2568_vm3, %v31438_v35, -inf }
0x13c9   : > { %19663 = vmax.xlane.f32.xlu1 %v19662_v9  ;;  %v26932_v52 = vpop.f32.mrf.mxu1 }
0x13ca   : > { %26971 = vmatmul.mubr.msk.f32.vlgmr.msra.gmra.mxu0 %vm1351_vm2, %v19339_v6  ;;  %v4110_v6 = vadd.f32 %v32945_v25, %v1319_v14  ;;  %v32952_v14 = vld [vmem:[#allocation50_spill] sm:$0xff] }
0x13cb   : > { %26979 = vmatpush3.xpose.msk.msra.mxu0 %vm1351_vm2, %v19497_v30  ;;  %v31447_v21 = vpop.f32.mrf.mxu1  ;;  %26980 = vmatprep.mubr.msk.f32.mxu0 %vm27872_vm1, %v32697_v22  ;;  %v32947_v30 = vld [vmem:[#allocation37_spill] sm:$0xff] }
0x13cc   : > { %v19665_v57 = vsel %vm2568_vm3, %v31447_v21, -inf  ;;  %26988 = vmatprep.subr.mxu0 %v32697_v22  ;;  %v6978_v9 = vadd.f32 %v32947_v30, %v4110_v6  ;;  %v32954_v6 = vld [vmem:[#allocation45_spill] sm:$0xff] }
0x13cd   : > { %19666 = vmax.xlane.f32.xlu0 %v19665_v57  ;;  %v26937_v46 = vpop.f32.mrf.mxu1 }
0x13ce   : > { %26981 = vmatmul.mubr.msk.f32.vlgmr.msra.gmra.mxu0 %vm1351_vm2, %v19495_v61  ;;  %v32948_v61 = vld [vmem:[#allocation27_spill] sm:$0xff] }
0x13cf   : > { %v31455_v28 = vpop.f32.mrf.mxu1  ;;  %26990 = vmatprep.mubr.msk.f32.mxu0 %vm27872_vm1, %v32697_v22  ;;  %v4112_v46 = vadd.f32 %v32948_v61, %v1321_v1 }
0x13d0   : > { %v19668_v59 = vsel %vm2568_vm3, %v31455_v28, -inf }
0x13d1   : > { %19669 = vmax.xlane.f32.xlu1 %v19668_v59  ;;  %v26942_v29 = vpop.f32.mrf.mxu1  ;;  %v32949_v59 = vld [vmem:[#allocation70_spill] sm:$0xff] }
0x13d2   : > { %v9830_v29 = vadd.f32 %v32949_v59, %v6978_v9  ;;  %v32958_v9 = vld [vmem:[#allocation41_spill] sm:$0xff] }
0x13d3   : > { %v31461_v49 = vpop.f32.mrf.mxu1 }
0x13d4   : > { %v19671_v23 = vsel %vm2568_vm3, %v31461_v49, -inf }
0x13d5   : > { %19672 = vmax.xlane.f32.xlu0 %v19671_v23  ;;  %v26947_v38 = vpop.f32.mrf.mxu1  ;;  %v32950_v23 = vld [vmem:[#allocation30_spill] sm:$0xff] }
0x13d6   : > { %v1323_v38 = vadd.f32 %v31472_v2, %v32950_v23  ;;  %v32959_v23 = vld [vmem:[#allocation78_spill] sm:$0xff] }
0x13d7   : > { %v31465_v43 = vpop.f32.mrf.mxu1 }
0x13d8   : > { %v19677_v45 = vsel %vm2568_vm3, %v31465_v43, -inf  ;;  %v4114_v44 = vadd.f32 %v32953_v32, %v1323_v38 }
0x13d9   : > { %19678 = vmax.xlane.f32.xlu0 %v19677_v45  ;;  %v26957_v17 = vpop.f32.mrf.mxu1  ;;  %v32951_v45 = vld [vmem:[#allocation39_spill] sm:$0xff] }
0x13da   : > { %v6980_v63 = vadd.f32 %v32951_v45, %v4112_v46  ;;  %v12682_v17 = vadd.f32 %v32952_v14, %v9830_v29  ;;  %v6982_v59 = vadd.f32 %v32958_v9, %v4114_v44  ;;  %v32962_v14 = vld [vmem:[#allocation86_spill] sm:$0xff] }
0x13dc   : > { %v31477_v13 = vpop.f32.mrf.mxu1  ;;  %v9832_v30 = vadd.f32 %v32954_v6, %v6980_v63  ;;  %v15534_v62 = vadd.f32 %v32955_v36, %v12682_v17  ;;  %v32961_v63 = vld [vmem:[#allocation71_spill] sm:$0xff] }
0x13dd   : > { %v19683_v52 = vsel %vm2568_vm3, %v31477_v13, -inf  ;;  %v9834_v36 = vadd.f32 %v32961_v63, %v6982_v59 }
0x13de   : > { %19684 = vmax.xlane.f32.xlu0 %v19683_v52  ;;  %v26967_v57 = vpop.f32.mrf.mxu1  ;;  %v32956_v52 = vld [vmem:[#allocation85_spill] sm:$0xff]  ;;  %v12684_v48 = vadd.f32 %v32959_v23, %v9832_v30  ;;  %v32967_v30 = vld [vmem:[#allocation87_spill] sm:$0xff]  ;;  %v32968_v23 = vld [vmem:[#allocation48_spill] sm:$0xff] }
0x13e0   : > { %v15536_v17 = vadd.f32 %v32962_v14, %v12684_v48 }
0x13e2   : > { %v26886_v25 = vpop.f32.mrf.mxu0 }
0x13e3   : > { %v31494_v57 = vadd.f32 %v26886_v25, %v32956_v52  ;;  %v32963_v25 = vld [vmem:[#allocation42_spill] sm:$0xff]  ;;  %v32965_v52 = vld [vmem:[#allocation79_spill] sm:$0xff] }
0x13e4   : > { %v18307_v1 = vpop.f32.mrf.mxu0  ;;  %v31496_v61 = vpop.f32.mrf.mxu1  ;;  %v12686_v44 = vadd.f32 %v32965_v52, %v9834_v36  ;;  %v32971_v36 = vld [vmem:[#allocation31_spill] sm:$0xff] }
0x13e5   : > { %32957 = vst [vmem:[#allocation93_spill] sm:$0xff] %v31494_v57  ;;  %v31500_v46 = vadd.f32 %v18307_v1, %v15534_v62  ;;  %v19689_v29 = vsel %vm2568_vm3, %v31496_v61, -inf }
0x13e6   : > { %v26889_v38 = vpop.f32.mrf.mxu0  ;;  %19690 = vmax.xlane.f32.xlu0 %v19689_v29  ;;  %v26977_v45 = vpop.f32.mrf.mxu1  ;;  %v15538_v1 = vadd.f32 %v32967_v30, %v12686_v44 }
0x13e7   : > { %32960 = vst [vmem:[#allocation18_spill] sm:$0xff] %v31500_v46  ;;  %v31507_v32 = vadd.f32 %v26889_v38, %v32963_v25 }
0x13e8   : > { %v18317_v6 = vpop.f32.mrf.mxu0 }
0x13e9   : > { %32964 = vst [vmem:[#allocation57_spill] sm:$0xff] %v31507_v32  ;;  %v31510_v9 = vadd.f32 %v18317_v6, %v15536_v17 }
0x13ea   : > { %v26892_v62 = vpop.f32.mrf.mxu0 }
0x13eb   : > { %32966 = vst [vmem:[#allocation28_spill] sm:$0xff] %v31510_v9  ;;  %v31514_v46 = vadd.f32 %v26892_v62, %v32968_v23 }
0x13ec   : > { %v18327_v29 = vpop.f32.mrf.mxu0  ;;  %v31516_v45 = vpop.f32.mrf.mxu1 }
0x13ed   : > { %32969 = vst [vmem:[#allocation37_spill] sm:$0xff] %v31514_v46  ;;  %v31518_v59 = vadd.f32 %v18327_v29, %v15538_v1  ;;  %v19695_v48 = vsel %vm2568_vm3, %v31516_v45, -inf }
0x13ee   : > { %v26895_v38 = vpop.f32.mrf.mxu0  ;;  %19696 = vmax.xlane.f32.xlu0 %v19695_v48  ;;  %v26987_v63 = vpop.f32.mrf.mxu1 }
0x13ef   : > { %32970 = vst [vmem:[#allocation27_spill] sm:$0xff] %v31518_v59  ;;  %v31523_v14 = vadd.f32 %v26895_v38, %v32971_v36 }
0x13f1   : > { %32972 = vst [vmem:[#allocation70_spill] sm:$0xff] %v31523_v14 }
0x1442   : > { %v19652_v17 = vpop.xlane.xlu1 %19651 }
0x1443   : > { %v19698_v25 = vsub.f32 %v31409_v47, %v19652_v17 }
0x1445   : > { %v19714_v6 = vmul.f32 1.442695, %v19698_v25 }
0x1446   : > { %v19655_v52 = vpop.xlane.xlu0 %19654 }
0x1447   : > { %27727 = vpow2.f32 %v19714_v6  ;;  %v19699_v44 = vsub.f32 %v31415_v24, %v19655_v52 }
0x1449   : > { %v19716_v62 = vmul.f32 1.442695, %v19699_v44 }
0x144a   : > { %v19658_v30 = vpop.xlane.xlu0 %19657 }
0x144b   : > { %27729 = vpow2.f32 %v19716_v62  ;;  %v19700_v1 = vsub.f32 %v31421_v5, %v19658_v30 }
0x144d   : > { %v19718_v23 = vmul.f32 1.442695, %v19700_v1 }
0x144e   : > { %v19661_v29 = vpop.xlane.xlu0 %19660 }
0x144f   : > { %27731 = vpow2.f32 %v19718_v23  ;;  %v19701_v48 = vsub.f32 %v31429_v39, %v19661_v29 }
0x1451   : > { %v19720_v38 = vmul.f32 1.442695, %v19701_v48 }
0x1452   : > { %v19664_v63 = vpop.xlane.xlu1 %19663 }
0x1453   : > { %27733 = vpow2.f32 %v19720_v38  ;;  %v19702_v47 = vsub.f32 %v31438_v35, %v19664_v63 }
0x1454   : > { %v31530_v36 = vpop.eup %27727 }
0x1455   : > { %v19722_v17 = vmul.f32 1.442695, %v19702_v47  ;;  %v19746_v24 = vsel %vm2568_vm3, %v31530_v36, 0.0 }
0x1456   : > { %v19667_v25 = vpop.xlane.xlu0 %19666  ;;  %19747 = vadd.xlane.f32.xlu1 %v19746_v24 }
0x1457   : > { %27735 = vpow2.f32 %v19722_v17  ;;  %v19703_v5 = vsub.f32 %v31447_v21, %v19667_v25 }
0x1458   : > { %v31535_v6 = vpop.eup %27729 }
0x1459   : > { %v19724_v52 = vmul.f32 1.442695, %v19703_v5  ;;  %v19749_v39 = vsel %vm2568_vm3, %v31535_v6, 0.0 }
0x145a   : > { %v19670_v44 = vpop.xlane.xlu1 %19669  ;;  %19750 = vadd.xlane.f32.xlu0 %v19749_v39 }
0x145b   : > { %27737 = vpow2.f32 %v19724_v52  ;;  %v19704_v35 = vsub.f32 %v31455_v28, %v19670_v44 }
0x145c   : > { %v31540_v62 = vpop.eup %27731 }
0x145d   : > { %v19726_v30 = vmul.f32 1.442695, %v19704_v35  ;;  %v19752_v1 = vsel %vm2568_vm3, %v31540_v62, 0.0 }
0x145e   : > { %19753 = vadd.xlane.f32.xlu1 %v19752_v1  ;;  %v19673_v23 = vpop.xlane.xlu0 %19672  ;;  %v32974_v1 = vld [vmem:[#allocation63_spill] sm:$0xff] }
0x145f   : > { %27739 = vpow2.f32 %v19726_v30  ;;  %v19705_v21 = vsub.f32 %v31461_v49, %v19673_v23 }
0x1460   : > { %v31545_v29 = vpop.eup %27733 }
0x1461   : > { %v19728_v48 = vmul.f32 1.442695, %v19705_v21  ;;  %v19755_v38 = vsel %vm2568_vm3, %v31545_v29, 0.0 }
0x1462   : > { %v19679_v63 = vpop.xlane.xlu0 %19678  ;;  %19756 = vadd.xlane.f32.xlu0 %v19755_v38 }
0x1463   : > { %27741 = vpow2.f32 %v19728_v48  ;;  %v19707_v28 = vsub.f32 %v31465_v43, %v19679_v63  ;;  %v32973_v43 = vld [vmem:[#allocation21_spill] sm:$0xff]  ;;  %v32976_v63 = vld [vmem:[#allocation23_spill] sm:$0xff] }
0x1464   : > { %v31550_v47 = vpop.eup %27735  ;;  %v1329_v35 = vadd.f32 %v31472_v2, %v32973_v43 }
0x1465   : > { %v19732_v17 = vmul.f32 1.442695, %v19707_v28  ;;  %v19758_v24 = vsel %vm2568_vm3, %v31550_v47, 0.0  ;;  %v1331_v28 = vadd.f32 %v31472_v2, %v32976_v63  ;;  %v32984_v63 = vld [vmem:[#allocation68_spill] sm:$0xff] }
0x1466   : > { %19759 = vadd.xlane.f32.xlu1 %v19758_v24  ;;  %v4120_v23 = vadd.f32 %v32974_v1, %v1329_v35  ;;  %v32979_v35 = vld [vmem:[#allocation74_spill] sm:$0xff]  ;;  %v32980_v1 = vld [vmem:[#allocation61_spill] sm:$0xff] }
0x1467   : > { %27743 = vpow2.f32 %v19732_v17  ;;  %v19685_v49 = vpop.xlane.xlu0 %19684  ;;  %v32977_v17 = vld [vmem:[#allocation67_spill] sm:$0xff] }
0x1468   : > { %v31554_v25 = vpop.eup %27737  ;;  %v19709_v5 = vsub.f32 %v31477_v13, %v19685_v49  ;;  %v31568_v13 = vpop.f32.mrf.mxu0  ;;  %v6988_v24 = vadd.f32 %v32977_v17, %v4120_v23 }
0x1469   : > { %v19761_v52 = vsel %vm2568_vm3, %v31554_v25, 0.0  ;;  %32975 = vst [vmem:[#allocation30_spill] sm:$0xff] %v31568_v13 }
0x146a   : > { %v19736_v39 = vmul.f32 1.442695, %v19709_v5  ;;  %19762 = vadd.xlane.f32.xlu0 %v19761_v52 }
0x146c   : > { %v31559_v44 = vpop.eup %27739  ;;  %27745 = vpow2.f32 %v19736_v39  ;;  %v32978_v39 = vld [vmem:[#allocation64_spill] sm:$0xff] }
0x146d   : > { %v19764_v30 = vsel %vm2568_vm3, %v31559_v44, 0.0  ;;  %v4122_v43 = vadd.f32 %v32978_v39, %v1331_v28  ;;  %v32987_v39 = vld [vmem:[#allocation75_spill] sm:$0xff] }
0x146e   : > { %19765 = vadd.xlane.f32.xlu1 %v19764_v30  ;;  %v9840_v30 = vadd.f32 %v32979_v35, %v6988_v24  ;;  %v32986_v24 = vld [vmem:[#allocation65_spill] sm:$0xff] }
0x146f   : > { %v19691_v21 = vpop.xlane.xlu0 %19690  ;;  %v6990_v17 = vadd.f32 %v32984_v63, %v4122_v43  ;;  %v32991_v43 = vld [vmem:[#allocation69_spill] sm:$0xff] }
0x1470   : > { %v31566_v48 = vpop.eup %27741  ;;  %v19711_v38 = vsub.f32 %v31496_v61, %v19691_v21  ;;  %v32983_v21 = vld [vmem:[#allocation25_spill] sm:$0xff] }
0x1471   : > { %v19767_v49 = vsel %vm2568_vm3, %v31566_v48, 0.0  ;;  %v1333_v23 = vadd.f32 %v31472_v2, %v32983_v21  ;;  %v9842_v35 = vadd.f32 %v32987_v39, %v6990_v17  ;;  %v32996_v39 = vld [vmem:[#allocation24_spill] sm:$0xff] }
0x1472   : > { %v19740_v5 = vmul.f32 1.442695, %v19711_v38  ;;  %v26898_v52 = vpop.f32.mrf.mxu0  ;;  %19768 = vadd.xlane.f32.xlu0 %v19767_v49  ;;  %v32985_v38 = vld [vmem:[#allocation82_spill] sm:$0xff] }
0x1473   : > { %v31579_v14 = vadd.f32 %v26898_v52, %v32980_v1  ;;  %v12692_v59 = vadd.f32 %v32985_v38, %v9840_v30  ;;  %v4124_v52 = vadd.f32 %v32986_v24, %v1333_v23  ;;  %v32988_v1 = vld [vmem:[#allocation90_spill] sm:$0xff]  ;;  %v32992_v30 = vld [vmem:[#allocation83_spill] sm:$0xff] }
0x1474   : > { %v31581_v13 = vpop.eup %27743  ;;  %27747 = vpow2.f32 %v19740_v5  ;;  %v31583_v61 = vpop.f32.mrf.mxu0  ;;  %v12694_v63 = vadd.f32 %v32992_v30, %v9842_v35  ;;  %v32995_v24 = vld [vmem:[#allocation91_spill] sm:$0xff] }
0x1475   : > { %32981 = vst [vmem:[#allocation39_spill] sm:$0xff] %v31579_v14  ;;  %32982 = vst [vmem:[#allocation50_spill] sm:$0xff] %v31583_v61  ;;  %v19773_v28 = vsel %vm2568_vm3, %v31581_v13, 0.0  ;;  %v15544_v5 = vadd.f32 %v32988_v1, %v12692_v59  ;;  %v32989_v14 = vld [vmem:[#allocation22_spill] sm:$0xff]  ;;  %v6992_v21 = vadd.f32 %v32991_v43, %v4124_v52  ;;  %v32998_v1 = vld [vmem:[#allocation84_spill] sm:$0xff] }
0x1476   : > { %v26901_v49 = vpop.f32.mrf.mxu0  ;;  %19774 = vadd.xlane.f32.xlu0 %v19773_v28  ;;  %v32994_v28 = vld [vmem:[#allocation76_spill] sm:$0xff]  ;;  %v15546_v59 = vadd.f32 %v32995_v24, %v12694_v63  ;;  %v33001_v43 = vld [vmem:[#allocation26_spill] sm:$0xff] }
0x1477   : > { %v31595_v61 = vadd.f32 %v26901_v49, %v32989_v14  ;;  %v9844_v17 = vadd.f32 %v32994_v28, %v6992_v21 }
0x1478   : > { %v18357_v46 = vpop.f32.mrf.mxu0 }
0x1479   : > { %32990 = vst [vmem:[#allocation29_spill] sm:$0xff] %v31595_v61  ;;  %v31597_v2 = vpop.eup %27745  ;;  %v31601_v38 = vadd.f32 %v18357_v46, %v15544_v5  ;;  %v12696_v61 = vadd.f32 %v32998_v1, %v9844_v17  ;;  %v33000_v46 = vld [vmem:[#allocation92_spill] sm:$0xff] }
0x147a   : > { %v26904_v9 = vpop.f32.mrf.mxu0  ;;  %v19779_v23 = vsel %vm2568_vm3, %v31597_v2, 0.0 }
0x147b   : > { %32993 = vst [vmem:[#allocation45_spill] sm:$0xff] %v31601_v38  ;;  %v31608_v14 = vadd.f32 %v26904_v9, %v32996_v39  ;;  %19780 = vadd.xlane.f32.xlu0 %v19779_v23  ;;  %v15548_v5 = vadd.f32 %v33000_v46, %v12696_v61  ;;  %v33004_v46 = vld [vmem:[#allocation58_spill] sm:$0xff] }
0x147c   : > { %v18367_v49 = vpop.f32.mrf.mxu0 }
0x147d   : > { %32997 = vst [vmem:[#allocation77_spill] sm:$0xff] %v31608_v14  ;;  %v31611_v52 = vadd.f32 %v18367_v49, %v15546_v59 }
0x147e   : > { %v26907_v35 = vpop.f32.mrf.mxu0 }
0x147f   : > { %32999 = vst [vmem:[#allocation85_spill] sm:$0xff] %v31611_v52  ;;  %v31615_v30 = vadd.f32 %v26907_v35, %v33001_v43  ;;  %v33006_v43 = vld [vmem:[#allocation47_spill] sm:$0xff] }
0x1480   : > { %v18377_v38 = vpop.f32.mrf.mxu0 }
0x1481   : > { %33002 = vst [vmem:[#allocation41_spill] sm:$0xff] %v31615_v30  ;;  %v31617_v32 = vpop.eup %27747  ;;  %v31619_v21 = vadd.f32 %v18377_v38, %v15548_v5  ;;  %v33005_v5 = vld [vmem:[#allocation60_spill] sm:$0xff] }
0x1482   : > { %v19100_v63 = vpop.f32.mrf.mxu0  ;;  %v19785_v9 = vsel %vm2568_vm3, %v31617_v32, 0.0 }
0x1483   : > { %33003 = vst [vmem:[#allocation78_spill] sm:$0xff] %v31619_v21  ;;  %19786 = vadd.xlane.f32.xlu0 %v19785_v9  ;;  %v19674_v23 = vsel %vm2568_vm3, %v19100_v63, -inf  ;;  %v33007_v9 = vld [vmem:[#allocation34_spill] sm:$0xff] }
0x1484   : > { %v26952_v28 = vpop.f32.mrf.mxu0  ;;  %19675 = vmax.xlane.f32.xlu1 %v19674_v23  ;;  %v33008_v23 = vld [vmem:[#allocation36_spill] sm:$0xff] }
0x1485   : > { %v19697_v28 = vpop.xlane.xlu0 %19696 }
0x1486   : > { %v19256_v17 = vpop.f32.mrf.mxu0 }
0x1487   : > { %v19680_v61 = vsel %vm2568_vm3, %v19256_v17, -inf }
0x1488   : > { %v26962_v24 = vpop.f32.mrf.mxu0  ;;  %19681 = vmax.xlane.f32.xlu1 %v19680_v61  ;;  %v33009_v61 = vld [vmem:[#allocation35_spill] sm:$0xff] }
0x1489   : > { %v19713_v24 = vsub.f32 %v31516_v45, %v19697_v28  ;;  %v33014_v45 = vld [vmem:[#allocation55_spill] sm:$0xff] }
0x148a   : > { %v31625_v59 = vpop.f32.mrf.mxu0 }
0x148b   : > { %v19686_v38 = vsel %vm2568_vm3, %v31625_v59, -inf }
0x148c   : > { %v26972_v39 = vpop.f32.mrf.mxu0  ;;  %19687 = vmax.xlane.f32.xlu1 %v19686_v38  ;;  %v33010_v38 = vld [vmem:[#allocation40_spill] sm:$0xff] }
0x148d   : > { %v19744_v39 = vmul.f32 1.442695, %v19713_v24  ;;  %v33015_v24 = vld [vmem:[#allocation53_spill] sm:$0xff] }
0x148e   : > { %v31629_v49 = vpop.f32.mrf.mxu0 }
0x148f   : > { %v19692_v1 = vsel %vm2568_vm3, %v31629_v49, -inf  ;;  %27749 = vpow2.f32 %v19744_v39  ;;  %v33016_v39 = vld [vmem:[#allocation46_spill] sm:$0xff] }
0x1490   : > { %v26982_v35 = vpop.f32.mrf.mxu0  ;;  %19693 = vmax.xlane.f32.xlu1 %v19692_v1  ;;  %v33011_v1 = vld [vmem:[#allocation38_spill] sm:$0xff] }
0x1491   : > { %v33012_v35 = vld [vmem:[#allocation43_spill] sm:$0xff] }
0x1499   : > { %19902 = vrot.lane.b32.xlu0 %v33004_v46, %s27878_s26 }
0x149d   : > { %19978 = vrot.lane.b32.xlu0 %v33005_v5, %s27878_s26 }
0x14a1   : > { %19826 = vrot.lane.b32.xlu1 %v33006_v43, %s27878_s26  ;;  %20054 = vrot.lane.b32.xlu0 %v33007_v9, %s27878_s26  ;;  %v33013_v43 = vld [vmem:[#allocation49_spill] sm:$0xff] }
0x14a5   : > { %20130 = vrot.lane.b32.xlu0 %v33008_v23, %s27878_s26 }
0x14a9   : > { %20206 = vrot.lane.b32.xlu0 %v33009_v61, %s27878_s26  ;;  %v31656_v61 = vpop.eup %27749 }
0x14aa   : > { %v19791_v28 = vsel %vm2568_vm3, %v31656_v61, 0.0 }
0x14ad   : > { %20282 = vrot.lane.b32.xlu0 %v33010_v38, %s27878_s26 }
0x14b1   : > { %20358 = vrot.lane.b32.xlu0 %v33011_v1, %s27878_s26 }
0x14b5   : > { %20510 = vrot.lane.b32.xlu0 %v33012_v35, %s27878_s26 }
0x14b9   : > { %20586 = vrot.lane.b32.xlu0 %v32940_v3, %s27878_s26 }
0x14bd   : > { %20662 = vrot.lane.b32.xlu0 %v33013_v43, %s27878_s26 }
0x14c1   : > { %20738 = vrot.lane.b32.xlu0 %v33014_v45, %s27878_s26 }
0x14c5   : > { %20814 = vrot.lane.b32.xlu0 %v33015_v24, %s27878_s26  ;;  %19792 = vadd.xlane.f32.xlu1 %v19791_v28 }
0x14d6   : > { %20434 = vrot.lane.b32.xlu1 %v33016_v39, %s27878_s26 }
0x14df   : > { %v19748_v43 = vpop.xlane.xlu1 %19747 }
0x14e3   : > { %v19751_v35 = vpop.xlane.xlu0 %19750 }
0x14e4   : > { %27751 = vrcp.f32 %v19751_v35 }
0x14e7   : > { %v19754_v23 = vpop.xlane.xlu1 %19753 }
0x14eb   : > { %v19757_v3 = vpop.xlane.xlu0 %19756 }
0x14ec   : > { %27753 = vrcp.f32 %v19757_v3 }
0x14ed   : > { %27755 = vrcp.f32 %v19748_v43 }
0x14ef   : > { %v19760_v5 = vpop.xlane.xlu1 %19759 }
0x14f1   : > { %v27752_v24 = vpop.eup %27751 }
0x14f2   : > { %v19797_v39 = vmul.f32 %v27752_v24, %v31535_v6 }
0x14f3   : > { %v19763_v1 = vpop.xlane.xlu0 %19762 }
0x14f4   : > { %27757 = vrcp.f32 %v19763_v1 }
0x14f5   : > { %27759 = vrcp.f32 %v19754_v23 }
0x14f7   : > { %v19766_v46 = vpop.xlane.xlu1 %19765 }
0x14fb   : > { %v19769_v38 = vpop.xlane.xlu0 %19768 }
0x14ff   : > { %v19775_v9 = vpop.xlane.xlu0 %19774 }
0x1504   : > { %v31666_v45 = vpop.xlane.xlu0 %19780 }
0x150c   : > { %v31668_v21 = vpop.xlane.xlu0 %19786 }
0x150d   : > { %v19676_v28 = vpop.xlane.xlu1 %19675 }
0x150e   : > { %v19706_v30 = vsub.f32 %v19100_v63, %v19676_v28  ;;  %v27754_v63 = vpop.eup %27753 }
0x150f   : > { %v19801_v23 = vmul.f32 %v27754_v63, %v31545_v29  ;;  %v27756_v1 = vpop.eup %27755 }
0x1510   : > { %v19730_v52 = vmul.f32 1.442695, %v19706_v30  ;;  %v19903_v14 = vpop.permute.xlu0 %19902 }
0x1511   : > { %v19682_v35 = vpop.xlane.xlu1 %19681  ;;  %26994 = vmatpush3.msra.mxu1 %v19903_v14 }
0x1512   : > { %27761 = vpow2.f32 %v19730_v52  ;;  %v19708_v57 = vsub.f32 %v19256_v17, %v19682_v35  ;;  %26996 = vmatmul.mubr.msk.f32.vlgmr.msra.gmra.mxu1 %vm2568_vm3, %v19797_v39  ;;  %27003 = vmatprep.subr.mxu1 %v32697_v22 }
0x1513   : > { %27005 = vmatprep.mubr.msk.f32.mxu1 %vm27872_vm1, %v32697_v22  ;;  %27763 = vrcp.f32 %v19760_v5  ;;  %v19795_v5 = vmul.f32 %v27756_v1, %v31530_v36 }
0x1514   : > { %v19734_v3 = vmul.f32 1.442695, %v19708_v57  ;;  %v19979_v43 = vpop.permute.xlu0 %19978 }
0x1515   : > { %v19688_v6 = vpop.xlane.xlu1 %19687 }
0x1516   : > { %27765 = vpow2.f32 %v19734_v3  ;;  %v19710_v30 = vsub.f32 %v31625_v59, %v19688_v6  ;;  %v27758_v59 = vpop.eup %27757 }
0x1517   : > { %27767 = vrcp.f32 %v19769_v38  ;;  %v27760_v38 = vpop.eup %27759 }
0x1518   : > { %v19738_v14 = vmul.f32 1.442695, %v19710_v30  ;;  %v20055_v52 = vpop.permute.xlu0 %20054  ;;  %27769 = vrcp.f32 %v19766_v46  ;;  %v19799_v36 = vmul.f32 %v27760_v38, %v31540_v62 }
0x1519   : > { %v19694_v17 = vpop.xlane.xlu1 %19693  ;;  %27004 = vmatpush3.msra.mxu1 %v20055_v52 }
0x151a   : > { %27771 = vpow2.f32 %v19738_v14  ;;  %v19712_v24 = vsub.f32 %v31629_v49, %v19694_v17  ;;  %27006 = vmatmul.mubr.msk.f32.vlgmr.msra.gmra.mxu1 %vm2568_vm3, %v19801_v23  ;;  %27013 = vmatprep.subr.mxu1 %v32697_v22  ;;  %v19805_v49 = vmul.f32 %v27758_v59, %v31554_v25 }
0x151b   : > { %27015 = vmatprep.mubr.msk.f32.mxu1 %vm27872_vm1, %v32697_v22  ;;  %27773 = vrcp.f32 %v19775_v9 }
0x151c   : > { %v19742_v57 = vmul.f32 1.442695, %v19712_v24  ;;  %v20131_v29 = vpop.permute.xlu0 %20130 }
0x151d   : > { %v19827_v46 = vpop.permute.xlu1 %19826 }
0x151e   : > { %27775 = vpow2.f32 %v19742_v57  ;;  %26989 = vmatpush3.msra.mxu0 %v19827_v46 }
0x151f   : > { %v31683_v39 = vpop.eup %27761  ;;  %26991 = vmatmul.mubr.msk.f32.vlgmr.msra.gmra.mxu0 %vm2568_vm3, %v19795_v5  ;;  %26998 = vmatprep.subr.mxu0 %v32697_v22  ;;  %27777 = vrcp.f32 %v31666_v45  ;;  %v33017_v5 = vld [vmem:[#allocation59_spill] sm:$0xff] }
0x1520   : > { %26999 = vmatpush3.msra.mxu0 %v19979_v43  ;;  %v20207_v28 = vpop.permute.xlu0 %20206  ;;  %v19770_v9 = vsel %vm2568_vm3, %v31683_v39, 0.0  ;;  %27000 = vmatprep.mubr.msk.f32.mxu0 %vm27872_vm1, %v32697_v22  ;;  %v27764_v35 = vpop.eup %27763  ;;  %27779 = vrcp.f32 %v31668_v21 }
0x1521   : > { %19771 = vadd.xlane.f32.xlu1 %v19770_v9  ;;  %27014 = vmatpush3.msra.mxu1 %v20207_v28  ;;  %v19803_v63 = vmul.f32 %v27764_v35, %v31550_v47 }
0x1522   : > { %27008 = vmatprep.subr.mxu0 %v32697_v22  ;;  %27016 = vmatmul.mubr.msk.f32.vlgmr.msra.gmra.mxu1 %vm2568_vm3, %v19805_v49 }
0x1523   : > { %v31695_v3 = vpop.eup %27765  ;;  %27001 = vmatmul.mubr.msk.f32.vlgmr.msra.gmra.mxu0 %vm2568_vm3, %v19799_v36  ;;  %27023 = vmatprep.subr.mxu1 %v32697_v22 }
0x1524   : > { %27009 = vmatpush3.msra.mxu0 %v20131_v29  ;;  %v20283_v25 = vpop.permute.xlu0 %20282  ;;  %v19776_v62 = vsel %vm2568_vm3, %v31695_v3, 0.0  ;;  %27010 = vmatprep.mubr.msk.f32.mxu0 %vm27872_vm1, %v32697_v22  ;;  %v27768_v43 = vpop.eup %27767 }
0x1525   : > { %19777 = vadd.xlane.f32.xlu1 %v19776_v62  ;;  %27018 = vmatprep.subr.mxu0 %v32697_v22  ;;  %v27770_v6 = vpop.eup %27769  ;;  %v19809_v45 = vmul.f32 %v27768_v43, %v31566_v48 }
0x1526   : > { %27025 = vmatprep.mubr.msk.f32.mxu1 %vm27872_vm1, %v32697_v22  ;;  %v19807_v52 = vmul.f32 %v27770_v6, %v31559_v44 }
0x1527   : > { %v31708_v30 = vpop.eup %27771  ;;  %27011 = vmatmul.mubr.msk.f32.vlgmr.msra.gmra.mxu0 %vm2568_vm3, %v19803_v63 }
0x1528   : > { %27019 = vmatpush3.msra.mxu0 %v20283_v25  ;;  %v20359_v23 = vpop.permute.xlu0 %20358  ;;  %v19782_v14 = vsel %vm2568_vm3, %v31708_v30, 0.0  ;;  %27020 = vmatprep.mubr.msk.f32.mxu0 %vm27872_vm1, %v32697_v22  ;;  %v27774_v47 = vpop.eup %27773 }
0x1529   : > { %19783 = vadd.xlane.f32.xlu1 %v19782_v14  ;;  %27024 = vmatpush3.msra.mxu1 %v20359_v23  ;;  %v19813_v48 = vmul.f32 %v27774_v47, %v31581_v13 }
0x152a   : > { %27026 = vmatmul.mubr.msk.f32.vlgmr.msra.gmra.mxu1 %vm2568_vm3, %v19809_v45  ;;  %27033 = vmatprep.subr.mxu1 %v32697_v22 }
0x152b   : > { %v31719_v17 = vpop.eup %27775  ;;  %27021 = vmatmul.mubr.msk.f32.vlgmr.msra.gmra.mxu0 %vm2568_vm3, %v19807_v52  ;;  %27035 = vmatprep.mubr.msk.f32.mxu1 %vm27872_vm1, %v32697_v22 }
0x152c   : > { %v20511_v1 = vpop.permute.xlu0 %20510  ;;  %v19788_v44 = vsel %vm2568_vm3, %v31719_v17, 0.0  ;;  %27028 = vmatprep.subr.mxu0 %v32697_v22  ;;  %27030 = vmatprep.mubr.msk.f32.mxu0 %vm27872_vm1, %v32697_v22  ;;  %v27778_v21 = vpop.eup %27777 }
0x152d   : > { %19789 = vadd.xlane.f32.xlu0 %v19788_v44  ;;  %27034 = vmatpush3.msra.mxu1 %v20511_v1  ;;  %v19817_v24 = vmul.f32 %v27778_v21, %v31597_v2  ;;  %v27780_v59 = vpop.eup %27779 }
0x152e   : > { %27036 = vmatmul.mubr.msk.f32.vlgmr.msra.gmra.mxu1 %vm2568_vm3, %v19813_v48  ;;  %27043 = vmatprep.subr.mxu1 %v32697_v22  ;;  %v19821_v46 = vmul.f32 %v27780_v59, %v31617_v32 }
0x152f   : > { %27045 = vmatprep.mubr.msk.f32.mxu1 %vm27872_vm1, %v32697_v22 }
0x1530   : > { %v31735_v13 = vpop.permute.xlu0 %20586 }
0x1534   : > { %v20663_v57 = vpop.permute.xlu0 %20662 }
0x1535   : > { %27044 = vmatpush3.msra.mxu1 %v20663_v57 }
0x1536   : > { %27046 = vmatmul.mubr.msk.f32.vlgmr.msra.gmra.mxu1 %vm2568_vm3, %v19817_v24  ;;  %27053 = vmatprep.subr.mxu1 %v32697_v22 }
0x1537   : > { %27055 = vmatprep.mubr.msk.f32.mxu1 %vm27872_vm1, %v32697_v22 }
0x1538   : > { %v31742_v29 = vpop.permute.xlu0 %20738 }
0x153a   : > { %20890 = vrot.lane.b32.xlu1 %v33017_v5, %s27878_s26 }
0x153c   : > { %v20815_v38 = vpop.permute.xlu0 %20814 }
0x153d   : > { %27054 = vmatpush3.msra.mxu1 %v20815_v38 }
0x153e   : > { %21256 = vrot.lane.b32.xlu1 %v28441_v34, %s27879_s18  ;;  %27056 = vmatmul.mubr.msk.f32.vlgmr.msra.gmra.mxu1 %vm2568_vm3, %v19821_v46 }
0x153f   : > { %27063 = vmatprep.subr.mxu1 %v32697_v22  ;;  %27065 = vmatprep.mubr.msk.f32.mxu1 %vm27872_vm1, %v32697_v22 }
0x1542   : > { %21334 = vrot.lane.b32.xlu1 %v28450_v37, %s27879_s18 }
0x1543   : > { %20966 = vrot.lane.b32.xlu0 %v32741_v53, %s27878_s26 }
0x1546   : > { %21412 = vrot.lane.b32.xlu1 %v28463_v50, %s27879_s18 }
0x1547   : > { %21254 = vrot.lane.b32.xlu0 %v28443_v33, %s27879_s18 }
0x154a   : > { %21490 = vrot.lane.b32.xlu1 %v28476_v60, %s27879_s18 }
0x154b   : > { %21332 = vrot.lane.b32.xlu0 %v28458_v41, %s27879_s18 }
0x154e   : > { %21568 = vrot.lane.b32.xlu1 %v28489_v58, %s27879_s18  ;;  %v19793_v34 = vpop.xlane.xlu1 %19792 }
0x154f   : > { %21410 = vrot.lane.b32.xlu0 %v28467_v31, %s27879_s18  ;;  %27781 = vrcp.f32 %v19793_v34 }
0x1552   : > { %21646 = vrot.lane.b32.xlu1 %v28505_v27, %s27879_s18  ;;  %v20435_v37 = vpop.permute.xlu1 %20434 }
0x1553   : > { %21488 = vrot.lane.b32.xlu0 %v28484_v56, %s27879_s18  ;;  %27029 = vmatpush3.msra.mxu0 %v20435_v37 }
0x1554   : > { %27038 = vmatprep.subr.mxu0 %v32697_v22 }
0x1556   : > { %21724 = vrot.lane.b32.xlu1 %v28539_v12, %s27879_s18 }
0x1557   : > { %21566 = vrot.lane.b32.xlu0 %v28500_v15, %s27879_s18 }
0x155a   : > { %21802 = vrot.lane.b32.xlu1 %v28568_v8, %s27879_s18  ;;  %v33020_v8 = vld [vmem:[#allocation54_spill] sm:$0xff] }
0x155b   : > { %21644 = vrot.lane.b32.xlu0 %v28525_v54, %s27879_s18 }
0x155c   : > { %v27782_v41 = vpop.eup %27781 }
0x155d   : > { %v19825_v60 = vmul.f32 %v27782_v41, %v31656_v61 }
0x155e   : > { %21880 = vrot.lane.b32.xlu1 %v28510_v20, %s27879_s18 }
0x155f   : > { %21722 = vrot.lane.b32.xlu0 %v28554_v42, %s27879_s18 }
0x1562   : > { %21878 = vrot.lane.b32.xlu1 %v28534_v16, %s27879_s18 }
0x1563   : > { %21800 = vrot.lane.b32.xlu0 %v28587_v7, %s27879_s18  ;;  %v33019_v7 = vld [vmem:[#allocation52_spill] sm:$0xff] }
0x1566   : > { %22036 = vrot.lane.b32.xlu1 %v28545_v40, %s27879_s18 }
0x1567   : > { %21958 = vrot.lane.b32.xlu0 %v28601_v4, %s27879_s18  ;;  %v33018_v4 = vld [vmem:[#allocation44_spill] sm:$0xff] }
0x156a   : > { %22034 = vrot.lane.b32.xlu1 %v28563_v10, %s27879_s18  ;;  %v33021_v10 = vld [vmem:[#allocation56_spill] sm:$0xff] }
0x156b   : > { %21956 = vrot.lane.b32.xlu0 %v32764_v11, %s27879_s18 }
0x156e   : > { %22192 = vrot.lane.b32.xlu1 %v32765_v0, %s27879_s18 }
0x156f   : > { %22114 = vrot.lane.b32.xlu0 %v32766_v26, %s27879_s18 }
0x1572   : > { %22190 = vrot.lane.b32.xlu1 %v32767_v19, %s27879_s18 }
0x1573   : > { %22112 = vrot.lane.b32.xlu0 %v32768_v51, %s27879_s18 }
0x1576   : > { %22348 = vrot.lane.b32.xlu1 %v32769_v55, %s27879_s18 }
0x1577   : > { %22270 = vrot.lane.b32.xlu0 %v32811_v18, %s27879_s18  ;;  %v31851_v18 = vld [vmem:[%s32558_s10 + $0x18] sm:$0xff] }
0x157a   : > { %22346 = vrot.lane.b32.xlu1 %v33018_v4, %s27879_s18 }
0x157b   : > { %22268 = vrot.lane.b32.xlu0 %v33019_v7, %s27879_s18 }
0x157f   : > { %22426 = vrot.lane.b32.xlu0 %v33020_v8, %s27879_s18 }
0x1583   : > { %22424 = vrot.lane.b32.xlu0 %v33021_v10, %s27879_s18 }
0x15aa   : > { %v19772_v12 = vpop.xlane.xlu1 %19771 }
0x15ab   : > { %27783 = vrcp.f32 %v19772_v12 }
0x15ae   : > { %v19778_v16 = vpop.xlane.xlu1 %19777 }
0x15af   : > { %27785 = vrcp.f32 %v19778_v16 }
0x15b2   : > { %v19784_v20 = vpop.xlane.xlu1 %19783 }
0x15b3   : > { %27787 = vrcp.f32 %v19784_v20 }
0x15b6   : > { %v20891_v27 = vpop.permute.xlu1 %20890  ;;  %v19790_v33 = vpop.xlane.xlu0 %19789 }
0x15b7   : > { %27789 = vrcp.f32 %v19790_v33 }
0x15b8   : > { %v27784_v50 = vpop.eup %27783 }
0x15b9   : > { %v19811_v31 = vmul.f32 %v27784_v50, %v31683_v39 }
0x15ba   : > { %v21257_v56 = vpop.permute.xlu1 %21256  ;;  %v20967_v58 = vpop.permute.xlu0 %20966 }
0x15bb   : > { %27031 = vmatmul.mubr.msk.f32.vlgmr.msra.gmra.mxu0 %vm2568_vm3, %v19811_v31  ;;  %27064 = vmatpush3.msra.mxu1 %v20967_v58 }
0x15bc   : > { %v27786_v15 = vpop.eup %27785  ;;  %27039 = vmatpush3.msra.mxu0 %v31735_v13  ;;  %27066 = vmatmul.mubr.msk.f32.vlgmr.msra.gmra.mxu1 %vm2568_vm3, %v19825_v60 }
0x15bd   : > { %v19815_v54 = vmul.f32 %v27786_v15, %v31695_v3  ;;  %27094 = vmatprep.subr.mxu1 %v32697_v22  ;;  %27040 = vmatprep.mubr.msk.f32.mxu0 %vm27872_vm1, %v32697_v22 }
0x15be   : > { %27095 = vmatpush3.xpose.msk.msra.mxu1 %vm1351_vm2, %v21257_v56  ;;  %v21335_v40 = vpop.permute.xlu1 %21334  ;;  %27048 = vmatprep.subr.mxu0 %v32697_v22  ;;  %v21255_v42 = vpop.permute.xlu0 %21254 }
0x15bf   : > { %27041 = vmatmul.mubr.msk.f32.vlgmr.msra.gmra.mxu0 %vm2568_vm3, %v19815_v54  ;;  %27096 = vmatprep.mubr.msk.f32.mxu1 %vm27872_vm1, %v32697_v22 }
0x15c0   : > { %v27788_v11 = vpop.eup %27787  ;;  %27049 = vmatpush3.msra.mxu0 %v31742_v29  ;;  %27099 = vmatprep.subr.mxu1 %v32697_v22 }
0x15c1   : > { %v19819_v0 = vmul.f32 %v27788_v11, %v31708_v30  ;;  %27097 = vmatmul.mubr.msk.f32.vlgmr.msra.gmra.mxu1 %vm1351_vm2, %v21255_v42  ;;  %27050 = vmatprep.mubr.msk.f32.mxu0 %vm27872_vm1, %v32697_v22 }
0x15c2   : > { %27100 = vmatpush3.xpose.msk.msra.mxu1 %vm1351_vm2, %v21335_v40  ;;  %v21413_v26 = vpop.permute.xlu1 %21412  ;;  %27058 = vmatprep.subr.mxu0 %v32697_v22  ;;  %v21333_v19 = vpop.permute.xlu0 %21332 }
0x15c3   : > { %27051 = vmatmul.mubr.msk.f32.vlgmr.msra.gmra.mxu0 %vm2568_vm3, %v19819_v0  ;;  %27101 = vmatprep.mubr.msk.f32.mxu1 %vm27872_vm1, %v32697_v22 }
0x15c4   : > { %v27790_v51 = vpop.eup %27789  ;;  %27059 = vmatpush3.msra.mxu0 %v20891_v27  ;;  %27104 = vmatprep.subr.mxu1 %v32697_v22 }
0x15c5   : > { %v19823_v55 = vmul.f32 %v27790_v51, %v31719_v17  ;;  %27102 = vmatmul.mubr.msk.f32.vlgmr.msra.gmra.mxu1 %vm1351_vm2, %v21333_v19  ;;  %27060 = vmatprep.mubr.msk.f32.mxu0 %vm27872_vm1, %v32697_v22 }
0x15c6   : > { %27105 = vmatpush3.xpose.msk.msra.mxu1 %vm1351_vm2, %v21413_v26  ;;  %v21491_v32 = vpop.permute.xlu1 %21490  ;;  %v21411_v2 = vpop.permute.xlu0 %21410  ;;  %27106 = vmatprep.mubr.msk.f32.mxu1 %vm27872_vm1, %v32697_v22 }
0x15c7   : > { %27061 = vmatmul.mubr.msk.f32.vlgmr.msra.gmra.mxu0 %vm2568_vm3, %v19823_v55  ;;  %27109 = vmatprep.subr.mxu1 %v32697_v22 }
0x15c8   : > { %27068 = vmatprep.subr.msk.mxu0 %vm3961_vm4, %v31851_v18 }
0x15c9   : > { %27107 = vmatmul.mubr.msk.f32.vlgmr.msra.gmra.mxu1 %vm1351_vm2, %v21411_v2  ;;  %27069 = vmatpush3.msk.msra.mxu0 %vm3961_vm4, %v31851_v18 }
0x15ca   : > { %27110 = vmatpush3.xpose.msk.msra.mxu1 %vm1351_vm2, %v21491_v32  ;;  %v21569_v61 = vpop.permute.xlu1 %21568  ;;  %v21489_v39 = vpop.permute.xlu0 %21488  ;;  %27111 = vmatprep.mubr.msk.f32.mxu1 %vm27872_vm1, %v32697_v22 }
0x15cb   : > { %27114 = vmatprep.subr.mxu1 %v32697_v22  ;;  %27134 = vmatprep.subr.mxu0 %v32697_v22 }
0x15cd   : > { %27112 = vmatmul.mubr.msk.f32.vlgmr.msra.gmra.mxu1 %vm1351_vm2, %v21489_v39 }
0x15ce   : > { %27115 = vmatpush3.xpose.msk.msra.mxu1 %vm1351_vm2, %v21569_v61  ;;  %v21647_v49 = vpop.permute.xlu1 %21646  ;;  %v21567_v28 = vpop.permute.xlu0 %21566  ;;  %27116 = vmatprep.mubr.msk.f32.mxu1 %vm27872_vm1, %v32697_v22 }
0x15cf   : > { %27119 = vmatprep.subr.mxu1 %v32697_v22 }
0x15d1   : > { %27117 = vmatmul.mubr.msk.f32.vlgmr.msra.gmra.mxu1 %vm1351_vm2, %v21567_v28 }
0x15d2   : > { %27120 = vmatpush3.xpose.msk.msra.mxu1 %vm1351_vm2, %v21647_v49  ;;  %v21645_v9 = vpop.permute.xlu0 %21644  ;;  %27121 = vmatprep.mubr.msk.f32.mxu1 %vm27872_vm1, %v32697_v22  ;;  %v21725_v36 = vpop.permute.xlu1 %21724 }
0x15d3   : > { %v19974_v35 = vpop.f32.mrf.mxu1  ;;  %27124 = vmatprep.subr.mxu1 %v32697_v22 }
0x15d5   : > { %v26997_v3 = vpop.f32.mrf.mxu1  ;;  %27122 = vmatmul.mubr.msk.f32.vlgmr.msra.gmra.mxu1 %vm1351_vm2, %v21645_v9 }
0x15d6   : > { %27125 = vmatpush3.xpose.msk.msra.mxu1 %vm1351_vm2, %v21725_v36  ;;  %v21723_v25 = vpop.permute.xlu0 %21722  ;;  %27126 = vmatprep.mubr.msk.f32.mxu1 %vm27872_vm1, %v32697_v22  ;;  %v21803_v62 = vpop.permute.xlu1 %21802 }
0x15d7   : > { %27129 = vmatprep.subr.mxu1 %v32697_v22 }
0x15d9   : > { %27127 = vmatmul.mubr.msk.f32.vlgmr.msra.gmra.mxu1 %vm1351_vm2, %v21723_v25 }
0x15da   : > { %27130 = vmatpush3.xpose.msk.msra.mxu1 %vm1351_vm2, %v21803_v62  ;;  %v21801_v43 = vpop.permute.xlu0 %21800  ;;  %27131 = vmatprep.mubr.msk.f32.mxu1 %vm27872_vm1, %v32697_v22  ;;  %v20126_v63 = vpop.f32.mrf.mxu1 }
0x15db   : > { %27139 = vmatprep.subr.mxu1 %v32697_v22  ;;  %v21881_v23 = vpop.permute.xlu1 %21880 }
0x15dc   : > { %v27007_v6 = vpop.f32.mrf.mxu1 }
0x15dd   : > { %27132 = vmatmul.mubr.msk.f32.vlgmr.msra.gmra.mxu1 %vm1351_vm2, %v21801_v43 }
0x15de   : > { %v21959_v30 = vpop.permute.xlu0 %21958  ;;  %27141 = vmatprep.mubr.msk.f32.mxu1 %vm27872_vm1, %v32697_v22 }
0x15df   : > { %v19898_v45 = vpop.f32.mrf.mxu0  ;;  %27140 = vmatpush3.xpose.msk.msra.mxu1 %vm1351_vm2, %v21959_v30  ;;  %v21879_v27 = vpop.permute.xlu1 %21878 }
0x15e0   : > { %27070 = vmatprep.mubr.msk.f32.mxu0 %vm1351_vm2, %v19898_v45  ;;  %27149 = vmatprep.subr.mxu1 %v32697_v22 }
0x15e1   : > { %v26992_v14 = vpop.f32.mrf.mxu0  ;;  %27071 = vmatmul.mubr.msk.f32.vlgmr.msra.gmra.mxu0 %vm1351_vm2, %v19974_v35 }
0x15e2   : > { %27135 = vmatpush3.xpose.msk.msra.mxu0 %vm1351_vm2, %v21881_v23  ;;  %v21957_v47 = vpop.permute.xlu0 %21956  ;;  %v20278_v52 = vpop.f32.mrf.mxu1 }
0x15e3   : > { %v20050_v17 = vpop.f32.mrf.mxu0  ;;  %27142 = vmatmul.mubr.msk.f32.vlgmr.msra.gmra.mxu1 %vm1351_vm2, %v21957_v47  ;;  %27144 = vmatprep.subr.mxu0 %v32697_v22  ;;  %v22037_v33 = vpop.permute.xlu1 %22036 }
0x15e4   : > { %27073 = vmatprep.mubr.msk.f32.mxu0 %vm1351_vm2, %v20050_v17  ;;  %27151 = vmatprep.mubr.msk.f32.mxu1 %vm27872_vm1, %v32697_v22  ;;  %v27017_v48 = vpop.f32.mrf.mxu1 }
0x15e5   : > { %v27002_v1 = vpop.f32.mrf.mxu0  ;;  %27074 = vmatmul.mubr.msk.f32.gmra.mxu0 %vm1351_vm2, %v20126_v63 }
0x15e6   : > { %v22115_v44 = vpop.permute.xlu0 %22114 }
0x15e7   : > { %v20202_v13 = vpop.f32.mrf.mxu0  ;;  %27150 = vmatpush3.xpose.msk.msra.mxu1 %vm1351_vm2, %v22115_v44  ;;  %v22035_v58 = vpop.permute.xlu1 %22034  ;;  %v33022_v44 = vld [vmem:[#allocation93_spill] sm:$0xff] }
0x15e8   : > { %27076 = vmatprep.mubr.msk.f32.mxu0 %vm1351_vm2, %v20202_v13  ;;  %27159 = vmatprep.subr.mxu1 %v32697_v22 }
0x15e9   : > { %v27012_v21 = vpop.f32.mrf.mxu0  ;;  %27077 = vmatmul.mubr.msk.f32.gmra.mxu0 %vm1351_vm2, %v20278_v52 }
0x15ea   : > { %v22113_v24 = vpop.permute.xlu0 %22112  ;;  %v20430_v57 = vpop.f32.mrf.mxu1 }
0x15eb   : > { %v20354_v29 = vpop.f32.mrf.mxu0  ;;  %27152 = vmatmul.mubr.msk.f32.vlgmr.msra.gmra.mxu1 %vm1351_vm2, %v22113_v24  ;;  %v22193_v19 = vpop.permute.xlu1 %22192 }
0x15ec   : > { %27079 = vmatprep.mubr.msk.f32.mxu0 %vm1351_vm2, %v20354_v29  ;;  %27161 = vmatprep.mubr.msk.f32.mxu1 %vm27872_vm1, %v32697_v22  ;;  %v27027_v59 = vpop.f32.mrf.mxu1 }
0x15ed   : > { %v27022_v46 = vpop.f32.mrf.mxu0  ;;  %27080 = vmatmul.mubr.msk.f32.gmra.mxu0 %vm1351_vm2, %v20430_v57  ;;  %v33023_v57 = vld [vmem:[#allocation18_spill] sm:$0xff] }
0x15ee   : > { %v22271_v38 = vpop.permute.xlu0 %22270  ;;  %v20582_v34 = vpop.f32.mrf.mxu1 }
0x15ef   : > { %27160 = vmatpush3.xpose.msk.msra.mxu1 %vm1351_vm2, %v22271_v38  ;;  %v22191_v28 = vpop.permute.xlu1 %22190 }
0x15f0   : > { %27169 = vmatprep.subr.mxu1 %v32697_v22  ;;  %v27037_v37 = vpop.f32.mrf.mxu1 }
0x15f2   : > { %v22269_v4 = vpop.permute.xlu0 %22268 }
0x15f3   : > { %27162 = vmatmul.mubr.msk.f32.vlgmr.msra.gmra.mxu1 %vm1351_vm2, %v22269_v4  ;;  %v22349_v25 = vpop.permute.xlu1 %22348 }
0x15f4   : > { %27171 = vmatprep.mubr.msk.f32.mxu1 %vm27872_vm1, %v32697_v22 }
0x15f6   : > { %v22427_v7 = vpop.permute.xlu0 %22426  ;;  %v20734_v8 = vpop.f32.mrf.mxu1 }
0x15f7   : > { %27170 = vmatpush3.xpose.msk.msra.mxu1 %vm1351_vm2, %v22427_v7  ;;  %v22347_v45 = vpop.permute.xlu1 %22346  ;;  %v33025_v7 = vld [vmem:[#allocation28_spill] sm:$0xff] }
0x15f8   : > { %27179 = vmatprep.subr.mxu1 %v32697_v22  ;;  %v27047_v10 = vpop.f32.mrf.mxu1 }
0x15fa   : > { %v22425_v12 = vpop.permute.xlu0 %22424 }
0x15fb   : > { %27172 = vmatmul.mubr.msk.f32.vlgmr.msra.gmra.mxu1 %vm1351_vm2, %v22425_v12  ;;  %v33026_v12 = vld [vmem:[#allocation37_spill] sm:$0xff] }
0x15fc   : > { %27181 = vmatprep.mubr.msk.f32.mxu1 %vm27872_vm1, %v32697_v22 }
0x15fe   : > { %v20886_v16 = vpop.f32.mrf.mxu1 }
0x1600   : > { %v27057_v20 = vpop.f32.mrf.mxu1 }
0x167b   : > { %v20506_v41 = vpop.f32.mrf.mxu0 }
0x167c   : > { %v21038_v50 = vpop.f32.mrf.mxu1  ;;  %27082 = vmatprep.mubr.msk.f32.mxu0 %vm1351_vm2, %v20506_v41 }
0x167d   : > { %v27032_v31 = vpop.f32.mrf.mxu0  ;;  %27083 = vmatmul.mubr.msk.f32.gmra.mxu0 %vm1351_vm2, %v20582_v34  ;;  %v33024_v34 = vld [vmem:[#allocation57_spill] sm:$0xff] }
0x167e   : > { %v27067_v60 = vpop.f32.mrf.mxu1 }
0x167f   : > { %v20658_v56 = vpop.f32.mrf.mxu0 }
0x1680   : > { %27085 = vmatprep.mubr.msk.f32.mxu0 %vm1351_vm2, %v20658_v56  ;;  %v33028_v56 = vld [vmem:[#allocation70_spill] sm:$0xff] }
0x1681   : > { %v31924_v15 = vpop.f32.mrf.mxu1  ;;  %v27042_v54 = vpop.f32.mrf.mxu0  ;;  %27086 = vmatmul.mubr.msk.f32.gmra.mxu0 %vm1351_vm2, %v20734_v8 }
0x1682   : > { %v22502_v40 = vsel %vm2568_vm3, %v31924_v15, -inf }
0x1683   : > { %22503 = vmax.xlane.f32.xlu1 %v22502_v40  ;;  %v27098_v42 = vpop.f32.mrf.mxu1  ;;  %v20810_v11 = vpop.f32.mrf.mxu0 }
0x1684   : > { %27088 = vmatprep.mubr.msk.f32.mxu0 %vm1351_vm2, %v20810_v11 }
0x1685   : > { %v31930_v0 = vpop.f32.mrf.mxu1  ;;  %v27052_v26 = vpop.f32.mrf.mxu0  ;;  %27089 = vmatmul.mubr.msk.f32.gmra.mxu0 %vm1351_vm2, %v20886_v16 }
0x1686   : > { %v22505_v51 = vsel %vm2568_vm3, %v31930_v0, -inf }
0x1687   : > { %22506 = vmax.xlane.f32.xlu0 %v22505_v51  ;;  %v27103_v55 = vpop.f32.mrf.mxu1  ;;  %v20962_v32 = vpop.f32.mrf.mxu0 }
0x1688   : > { %27091 = vmatprep.mubr.msk.f32.mxu0 %vm1351_vm2, %v20962_v32 }
0x1689   : > { %v31936_v2 = vpop.f32.mrf.mxu1  ;;  %v27062_v61 = vpop.f32.mrf.mxu0  ;;  %27092 = vmatmul.mubr.msk.f32.gmra.mxu0 %vm1351_vm2, %v21038_v50 }
0x168a   : > { %v22508_v39 = vsel %vm2568_vm3, %v31936_v2, -inf  ;;  %27136 = vmatprep.mubr.msk.f32.mxu0 %vm27872_vm1, %v32697_v22 }
0x168b   : > { %22509 = vmax.xlane.f32.xlu0 %v22508_v39  ;;  %v27108_v49 = vpop.f32.mrf.mxu1 }
0x168d   : > { %v31943_v9 = vpop.f32.mrf.mxu1  ;;  %27137 = vmatmul.mubr.msk.f32.vlgmr.msra.gmra.mxu0 %vm1351_vm2, %v21879_v27 }
0x168e   : > { %27145 = vmatpush3.xpose.msk.msra.mxu0 %vm1351_vm2, %v22037_v33  ;;  %v22511_v36 = vsel %vm2568_vm3, %v31943_v9, -inf  ;;  %27146 = vmatprep.mubr.msk.f32.mxu0 %vm27872_vm1, %v32697_v22  ;;  %v33027_v33 = vld [vmem:[#allocation27_spill] sm:$0xff] }
0x168f   : > { %22512 = vmax.xlane.f32.xlu1 %v22511_v36  ;;  %v27113_v35 = vpop.f32.mrf.mxu1  ;;  %27154 = vmatprep.subr.mxu0 %v32697_v22 }
0x1691   : > { %v31952_v3 = vpop.f32.mrf.mxu1  ;;  %27147 = vmatmul.mubr.msk.f32.vlgmr.msra.gmra.mxu0 %vm1351_vm2, %v22035_v58 }
0x1692   : > { %27155 = vmatpush3.xpose.msk.msra.mxu0 %vm1351_vm2, %v22193_v19  ;;  %v22514_v62 = vsel %vm2568_vm3, %v31952_v3, -inf  ;;  %27156 = vmatprep.mubr.msk.f32.mxu0 %vm27872_vm1, %v32697_v22 }
0x1693   : > { %22515 = vmax.xlane.f32.xlu0 %v22514_v62  ;;  %v27118_v43 = vpop.f32.mrf.mxu1  ;;  %27164 = vmatprep.subr.mxu0 %v32697_v22 }
0x1695   : > { %v31961_v63 = vpop.f32.mrf.mxu1  ;;  %27157 = vmatmul.mubr.msk.f32.vlgmr.msra.gmra.mxu0 %vm1351_vm2, %v22191_v28 }
0x1696   : > { %27165 = vmatpush3.xpose.msk.msra.mxu0 %vm1351_vm2, %v22349_v25  ;;  %v22517_v6 = vsel %vm2568_vm3, %v31961_v63, -inf  ;;  %27166 = vmatprep.mubr.msk.f32.mxu0 %vm27872_vm1, %v32697_v22 }
0x1697   : > { %22518 = vmax.xlane.f32.xlu1 %v22517_v6  ;;  %v27123_v30 = vpop.f32.mrf.mxu1  ;;  %27174 = vmatprep.subr.mxu0 %v32697_v22 }
0x1699   : > { %v31970_v23 = vpop.f32.mrf.mxu1  ;;  %27167 = vmatmul.mubr.msk.f32.vlgmr.msra.gmra.mxu0 %vm1351_vm2, %v22347_v45 }
0x169a   : > { %v22520_v14 = vsel %vm2568_vm3, %v31970_v23, -inf  ;;  %27176 = vmatprep.mubr.msk.f32.mxu0 %vm27872_vm1, %v32697_v22 }
0x169b   : > { %22521 = vmax.xlane.f32.xlu0 %v22520_v14  ;;  %v27128_v47 = vpop.f32.mrf.mxu1 }
0x169d   : > { %v21874_v52 = vpop.f32.mrf.mxu1 }
0x169e   : > { %v22523_v17 = vsel %vm2568_vm3, %v21874_v52, -inf }
0x169f   : > { %22524 = vmax.xlane.f32.xlu1 %v22523_v17  ;;  %v27133_v48 = vpop.f32.mrf.mxu1 }
0x16a1   : > { %v27072_v1 = vpop.f32.mrf.mxu0 }
0x16a2   : > { %v31979_v13 = vadd.f32 %v27072_v1, %v33022_v44 }
0x16a3   : > { %v21159_v21 = vpop.f32.mrf.mxu0  ;;  %v22030_v24 = vpop.f32.mrf.mxu1 }
0x16a4   : > { %v31982_v29 = vadd.f32 %v21159_v21, %v33023_v57  ;;  %v22529_v59 = vsel %vm2568_vm3, %v22030_v24, -inf  ;;  %v32030_v21 = vld [vmem:[%s32559_s11] ss:$0 sm:$0xff]  ;;  %v33029_v57 = vld [vmem:[#allocation19_spill] sm:$0xff] }
0x16a5   : > { %v27075_v46 = vpop.f32.mrf.mxu0  ;;  %22530 = vmax.xlane.f32.xlu1 %v22529_v59  ;;  %v27143_v38 = vpop.f32.mrf.mxu1 }
0x16a6   : > { %v31986_v37 = vadd.f32 %v27075_v46, %v33024_v34  ;;  %v33030_v46 = vld [vmem:[#allocation62_spill] sm:$0xff] }
0x16a7   : > { %v21169_v4 = vpop.f32.mrf.mxu0  ;;  %v33031_v34 = vld [vmem:[#allocation66_spill] sm:$0xff] }
0x16a8   : > { %v31989_v8 = vadd.f32 %v21169_v4, %v33025_v7 }
0x16a9   : > { %v27078_v10 = vpop.f32.mrf.mxu0 }
0x16aa   : > { %v31992_v16 = vadd.f32 %v27078_v10, %v33026_v12  ;;  %v33032_v10 = vld [vmem:[#allocation73_spill] sm:$0xff] }
0x16ab   : > { %v21179_v20 = vpop.f32.mrf.mxu0  ;;  %v22186_v27 = vpop.f32.mrf.mxu1 }
0x16ac   : > { %v31995_v41 = vadd.f32 %v21179_v20, %v33027_v33  ;;  %v22535_v50 = vsel %vm2568_vm3, %v22186_v27, -inf }
0x16ad   : > { %v27081_v31 = vpop.f32.mrf.mxu0  ;;  %22536 = vmax.xlane.f32.xlu1 %v22535_v50  ;;  %v27153_v60 = vpop.f32.mrf.mxu1  ;;  %v33033_v50 = vld [vmem:[#allocation81_spill] sm:$0xff] }
0x16ae   : > { %v31999_v58 = vadd.f32 %v27081_v31, %v33028_v56 }
0x16af   : > { %v32042_v60 = vpop.f32.mrf.mxu0 }
0x16b3   : > { %v32001_v54 = vpop.f32.mrf.mxu1 }
0x16b4   : > { %v22541_v40 = vsel %vm2568_vm3, %v32001_v54, -inf }
0x16b5   : > { %22542 = vmax.xlane.f32.xlu1 %v22541_v40  ;;  %v27163_v42 = vpop.f32.mrf.mxu1  ;;  %v33034_v40 = vld [vmem:[#allocation89_spill] sm:$0xff] }
0x16bb   : > { %v32005_v11 = vpop.f32.mrf.mxu1 }
0x16bc   : > { %v22547_v26 = vsel %vm2568_vm3, %v32005_v11, -inf }
0x16bd   : > { %22548 = vmax.xlane.f32.xlu1 %v22547_v26  ;;  %v27173_v19 = vpop.f32.mrf.mxu1 }
0x16be   : > { %v33035_v19 = vld [vmem:[#allocation50_spill] sm:$0xff] }
0x170c   : > { %v22504_v51 = vpop.xlane.xlu1 %22503 }
0x170d   : > { %v22550_v55 = vsub.f32 %v31924_v15, %v22504_v51 }
0x170f   : > { %v22566_v32 = vmul.f32 1.442695, %v22550_v55 }
0x1710   : > { %v22507_v61 = vpop.xlane.xlu0 %22506 }
0x1711   : > { %27791 = vpow2.f32 %v22566_v32  ;;  %v22551_v39 = vsub.f32 %v31930_v0, %v22507_v61 }
0x1713   : > { %v22568_v49 = vmul.f32 1.442695, %v22551_v39 }
0x1715   : > { %27793 = vpow2.f32 %v22568_v49 }
0x1718   : > { %v22513_v28 = vpop.xlane.xlu1 %22512 }
0x1719   : > { %v22553_v36 = vsub.f32 %v31943_v9, %v22513_v28 }
0x171b   : > { %v22572_v35 = vmul.f32 1.442695, %v22553_v36 }
0x171d   : > { %27795 = vpow2.f32 %v22572_v35 }
0x171e   : > { %v32012_v25 = vpop.eup %27791 }
0x171f   : > { %v22598_v62 = vsel %vm2568_vm3, %v32012_v25, 0.0 }
0x1720   : > { %v22519_v43 = vpop.xlane.xlu1 %22518  ;;  %22599 = vadd.xlane.f32.xlu0 %v22598_v62 }
0x1721   : > { %v22555_v15 = vsub.f32 %v31961_v63, %v22519_v43  ;;  %v33037_v43 = vld [vmem:[#allocation29_spill] sm:$0xff] }
0x1722   : > { %v32017_v6 = vpop.eup %27793 }
0x1723   : > { %v22576_v30 = vmul.f32 1.442695, %v22555_v15  ;;  %v22601_v0 = vsel %vm2568_vm3, %v32017_v6, 0.0 }
0x1724   : > { %22602 = vadd.xlane.f32.xlu1 %v22601_v0 }
0x1725   : > { %27797 = vpow2.f32 %v22576_v30  ;;  %v22510_v30 = vpop.xlane.xlu0 %22509 }
0x1728   : > { %v22525_v9 = vpop.xlane.xlu1 %22524 }
0x1729   : > { %v22557_v45 = vsub.f32 %v21874_v52, %v22525_v9  ;;  %v1327_v52 = vadd.f32 %v32030_v21, %v33029_v57  ;;  %v33038_v9 = vld [vmem:[#allocation45_spill] sm:$0xff] }
0x172a   : > { %v32021_v14 = vpop.eup %27795 }
0x172b   : > { %v22580_v47 = vmul.f32 1.442695, %v22557_v45  ;;  %v22607_v17 = vsel %vm2568_vm3, %v32021_v14, 0.0  ;;  %v4118_v38 = vadd.f32 %v33030_v46, %v1327_v52  ;;  %v33040_v52 = vld [vmem:[#allocation85_spill] sm:$0xff] }
0x172c   : > { %22608 = vadd.xlane.f32.xlu1 %v22607_v17  ;;  %v33039_v17 = vld [vmem:[#allocation77_spill] sm:$0xff] }
0x172d   : > { %27799 = vpow2.f32 %v22580_v47  ;;  %v22552_v47 = vsub.f32 %v31936_v2, %v22510_v30 }
0x172e   : > { %v22531_v48 = vpop.xlane.xlu1 %22530 }
0x172f   : > { %v22559_v63 = vsub.f32 %v22030_v24, %v22531_v48  ;;  %v6986_v24 = vadd.f32 %v33031_v34, %v4118_v38  ;;  %v22570_v34 = vmul.f32 1.442695, %v22552_v47  ;;  %v33043_v47 = vld [vmem:[#allocation58_spill] sm:$0xff] }
0x1731   : > { %v22584_v1 = vmul.f32 1.442695, %v22559_v63  ;;  %v9838_v12 = vadd.f32 %v33032_v10, %v6986_v24  ;;  %v22516_v63 = vpop.xlane.xlu0 %22515 }
0x1732   : > { %v32025_v44 = vpop.eup %27797  ;;  %v22554_v24 = vsub.f32 %v31952_v3, %v22516_v63  ;;  %v33044_v63 = vld [vmem:[#allocation60_spill] sm:$0xff] }
0x1733   : > { %27801 = vpow2.f32 %v22584_v1  ;;  %v22613_v59 = vsel %vm2568_vm3, %v32025_v44, 0.0  ;;  %v12690_v31 = vadd.f32 %v33033_v50, %v9838_v12  ;;  %v33042_v12 = vld [vmem:[#allocation78_spill] sm:$0xff] }
0x1734   : > { %22614 = vadd.xlane.f32.xlu1 %v22613_v59 }
0x1735   : > { %v15542_v42 = vadd.f32 %v33034_v40, %v12690_v31  ;;  %v22522_v2 = vpop.xlane.xlu0 %22521  ;;  %v22574_v31 = vmul.f32 1.442695, %v22554_v24  ;;  %v33050_v24 = vld [vmem:[#allocation47_spill] sm:$0xff] }
0x1736   : > { %v22537_v4 = vpop.xlane.xlu1 %22536 }
0x1737   : > { %v22561_v7 = vsub.f32 %v22186_v27, %v22537_v4  ;;  %v18394_v51 = vadd.f32 %v33035_v19, %v15542_v42  ;;  %v33036_v27 = vld [vmem:[#allocation39_spill] sm:$0xff]  ;;  %v33041_v4 = vld [vmem:[#allocation41_spill] sm:$0xff] }
0x1739   : > { %v22588_v20 = vmul.f32 1.442695, %v22561_v7 }
0x173a   : > { %v32039_v33 = vpop.eup %27799 }
0x173b   : > { %27803 = vpow2.f32 %v22588_v20  ;;  %v22619_v56 = vsel %vm2568_vm3, %v32039_v33, 0.0 }
0x173c   : > { %22620 = vadd.xlane.f32.xlu1 %v22619_v56  ;;  %v22556_v56 = vsub.f32 %v31970_v23, %v22522_v2 }
0x173d   : > { %v27084_v26 = vpop.f32.mrf.mxu0 }
0x173e   : > { %v32049_v55 = vadd.f32 %v27084_v26, %v33036_v27  ;;  %v22543_v32 = vpop.xlane.xlu1 %22542 }
0x173f   : > { %v22563_v61 = vsub.f32 %v32001_v54, %v22543_v32  ;;  %v21199_v39 = vpop.f32.mrf.mxu0 }
0x1740   : > { %v32052_v49 = vpop.eup %27801  ;;  %v32054_v28 = vadd.f32 %v21199_v39, %v18394_v51  ;;  %v22578_v51 = vmul.f32 1.442695, %v22556_v56  ;;  %v33053_v56 = vld [vmem:[#allocation49_spill] sm:$0xff] }
0x1741   : > { %v22592_v36 = vmul.f32 1.442695, %v22563_v61  ;;  %v27087_v35 = vpop.f32.mrf.mxu0  ;;  %v22625_v62 = vsel %vm2568_vm3, %v32052_v49, 0.0 }
0x1742   : > { %v32059_v15 = vadd.f32 %v27087_v35, %v33037_v43  ;;  %22626 = vadd.xlane.f32.xlu1 %v22625_v62 }
0x1743   : > { %27805 = vpow2.f32 %v22592_v36  ;;  %v21209_v0 = vpop.f32.mrf.mxu0 }
0x1744   : > { %v32062_v45 = vadd.f32 %v21209_v0, %v33038_v9  ;;  %27807 = vpow2.f32 %v22570_v34  ;;  %v33049_v34 = vld [vmem:[#allocation38_spill] sm:$0xff] }
0x1745   : > { %v27090_v54 = vpop.f32.mrf.mxu0  ;;  %27809 = vpow2.f32 %v22574_v31 }
0x1746   : > { %v32066_v48 = vadd.f32 %v27090_v54, %v33039_v17  ;;  %27811 = vpow2.f32 %v22578_v51  ;;  %v22549_v2 = vpop.xlane.xlu1 %22548 }
0x1747   : > { %v21219_v1 = vpop.f32.mrf.mxu0 }
0x1748   : > { %v32068_v57 = vpop.eup %27803  ;;  %v32071_v59 = vadd.f32 %v21219_v1, %v33040_v52  ;;  %v33045_v1 = vld [vmem:[#allocation34_spill] sm:$0xff]  ;;  %v33046_v52 = vld [vmem:[#allocation36_spill] sm:$0xff] }
0x1749   : > { %v27093_v46 = vpop.f32.mrf.mxu0  ;;  %v22631_v38 = vsel %vm2568_vm3, %v32068_v57, 0.0 }
0x174a   : > { %v32077_v7 = vadd.f32 %v27093_v46, %v33041_v4  ;;  %22632 = vadd.xlane.f32.xlu1 %v22631_v38  ;;  %v33047_v46 = vld [vmem:[#allocation35_spill] sm:$0xff]  ;;  %v33048_v38 = vld [vmem:[#allocation40_spill] sm:$0xff]  ;;  %v33051_v4 = vld [vmem:[#allocation46_spill] sm:$0xff] }
0x174b   : > { %v21229_v10 = vpop.f32.mrf.mxu0 }
0x174c   : > { %v32080_v20 = vadd.f32 %v21229_v10, %v33042_v12  ;;  %v22565_v10 = vsub.f32 %v32005_v11, %v22549_v2  ;;  %v33052_v12 = vld [vmem:[#allocation43_spill] sm:$0xff] }
0x174d   : > { %v32082_v50 = vpop.f32.mrf.mxu0 }
0x174e   : > { %v22526_v40 = vsel %vm2568_vm3, %v32082_v50, -inf  ;;  %v22596_v31 = vmul.f32 1.442695, %v22565_v10 }
0x174f   : > { %v27138_v42 = vpop.f32.mrf.mxu0  ;;  %22527 = vmax.xlane.f32.xlu0 %v22526_v40  ;;  %v33054_v40 = vld [vmem:[#allocation55_spill] sm:$0xff] }
0x1750   : > { %v32087_v3 = vpop.eup %27805  ;;  %27813 = vpow2.f32 %v22596_v31  ;;  %v33055_v42 = vld [vmem:[#allocation53_spill] sm:$0xff] }
0x1751   : > { %v32089_v26 = vpop.f32.mrf.mxu0  ;;  %v22637_v19 = vsel %vm2568_vm3, %v32087_v3, 0.0  ;;  %v32103_v62 = vpop.eup %27807 }
0x1752   : > { %22638 = vadd.xlane.f32.xlu1 %v22637_v19  ;;  %v22532_v27 = vsel %vm2568_vm3, %v32089_v26, -inf  ;;  %v22604_v30 = vsel %vm2568_vm3, %v32103_v62, 0.0  ;;  %v32107_v0 = vpop.eup %27809 }
0x1753   : > { %v27148_v32 = vpop.f32.mrf.mxu0  ;;  %22533 = vmax.xlane.f32.xlu0 %v22532_v27  ;;  %v22610_v9 = vsel %vm2568_vm3, %v32107_v0, 0.0  ;;  %v32111_v54 = vpop.eup %27811 }
0x1754   : > { %v22616_v17 = vsel %vm2568_vm3, %v32111_v54, 0.0 }
0x1755   : > { %v32095_v23 = vpop.f32.mrf.mxu0 }
0x1756   : > { %v22538_v61 = vsel %vm2568_vm3, %v32095_v23, -inf }
0x1757   : > { %v27158_v39 = vpop.f32.mrf.mxu0  ;;  %22539 = vmax.xlane.f32.xlu0 %v22538_v61 }
0x1759   : > { %v32099_v36 = vpop.f32.mrf.mxu0 }
0x175a   : > { %v22544_v35 = vsel %vm2568_vm3, %v32099_v36, -inf }
0x175b   : > { %v27168_v43 = vpop.f32.mrf.mxu0  ;;  %22545 = vmax.xlane.f32.xlu0 %v22544_v35 }
0x175d   : > { %v32144_v19 = vpop.eup %27813 }
0x175e   : > { %v22643_v11 = vsel %vm2568_vm3, %v32144_v19, 0.0 }
0x175f   : > { %22605 = vadd.xlane.f32.xlu0 %v22604_v30 }
0x1763   : > { %22611 = vadd.xlane.f32.xlu0 %v22610_v9  ;;  %22754 = vrot.lane.b32.xlu1 %v33043_v47, %s27879_s18 }
0x1767   : > { %22617 = vadd.xlane.f32.xlu0 %v22616_v17  ;;  %22830 = vrot.lane.b32.xlu1 %v33044_v63, %s27879_s18 }
0x176b   : > { %22906 = vrot.lane.b32.xlu1 %v33045_v1, %s27879_s18 }
0x176f   : > { %22982 = vrot.lane.b32.xlu1 %v33046_v52, %s27879_s18 }
0x1773   : > { %23058 = vrot.lane.b32.xlu1 %v33047_v46, %s27879_s18 }
0x1777   : > { %23134 = vrot.lane.b32.xlu1 %v33048_v38, %s27879_s18 }
0x177b   : > { %23210 = vrot.lane.b32.xlu1 %v33049_v34, %s27879_s18 }
0x177d   : > { %22678 = vrot.lane.b32.xlu0 %v33050_v24, %s27879_s18 }
0x177f   : > { %23286 = vrot.lane.b32.xlu1 %v33051_v4, %s27879_s18 }
0x1783   : > { %23362 = vrot.lane.b32.xlu1 %v33052_v12, %s27879_s18 }
0x1787   : > { %23514 = vrot.lane.b32.xlu1 %v33053_v56, %s27879_s18 }
0x178b   : > { %23590 = vrot.lane.b32.xlu1 %v33054_v40, %s27879_s18 }
0x178f   : > { %23666 = vrot.lane.b32.xlu1 %v33055_v42, %s27879_s18 }
0x1793   : > { %23742 = vrot.lane.b32.xlu1 %v33017_v5, %s27879_s18 }
0x179c   : > { %22644 = vadd.xlane.f32.xlu0 %v22643_v11 }
0x17a9   : > { %v22600_v35 = vpop.xlane.xlu0 %22599 }
0x17ad   : > { %v22603_v51 = vpop.xlane.xlu1 %22602 }
0x17ae   : > { %27815 = vrcp.f32 %v22603_v51 }
0x17b5   : > { %v22609_v27 = vpop.xlane.xlu1 %22608 }
0x17b6   : > { %27817 = vrcp.f32 %v22609_v27 }
0x17bb   : > { %v27816_v17 = vpop.eup %27815 }
0x17bc   : > { %v22649_v52 = vmul.f32 %v27816_v17, %v32017_v6 }
0x17bd   : > { %v22615_v32 = vpop.xlane.xlu1 %22614 }
0x17c5   : > { %v22621_v61 = vpop.xlane.xlu1 %22620 }
0x17cb   : > { %v22627_v39 = vpop.xlane.xlu1 %22626 }
0x17d3   : > { %v22633_v43 = vpop.xlane.xlu1 %22632 }
0x17d8   : > { %v22528_v30 = vpop.xlane.xlu0 %22527 }
0x17d9   : > { %v22558_v9 = vsub.f32 %v32082_v50, %v22528_v30 }
0x17db   : > { %v22582_v47 = vmul.f32 1.442695, %v22558_v9  ;;  %v32149_v5 = vpop.xlane.xlu1 %22638 }
0x17dc   : > { %v22534_v63 = vpop.xlane.xlu0 %22533 }
0x17dd   : > { %27819 = vpow2.f32 %v22582_v47  ;;  %v22560_v1 = vsub.f32 %v32089_v26, %v22534_v63  ;;  %v27818_v26 = vpop.eup %27817 }
0x17de   : > { %27821 = vrcp.f32 %v22615_v32  ;;  %v22653_v10 = vmul.f32 %v27818_v26, %v32021_v14 }
0x17df   : > { %v22586_v46 = vmul.f32 1.442695, %v22560_v1  ;;  %v22755_v38 = vpop.permute.xlu1 %22754 }
0x17e0   : > { %v22540_v34 = vpop.xlane.xlu0 %22539  ;;  %27180 = vmatpush3.msra.mxu1 %v22755_v38 }
0x17e1   : > { %27823 = vpow2.f32 %v22586_v46  ;;  %v22562_v24 = vsub.f32 %v32095_v23, %v22540_v34  ;;  %27182 = vmatmul.mubr.msk.f32.vlgmr.msra.gmra.mxu1 %vm2568_vm3, %v22649_v52  ;;  %27189 = vmatprep.subr.mxu1 %v32697_v22 }
0x17e2   : > { %27191 = vmatprep.mubr.msk.f32.mxu1 %vm27872_vm1, %v32697_v22  ;;  %27825 = vrcp.f32 %v22600_v35 }
0x17e3   : > { %v22590_v50 = vmul.f32 1.442695, %v22562_v24  ;;  %v22831_v4 = vpop.permute.xlu1 %22830 }
0x17e4   : > { %v22546_v6 = vpop.xlane.xlu0 %22545 }
0x17e5   : > { %27827 = vpow2.f32 %v22590_v50  ;;  %v22564_v2 = vsub.f32 %v32099_v36, %v22546_v6 }
0x17e6   : > { %27829 = vrcp.f32 %v22621_v61 }
0x17e7   : > { %v22594_v12 = vmul.f32 1.442695, %v22564_v2  ;;  %v22907_v23 = vpop.permute.xlu1 %22906 }
0x17e8   : > { %v22606_v31 = vpop.xlane.xlu0 %22605  ;;  %27190 = vmatpush3.msra.mxu1 %v22907_v23 }
0x17e9   : > { %27831 = vpow2.f32 %v22594_v12  ;;  %27192 = vmatmul.mubr.msk.f32.vlgmr.msra.gmra.mxu1 %vm2568_vm3, %v22653_v10  ;;  %27199 = vmatprep.subr.mxu1 %v32697_v22 }
0x17ea   : > { %v32162_v56 = vpop.eup %27819  ;;  %27833 = vrcp.f32 %v22606_v31  ;;  %27201 = vmatprep.mubr.msk.f32.mxu1 %vm27872_vm1, %v32697_v22 }
0x17eb   : > { %v22983_v40 = vpop.permute.xlu1 %22982  ;;  %v22622_v14 = vsel %vm2568_vm3, %v32162_v56, 0.0  ;;  %v27822_v36 = vpop.eup %27821 }
0x17ec   : > { %v22612_v42 = vpop.xlane.xlu0 %22611  ;;  %22623 = vadd.xlane.f32.xlu0 %v22622_v14  ;;  %v22657_v51 = vmul.f32 %v27822_v36, %v32025_v44 }
0x17ed   : > { %27835 = vrcp.f32 %v22612_v42 }
0x17ee   : > { %v32168_v11 = vpop.eup %27823  ;;  %27837 = vrcp.f32 %v22627_v39 }
0x17ef   : > { %v23059_v27 = vpop.permute.xlu1 %23058  ;;  %v22628_v32 = vsel %vm2568_vm3, %v32168_v11, 0.0  ;;  %v27826_v35 = vpop.eup %27825 }
0x17f0   : > { %v22618_v61 = vpop.xlane.xlu0 %22617  ;;  %22629 = vadd.xlane.f32.xlu0 %v22628_v32  ;;  %27200 = vmatpush3.msra.mxu1 %v23059_v27  ;;  %v22647_v47 = vmul.f32 %v27826_v35, %v32012_v25 }
0x17f1   : > { %27839 = vrcp.f32 %v22618_v61  ;;  %27202 = vmatmul.mubr.msk.f32.vlgmr.msra.gmra.mxu1 %vm2568_vm3, %v22657_v51  ;;  %27209 = vmatprep.subr.mxu1 %v32697_v22 }
0x17f2   : > { %v32175_v30 = vpop.eup %27827  ;;  %27211 = vmatprep.mubr.msk.f32.mxu1 %vm27872_vm1, %v32697_v22  ;;  %27841 = vrcp.f32 %v22633_v43 }
0x17f3   : > { %v23135_v44 = vpop.permute.xlu1 %23134  ;;  %v22634_v39 = vsel %vm2568_vm3, %v32175_v30, 0.0  ;;  %v27830_v9 = vpop.eup %27829  ;;  %27843 = vrcp.f32 %v32149_v5 }
0x17f4   : > { %v22679_v17 = vpop.permute.xlu0 %22678  ;;  %22635 = vadd.xlane.f32.xlu0 %v22634_v39  ;;  %v22661_v52 = vmul.f32 %v27830_v9, %v32039_v33 }
0x17f5   : > { %27175 = vmatpush3.msra.mxu0 %v22679_v17 }
0x17f6   : > { %v32182_v63 = vpop.eup %27831  ;;  %27177 = vmatmul.mubr.msk.f32.vlgmr.msra.gmra.mxu0 %vm2568_vm3, %v22647_v47  ;;  %27184 = vmatprep.subr.mxu0 %v32697_v22 }
0x17f7   : > { %v27834_v1 = vpop.eup %27833  ;;  %27185 = vmatpush3.msra.mxu0 %v22831_v4  ;;  %v23211_v43 = vpop.permute.xlu1 %23210  ;;  %v22640_v46 = vsel %vm2568_vm3, %v32182_v63, 0.0  ;;  %27186 = vmatprep.mubr.msk.f32.mxu0 %vm27872_vm1, %v32697_v22 }
0x17f8   : > { %v22651_v25 = vmul.f32 %v27834_v1, %v32103_v62  ;;  %22641 = vadd.xlane.f32.xlu1 %v22640_v46  ;;  %27210 = vmatpush3.msra.mxu1 %v23211_v43 }
0x17f9   : > { %27194 = vmatprep.subr.mxu0 %v32697_v22  ;;  %27212 = vmatmul.mubr.msk.f32.vlgmr.msra.gmra.mxu1 %vm2568_vm3, %v22661_v52 }
0x17fa   : > { %v27836_v38 = vpop.eup %27835  ;;  %27187 = vmatmul.mubr.msk.f32.vlgmr.msra.gmra.mxu0 %vm2568_vm3, %v22651_v25  ;;  %27219 = vmatprep.subr.mxu1 %v32697_v22 }
0x17fb   : > { %v22655_v33 = vmul.f32 %v27836_v38, %v32107_v0  ;;  %27195 = vmatpush3.msra.mxu0 %v22983_v40  ;;  %v23287_v34 = vpop.permute.xlu1 %23286  ;;  %27196 = vmatprep.mubr.msk.f32.mxu0 %vm27872_vm1, %v32697_v22  ;;  %v27838_v62 = vpop.eup %27837 }
0x17fc   : > { %27204 = vmatprep.subr.mxu0 %v32697_v22  ;;  %27221 = vmatprep.mubr.msk.f32.mxu1 %vm27872_vm1, %v32697_v22  ;;  %v22665_v50 = vmul.f32 %v27838_v62, %v32052_v49 }
0x17fe   : > { %v27840_v24 = vpop.eup %27839  ;;  %27197 = vmatmul.mubr.msk.f32.vlgmr.msra.gmra.mxu0 %vm2568_vm3, %v22655_v33 }
0x17ff   : > { %v22659_v5 = vmul.f32 %v27840_v24, %v32111_v54  ;;  %27205 = vmatpush3.msra.mxu0 %v23135_v44  ;;  %v23363_v0 = vpop.permute.xlu1 %23362  ;;  %27206 = vmatprep.mubr.msk.f32.mxu0 %vm27872_vm1, %v32697_v22  ;;  %v27842_v4 = vpop.eup %27841 }
0x1800   : > { %27220 = vmatpush3.msra.mxu1 %v23363_v0  ;;  %27214 = vmatprep.subr.mxu0 %v32697_v22  ;;  %v22669_v49 = vmul.f32 %v27842_v4, %v32068_v57  ;;  %v27844_v6 = vpop.eup %27843  ;;  %v33056_v57 = vld [vmem:[#allocation51_spill] sm:$0xff] }
0x1801   : > { %27222 = vmatmul.mubr.msk.f32.vlgmr.msra.gmra.mxu1 %vm2568_vm3, %v22665_v50  ;;  %27229 = vmatprep.subr.mxu1 %v32697_v22  ;;  %v22673_v2 = vmul.f32 %v27844_v6, %v32087_v3 }
0x1802   : > { %27207 = vmatmul.mubr.msk.f32.vlgmr.msra.gmra.mxu0 %vm2568_vm3, %v22659_v5  ;;  %27231 = vmatprep.mubr.msk.f32.mxu1 %vm27872_vm1, %v32697_v22 }
0x1803   : > { %27215 = vmatpush3.msra.mxu0 %v23287_v34  ;;  %v23515_v54 = vpop.permute.xlu1 %23514  ;;  %27216 = vmatprep.mubr.msk.f32.mxu0 %vm27872_vm1, %v32697_v22 }
0x1804   : > { %27230 = vmatpush3.msra.mxu1 %v23515_v54  ;;  %27224 = vmatprep.subr.mxu0 %v32697_v22 }
0x1805   : > { %27232 = vmatmul.mubr.msk.f32.vlgmr.msra.gmra.mxu1 %vm2568_vm3, %v22669_v49  ;;  %27239 = vmatprep.subr.mxu1 %v32697_v22 }
0x1806   : > { %27241 = vmatprep.mubr.msk.f32.mxu1 %vm27872_vm1, %v32697_v22 }
0x1807   : > { %v23591_v26 = vpop.permute.xlu1 %23590 }
0x1809   : > { %23818 = vrot.lane.b32.xlu1 %v32741_v53, %s27879_s18 }
0x180a   : > { %23438 = vrot.lane.b32.xlu0 %v33056_v57, %s27879_s18 }
0x180b   : > { %v23667_v10 = vpop.permute.xlu1 %23666 }
0x180c   : > { %27240 = vmatpush3.msra.mxu1 %v23667_v10 }
0x180d   : > { %27242 = vmatmul.mubr.msk.f32.vlgmr.msra.gmra.mxu1 %vm2568_vm3, %v22673_v2  ;;  %27249 = vmatprep.subr.mxu1 %v32697_v22 }
0x180e   : > { %27251 = vmatprep.mubr.msk.f32.mxu1 %vm27872_vm1, %v32697_v22 }
0x180f   : > { %v23743_v53 = vpop.permute.xlu1 %23742 }
0x1825   : > { %v22645_v12 = vpop.xlane.xlu0 %22644 }
0x1826   : > { %27845 = vrcp.f32 %v22645_v12 }
0x1833   : > { %v27846_v3 = vpop.eup %27845 }
0x1834   : > { %v22677_v51 = vmul.f32 %v27846_v3, %v32144_v19  ;;  %v23894_v19 = vrot.slane %v31851_v18, 4 }
0x1875   : > { %v22624_v23 = vpop.xlane.xlu0 %22623 }
0x1876   : > { %27847 = vrcp.f32 %v22624_v23 }
0x1879   : > { %v22630_v31 = vpop.xlane.xlu0 %22629 }
0x187a   : > { %27849 = vrcp.f32 %v22630_v31 }
0x187d   : > { %v22636_v40 = vpop.xlane.xlu0 %22635 }
0x187e   : > { %27851 = vrcp.f32 %v22636_v40 }
0x1881   : > { %v22642_v14 = vpop.xlane.xlu1 %22641  ;;  %v23439_v32 = vpop.permute.xlu0 %23438 }
0x1882   : > { %27853 = vrcp.f32 %v22642_v14 }
0x1883   : > { %v27848_v36 = vpop.eup %27847 }
0x1884   : > { %v22663_v42 = vmul.f32 %v27848_v36, %v32162_v56 }
0x1885   : > { %v23819_v27 = vpop.permute.xlu1 %23818 }
0x1886   : > { %27217 = vmatmul.mubr.msk.f32.vlgmr.msra.gmra.mxu0 %vm2568_vm3, %v22663_v42  ;;  %27250 = vmatpush3.msra.mxu1 %v23819_v27 }
0x1887   : > { %v27850_v61 = vpop.eup %27849  ;;  %27225 = vmatpush3.msra.mxu0 %v23439_v32  ;;  %27252 = vmatmul.mubr.msk.f32.vlgmr.msra.gmra.mxu1 %vm2568_vm3, %v22677_v51  ;;  %v33057_v51 = vld [vmem:[#allocation32_spill] sm:$0xff] }
0x1888   : > { %v22667_v35 = vmul.f32 %v27850_v61, %v32168_v11  ;;  %27226 = vmatprep.mubr.msk.f32.mxu0 %vm27872_vm1, %v32697_v22  ;;  %27234 = vmatprep.subr.mxu0 %v32697_v22  ;;  %v1325_v27 = vadd.f32 %v32030_v21, %v33057_v51 }
0x188a   : > { %27227 = vmatmul.mubr.msk.f32.vlgmr.msra.gmra.mxu0 %vm2568_vm3, %v22667_v35 }
0x188b   : > { %v27852_v56 = vpop.eup %27851  ;;  %27235 = vmatpush3.msra.mxu0 %v23591_v26  ;;  %27236 = vmatprep.mubr.msk.f32.mxu0 %vm27872_vm1, %v32697_v22 }
0x188c   : > { %v22671_v44 = vmul.f32 %v27852_v56, %v32175_v30  ;;  %27244 = vmatprep.subr.mxu0 %v32697_v22  ;;  %v33058_v56 = vld [vmem:[#allocation33_spill] sm:$0xff] }
0x188e   : > { %27237 = vmatmul.mubr.msk.f32.vlgmr.msra.gmra.mxu0 %vm2568_vm3, %v22671_v44 }
0x188f   : > { %v27854_v11 = vpop.eup %27853  ;;  %27245 = vmatpush3.msra.mxu0 %v23743_v53  ;;  %27246 = vmatprep.mubr.msk.f32.mxu0 %vm27872_vm1, %v32697_v22 }
0x1890   : > { %v22675_v39 = vmul.f32 %v27854_v11, %v32182_v63  ;;  %27254 = vmatprep.subr.msk.mxu0 %vm3961_vm4, %v23894_v19  ;;  %v33059_v11 = vld [vmem:[#allocation20_spill] sm:$0xff] }
0x1892   : > { %27247 = vmatmul.mubr.msk.f32.vlgmr.msra.gmra.mxu0 %vm2568_vm3, %v22675_v39 }
0x1893   : > { %27255 = vmatpush3.msk.msra.mxu0 %vm3961_vm4, %v23894_v19  ;;  %v4116_v19 = vadd.f32 %v33058_v56, %v1325_v27 }
0x1895   : > { %v6984_v39 = vadd.f32 %v33059_v11, %v4116_v19 }
0x18a1   : > { %v22826_v18 = vpop.f32.mrf.mxu1 }
0x18a3   : > { %v27183_v9 = vpop.f32.mrf.mxu1 }
0x18a4   : > { %v33060_v9 = vld [vmem:[#allocation72_spill] sm:$0xff] }
0x18a9   : > { %v22978_v30 = vpop.f32.mrf.mxu1 }
0x18ab   : > { %v27193_v47 = vpop.f32.mrf.mxu1 }
0x18b1   : > { %v23130_v17 = vpop.f32.mrf.mxu1 }
0x18b3   : > { %v27203_v1 = vpop.f32.mrf.mxu1 }
0x18b6   : > { %v22750_v52 = vpop.f32.mrf.mxu0 }
0x18b7   : > { %27256 = vmatprep.mubr.msk.f32.mxu0 %vm1351_vm2, %v22750_v52 }
0x18b8   : > { %v27178_v43 = vpop.f32.mrf.mxu0  ;;  %27257 = vmatmul.mubr.msk.f32.vlgmr.msra.gmra.mxu0 %vm1351_vm2, %v22826_v18 }
0x18b9   : > { %v23282_v22 = vpop.f32.mrf.mxu1 }
0x18ba   : > { %v22902_v63 = vpop.f32.mrf.mxu0 }
0x18bb   : > { %v27213_v46 = vpop.f32.mrf.mxu1  ;;  %27259 = vmatprep.mubr.msk.f32.mxu0 %vm1351_vm2, %v22902_v63 }
0x18bc   : > { %v27188_v25 = vpop.f32.mrf.mxu0  ;;  %27260 = vmatmul.mubr.msk.f32.gmra.mxu0 %vm1351_vm2, %v22978_v30  ;;  %v9836_v30 = vadd.f32 %v33060_v9, %v6984_v39 }
0x18be   : > { %v23054_v38 = vpop.f32.mrf.mxu0 }
0x18bf   : > { %27262 = vmatprep.mubr.msk.f32.mxu0 %vm1351_vm2, %v23054_v38  ;;  %v33063_v38 = vld [vmem:[#allocation30_spill] sm:$0xff] }
0x18c0   : > { %v27198_v33 = vpop.f32.mrf.mxu0  ;;  %27263 = vmatmul.mubr.msk.f32.gmra.mxu0 %vm1351_vm2, %v23130_v17  ;;  %v33061_v17 = vld [vmem:[#allocation80_spill] sm:$0xff] }
0x18c1   : > { %v23434_v34 = vpop.f32.mrf.mxu1  ;;  %v12688_v1 = vadd.f32 %v33061_v17, %v9836_v30 }
0x18c2   : > { %v23206_v62 = vpop.f32.mrf.mxu0 }
0x18c3   : > { %v27223_v24 = vpop.f32.mrf.mxu1  ;;  %27265 = vmatprep.mubr.msk.f32.mxu0 %vm1351_vm2, %v23206_v62 }
0x18c4   : > { %v27208_v50 = vpop.f32.mrf.mxu0  ;;  %27266 = vmatmul.mubr.msk.f32.gmra.mxu0 %vm1351_vm2, %v23282_v22  ;;  %v33062_v22 = vld [vmem:[#allocation88_spill] sm:$0xff] }
0x18c5   : > { %v23586_v5 = vpop.f32.mrf.mxu1  ;;  %v15540_v63 = vadd.f32 %v33062_v22, %v12688_v1 }
0x18c7   : > { %v27233_v0 = vpop.f32.mrf.mxu1  ;;  %v18392_v33 = vadd.f32 %v33063_v38, %v15540_v63 }
0x18c9   : > { %v21244_v62 = vadd.f32 %v32042_v60, %v18392_v33 }
0x18cd   : > { %v23738_v4 = vpop.f32.mrf.mxu1 }
0x18cf   : > { %v27243_v49 = vpop.f32.mrf.mxu1 }
0x1946   : > { %v23358_v54 = vpop.f32.mrf.mxu0 }
0x1947   : > { %v23890_v26 = vpop.f32.mrf.mxu1  ;;  %27268 = vmatprep.mubr.msk.f32.mxu0 %vm1351_vm2, %v23358_v54 }
0x1948   : > { %v27218_v6 = vpop.f32.mrf.mxu0  ;;  %27269 = vmatmul.mubr.msk.f32.gmra.mxu0 %vm1351_vm2, %v23434_v34 }
0x1949   : > { %v27253_v57 = vpop.f32.mrf.mxu1 }
0x194a   : > { %v23510_v2 = vpop.f32.mrf.mxu0 }
0x194b   : > { %27271 = vmatprep.mubr.msk.f32.mxu0 %vm1351_vm2, %v23510_v2 }
0x194c   : > { %v27228_v10 = vpop.f32.mrf.mxu0  ;;  %27272 = vmatmul.mubr.msk.f32.gmra.mxu0 %vm1351_vm2, %v23586_v5 }
0x194e   : > { %v23662_v12 = vpop.f32.mrf.mxu0 }
0x194f   : > { %27274 = vmatprep.mubr.msk.f32.mxu0 %vm1351_vm2, %v23662_v12 }
0x1950   : > { %v27238_v23 = vpop.f32.mrf.mxu0  ;;  %27275 = vmatmul.mubr.msk.f32.gmra.mxu0 %vm1351_vm2, %v23738_v4 }
0x1952   : > { %v23814_v31 = vpop.f32.mrf.mxu0 }
0x1953   : > { %27277 = vmatprep.mubr.msk.f32.mxu0 %vm1351_vm2, %v23814_v31 }
0x1954   : > { %v27248_v53 = vpop.f32.mrf.mxu0  ;;  %27278 = vmatmul.mubr.msk.f32.gmra.mxu0 %vm1351_vm2, %v23890_v26 }
0x1978   : > { %v27258_v40 = vpop.f32.mrf.mxu0 }
0x1979   : > { %v32274_v32 = vadd.f32 %v27258_v40, %v31979_v13 }
0x197a   : > { %v24011_v14 = vpop.f32.mrf.mxu0 }
0x197b   : > { %v32269_v42 = vadd.f32 %v24011_v14, %v31982_v29  ;;  %v24107_v29 = vsel %vm504_vm0, %v32274_v32, 0.0 }
0x197c   : > { %v27261_v3 = vpop.f32.mrf.mxu0 }
0x197d   : > { %v24106_v44 = vsel %vm504_vm0, %v32269_v42, 0.0 }
0x197e   : > { %v24021_v36 = vpop.f32.mrf.mxu0  ;;  %v24108_v18 = vadd.f32 %v24107_v29, %v24106_v44 }
0x197f   : > { %v32277_v61 = vadd.f32 %v24021_v36, %v31989_v8  ;;  %v32289_v8 = vadd.f32 %v27261_v3, %v31986_v37 }
0x1980   : > { %v27264_v35 = vpop.f32.mrf.mxu0 }
0x1981   : > { %v24109_v21 = vsel %vm504_vm0, %v32277_v61, 0.0  ;;  %v24111_v46 = vsel %vm504_vm0, %v32289_v8, 0.0  ;;  %v24095_v24 = vadd.f32 %v27264_v35, %v31992_v16 }
0x1982   : > { %v24031_v13 = vpop.f32.mrf.mxu0  ;;  %v24110_v47 = vadd.f32 %v24109_v21, %v24108_v18 }
0x1983   : > { %v32293_v52 = vadd.f32 %v24031_v13, %v31995_v41  ;;  %v24115_v5 = vsel %vm504_vm0, %v24095_v24, 0.0 }
0x1984   : > { %v27267_v43 = vpop.f32.mrf.mxu0  ;;  %v24112_v25 = vadd.f32 %v24111_v46, %v24110_v47 }
0x1985   : > { %v24113_v34 = vsel %vm504_vm0, %v32293_v52, 0.0  ;;  %v32309_v49 = vadd.f32 %v27267_v43, %v31999_v58 }
0x1986   : > { %v24041_v37 = vpop.f32.mrf.mxu0  ;;  %v24114_v50 = vadd.f32 %v24113_v34, %v24112_v25 }
0x1987   : > { %v32303_v41 = vadd.f32 %v24041_v37, %v21244_v62  ;;  %v24119_v60 = vsel %vm504_vm0, %v32309_v49, 0.0 }
0x1988   : > { %v24116_v0 = vadd.f32 %v24115_v5, %v24114_v50 }
0x1989   : > { %v24117_v4 = vsel %vm504_vm0, %v32303_v41, 0.0 }
0x198a   : > { %v24118_v54 = vadd.f32 %v24117_v4, %v24116_v0 }
0x198c   : > { %v24120_v2 = vadd.f32 %v24119_v60, %v24118_v54 }
0x1a08   : > { %v27270_v26 = vpop.f32.mrf.mxu0 }
0x1a09   : > { %v32314_v16 = vadd.f32 %v27270_v26, %v32049_v55 }
0x1a0a   : > { %v24051_v6 = vpop.f32.mrf.mxu0 }
0x1a0b   : > { %v32317_v57 = vadd.f32 %v24051_v6, %v32054_v28  ;;  %v24123_v31 = vsel %vm504_vm0, %v32314_v16, 0.0 }
0x1a0c   : > { %v27273_v10 = vpop.f32.mrf.mxu0 }
0x1a0d   : > { %v24121_v12 = vsel %vm504_vm0, %v32317_v57, 0.0  ;;  %v32324_v53 = vadd.f32 %v27273_v10, %v32059_v15 }
0x1a0e   : > { %v24122_v23 = vadd.f32 %v24121_v12, %v24120_v2  ;;  %v24061_v58 = vpop.f32.mrf.mxu0 }
0x1a0f   : > { %v32327_v40 = vadd.f32 %v24061_v58, %v32062_v45  ;;  %v24127_v51 = vsel %vm504_vm0, %v32324_v53, 0.0 }
0x1a10   : > { %v24124_v55 = vadd.f32 %v24123_v31, %v24122_v23  ;;  %v27276_v14 = vpop.f32.mrf.mxu0 }
0x1a11   : > { %v24125_v28 = vsel %vm504_vm0, %v32327_v40, 0.0  ;;  %v32334_v27 = vadd.f32 %v27276_v14, %v32066_v48 }
0x1a12   : > { %v24126_v3 = vadd.f32 %v24125_v28, %v24124_v55  ;;  %v24071_v36 = vpop.f32.mrf.mxu0 }
0x1a13   : > { %v32337_v35 = vadd.f32 %v24071_v36, %v32071_v59  ;;  %v24131_v11 = vsel %vm504_vm0, %v32334_v27, 0.0 }
0x1a14   : > { %v24128_v15 = vadd.f32 %v24127_v51, %v24126_v3  ;;  %v27279_v56 = vpop.f32.mrf.mxu0 }
0x1a15   : > { %v24129_v45 = vsel %vm504_vm0, %v32337_v35, 0.0  ;;  %v32344_v39 = vadd.f32 %v27279_v56, %v32077_v7 }
0x1a16   : > { %v24130_v19 = vadd.f32 %v24129_v45, %v24128_v15  ;;  %v24081_v44 = vpop.f32.mrf.mxu0 }
0x1a17   : > { %v32347_v29 = vadd.f32 %v24081_v44, %v32080_v20  ;;  %v24135_v18 = vsel %vm504_vm0, %v32344_v39, 0.0 }
0x1a18   : > { %v24132_v48 = vadd.f32 %v24131_v11, %v24130_v19 }
0x1a19   : > { %v24133_v59 = vsel %vm504_vm0, %v32347_v29, 0.0 }
0x1a1a   : > { %v24134_v21 = vadd.f32 %v24133_v59, %v24132_v48 }
0x1a1c   : > { %v24136_v13 = vadd.f32 %v24135_v18, %v24134_v21 }
0x1a1e   : > { %24137 = vadd.xlane.f32.xlu1 %v24136_v13 }
0x1aa7   : > { %v24138_v9 = vpop.xlane.xlu1 %24137 }
0x1aa8   : > { %v24139_v30 = vrot.slane %v24138_v9, 4 }
0x1aaa   : > { %v24140_v47 = vadd.f32 %v24139_v30, %v24138_v9 }
0x1aac   : > { %v24141_v17 = vrot.slane %v24140_v47, 2 }
0x1aae   : > { %v24142_v1 = vadd.f32 %v24141_v17, %v24140_v47 }
0x1ab0   : > { %v24143_v7 = vrot.slane %v24142_v1, 1 }
0x1ab2   : > { %v24144_v43 = vadd.f32 %v24143_v7, %v24142_v1 }
0x1ab4   : > { %27288 = vpush %v24144_v43 }
0x1ae5   : > { %s27289_s23 = spop %27288 }
0x1ae6   : > { %s24148_s24 = smul.f32 0.00024414063, %s27289_s23 }
0x1ae8   : > { %v24149_v20 = vstv %s24148_s24 }
0x1ae9   : > { %v32354_v22 = vsub.f32 %v32269_v42, %v24149_v20  ;;  %v32357_v63 = vsub.f32 %v32274_v32, %v24149_v20  ;;  %v32360_v46 = vsub.f32 %v32277_v61, %v24149_v20  ;;  %v32363_v25 = vsub.f32 %v32289_v8, %v24149_v20 }
0x1aea   : > { %v32370_v34 = vsub.f32 %v32293_v52, %v24149_v20  ;;  %v32374_v32 = vsub.f32 %v24095_v24, %v24149_v20  ;;  %v32381_v50 = vsub.f32 %v32303_v41, %v24149_v20  ;;  %v32387_v24 = vsub.f32 %v32309_v49, %v24149_v20 }
0x1aeb   : > { %v24166_v38 = vmul.f32 %v32354_v22, %v32354_v22  ;;  %v24167_v33 = vmul.f32 %v32357_v63, %v32357_v63  ;;  %v24168_v42 = vmul.f32 %v32360_v46, %v32360_v46  ;;  %v24169_v61 = vmul.f32 %v32363_v25, %v32363_v25 }
0x1aec   : > { %v24170_v52 = vmul.f32 %v32370_v34, %v32370_v34  ;;  %v24171_v4 = vmul.f32 %v32374_v32, %v32374_v32  ;;  %v32393_v6 = vsub.f32 %v32317_v57, %v24149_v20  ;;  %v24172_v41 = vmul.f32 %v32381_v50, %v32381_v50 }
0x1aed   : > { %v24182_v8 = vsel %vm504_vm0, %v24166_v38, 0.0  ;;  %v24183_v37 = vsel %vm504_vm0, %v24167_v33, 0.0  ;;  %v24185_v5 = vsel %vm504_vm0, %v24168_v42, 0.0  ;;  %v24187_v54 = vsel %vm504_vm0, %v24169_v61, 0.0 }
0x1aee   : > { %v24184_v62 = vadd.f32 %v24183_v37, %v24182_v8  ;;  %v24189_v60 = vsel %vm504_vm0, %v24170_v52, 0.0  ;;  %v32399_v10 = vsub.f32 %v32314_v16, %v24149_v20  ;;  %v24173_v49 = vmul.f32 %v32387_v24, %v32387_v24 }
0x1aef   : > { %v24191_v12 = vsel %vm504_vm0, %v24171_v4, 0.0  ;;  %v32405_v58 = vsub.f32 %v32327_v40, %v24149_v20  ;;  %v24174_v57 = vmul.f32 %v32393_v6, %v32393_v6  ;;  %v24193_v31 = vsel %vm504_vm0, %v24172_v41, 0.0 }
0x1af0   : > { %v24186_v0 = vadd.f32 %v24185_v5, %v24184_v62  ;;  %v32411_v14 = vsub.f32 %v32324_v53, %v24149_v20  ;;  %v24175_v16 = vmul.f32 %v32399_v10, %v32399_v10  ;;  %v24195_v28 = vsel %vm504_vm0, %v24173_v49, 0.0 }
0x1af1   : > { %v32417_v36 = vsub.f32 %v32337_v35, %v24149_v20  ;;  %v24176_v40 = vmul.f32 %v32405_v58, %v32405_v58  ;;  %v24197_v51 = vsel %vm504_vm0, %v24174_v57, 0.0  ;;  %v32423_v56 = vsub.f32 %v32334_v27, %v24149_v20 }
0x1af2   : > { %v24188_v26 = vadd.f32 %v24187_v54, %v24186_v0  ;;  %v24177_v53 = vmul.f32 %v32411_v14, %v32411_v14  ;;  %v24199_v45 = vsel %vm504_vm0, %v24175_v16, 0.0  ;;  %v32429_v44 = vsub.f32 %v32347_v29, %v24149_v20  ;;  %v32453_v0 = vld [vmem:[%s32560_s12] ss:$0 sm:$0xff] }
0x1af3   : > { %v24178_v35 = vmul.f32 %v32417_v36, %v32417_v36  ;;  %v24201_v11 = vsel %vm504_vm0, %v24176_v40, 0.0  ;;  %v32435_v59 = vsub.f32 %v32344_v39, %v24149_v20  ;;  %v24179_v27 = vmul.f32 %v32423_v56, %v32423_v56 }
0x1af4   : > { %v24190_v2 = vadd.f32 %v24189_v60, %v24188_v26  ;;  %v24203_v21 = vsel %vm504_vm0, %v24177_v53, 0.0  ;;  %v24180_v13 = vmul.f32 %v32429_v44, %v32429_v44  ;;  %v32462_v26 = vld [vmem:[%s32561_s13] ss:$0 sm:$0xff]  ;;  %v33067_v53 = vld [vmem:[#allocation5_spill] sm:$0xff] }
0x1af5   : > { %v24205_v29 = vsel %vm504_vm0, %v24178_v35, 0.0  ;;  %v24181_v30 = vmul.f32 %v32435_v59, %v32435_v59  ;;  %v24207_v47 = vsel %vm504_vm0, %v24179_v27, 0.0 }
0x1af6   : > { %v24192_v23 = vadd.f32 %v24191_v12, %v24190_v2  ;;  %v24209_v39 = vsel %vm504_vm0, %v24180_v13, 0.0  ;;  %v33064_v12 = vld [vmem:[#allocation2_spill] sm:$0xff] }
0x1af7   : > { %v24211_v7 = vsel %vm504_vm0, %v24181_v30, 0.0  ;;  %v33070_v30 = vld [vmem:[#allocation8_spill] sm:$0xff] }
0x1af8   : > { %v24194_v55 = vadd.f32 %v24193_v31, %v24192_v23  ;;  %v33065_v31 = vld [vmem:[#allocation3_spill] sm:$0xff] }
0x1afa   : > { %v24196_v3 = vadd.f32 %v24195_v28, %v24194_v55 }
0x1afc   : > { %v24198_v15 = vadd.f32 %v24197_v51, %v24196_v3  ;;  %v33066_v3 = vld [vmem:[#allocation4_spill] sm:$0xff] }
0x1afe   : > { %v24200_v19 = vadd.f32 %v24199_v45, %v24198_v15 }
0x1b00   : > { %v24202_v48 = vadd.f32 %v24201_v11, %v24200_v19  ;;  %v33068_v11 = vld [vmem:[#allocation6_spill] sm:$0xff] }
0x1b02   : > { %v24204_v18 = vadd.f32 %v24203_v21, %v24202_v48 }
0x1b04   : > { %v24206_v9 = vadd.f32 %v24205_v29, %v24204_v18  ;;  %v33069_v18 = vld [vmem:[#allocation7_spill] sm:$0xff] }
0x1b06   : > { %v24208_v17 = vadd.f32 %v24207_v47, %v24206_v9 }
0x1b08   : > { %v24210_v1 = vadd.f32 %v24209_v39, %v24208_v17 }
0x1b0a   : > { %v24212_v43 = vadd.f32 %v24211_v7, %v24210_v1  ;;  %v33071_v1 = vld [vmem:[#allocation9_spill] sm:$0xff] }
0x1b0c   : > { %24213 = vadd.xlane.f32.xlu0 %v24212_v43 }
0x1b95   : > { %v24214_v20 = vpop.xlane.xlu0 %24213 }
0x1b96   : > { %v24215_v38 = vrot.slane %v24214_v20, 4 }
0x1b98   : > { %v24216_v33 = vadd.f32 %v24215_v38, %v24214_v20  ;;  %v33072_v38 = vld [vmem:[#allocation10_spill] sm:$0xff] }
0x1b9a   : > { %v24217_v42 = vrot.slane %v24216_v33, 2 }
0x1b9c   : > { %v24218_v61 = vadd.f32 %v24217_v42, %v24216_v33 }
0x1b9e   : > { %v24219_v8 = vrot.slane %v24218_v61, 1 }
0x1ba0   : > { %v24220_v37 = vadd.f32 %v24219_v8, %v24218_v61  ;;  %v33073_v8 = vld [vmem:[#allocation11_spill] sm:$0xff] }
0x1ba2   : > { %27290 = vpush %v24220_v37 }
0x1bd3   : > { %s27291_s25 = spop %27290 }
0x1bd4   : > { %s24224_s26 = smul.f32 0.00024414063, %s27291_s25 }
0x1bd6   : > { %s24225_s27 = sadd.f32 1e-12, %s24224_s26 }
0x1bd8   : > { %v24226_v62 = vstv %s24225_s27 }
0x1bd9   : > { %27855 = vrsqrt.f32 %v24226_v62 }
0x1be6   : > { %v27856_v52 = vpop.eup %27855 }
0x1be7   : > { %27292 = vpush %v27856_v52 }
0x1c18   : > { %s27293_s28 = spop %27292 }
0x1c19   : > { %v32448_v5 = vstv %s27293_s28 }
0x1c1a   : > { %v24230_v4 = vmul.f32 %v32448_v5, %v32354_v22  ;;  %v24231_v54 = vmul.f32 %v32448_v5, %v32357_v63  ;;  %v24232_v2 = vmul.f32 %v32448_v5, %v32360_v46  ;;  %v24233_v57 = vmul.f32 %v32448_v5, %v32363_v25 }
0x1c1b   : > { %v24234_v46 = vmul.f32 %v32448_v5, %v32370_v34  ;;  %v24235_v25 = vmul.f32 %v32448_v5, %v32374_v32  ;;  %v24236_v34 = vmul.f32 %v32448_v5, %v32381_v50  ;;  %v24237_v32 = vmul.f32 %v32448_v5, %v32387_v24 }
0x1c1c   : > { %v24253_v41 = vmul.f32 %v32453_v0, %v24230_v4  ;;  %v24254_v60 = vmul.f32 %v32453_v0, %v24231_v54  ;;  %v24255_v63 = vmul.f32 %v32453_v0, %v24232_v2  ;;  %v24256_v28 = vmul.f32 %v32453_v0, %v24233_v57  ;;  %v33074_v4 = vld [vmem:[#allocation12_spill] sm:$0xff]  ;;  %v33075_v2 = vld [vmem:[#allocation13_spill] sm:$0xff] }
0x1c1d   : > { %v24257_v15 = vmul.f32 %v32453_v0, %v24234_v46  ;;  %v24258_v35 = vmul.f32 %v32453_v0, %v24235_v25  ;;  %v24259_v21 = vmul.f32 %v32453_v0, %v24236_v34  ;;  %v24260_v9 = vmul.f32 %v32453_v0, %v24237_v32 }
0x1c1e   : > { %v24276_v49 = vadd.f32 %v32462_v26, %v24253_v41  ;;  %v24277_v22 = vadd.f32 %v32462_v26, %v24254_v60  ;;  %v24278_v16 = vadd.f32 %v32462_v26, %v24255_v63  ;;  %v24279_v51 = vadd.f32 %v32462_v26, %v24256_v28 }
0x1c1f   : > { %v24280_v19 = vadd.f32 %v32462_v26, %v24257_v15  ;;  %v24281_v27 = vadd.f32 %v32462_v26, %v24258_v35  ;;  %v24282_v29 = vadd.f32 %v32462_v26, %v24259_v21  ;;  %v24238_v50 = vmul.f32 %v32448_v5, %v32393_v6 }
0x1c20   : > { %v24292_v23 = vadd.f32 %v24276_v49, %v33064_v12  ;;  %v24293_v55 = vadd.f32 %v24277_v22, %v33065_v31  ;;  %v24294_v40 = vadd.f32 %v24278_v16, %v33066_v3  ;;  %v24295_v45 = vadd.f32 %v24279_v51, %v33067_v53  ;;  %v33076_v22 = vld [vmem:[#allocation14_spill] sm:$0xff]  ;;  %v33079_v51 = vld [vmem:[#allocation17_spill] sm:$0xff] }
0x1c21   : > { %v24296_v48 = vadd.f32 %v24280_v19, %v33068_v11  ;;  %v24297_v13 = vadd.f32 %v24281_v27, %v33069_v18  ;;  %v24298_v47 = vadd.f32 %v24282_v29, %v33070_v30  ;;  %v24283_v17 = vadd.f32 %v32462_v26, %v24260_v9 }
0x1c22   : > { %24308 = vxpose.xlu0.b32.start [1/16] (narrow) %v24292_v23, 32  ;;  %v24261_v39 = vmul.f32 %v32453_v0, %v24238_v50  ;;  %v24239_v24 = vmul.f32 %v32448_v5, %v32399_v10  ;;  %v24240_v6 = vmul.f32 %v32448_v5, %v32405_v58  ;;  %v24241_v10 = vmul.f32 %v32448_v5, %v32411_v14 }
0x1c23   : > { %v24299_v7 = vadd.f32 %v24283_v17, %v33071_v1  ;;  %v24242_v58 = vmul.f32 %v32448_v5, %v32417_v36  ;;  %v24243_v14 = vmul.f32 %v32448_v5, %v32423_v56  ;;  %v24244_v36 = vmul.f32 %v32448_v5, %v32429_v44  ;;  %v33078_v44 = vld [vmem:[#allocation16_spill] sm:$0xff] }
0x1c24   : > { %v24284_v43 = vadd.f32 %v32462_v26, %v24261_v39  ;;  %v24262_v20 = vmul.f32 %v32453_v0, %v24239_v24  ;;  %v24263_v61 = vmul.f32 %v32453_v0, %v24240_v6  ;;  %v24264_v52 = vmul.f32 %v32453_v0, %v24241_v10 }
0x1c25   : > { %v24265_v60 = vmul.f32 %v32453_v0, %v24242_v58  ;;  %v24266_v23 = vmul.f32 %v32453_v0, %v24243_v14  ;;  %v24267_v31 = vmul.f32 %v32453_v0, %v24244_v36  ;;  %v24245_v56 = vmul.f32 %v32448_v5, %v32435_v59 }
0x1c26   : > { %24309 = vxpose.xlu0.b32.cont [2/16] (narrow) %v24293_v55, 32  ;;  %v24300_v33 = vadd.f32 %v24284_v43, %v33072_v38  ;;  %v24285_v42 = vadd.f32 %v32462_v26, %v24262_v20  ;;  %v24286_v62 = vadd.f32 %v32462_v26, %v24263_v61  ;;  %v24287_v41 = vadd.f32 %v32462_v26, %v24264_v52  ;;  %v33077_v55 = vld [vmem:[#allocation15_spill] sm:$0xff] }
0x1c27   : > { %v24288_v12 = vadd.f32 %v32462_v26, %v24265_v60  ;;  %v24289_v57 = vadd.f32 %v32462_v26, %v24266_v23  ;;  %v24290_v28 = vadd.f32 %v32462_v26, %v24267_v31  ;;  %v24268_v46 = vmul.f32 %v32453_v0, %v24245_v56 }
0x1c28   : > { %v24301_v37 = vadd.f32 %v24285_v42, %v33073_v8  ;;  %v24302_v54 = vadd.f32 %v24286_v62, %v33074_v4  ;;  %v24303_v49 = vadd.f32 %v24287_v41, %v33075_v2 }
0x1c29   : > { %v24304_v63 = vadd.f32 %v24288_v12, %v33076_v22  ;;  %v24305_v16 = vadd.f32 %v24289_v57, %v33077_v55  ;;  %v24306_v3 = vadd.f32 %v24290_v28, %v33078_v44 }
0x1c2a   : > { %24310 = vxpose.xlu0.b32.cont [3/16] (narrow) %v24294_v40, 32  ;;  %v24291_v40 = vadd.f32 %v32462_v26, %v24268_v46 }
0x1c2c   : > { %v24307_v15 = vadd.f32 %v24291_v40, %v33079_v51 }
0x1c2e   : > { %24311 = vxpose.xlu0.b32.cont [4/16] (narrow) %v24295_v45, 32 }
0x1c32   : > { %24312 = vxpose.xlu0.b32.cont [5/16] (narrow) %v24296_v48, 32 }
0x1c36   : > { %24313 = vxpose.xlu0.b32.cont [6/16] (narrow) %v24297_v13, 32 }
0x1c3a   : > { %24314 = vxpose.xlu0.b32.cont [7/16] (narrow) %v24298_v47, 32 }
0x1c3e   : > { %24315 = vxpose.xlu0.b32.cont [8/16] (narrow) %v24299_v7, 32 }
0x1c42   : > { %24316 = vxpose.xlu0.b32.cont [9/16] (narrow) %v24300_v33, 32 }
0x1c46   : > { %24317 = vxpose.xlu0.b32.cont [10/16] (narrow) %v24301_v37, 32 }
0x1c4a   : > { %24318 = vxpose.xlu0.b32.cont [11/16] (narrow) %v24302_v54, 32 }
0x1c4e   : > { %24319 = vxpose.xlu0.b32.cont [12/16] (narrow) %v24303_v49, 32 }
0x1c52   : > { %24320 = vxpose.xlu0.b32.cont [13/16] (narrow) %v24304_v63, 32 }
0x1c56   : > { %24321 = vxpose.xlu0.b32.cont [14/16] (narrow) %v24305_v16, 32 }
0x1c5a   : > { %24322 = vxpose.xlu0.b32.cont [15/16] (narrow) %v24306_v3, 32 }
0x1c5e   : > { %24323 = vxpose.xlu0.b32.end [16/16] (narrow) %v24307_v15, 32 }
0x1c9e   : > { %v24324_v59 = vpop.trf.xlu0 }
0x1c9f   : > { %24340 = vst [vmem:[%s467_s22] sm:$0xff] %v24324_v59 }
0x1ca2   : > { %v24325_v5 = vpop.trf.xlu0 }
0x1ca3   : > { %24341 = vst [vmem:[%s467_s22 + $0x8] sm:$0xff] %v24325_v5 }
0x1ca6   : > { %v24326_v25 = vpop.trf.xlu0 }
0x1ca7   : > { %24342 = vst [vmem:[%s467_s22 + $0x10] sm:$0xff] %v24326_v25 }
0x1caa   : > { %v24327_v0 = vpop.trf.xlu0 }
0x1cab   : > { %24343 = vst [vmem:[%s467_s22 + $0x18] sm:$0xff] %v24327_v0 }
0x1cac PF: > { %s24_s29 = sadd.s32 1, %s27869_s29  }
0x1cad   : > { %p21_p4 = scmp.ge.s32.totalorder %s24_s29, 4  }
0x1caf   :  { %23 = sbr.rel (!%p21_p4) target bundleno = 1 (0x1), region = 106 }

</bundles_post_ra>
